<compile_context>
chip_gen: v5e
topology: v5e:2x2
jax: 0.10.0
libtpu: 0.0.40
codegen_flags: <defaults>
</compile_context>

<pallas_src>
import functools

import jax
import jax.numpy as jnp
from jax import lax
from jax.experimental import pallas as pl
from jax.experimental.pallas import tpu as pltpu
import numpy as np


def _round_up(x, m):
    return (x + m - 1) // m * m


def _vmem_capacity_bytes():
    """Detected per-core VMEM capacity, with a conservative fallback."""
    try:
        return int(pltpu.get_tpu_info().vmem_capacity_bytes)
    except Exception:
        return 64 * 1024 * 1024  # v7x-sized fallback; safe on every generation


def _pick_batch_block(n, h, w, cp, act_itemsize, weight_bytes, vmem_budget):
    """Largest divisor of n (<= 8) whose per-step VMEM footprint fits budget.

    Counts: double-buffered bf16 input block, double-buffered bf16 output
    block, the bf16 conv-halo scratch, the two f32 accumulators, and the
    (nb-independent) double-buffered weight blocks.  Also prefers at least two
    grid steps so megacore sharding / pipelining has something to work with.
    """
    per_img = (2 * (h + 2) * (w + 2) * cp * act_itemsize   # input, 2 buffers
               + 2 * h * w * cp * act_itemsize             # output, 2 buffers
               + (h + 2) * (w + 2) * cp * act_itemsize     # bf16 halo scratch
               + 2 * h * w * cp * 4)                       # two f32 accumulators
    avail = max(vmem_budget - weight_bytes, per_img)
    cap = int(max(1, min(8, avail // max(per_img, 1))))

    best = 1
    for d in range(min(n, cap), 0, -1):
        if n % d == 0:
            best = d
            break
    # Keep both TensorCores busy / enable pipelining: want >= 2 grid steps.
    if n >= 2 and n // best < 2:
        for d in range(best, 0, -1):
            if n % d == 0 and n // d >= 2:
                best = d
                break
    return best


def _basic_block_kernel(xpad_ref, w1_ref, b1_ref, w2_ref, b2_ref, out_ref,
                        ypad_ref):
    """One grid step == `nb` images of the batch.

    xpad_ref : (nb, H+2, W+2, Cp) bf16 -- spatially + channel padded x
    w*_ref   : (9, Cp, Cp)        bf16 -- BN-scale-folded conv taps
    b*_ref   : (1, Cp)            f32  -- BN-folded biases
    out_ref  : (nb, H, W, Cp)     bf16 -- lane-dense NHWC output
    ypad_ref : (nb, H+2, W+2, Cp) bf16 scratch -- conv1 output with halo
    """
    nb, H, W, Cp = out_ref.shape
    M = nb * H
    sdt = ypad_ref.dtype

    # Zero ONLY the 1-pixel halo border of the conv2 scratch; the interior is
    # fully rewritten every step.  Done every step (cheap, bf16) so it stays
    # correct when the parallel batch axis is split across TensorCores, each
    # of which owns its own scratch instance.
    zrow = jnp.zeros((nb, 1, W + 2, Cp), sdt)
    zcol = jnp.zeros((nb, H + 2, 1, Cp), sdt)
    ypad_ref[:, 0:1, :, :] = zrow
    ypad_ref[:, H + 1:H + 2, :, :] = zrow
    ypad_ref[:, :, 0:1, :] = zcol
    ypad_ref[:, :, W + 1:W + 2, :] = zcol

    b1 = b1_ref[...]          # (1, Cp) f32, broadcasts over (M, W, Cp)
    b2 = b2_ref[...]

    # ---- conv1 (3x3, stride 1, pad 1) + folded BN1 + ReLU ----
    # All nb images ride in the matmul leading dims: 9 dots with M = nb*H*W
    # instead of 9*nb dots with M = H*W.  Reshapes only collapse leading
    # (non-tiled) dims, so they are free relabels.
    acc1 = jnp.zeros((M, W, Cp), jnp.float32)
    for kh in range(3):
        for kw in range(3):
            tap = xpad_ref[:, kh:kh + H, kw:kw + W, :].reshape(M, W, Cp)
            acc1 = acc1 + jnp.dot(tap, w1_ref[kh * 3 + kw],
                                  preferred_element_type=jnp.float32)
    y1 = jnp.maximum(acc1 + b1, 0.0).astype(sdt)     # single f32 -> bf16 cast
    ypad_ref[:, 1:H + 1, 1:W + 1, :] = y1.reshape(nb, H, W, Cp)

    # ---- conv2 (3x3, stride 1, pad 1) + folded BN2 ----
    acc2 = jnp.zeros((M, W, Cp), jnp.float32)
    for kh in range(3):
        for kw in range(3):
            tap = ypad_ref[:, kh:kh + H, kw:kw + W, :].reshape(M, W, Cp)
            acc2 = acc2 + jnp.dot(tap, w2_ref[kh * 3 + kw],
                                  preferred_element_type=jnp.float32)

    # ---- residual add (interior slice of the padded input) + ReLU ----
    # Note: the skip connection is taken from the bf16 activation copy, so it
    # is bf16-rounded (inference-grade; PyTorch keeps it f32).
    resid = xpad_ref[:, 1:H + 1, 1:W + 1, :].reshape(M, W, Cp).astype(jnp.float32)
    out = jnp.maximum(acc2 + b2 + resid, 0.0)
    out_ref[...] = out.reshape(nb, H, W, Cp).astype(out_ref.dtype)


def basic_block_forward(x_nchw, w1_oihw, w2_oihw,
                        g1, bt1, m1, v1, g2, bt2, m2, v2,
                        *, eps=1e-5, compute_dtype=jnp.bfloat16,
                        keep_nhwc_padded=False):
    """BasicBlock forward (inference BN). Takes PyTorch NCHW layout.

    Returns NCHW (input dtype) by default; with keep_nhwc_padded=True returns
    the kernel's lane-dense bf16 NHWC (channel-padded) activation directly,
    which is the layout a following fused layer should consume.
    """
    N, C, H, W = x_nchw.shape
    P = w1_oihw.shape[0]
    assert w1_oihw.shape == (P, C, 3, 3) and w2_oihw.shape == (P, P, 3, 3)
    assert C == P, "stride=1 / downsample=None BasicBlock requires inplanes == planes"

    Cp = _round_up(C, 128)    # lane-dense channel count
    # TODO(synk): for C <= 64 an im2col packing (K = 9*C) would use the padded
    # lanes for real work instead of zeros.

    # Fold BN (inference) into per-output-channel scale/bias, then fold the
    # scale into the conv weights.
    s1 = g1 / jnp.sqrt(v1 + eps)
    b1 = bt1 - m1 * s1
    s2 = g2 / jnp.sqrt(v2 + eps)
    b2 = bt2 - m2 * s2

    # OIHW -> HWIO -> (9, Cin, Cout), scale folded into Cout, zero-pad to Cp.
    w1_k = (jnp.transpose(w1_oihw, (2, 3, 1, 0)) * s1).reshape(9, C, P)
    w2_k = (jnp.transpose(w2_oihw, (2, 3, 1, 0)) * s2).reshape(9, P, P)
    w1_k = jnp.pad(w1_k, ((0, 0), (0, Cp - C), (0, Cp - P))).astype(compute_dtype)
    w2_k = jnp.pad(w2_k, ((0, 0), (0, Cp - P), (0, Cp - P))).astype(compute_dtype)
    b1_k = jnp.pad(b1, (0, Cp - P)).reshape(1, Cp).astype(jnp.float32)
    b2_k = jnp.pad(b2, (0, Cp - P)).reshape(1, Cp).astype(jnp.float32)

    # NCHW -> NHWC; ONE fused pad: +1 spatial halo and zero channels up to Cp.
    # This is the only activation array the kernel reads (the residual is its
    # interior slice), so activation bytes are DMA'd exactly once.
    x_nhwc = jnp.transpose(x_nchw, (0, 2, 3, 1))
    x_pad = jnp.pad(x_nhwc,
                    ((0, 0), (1, 1), (1, 1), (0, Cp - C))).astype(compute_dtype)

    act_itemsize = jnp.dtype(compute_dtype).itemsize
    weight_bytes = 2 * 2 * 9 * Cp * Cp * act_itemsize   # 2 tensors x 2 buffers
    vmem_cap = _vmem_capacity_bytes()
    nb = _pick_batch_block(N, H, W, Cp, act_itemsize, weight_bytes,
                           vmem_budget=int(vmem_cap * 0.6))
    vmem_limit = int(min(int(vmem_cap * 0.75), vmem_cap - (2 << 20)))

    grid = (N // nb,)
    grid_spec = pltpu.PrefetchScalarGridSpec(
        num_scalar_prefetch=0,
        grid=grid,
        in_specs=[
            pl.BlockSpec((nb, H + 2, W + 2, Cp), lambda i: (i, 0, 0, 0)),  # x_pad
            pl.BlockSpec((9, Cp, Cp), lambda i: (0, 0, 0)),                # w1
            pl.BlockSpec((1, Cp), lambda i: (0, 0)),                       # b1
            pl.BlockSpec((9, Cp, Cp), lambda i: (0, 0, 0)),                # w2
            pl.BlockSpec((1, Cp), lambda i: (0, 0)),                       # b2
        ],
        out_specs=pl.BlockSpec((nb, H, W, Cp), lambda i: (i, 0, 0, 0)),
        scratch_shapes=[pltpu.VMEM((nb, H + 2, W + 2, Cp), compute_dtype)],
    )

    out_pad = pl.pallas_call(
        _basic_block_kernel,
        out_shape=jax.ShapeDtypeStruct((N, H, W, Cp), compute_dtype),
        grid_spec=grid_spec,
        compiler_params=pltpu.CompilerParams(
            dimension_semantics=("parallel",),
            vmem_limit_bytes=vmem_limit),
    )(x_pad, w1_k, b1_k, w2_k, b2_k)

    if keep_nhwc_padded:
        return out_pad                      # (N, H, W, Cp) bf16, lane-dense
    # Drop the channel padding, back to PyTorch NCHW / input dtype.
    return jnp.transpose(out_pad[..., :C], (0, 3, 1, 2)).astype(x_nchw.dtype)


def _reference_forward_nchw(x, w1, w2, g1, bt1, m1, v1, g2, bt2, m2, v2, eps):
    """Pure-JAX reference of the PyTorch BasicBlock forward (inference BN)."""
    dn = ("NCHW", "OIHW", "NCHW")
    hp = lax.Precision.HIGHEST

    def bn(y, g, b, m, v):
        c = y.shape[1]
        rs = lambda t: t.reshape(1, c, 1, 1)
        return (y - rs(m)) / jnp.sqrt(rs(v) + eps) * rs(g) + rs(b)

    y = lax.conv_general_dilated(x, w1, (1, 1), "SAME",
                                 dimension_numbers=dn, precision=hp)
    y = jnp.maximum(bn(y, g1, bt1, m1, v1), 0.0)
    y2 = lax.conv_general_dilated(y, w2, (1, 1), "SAME",
                                  dimension_numbers=dn, precision=hp)
    y2 = bn(y2, g2, bt2, m2, v2)
    return jnp.maximum(y2 + x, 0.0)


if __name__ == "__main__":
    # Small shapes consistent with the module: batch=2, inplanes=planes=8,
    # spatial 16x16, stride=1, downsample=None.
    N, C, H, W = 2, 8, 16, 16
    P = C
    eps = 1e-5

    key = jax.random.PRNGKey(0)
    (k_x, k_w1, k_w2, k_g1, k_b1, k_m1, k_v1,
     k_g2, k_b2, k_m2, k_v2) = jax.random.split(key, 11)

    # Snap x / conv weights to bf16-representable values so the f32 reference
    # and the bf16-MXU kernel consume identical inputs (comparison then only
    # measures BN-folding + bf16 output + f32-accumulation rounding).
    def snap_bf16(a):
        return a.astype(jnp.bfloat16).astype(jnp.float32)

    x_nchw = snap_bf16(jax.random.normal(k_x, (N, C, H, W), jnp.float32))
    w1_oihw = snap_bf16(0.1 * jax.random.normal(k_w1, (P, C, 3, 3), jnp.float32))
    w2_oihw = snap_bf16(0.1 * jax.random.normal(k_w2, (P, P, 3, 3), jnp.float32))

    # BatchNorm parameters / running stats (inference mode), deterministic.
    g1 = 1.0 + 0.1 * jax.random.normal(k_g1, (P,), jnp.float32)
    bt1 = 0.1 * jax.random.normal(k_b1, (P,), jnp.float32)
    m1 = 0.1 * jax.random.normal(k_m1, (P,), jnp.float32)
    v1 = jax.random.uniform(k_v1, (P,), jnp.float32, 0.5, 1.5)
    g2 = 1.0 + 0.1 * jax.random.normal(k_g2, (P,), jnp.float32)
    bt2 = 0.1 * jax.random.normal(k_b2, (P,), jnp.float32)
    m2 = 0.1 * jax.random.normal(k_m2, (P,), jnp.float32)
    v2 = jax.random.uniform(k_v2, (P,), jnp.float32, 0.5, 1.5)

    out = basic_block_forward(x_nchw, w1_oihw, w2_oihw,
                              g1, bt1, m1, v1, g2, bt2, m2, v2, eps=eps)
    out = jax.block_until_ready(out)

    ref = _reference_forward_nchw(x_nchw, w1_oihw, w2_oihw,
                                  g1, bt1, m1, v1, g2, bt2, m2, v2, eps)
    ref = jax.block_until_ready(ref)

    np.testing.assert_allclose(np.asarray(out, dtype=np.float32),
                               np.asarray(ref, dtype=np.float32),
                               rtol=3e-2, atol=3e-2)
    print("KERNEL_OK")
</pallas_src>

<mosaic_0001>
module attributes {stable_mosaic.version = 11 : i64} {
  func.func @_basic_block_kernel(%arg0: i32, %arg1: memref<1x18x18x128xbf16, #tpu.memory_space<vmem>>, %arg2: memref<9x128x128xbf16, #tpu.memory_space<vmem>>, %arg3: memref<1x128xf32, #tpu.memory_space<vmem>>, %arg4: memref<9x128x128xbf16, #tpu.memory_space<vmem>>, %arg5: memref<1x128xf32, #tpu.memory_space<vmem>>, %arg6: memref<1x16x16x128xbf16, #tpu.memory_space<vmem>>, %arg7: memref<1x18x18x128xbf16, #tpu.memory_space<vmem>>) attributes {dimension_semantics = [#tpu.dimension_semantics<parallel>], iteration_bounds = array<i64: 2>, scalar_prefetch = 0 : i64, scratch_operands = 1 : i64, tpu.core_type = #tpu.core_type<tc>, window_params = [{transform_indices = @transform_0, window_bounds = array<i64: 1, 18, 18, 128>}, {pipeline_mode = #tpu.pipeline_mode<synchronous>, transform_indices = @transform_1, window_bounds = array<i64: 9, 128, 128>}, {pipeline_mode = #tpu.pipeline_mode<synchronous>, transform_indices = @transform_2, window_bounds = array<i64: 1, 128>}, {pipeline_mode = #tpu.pipeline_mode<synchronous>, transform_indices = @transform_3, window_bounds = array<i64: 9, 128, 128>}, {pipeline_mode = #tpu.pipeline_mode<synchronous>, transform_indices = @transform_4, window_bounds = array<i64: 1, 128>}, {transform_indices = @transform_5, window_bounds = array<i64: 1, 16, 16, 128>}]} {
    %cst = arith.constant 0.000000e+00 : bf16
    %0 = vector.broadcast %cst : bf16 to vector<1x1x18x128xbf16>
    %cst_0 = arith.constant 0.000000e+00 : bf16
    %1 = vector.broadcast %cst_0 : bf16 to vector<1x18x1x128xbf16>
    %c0 = arith.constant 0 : index
    %c0_1 = arith.constant 0 : index
    %c0_2 = arith.constant 0 : index
    %c0_3 = arith.constant 0 : index
    %2 = vector.load %arg7[%c0, %c0_1, %c0_2, %c0_3] : memref<1x18x18x128xbf16, #tpu.memory_space<vmem>>, vector<1x1x18x128xbf16>
    tpu.vector_store %arg7[%c0, %c0_1, %c0_2, %c0_3], %0 {strides = array<i32>} : memref<1x18x18x128xbf16, #tpu.memory_space<vmem>>, vector<1x1x18x128xbf16>,
    %c0_4 = arith.constant 0 : index
    %c17 = arith.constant 17 : index
    %c0_5 = arith.constant 0 : index
    %c0_6 = arith.constant 0 : index
    %3 = vector.load %arg7[%c0_4, %c17, %c0_5, %c0_6] : memref<1x18x18x128xbf16, #tpu.memory_space<vmem>>, vector<1x1x18x128xbf16>
    tpu.vector_store %arg7[%c0_4, %c17, %c0_5, %c0_6], %0 {strides = array<i32>} : memref<1x18x18x128xbf16, #tpu.memory_space<vmem>>, vector<1x1x18x128xbf16>,
    %c0_7 = arith.constant 0 : index
    %c0_8 = arith.constant 0 : index
    %c0_9 = arith.constant 0 : index
    %c0_10 = arith.constant 0 : index
    %4 = vector.load %arg7[%c0_7, %c0_8, %c0_9, %c0_10] : memref<1x18x18x128xbf16, #tpu.memory_space<vmem>>, vector<1x18x1x128xbf16>
    tpu.vector_store %arg7[%c0_7, %c0_8, %c0_9, %c0_10], %1 {strides = array<i32>} : memref<1x18x18x128xbf16, #tpu.memory_space<vmem>>, vector<1x18x1x128xbf16>,
    %c0_11 = arith.constant 0 : index
    %c0_12 = arith.constant 0 : index
    %c17_13 = arith.constant 17 : index
    %c0_14 = arith.constant 0 : index
    %5 = vector.load %arg7[%c0_11, %c0_12, %c17_13, %c0_14] : memref<1x18x18x128xbf16, #tpu.memory_space<vmem>>, vector<1x18x1x128xbf16>
    tpu.vector_store %arg7[%c0_11, %c0_12, %c17_13, %c0_14], %1 {strides = array<i32>} : memref<1x18x18x128xbf16, #tpu.memory_space<vmem>>, vector<1x18x1x128xbf16>,
    %c0_15 = arith.constant 0 : index
    %c0_16 = arith.constant 0 : index
    %6 = vector.load %arg3[%c0_15, %c0_16] : memref<1x128xf32, #tpu.memory_space<vmem>>, vector<1x128xf32>
    %c0_17 = arith.constant 0 : index
    %c0_18 = arith.constant 0 : index
    %7 = vector.load %arg5[%c0_17, %c0_18] : memref<1x128xf32, #tpu.memory_space<vmem>>, vector<1x128xf32>
    %cst_19 = arith.constant 0.000000e+00 : f32
    %8 = vector.broadcast %cst_19 : f32 to vector<16x16x128xf32>
    %c0_20 = arith.constant 0 : index
    %c0_21 = arith.constant 0 : index
    %c0_22 = arith.constant 0 : index
    %c0_23 = arith.constant 0 : index
    %9 = vector.load %arg1[%c0_20, %c0_21, %c0_22, %c0_23] : memref<1x18x18x128xbf16, #tpu.memory_space<vmem>>, vector<1x16x16x128xbf16>
    %10 = vector.shape_cast %9 : vector<1x16x16x128xbf16> to vector<16x16x128xbf16>
    %c0_24 = arith.constant 0 : index
    %c0_25 = arith.constant 0 : index
    %c0_26 = arith.constant 0 : index
    %11 = vector.load %arg2[%c0_24, %c0_25, %c0_26] : memref<9x128x128xbf16, #tpu.memory_space<vmem>>, vector<1x128x128xbf16>
    %12 = vector.shape_cast %11 : vector<1x128x128xbf16> to vector<128x128xbf16>
    %cst_27 = arith.constant dense<0.000000e+00> : vector<16x16x128xf32>
    %13 = tpu.matmul %10, %12, %cst_27 {dimension_numbers = #tpu.dot_dimension_numbers<[2], [0], [0, 1], [1], [0, 0, 0, 1, 1, 1], [], []>} : vector<16x16x128xbf16>, vector<128x128xbf16>, vector<16x16x128xf32> -> vector<16x16x128xf32>
    %14 = arith.addf %8, %13 : vector<16x16x128xf32>
    %c0_28 = arith.constant 0 : index
    %c0_29 = arith.constant 0 : index
    %c1 = arith.constant 1 : index
    %c0_30 = arith.constant 0 : index
    %15 = vector.load %arg1[%c0_28, %c0_29, %c1, %c0_30] : memref<1x18x18x128xbf16, #tpu.memory_space<vmem>>, vector<1x16x16x128xbf16>
    %16 = vector.shape_cast %15 : vector<1x16x16x128xbf16> to vector<16x16x128xbf16>
    %c1_31 = arith.constant 1 : index
    %c0_32 = arith.constant 0 : index
    %c0_33 = arith.constant 0 : index
    %17 = vector.load %arg2[%c1_31, %c0_32, %c0_33] : memref<9x128x128xbf16, #tpu.memory_space<vmem>>, vector<1x128x128xbf16>
    %18 = vector.shape_cast %17 : vector<1x128x128xbf16> to vector<128x128xbf16>
    %cst_34 = arith.constant dense<0.000000e+00> : vector<16x16x128xf32>
    %19 = tpu.matmul %16, %18, %cst_34 {dimension_numbers = #tpu.dot_dimension_numbers<[2], [0], [0, 1], [1], [0, 0, 0, 1, 1, 1], [], []>} : vector<16x16x128xbf16>, vector<128x128xbf16>, vector<16x16x128xf32> -> vector<16x16x128xf32>
    %20 = arith.addf %14, %19 : vector<16x16x128xf32>
    %c0_35 = arith.constant 0 : index
    %c0_36 = arith.constant 0 : index
    %c2 = arith.constant 2 : index
    %c0_37 = arith.constant 0 : index
    %21 = vector.load %arg1[%c0_35, %c0_36, %c2, %c0_37] : memref<1x18x18x128xbf16, #tpu.memory_space<vmem>>, vector<1x16x16x128xbf16>
    %22 = vector.shape_cast %21 : vector<1x16x16x128xbf16> to vector<16x16x128xbf16>
    %c2_38 = arith.constant 2 : index
    %c0_39 = arith.constant 0 : index
    %c0_40 = arith.constant 0 : index
    %23 = vector.load %arg2[%c2_38, %c0_39, %c0_40] : memref<9x128x128xbf16, #tpu.memory_space<vmem>>, vector<1x128x128xbf16>
    %24 = vector.shape_cast %23 : vector<1x128x128xbf16> to vector<128x128xbf16>
    %cst_41 = arith.constant dense<0.000000e+00> : vector<16x16x128xf32>
    %25 = tpu.matmul %22, %24, %cst_41 {dimension_numbers = #tpu.dot_dimension_numbers<[2], [0], [0, 1], [1], [0, 0, 0, 1, 1, 1], [], []>} : vector<16x16x128xbf16>, vector<128x128xbf16>, vector<16x16x128xf32> -> vector<16x16x128xf32>
    %26 = arith.addf %20, %25 : vector<16x16x128xf32>
    %c0_42 = arith.constant 0 : index
    %c1_43 = arith.constant 1 : index
    %c0_44 = arith.constant 0 : index
    %c0_45 = arith.constant 0 : index
    %27 = vector.load %arg1[%c0_42, %c1_43, %c0_44, %c0_45] : memref<1x18x18x128xbf16, #tpu.memory_space<vmem>>, vector<1x16x16x128xbf16>
    %28 = vector.shape_cast %27 : vector<1x16x16x128xbf16> to vector<16x16x128xbf16>
    %c3 = arith.constant 3 : index
    %c0_46 = arith.constant 0 : index
    %c0_47 = arith.constant 0 : index
    %29 = vector.load %arg2[%c3, %c0_46, %c0_47] : memref<9x128x128xbf16, #tpu.memory_space<vmem>>, vector<1x128x128xbf16>
    %30 = vector.shape_cast %29 : vector<1x128x128xbf16> to vector<128x128xbf16>
    %cst_48 = arith.constant dense<0.000000e+00> : vector<16x16x128xf32>
    %31 = tpu.matmul %28, %30, %cst_48 {dimension_numbers = #tpu.dot_dimension_numbers<[2], [0], [0, 1], [1], [0, 0, 0, 1, 1, 1], [], []>} : vector<16x16x128xbf16>, vector<128x128xbf16>, vector<16x16x128xf32> -> vector<16x16x128xf32>
    %32 = arith.addf %26, %31 : vector<16x16x128xf32>
    %c0_49 = arith.constant 0 : index
    %c1_50 = arith.constant 1 : index
    %c1_51 = arith.constant 1 : index
    %c0_52 = arith.constant 0 : index
    %33 = vector.load %arg1[%c0_49, %c1_50, %c1_51, %c0_52] : memref<1x18x18x128xbf16, #tpu.memory_space<vmem>>, vector<1x16x16x128xbf16>
    %34 = vector.shape_cast %33 : vector<1x16x16x128xbf16> to vector<16x16x128xbf16>
    %c4 = arith.constant 4 : index
    %c0_53 = arith.constant 0 : index
    %c0_54 = arith.constant 0 : index
    %35 = vector.load %arg2[%c4, %c0_53, %c0_54] : memref<9x128x128xbf16, #tpu.memory_space<vmem>>, vector<1x128x128xbf16>
    %36 = vector.shape_cast %35 : vector<1x128x128xbf16> to vector<128x128xbf16>
    %cst_55 = arith.constant dense<0.000000e+00> : vector<16x16x128xf32>
    %37 = tpu.matmul %34, %36, %cst_55 {dimension_numbers = #tpu.dot_dimension_numbers<[2], [0], [0, 1], [1], [0, 0, 0, 1, 1, 1], [], []>} : vector<16x16x128xbf16>, vector<128x128xbf16>, vector<16x16x128xf32> -> vector<16x16x128xf32>
    %38 = arith.addf %32, %37 : vector<16x16x128xf32>
    %c0_56 = arith.constant 0 : index
    %c1_57 = arith.constant 1 : index
    %c2_58 = arith.constant 2 : index
    %c0_59 = arith.constant 0 : index
    %39 = vector.load %arg1[%c0_56, %c1_57, %c2_58, %c0_59] : memref<1x18x18x128xbf16, #tpu.memory_space<vmem>>, vector<1x16x16x128xbf16>
    %40 = vector.shape_cast %39 : vector<1x16x16x128xbf16> to vector<16x16x128xbf16>
    %c5 = arith.constant 5 : index
    %c0_60 = arith.constant 0 : index
    %c0_61 = arith.constant 0 : index
    %41 = vector.load %arg2[%c5, %c0_60, %c0_61] : memref<9x128x128xbf16, #tpu.memory_space<vmem>>, vector<1x128x128xbf16>
    %42 = vector.shape_cast %41 : vector<1x128x128xbf16> to vector<128x128xbf16>
    %cst_62 = arith.constant dense<0.000000e+00> : vector<16x16x128xf32>
    %43 = tpu.matmul %40, %42, %cst_62 {dimension_numbers = #tpu.dot_dimension_numbers<[2], [0], [0, 1], [1], [0, 0, 0, 1, 1, 1], [], []>} : vector<16x16x128xbf16>, vector<128x128xbf16>, vector<16x16x128xf32> -> vector<16x16x128xf32>
    %44 = arith.addf %38, %43 : vector<16x16x128xf32>
    %c0_63 = arith.constant 0 : index
    %c2_64 = arith.constant 2 : index
    %c0_65 = arith.constant 0 : index
    %c0_66 = arith.constant 0 : index
    %45 = vector.load %arg1[%c0_63, %c2_64, %c0_65, %c0_66] : memref<1x18x18x128xbf16, #tpu.memory_space<vmem>>, vector<1x16x16x128xbf16>
    %46 = vector.shape_cast %45 : vector<1x16x16x128xbf16> to vector<16x16x128xbf16>
    %c6 = arith.constant 6 : index
    %c0_67 = arith.constant 0 : index
    %c0_68 = arith.constant 0 : index
    %47 = vector.load %arg2[%c6, %c0_67, %c0_68] : memref<9x128x128xbf16, #tpu.memory_space<vmem>>, vector<1x128x128xbf16>
    %48 = vector.shape_cast %47 : vector<1x128x128xbf16> to vector<128x128xbf16>
    %cst_69 = arith.constant dense<0.000000e+00> : vector<16x16x128xf32>
    %49 = tpu.matmul %46, %48, %cst_69 {dimension_numbers = #tpu.dot_dimension_numbers<[2], [0], [0, 1], [1], [0, 0, 0, 1, 1, 1], [], []>} : vector<16x16x128xbf16>, vector<128x128xbf16>, vector<16x16x128xf32> -> vector<16x16x128xf32>
    %50 = arith.addf %44, %49 : vector<16x16x128xf32>
    %c0_70 = arith.constant 0 : index
    %c2_71 = arith.constant 2 : index
    %c1_72 = arith.constant 1 : index
    %c0_73 = arith.constant 0 : index
    %51 = vector.load %arg1[%c0_70, %c2_71, %c1_72, %c0_73] : memref<1x18x18x128xbf16, #tpu.memory_space<vmem>>, vector<1x16x16x128xbf16>
    %52 = vector.shape_cast %51 : vector<1x16x16x128xbf16> to vector<16x16x128xbf16>
    %c7 = arith.constant 7 : index
    %c0_74 = arith.constant 0 : index
    %c0_75 = arith.constant 0 : index
    %53 = vector.load %arg2[%c7, %c0_74, %c0_75] : memref<9x128x128xbf16, #tpu.memory_space<vmem>>, vector<1x128x128xbf16>
    %54 = vector.shape_cast %53 : vector<1x128x128xbf16> to vector<128x128xbf16>
    %cst_76 = arith.constant dense<0.000000e+00> : vector<16x16x128xf32>
    %55 = tpu.matmul %52, %54, %cst_76 {dimension_numbers = #tpu.dot_dimension_numbers<[2], [0], [0, 1], [1], [0, 0, 0, 1, 1, 1], [], []>} : vector<16x16x128xbf16>, vector<128x128xbf16>, vector<16x16x128xf32> -> vector<16x16x128xf32>
    %56 = arith.addf %50, %55 : vector<16x16x128xf32>
    %c0_77 = arith.constant 0 : index
    %c2_78 = arith.constant 2 : index
    %c2_79 = arith.constant 2 : index
    %c0_80 = arith.constant 0 : index
    %57 = vector.load %arg1[%c0_77, %c2_78, %c2_79, %c0_80] : memref<1x18x18x128xbf16, #tpu.memory_space<vmem>>, vector<1x16x16x128xbf16>
    %58 = vector.shape_cast %57 : vector<1x16x16x128xbf16> to vector<16x16x128xbf16>
    %c8 = arith.constant 8 : index
    %c0_81 = arith.constant 0 : index
    %c0_82 = arith.constant 0 : index
    %59 = vector.load %arg2[%c8, %c0_81, %c0_82] : memref<9x128x128xbf16, #tpu.memory_space<vmem>>, vector<1x128x128xbf16>
    %60 = vector.shape_cast %59 : vector<1x128x128xbf16> to vector<128x128xbf16>
    %cst_83 = arith.constant dense<0.000000e+00> : vector<16x16x128xf32>
    %61 = tpu.matmul %58, %60, %cst_83 {dimension_numbers = #tpu.dot_dimension_numbers<[2], [0], [0, 1], [1], [0, 0, 0, 1, 1, 1], [], []>} : vector<16x16x128xbf16>, vector<128x128xbf16>, vector<16x16x128xf32> -> vector<16x16x128xf32>
    %62 = arith.addf %56, %61 : vector<16x16x128xf32>
    %63 = vector.shape_cast %6 : vector<1x128xf32> to vector<1x1x128xf32>
    %64 = vector.broadcast %63 : vector<1x1x128xf32> to vector<16x16x128xf32>
    %65 = arith.addf %62, %64 : vector<16x16x128xf32>
    %cst_84 = arith.constant 0.000000e+00 : f32
    %66 = vector.broadcast %cst_84 : f32 to vector<16x16x128xf32>
    %67 = arith.maximumf %65, %66 : vector<16x16x128xf32>
    %68 = arith.truncf %67 : vector<16x16x128xf32> to vector<16x16x128xbf16>
    %69 = vector.shape_cast %68 : vector<16x16x128xbf16> to vector<1x16x16x128xbf16>
    %c0_85 = arith.constant 0 : index
    %c1_86 = arith.constant 1 : index
    %c1_87 = arith.constant 1 : index
    %c0_88 = arith.constant 0 : index
    %70 = vector.load %arg7[%c0_85, %c1_86, %c1_87, %c0_88] : memref<1x18x18x128xbf16, #tpu.memory_space<vmem>>, vector<1x16x16x128xbf16>
    tpu.vector_store %arg7[%c0_85, %c1_86, %c1_87, %c0_88], %69 {strides = array<i32>} : memref<1x18x18x128xbf16, #tpu.memory_space<vmem>>, vector<1x16x16x128xbf16>,
    %cst_89 = arith.constant 0.000000e+00 : f32
    %71 = vector.broadcast %cst_89 : f32 to vector<16x16x128xf32>
    %c0_90 = arith.constant 0 : index
    %c0_91 = arith.constant 0 : index
    %c0_92 = arith.constant 0 : index
    %c0_93 = arith.constant 0 : index
    %72 = vector.load %arg7[%c0_90, %c0_91, %c0_92, %c0_93] : memref<1x18x18x128xbf16, #tpu.memory_space<vmem>>, vector<1x16x16x128xbf16>
    %73 = vector.shape_cast %72 : vector<1x16x16x128xbf16> to vector<16x16x128xbf16>
    %c0_94 = arith.constant 0 : index
    %c0_95 = arith.constant 0 : index
    %c0_96 = arith.constant 0 : index
    %74 = vector.load %arg4[%c0_94, %c0_95, %c0_96] : memref<9x128x128xbf16, #tpu.memory_space<vmem>>, vector<1x128x128xbf16>
    %75 = vector.shape_cast %74 : vector<1x128x128xbf16> to vector<128x128xbf16>
    %cst_97 = arith.constant dense<0.000000e+00> : vector<16x16x128xf32>
    %76 = tpu.matmul %73, %75, %cst_97 {dimension_numbers = #tpu.dot_dimension_numbers<[2], [0], [0, 1], [1], [0, 0, 0, 1, 1, 1], [], []>} : vector<16x16x128xbf16>, vector<128x128xbf16>, vector<16x16x128xf32> -> vector<16x16x128xf32>
    %77 = arith.addf %71, %76 : vector<16x16x128xf32>
    %c0_98 = arith.constant 0 : index
    %c0_99 = arith.constant 0 : index
    %c1_100 = arith.constant 1 : index
    %c0_101 = arith.constant 0 : index
    %78 = vector.load %arg7[%c0_98, %c0_99, %c1_100, %c0_101] : memref<1x18x18x128xbf16, #tpu.memory_space<vmem>>, vector<1x16x16x128xbf16>
    %79 = vector.shape_cast %78 : vector<1x16x16x128xbf16> to vector<16x16x128xbf16>
    %c1_102 = arith.constant 1 : index
    %c0_103 = arith.constant 0 : index
    %c0_104 = arith.constant 0 : index
    %80 = vector.load %arg4[%c1_102, %c0_103, %c0_104] : memref<9x128x128xbf16, #tpu.memory_space<vmem>>, vector<1x128x128xbf16>
    %81 = vector.shape_cast %80 : vector<1x128x128xbf16> to vector<128x128xbf16>
    %cst_105 = arith.constant dense<0.000000e+00> : vector<16x16x128xf32>
    %82 = tpu.matmul %79, %81, %cst_105 {dimension_numbers = #tpu.dot_dimension_numbers<[2], [0], [0, 1], [1], [0, 0, 0, 1, 1, 1], [], []>} : vector<16x16x128xbf16>, vector<128x128xbf16>, vector<16x16x128xf32> -> vector<16x16x128xf32>
    %83 = arith.addf %77, %82 : vector<16x16x128xf32>
    %c0_106 = arith.constant 0 : index
    %c0_107 = arith.constant 0 : index
    %c2_108 = arith.constant 2 : index
    %c0_109 = arith.constant 0 : index
    %84 = vector.load %arg7[%c0_106, %c0_107, %c2_108, %c0_109] : memref<1x18x18x128xbf16, #tpu.memory_space<vmem>>, vector<1x16x16x128xbf16>
    %85 = vector.shape_cast %84 : vector<1x16x16x128xbf16> to vector<16x16x128xbf16>
    %c2_110 = arith.constant 2 : index
    %c0_111 = arith.constant 0 : index
    %c0_112 = arith.constant 0 : index
    %86 = vector.load %arg4[%c2_110, %c0_111, %c0_112] : memref<9x128x128xbf16, #tpu.memory_space<vmem>>, vector<1x128x128xbf16>
    %87 = vector.shape_cast %86 : vector<1x128x128xbf16> to vector<128x128xbf16>
    %cst_113 = arith.constant dense<0.000000e+00> : vector<16x16x128xf32>
    %88 = tpu.matmul %85, %87, %cst_113 {dimension_numbers = #tpu.dot_dimension_numbers<[2], [0], [0, 1], [1], [0, 0, 0, 1, 1, 1], [], []>} : vector<16x16x128xbf16>, vector<128x128xbf16>, vector<16x16x128xf32> -> vector<16x16x128xf32>
    %89 = arith.addf %83, %88 : vector<16x16x128xf32>
    %c0_114 = arith.constant 0 : index
    %c1_115 = arith.constant 1 : index
    %c0_116 = arith.constant 0 : index
    %c0_117 = arith.constant 0 : index
    %90 = vector.load %arg7[%c0_114, %c1_115, %c0_116, %c0_117] : memref<1x18x18x128xbf16, #tpu.memory_space<vmem>>, vector<1x16x16x128xbf16>
    %91 = vector.shape_cast %90 : vector<1x16x16x128xbf16> to vector<16x16x128xbf16>
    %c3_118 = arith.constant 3 : index
    %c0_119 = arith.constant 0 : index
    %c0_120 = arith.constant 0 : index
    %92 = vector.load %arg4[%c3_118, %c0_119, %c0_120] : memref<9x128x128xbf16, #tpu.memory_space<vmem>>, vector<1x128x128xbf16>
    %93 = vector.shape_cast %92 : vector<1x128x128xbf16> to vector<128x128xbf16>
    %cst_121 = arith.constant dense<0.000000e+00> : vector<16x16x128xf32>
    %94 = tpu.matmul %91, %93, %cst_121 {dimension_numbers = #tpu.dot_dimension_numbers<[2], [0], [0, 1], [1], [0, 0, 0, 1, 1, 1], [], []>} : vector<16x16x128xbf16>, vector<128x128xbf16>, vector<16x16x128xf32> -> vector<16x16x128xf32>
    %95 = arith.addf %89, %94 : vector<16x16x128xf32>
    %c0_122 = arith.constant 0 : index
    %c1_123 = arith.constant 1 : index
    %c1_124 = arith.constant 1 : index
    %c0_125 = arith.constant 0 : index
    %96 = vector.load %arg7[%c0_122, %c1_123, %c1_124, %c0_125] : memref<1x18x18x128xbf16, #tpu.memory_space<vmem>>, vector<1x16x16x128xbf16>
    %97 = vector.shape_cast %96 : vector<1x16x16x128xbf16> to vector<16x16x128xbf16>
    %c4_126 = arith.constant 4 : index
    %c0_127 = arith.constant 0 : index
    %c0_128 = arith.constant 0 : index
    %98 = vector.load %arg4[%c4_126, %c0_127, %c0_128] : memref<9x128x128xbf16, #tpu.memory_space<vmem>>, vector<1x128x128xbf16>
    %99 = vector.shape_cast %98 : vector<1x128x128xbf16> to vector<128x128xbf16>
    %cst_129 = arith.constant dense<0.000000e+00> : vector<16x16x128xf32>
    %100 = tpu.matmul %97, %99, %cst_129 {dimension_numbers = #tpu.dot_dimension_numbers<[2], [0], [0, 1], [1], [0, 0, 0, 1, 1, 1], [], []>} : vector<16x16x128xbf16>, vector<128x128xbf16>, vector<16x16x128xf32> -> vector<16x16x128xf32>
    %101 = arith.addf %95, %100 : vector<16x16x128xf32>
    %c0_130 = arith.constant 0 : index
    %c1_131 = arith.constant 1 : index
    %c2_132 = arith.constant 2 : index
    %c0_133 = arith.constant 0 : index
    %102 = vector.load %arg7[%c0_130, %c1_131, %c2_132, %c0_133] : memref<1x18x18x128xbf16, #tpu.memory_space<vmem>>, vector<1x16x16x128xbf16>
    %103 = vector.shape_cast %102 : vector<1x16x16x128xbf16> to vector<16x16x128xbf16>
    %c5_134 = arith.constant 5 : index
    %c0_135 = arith.constant 0 : index
    %c0_136 = arith.constant 0 : index
    %104 = vector.load %arg4[%c5_134, %c0_135, %c0_136] : memref<9x128x128xbf16, #tpu.memory_space<vmem>>, vector<1x128x128xbf16>
    %105 = vector.shape_cast %104 : vector<1x128x128xbf16> to vector<128x128xbf16>
    %cst_137 = arith.constant dense<0.000000e+00> : vector<16x16x128xf32>
    %106 = tpu.matmul %103, %105, %cst_137 {dimension_numbers = #tpu.dot_dimension_numbers<[2], [0], [0, 1], [1], [0, 0, 0, 1, 1, 1], [], []>} : vector<16x16x128xbf16>, vector<128x128xbf16>, vector<16x16x128xf32> -> vector<16x16x128xf32>
    %107 = arith.addf %101, %106 : vector<16x16x128xf32>
    %c0_138 = arith.constant 0 : index
    %c2_139 = arith.constant 2 : index
    %c0_140 = arith.constant 0 : index
    %c0_141 = arith.constant 0 : index
    %108 = vector.load %arg7[%c0_138, %c2_139, %c0_140, %c0_141] : memref<1x18x18x128xbf16, #tpu.memory_space<vmem>>, vector<1x16x16x128xbf16>
    %109 = vector.shape_cast %108 : vector<1x16x16x128xbf16> to vector<16x16x128xbf16>
    %c6_142 = arith.constant 6 : index
    %c0_143 = arith.constant 0 : index
    %c0_144 = arith.constant 0 : index
    %110 = vector.load %arg4[%c6_142, %c0_143, %c0_144] : memref<9x128x128xbf16, #tpu.memory_space<vmem>>, vector<1x128x128xbf16>
    %111 = vector.shape_cast %110 : vector<1x128x128xbf16> to vector<128x128xbf16>
    %cst_145 = arith.constant dense<0.000000e+00> : vector<16x16x128xf32>
    %112 = tpu.matmul %109, %111, %cst_145 {dimension_numbers = #tpu.dot_dimension_numbers<[2], [0], [0, 1], [1], [0, 0, 0, 1, 1, 1], [], []>} : vector<16x16x128xbf16>, vector<128x128xbf16>, vector<16x16x128xf32> -> vector<16x16x128xf32>
    %113 = arith.addf %107, %112 : vector<16x16x128xf32>
    %c0_146 = arith.constant 0 : index
    %c2_147 = arith.constant 2 : index
    %c1_148 = arith.constant 1 : index
    %c0_149 = arith.constant 0 : index
    %114 = vector.load %arg7[%c0_146, %c2_147, %c1_148, %c0_149] : memref<1x18x18x128xbf16, #tpu.memory_space<vmem>>, vector<1x16x16x128xbf16>
    %115 = vector.shape_cast %114 : vector<1x16x16x128xbf16> to vector<16x16x128xbf16>
    %c7_150 = arith.constant 7 : index
    %c0_151 = arith.constant 0 : index
    %c0_152 = arith.constant 0 : index
    %116 = vector.load %arg4[%c7_150, %c0_151, %c0_152] : memref<9x128x128xbf16, #tpu.memory_space<vmem>>, vector<1x128x128xbf16>
    %117 = vector.shape_cast %116 : vector<1x128x128xbf16> to vector<128x128xbf16>
    %cst_153 = arith.constant dense<0.000000e+00> : vector<16x16x128xf32>
    %118 = tpu.matmul %115, %117, %cst_153 {dimension_numbers = #tpu.dot_dimension_numbers<[2], [0], [0, 1], [1], [0, 0, 0, 1, 1, 1], [], []>} : vector<16x16x128xbf16>, vector<128x128xbf16>, vector<16x16x128xf32> -> vector<16x16x128xf32>
    %119 = arith.addf %113, %118 : vector<16x16x128xf32>
    %c0_154 = arith.constant 0 : index
    %c2_155 = arith.constant 2 : index
    %c2_156 = arith.constant 2 : index
    %c0_157 = arith.constant 0 : index
    %120 = vector.load %arg7[%c0_154, %c2_155, %c2_156, %c0_157] : memref<1x18x18x128xbf16, #tpu.memory_space<vmem>>, vector<1x16x16x128xbf16>
    %121 = vector.shape_cast %120 : vector<1x16x16x128xbf16> to vector<16x16x128xbf16>
    %c8_158 = arith.constant 8 : index
    %c0_159 = arith.constant 0 : index
    %c0_160 = arith.constant 0 : index
    %122 = vector.load %arg4[%c8_158, %c0_159, %c0_160] : memref<9x128x128xbf16, #tpu.memory_space<vmem>>, vector<1x128x128xbf16>
    %123 = vector.shape_cast %122 : vector<1x128x128xbf16> to vector<128x128xbf16>
    %cst_161 = arith.constant dense<0.000000e+00> : vector<16x16x128xf32>
    %124 = tpu.matmul %121, %123, %cst_161 {dimension_numbers = #tpu.dot_dimension_numbers<[2], [0], [0, 1], [1], [0, 0, 0, 1, 1, 1], [], []>} : vector<16x16x128xbf16>, vector<128x128xbf16>, vector<16x16x128xf32> -> vector<16x16x128xf32>
    %125 = arith.addf %119, %124 : vector<16x16x128xf32>
    %c0_162 = arith.constant 0 : index
    %c1_163 = arith.constant 1 : index
    %c1_164 = arith.constant 1 : index
    %c0_165 = arith.constant 0 : index
    %126 = vector.load %arg1[%c0_162, %c1_163, %c1_164, %c0_165] : memref<1x18x18x128xbf16, #tpu.memory_space<vmem>>, vector<1x16x16x128xbf16>
    %127 = vector.shape_cast %126 : vector<1x16x16x128xbf16> to vector<16x16x128xbf16>
    %128 = arith.extf %127 : vector<16x16x128xbf16> to vector<16x16x128xf32>
    %129 = vector.shape_cast %7 : vector<1x128xf32> to vector<1x1x128xf32>
    %130 = vector.broadcast %129 : vector<1x1x128xf32> to vector<16x16x128xf32>
    %131 = arith.addf %125, %130 : vector<16x16x128xf32>
    %132 = arith.addf %131, %128 : vector<16x16x128xf32>
    %cst_166 = arith.constant 0.000000e+00 : f32
    %133 = vector.broadcast %cst_166 : f32 to vector<16x16x128xf32>
    %134 = arith.maximumf %132, %133 : vector<16x16x128xf32>
    %135 = vector.shape_cast %134 : vector<16x16x128xf32> to vector<1x16x16x128xf32>
    %136 = arith.truncf %135 : vector<1x16x16x128xf32> to vector<1x16x16x128xbf16>
    %c0_167 = arith.constant 0 : index
    %c0_168 = arith.constant 0 : index
    %c0_169 = arith.constant 0 : index
    %c0_170 = arith.constant 0 : index
    %137 = vector.load %arg6[%c0_167, %c0_168, %c0_169, %c0_170] : memref<1x16x16x128xbf16, #tpu.memory_space<vmem>>, vector<1x16x16x128xbf16>
    tpu.vector_store %arg6[%c0_167, %c0_168, %c0_169, %c0_170], %136 {strides = array<i32>} : memref<1x16x16x128xbf16, #tpu.memory_space<vmem>>, vector<1x16x16x128xbf16>,
    return
  }
  func.func @transform_0(%arg0: i32) -> (i32, i32, i32, i32) {
    %c0_i32 = arith.constant 0 : i32
    %c0_i32_0 = arith.constant 0 : i32
    %c0_i32_1 = arith.constant 0 : i32
    %c0_i32_2 = arith.constant 0 : i32
    return %arg0, %c0_i32, %c0_i32_0, %c0_i32_1 : i32, i32, i32, i32
  }
  func.func @transform_1(%arg0: i32) -> (i32, i32, i32) {
    %c0_i32 = arith.constant 0 : i32
    %c0_i32_0 = arith.constant 0 : i32
    %c0_i32_1 = arith.constant 0 : i32
    %c0_i32_2 = arith.constant 0 : i32
    return %c0_i32, %c0_i32_0, %c0_i32_1 : i32, i32, i32
  }
  func.func @transform_2(%arg0: i32) -> (i32, i32) {
    %c0_i32 = arith.constant 0 : i32
    %c0_i32_0 = arith.constant 0 : i32
    %c0_i32_1 = arith.constant 0 : i32
    return %c0_i32, %c0_i32_0 : i32, i32
  }
  func.func @transform_3(%arg0: i32) -> (i32, i32, i32) {
    %c0_i32 = arith.constant 0 : i32
    %c0_i32_0 = arith.constant 0 : i32
    %c0_i32_1 = arith.constant 0 : i32
    %c0_i32_2 = arith.constant 0 : i32
    return %c0_i32, %c0_i32_0, %c0_i32_1 : i32, i32, i32
  }
  func.func @transform_4(%arg0: i32) -> (i32, i32) {
    %c0_i32 = arith.constant 0 : i32
    %c0_i32_0 = arith.constant 0 : i32
    %c0_i32_1 = arith.constant 0 : i32
    return %c0_i32, %c0_i32_0 : i32, i32
  }
  func.func @transform_5(%arg0: i32) -> (i32, i32, i32, i32) {
    %c0_i32 = arith.constant 0 : i32
    %c0_i32_0 = arith.constant 0 : i32
    %c0_i32_1 = arith.constant 0 : i32
    %c0_i32_2 = arith.constant 0 : i32
    return %arg0, %c0_i32, %c0_i32_0, %c0_i32_1 : i32, i32, i32, i32
  }
}

</mosaic_0001>

<bundles_post_ra>
// kernel: tpu_custom_call.1
= control target key start
LH: loop header
LB: loop body
LE: loop exit
PB: predicated region body
PF: predicated region fallthrough
CT: control target
= control target key end

     0   :  { %10 = vsyncpa [#allocation4], 0  ;;  %s15426_s0 = inlined_call_operand.vmem [shape: bf16[2,18,18,128], index: 0, kind: input, shape index: {}]   ;;  %s15427_s1 = inlined_call_operand.vmem [shape: bf16[9,128,128], index: 1, kind: input, shape index: {}]   ;;  %s15428_s2 = inlined_call_operand.vmem [shape: f32[1,128], index: 2, kind: input, shape index: {}]   ;;  %s15429_s3 = inlined_call_operand.hbm [shape: bf16[9,128,128], index: 3, kind: input, shape index: {}]   ;;  %s15430_s4 = inlined_call_operand.vmem [shape: f32[1,128], index: 4, kind: input, shape index: {}]   ;;  %s15431_s5 = inlined_call_operand.hbm [shape: bf16[2,16,16,128], index: 5, kind: output, shape index: {}]  }
   0x1   :  { %11 = vsyncpa [#allocation5], 0 }
   0x2   :  { %13 = vsyncpa [#allocation5 + $0x1], 0  ;;  %s11776_s18 = smov 0   ;;  %s11778_s19 = smov 0  }
   0x3   :  { %s11780_s20 = smov 0   ;;  %s11782_s21 = smov 0  }
   0x4 LB: > { %s11797_s22 = sadd.s32 4294967295, %s11738_s21   ;;  %s9724_s23 = sadd.s32 4294967294, %s11738_s21   ;;  %s11738_s21 = sphi %s11782_s21, %s15643_s21   ;;  %s11734_s20 = sphi %s11780_s20, %s15642_s20   ;;  %s11730_s19 = sphi %s11778_s19, %s15641_s19   ;;  %s11726_s18 = sphi %s11776_s18, %s15640_s18  }
   0x5   : > { %s11801_s24 = sadd.s32 1, %s11738_s21   ;;  %s136_s25 = sadd.s32 1, %s11734_s20 }
   0x6   : > { %s133_s26 = ssub.s32 %s11738_s21, %s11801_s24  ;;  %p146_p0 = scmp.ne.s32.totalorder %s11734_s20, %s11730_s19 }
   0x7   : > { %p134_p1 = scmp.eq.s32.totalorder %s133_s26, 0  ;;  %p147_p2 = scmp.eq.s32.totalorder %s11797_s22, 1 }
   0x8   : > { %p152_p3 = scmp.ne.s32.totalorder %s11730_s19, %s11726_s18  ;;  %p153_p4 = scmp.eq.s32.totalorder %s9724_s23, 1 }
   0x9   : > { %s11812_s27 = scalar_select %p134_p1, %s11734_s20, %s136_s25  }
   0xa   : > { %p11814_p5 = por %p147_p2, %p146_p0  ;;  %p11818_p6 = por %p153_p4, %p152_p3 }
   0xb   : > { %p9725_p7 = scmp.ge.s32.totalorder %s11738_s21, 1  ;;  %p160_p8 = scmp.lt.s32.totalorder %s11738_s21, 3 }
   0xc   : > { %p11568_p9 = scmp.eq.s32.totalorder %s11797_s22, 0  ;;  %s177_s7 = sshll.u32 %s15429_s3, 4  ;;  %s178_s7 = int_to_ptr.hbm [resolvable:$true] %s177_s7 }
   0xd   : > { %p161_p10 = pnand %p9725_p7, %p160_p8  ;;  %s11740_s8 = smov [#allocation3]  }
   0xe   : > { %s179_s9 = sshll.u32 %s11740_s8, 4  ;;  %s11741_s10 = smov 64   ;;  %s180_s9 = int_to_ptr.vmem [resolvable:$true] %s179_s9 }
   0xf   : > { %p11560_p11 = pneg %p161_p10  ;;  %s11742_s11 = smov 4  }
  0x10   : > { %206 = sbr.rel (%p161_p10) target bundleno = 1508 (0x5e4), region = 40 }
  0x11   : > { %p11561_p12 = pnand %p11568_p9, %p11560_p11 }
  0x13   : > { %11563 = dma.hbm_to_vmem [thread:$0]  (!%p11561_p12), %s178_s7, 9216, %s180_s9, [#allocation4], %s11741_s10, %s11741_s10, %s11742_s11  }
  0x15   : > { %11717 = dma.done.wait (%p11568_p9), [#allocation4], 9216  }
  0x16   : > { %11719 = vsyncadd (%p11568_p9), [#allocation4], 4294958080  ;;  %p235_p13 = scmp.lt.s32.totalorder %s11797_s22, 1  ;;  %v11192_v0 = vld [vmem:[%s15427_s1 + $0x78] sm:$0xff]  ;;  %v11191_v2 = vld [vmem:[%s15427_s1 + $0x70] sm:$0xff]  ;;  %vm1330_vm3 = vcmask 1042432  }
  0x17   : > { %v11184_v1 = vld [vmem:[%s15427_s1 + $0x38] sm:$0xff]  ;;  %943 = vmatpush.bf16.msra.mxu0 %v11192_v0  ;;  %11537 = vmatpush.bf16.msra.mxu2 %v11192_v0  ;;  %v11183_v3 = vld [vmem:[%s15427_s1 + $0x30] sm:$0xff]  ;;  %v11190_v6 = vld [vmem:[%s15427_s1 + $0x68] sm:$0xff]  ;;  %vm444_vm0 = vsmask.f32 3328  ;;  %vm1331_vm4 = vcmask 1046532  }
  0x18   : > { %s236_s12 = scalar_select %p235_p13, %s11797_s22, 1  ;;  %11545 = vmatpush.bf16.msra.mxu3 %v11184_v1  ;;  %1176 = vmatpush.bf16.msra.mxu1 %v11184_v1  ;;  %v11182_v11 = vld [vmem:[%s15427_s1 + $0x28] sm:$0xff]  ;;  %v11189_v22 = vld [vmem:[%s15427_s1 + $0x60] sm:$0xff]  ;;  %v11188_v34 = vld [vmem:[%s15427_s1 + $0x58] sm:$0xff]  ;;  %vm445_vm1 = vsmask.f32 7440 }
  0x19   : > { %v11181_v24 = vld [vmem:[%s15427_s1 + $0x20] sm:$0xff]  ;;  %v11180_v37 = vld [vmem:[%s15427_s1 + $0x18] sm:$0xff]  ;;  %vm11880_vm2 = vmor %vm444_vm0, %vm445_vm1  ;;  %vm248_vm6 = vcmask 1040384   ;;  %vm249_vm7 = vsmask.f32 256  ;;  %vm4946_vm11 = vcmask 1043456  }
  0x1a   : > { %s11553_s13 = smul.u32 216, %s236_s12  ;;  %v11187_v45 = vld [vmem:[%s15427_s1 + $0x50] sm:$0xff]  ;;  %v11186_v59 = vld [vmem:[%s15427_s1 + $0x48] sm:$0xff]  ;;  %vm12183_vm5 = vmor %vm1330_vm3, %vm1331_vm4  ;;  %vm305_vm9 = vsmask.f32 7938  ;;  %vm9393_vm15 = vcmask 1046528  }
  0x1b   : > { %944 = vmatpush.bf16.msra.mxu0 %v11191_v2  ;;  %11538 = vmatpush.bf16.msra.mxu2 %v11191_v2  ;;  %v11179_v49 = vld [vmem:[%s15427_s1 + $0x10] sm:$0xff]  ;;  %v11178_v0 = vld [vmem:[%s15427_s1 + $0x8] sm:$0xff]  ;;  %vm12936_vm8 = vmand %vm248_vm6, %vm249_vm7  ;;  %vm4623_vm13 = vsmask.f32 4368  ;;  %s232_s23 = sand.u32 1, %s11730_s19   ;;  %s11692_s17 = scalar_lea.hbm %s15431_s5, 256 }
  0x1c   : > { %s11848_s6 = scalar_lea.vmem %s15426_s0, %s11553_s13  ;;  %11546 = vmatpush.bf16.msra.mxu3 %v11183_v3  ;;  %1177 = vmatpush.bf16.msra.mxu1 %v11183_v3  ;;  %vm12947_vm10 = vmand %vm248_vm6, %vm305_vm9  ;;  %s9730_s25 = sshll.u32 %s232_s23, 7 }
  0x1d   : > { %v363_v4 = vld [vmem:[%s11848_s6] sm:$0xf]  ;;  %v364_v5 = vld [vmem:[%s11848_s6 + $0x4] sm:$0xf]  ;;  %v411_v17 = vld [vmem:[%s11848_s6 + $0x8] sm:$0x1] }
  0x1e   : > { %v448_v7 = vshrl.u32 %v363_v4, 16  ;;  %v451_v8 = vshll.u32 %v363_v4, 16  ;;  %v457_v9 = vshll.u32 %v364_v5, 16  ;;  %v461_v10 = vshrl.u32 %v364_v5, 16  ;;  %v379_v12 = vld [vmem:[%s11848_s6 + $0x60] sm:$0xf]  ;;  %vm13076_vm12 = vmand %vm4946_vm11, %vm305_vm9 }
  0x1f   : > { %v380_v13 = vld [vmem:[%s11848_s6 + $0x64] sm:$0xf]  ;;  %v640_v19 = vshrl.u32 %v379_v12, 16  ;;  %v643_v20 = vshll.u32 %v379_v12, 16  ;;  %945 = vmatpush.bf16.msra.mxu0 %v11190_v6  ;;  %11539 = vmatpush.bf16.msra.mxu2 %v11190_v6  ;;  %v419_v25 = vld [vmem:[%s11848_s6 + $0x68] sm:$0x1]  ;;  %vm13122_vm14 = vmor %vm249_vm7, %vm4623_vm13 }
  0x20   : > { %v450_v14 = vrot.slane %v448_v7, 4  ;;  %v453_v15 = vrot.slane %v451_v8, 5  ;;  %v11863_v16 = vrot.slane %v457_v9, 5  ;;  %v463_v18 = vrot.slane %v461_v10, 4  ;;  %11547 = vmatpush.bf16.msra.mxu3 %v11182_v11  ;;  %1178 = vmatpush.bf16.msra.mxu1 %v11182_v11  ;;  %v365_v43 = vld [vmem:[%s11848_s6 + $0xc] sm:$0xf] }
  0x21   : > { %v649_v21 = vshll.u32 %v380_v13, 16  ;;  %v653_v23 = vshrl.u32 %v380_v13, 16  ;;  %v642_v26 = vrot.slane %v640_v19, 4  ;;  %v645_v27 = vrot.slane %v643_v20, 5  ;;  %v366_v44 = vld [vmem:[%s11848_s6 + $0x10] sm:$0xf] }
  0x22   : > { %v454_v29 = vor.u32 %v453_v15, %v450_v14  ;;  %v467_v30 = vshll.u32 %v411_v17, 16  ;;  %v464_v32 = vor.u32 %v463_v18, %v11863_v16  ;;  %v659_v36 = vshll.u32 %v419_v25, 16  ;;  %v381_v48 = vld [vmem:[%s11848_s6 + $0x6c] sm:$0xf]  ;;  %v382_v50 = vld [vmem:[%s11848_s6 + $0x70] sm:$0xf] }
  0x23   : > { %v651_v28 = vrot.slane %v649_v21, 5  ;;  %v655_v31 = vrot.slane %v653_v23, 4  ;;  %v646_v33 = vor.u32 %v645_v27, %v642_v26  ;;  %946 = vmatpush.bf16.msra.mxu0 %v11189_v22  ;;  %11540 = vmatpush.bf16.msra.mxu2 %v11189_v22  ;;  %v472_v52 = vshrl.u32 %v365_v43, 16  ;;  %v11910_v7 = vld [vmem:[%s11848_s6 + $0x14] sm:$0x1]  ;;  %v11185_v10 = vld [vmem:[%s15427_s1 + $0x40] sm:$0xff] }
  0x24   : > { %11548 = vmatpush.bf16.msra.mxu3 %v11181_v24  ;;  %1179 = vmatpush.bf16.msra.mxu1 %v11181_v24  ;;  %v455_v38 = vrot.slane %v454_v29, 4  ;;  %v469_v39 = vrot.slane %v467_v30, 5  ;;  %v465_v41 = vrot.slane %v464_v32, 4  ;;  %v661_v47 = vrot.slane %v659_v36, 5  ;;  %v11177_v15 = vld [vmem:[%s15427_s1] sm:$0xff]  ;;  %v11200_v17 = vld [vmem:[%s15427_s1 + $0xb8] sm:$0xff] }
  0x25   : > { %v656_v35 = vor.u32 %v655_v31, %v651_v28  ;;  %v647_v42 = vrot.slane %v646_v33, 4  ;;  %v475_v53 = vshll.u32 %v365_v43, 16  ;;  %v481_v54 = vshll.u32 %v366_v44, 16  ;;  %v11224_v18 = vld [vmem:[%s15427_s1 + $0xf8] sm:$0xff]  ;;  %v11169_v24 = vld [vmem:[%s11848_s6 + $0x60] sm:$0xff]  ;;  %v11199_v31 = vld [vmem:[%s15427_s1 + $0xb0] sm:$0xff] }
  0x26   : > { %v460_v51 = vsel %vm11880_vm2, %v455_v38, %v11863_v16  ;;  %v470_v55 = vsel %vm11880_vm2, %v465_v41, %v469_v39  ;;  %v485_v57 = vshrl.u32 %v366_v44, 16  ;;  %v664_v58 = vshrl.u32 %v381_v48, 16  ;;  %v420_v16 = vld [vmem:[%s11848_s6 + $0x74] sm:$0x1]  ;;  %v11161_v25 = vld [vmem:[%s11848_s6] sm:$0xff]  ;;  %v11232_v30 = vld [vmem:[%s15427_s1 + $0x138] sm:$0xff] }
  0x27   : > { %947 = vmatpush.bf16.msra.mxu0 %v11188_v34  ;;  %11541 = vmatpush.bf16.msra.mxu2 %v11188_v34  ;;  %v657_v46 = vrot.slane %v656_v35, 4  ;;  %v652_v56 = vsel %vm11880_vm2, %v647_v42, %v651_v28  ;;  %v667_v61 = vshll.u32 %v381_v48, 16  ;;  %v673_v62 = vshll.u32 %v382_v50, 16  ;;  %v367_v29 = vld [vmem:[%s11848_s6 + $0x18] sm:$0xf]  ;;  %v11223_v32 = vld [vmem:[%s15427_s1 + $0xf0] sm:$0xff] }
  0x28   : > { %11549 = vmatpush.bf16.msra.mxu3 %v11180_v37  ;;  %1180 = vmatpush.bf16.msra.mxu1 %v11180_v37  ;;  %v677_v63 = vshrl.u32 %v382_v50, 16  ;;  %v831_v1 = vunpack.c.l.b16 %v460_v51  ;;  %v832_v2 = vunpack.c.l.b16 %v470_v55  ;;  %v474_v3 = vrot.slane %v472_v52, 4  ;;  %v11945_v33 = vld [vmem:[%s11848_s6 + $0x1c] sm:$0xf]  ;;  %v383_v34 = vld [vmem:[%s11848_s6 + $0x78] sm:$0xf] }
  0x29   : > { %v662_v60 = vsel %vm11880_vm2, %v657_v46, %v661_v47  ;;  %v477_v4 = vrot.slane %v475_v53, 5  ;;  %v847_v5 = vunpack.c.l.b16 %v652_v56  ;;  %v11912_v8 = vrot.slane %v481_v54, 5  ;;  %v384_v39 = vld [vmem:[%s11848_s6 + $0x7c] sm:$0xf]  ;;  %v11198_v52 = vld [vmem:[%s15427_s1 + $0xa8] sm:$0xff]  ;;  %s15150_s26 = scalar_lea.vmem [#allocation6], %s9730_s25 }
  0x2a   : > { %v848_v6 = vunpack.c.l.b16 %v662_v60  ;;  %v487_v9 = vrot.slane %v485_v57, 4  ;;  %v666_v11 = vrot.slane %v664_v58, 4  ;;  %v669_v12 = vrot.slane %v667_v61, 5  ;;  %v11222_v53 = vld [vmem:[%s15427_s1 + $0xe8] sm:$0xff]  ;;  %s9647_s11 = sshll.u32 %s15150_s26, 4  ;;  %s9648_s11 = int_to_ptr.vmem [resolvable:$true] %s9647_s11 }
  0x2b   : > { %948 = vmatpush.bf16.msra.mxu0 %v11187_v45  ;;  %11542 = vmatpush.bf16.msra.mxu2 %v11187_v45  ;;  %v11917_v13 = vrot.slane %v673_v62, 5  ;;  %v679_v14 = vrot.slane %v677_v63, 4  ;;  %v491_v19 = vshll.u32 %v11910_v7, 16  ;;  %v863_v20 = vpack.c.b16 %v832_v2, %v831_v1  ;;  %v11231_v45 = vld [vmem:[%s15427_s1 + $0x130] sm:$0xff]  ;;  %v11974_v1 = vld [vmem:[%s11848_s6 + $0x20] sm:$0x1] }
  0x2c   : > { %11550 = vmatpush.bf16.msra.mxu3 %v11179_v49  ;;  %1181 = vmatpush.bf16.msra.mxu1 %v11179_v49  ;;  %v871_v21 = vpack.c.b16 %v848_v6, %v847_v5  ;;  %v478_v22 = vor.u32 %v477_v4, %v474_v3  ;;  %v488_v23 = vor.u32 %v487_v9, %v11912_v8  ;;  %v683_v28 = vshll.u32 %v420_v16, 16  ;;  %v421_v9 = vld [vmem:[%s11848_s6 + $0x80] sm:$0x1] }
  0x2d   : > { %v670_v26 = vor.u32 %v669_v12, %v666_v11  ;;  %v680_v27 = vor.u32 %v679_v14, %v11917_v13  ;;  %v493_v37 = vrot.slane %v491_v19, 5  ;;  %v496_v38 = vshrl.u32 %v367_v29, 16  ;;  %v11162_v19 = vld [vmem:[%s11848_s6 + $0xc] sm:$0xff] }
  0x2e   : > { %v479_v35 = vrot.slane %v478_v22, 4  ;;  %v489_v36 = vrot.slane %v488_v23, 4  ;;  %v685_v43 = vrot.slane %v683_v28, 5  ;;  %v499_v44 = vshll.u32 %v367_v29, 16  ;;  %v385_v28 = vld [vmem:[%s11848_s6 + $0x84] sm:$0xf] }
  0x2f   : > { %949 = vmatpush.bf16.msra.mxu0 %v11186_v59  ;;  %11543 = vmatpush.bf16.msra.mxu2 %v11186_v59  ;;  %v671_v41 = vrot.slane %v670_v26, 4  ;;  %v681_v42 = vrot.slane %v680_v27, 4  ;;  %v505_v46 = vshll.u32 %v11945_v33, 16  ;;  %v509_v47 = vshrl.u32 %v11945_v33, 16  ;;  %v369_v26 = vld [vmem:[%s11848_s6 + $0x24] sm:$0xf] }
  0x30   : > { %11551 = vmatpush.bf16.msra.mxu3 %v11178_v0  ;;  %1182 = vmatpush.bf16.msra.mxu1 %v11178_v0  ;;  %v688_v48 = vshrl.u32 %v383_v34, 16  ;;  %v691_v49 = vshll.u32 %v383_v34, 16  ;;  %v697_v50 = vshll.u32 %v384_v39, 16  ;;  %v701_v51 = vshrl.u32 %v384_v39, 16  ;;  %v11230_v0 = vld [vmem:[%s15427_s1 + $0x128] sm:$0xff] }
  0x31   : > { %v484_v54 = vsel %vm11880_vm2, %v479_v35, %v11912_v8  ;;  %v494_v55 = vsel %vm11880_vm2, %v489_v36, %v493_v37  ;;  %v676_v56 = vsel %vm11880_vm2, %v671_v41, %v11917_v13  ;;  %v686_v57 = vsel %vm11880_vm2, %v681_v42, %v685_v43  ;;  %v11982_v27 = vld [vmem:[%s11848_s6 + $0x28] sm:$0xf]  ;;  %v11229_v37 = vld [vmem:[%s15427_s1 + $0x120] sm:$0xff] }
  0x32   : > { %v498_v58 = vrot.slane %v496_v38, 4  ;;  %v501_v59 = vrot.slane %v499_v44, 5  ;;  %v507_v60 = vrot.slane %v505_v46, 5  ;;  %v511_v61 = vrot.slane %v509_v47, 4  ;;  %v386_v29 = vld [vmem:[%s11848_s6 + $0x88] sm:$0xf] }
  0x33   : > { %950 = vmatpush.bf16.msra.mxu0 %v11185_v10  ;;  %11544 = vmatpush.bf16.msra.mxu2 %v11185_v10  ;;  %v690_v62 = vrot.slane %v688_v48, 4  ;;  %v693_v63 = vrot.slane %v691_v49, 5  ;;  %v699_v2 = vrot.slane %v697_v50, 5  ;;  %v703_v3 = vrot.slane %v701_v51, 4 }
  0x34   : > { %11552 = vmatpush.bf16.msra.mxu3 %v11177_v15  ;;  %1183 = vmatpush.bf16.msra.mxu1 %v11177_v15  ;;  %v833_v4 = vunpack.c.l.b16 %v484_v54  ;;  %v834_v5 = vunpack.c.l.b16 %v494_v55  ;;  %v849_v6 = vunpack.c.l.b16 %v676_v56  ;;  %v850_v8 = vunpack.c.l.b16 %v686_v57  ;;  %v12006_v55 = vld [vmem:[%s11848_s6 + $0x2c] sm:$0x1] }
  0x35   : > { %v502_v10 = vor.u32 %v501_v59, %v498_v58  ;;  %v512_v11 = vor.u32 %v511_v61, %v507_v60  ;;  %v515_v12 = vshll.u32 %v11974_v1, 16  ;;  %v694_v13 = vor.u32 %v693_v63, %v690_v62 }
  0x36   : > { %951 = vmatmul.bf16.vlgmr.msra.gmra.mxu0 %v863_v20  ;;  %991 = vmatmul.bf16.vlgmr.msra.gmra.mxu2 %v871_v21  ;;  %v704_v14 = vor.u32 %v703_v3, %v699_v2  ;;  %v707_v15 = vshll.u32 %v421_v9, 16  ;;  %v864_v16 = vpack.c.b16 %v834_v5, %v833_v4  ;;  %v520_v36 = vshrl.u32 %v369_v26, 16  ;;  %v371_v9 = vld [vmem:[%s11848_s6 + $0x30] sm:$0xf] }
  0x37   : > { %1557 = vmatpush.bf16.msrb.mxu2 %v11200_v17  ;;  %1224 = vmatmul.bf16.vlgmr.msra.gmra.mxu3 %v11169_v24  ;;  %v872_v17 = vpack.c.b16 %v850_v8, %v849_v6  ;;  %v503_v20 = vrot.slane %v502_v10, 4  ;;  %v513_v21 = vrot.slane %v512_v11, 4  ;;  %v517_v22 = vrot.slane %v515_v12, 5  ;;  %v11171_v6 = vld [vmem:[%s11848_s6 + $0x78] sm:$0xff]  ;;  %v372_v10 = vld [vmem:[%s11848_s6 + $0x34] sm:$0xf] }
  0x38   : > { %1872 = vmatpush.bf16.msrb.mxu3 %v11224_v18  ;;  %1184 = vmatmul.bf16.vlgmr.msra.gmra.mxu1 %v11161_v25  ;;  %v11170_v18 = vld [vmem:[%s11848_s6 + $0x6c] sm:$0xff]  ;;  %v695_v23 = vrot.slane %v694_v13, 4  ;;  %v705_v24 = vrot.slane %v704_v14, 4  ;;  %v709_v25 = vrot.slane %v707_v15, 5  ;;  %v523_v39 = vshll.u32 %v369_v26, 16  ;;  %v11163_v8 = vld [vmem:[%s11848_s6 + $0x18] sm:$0xff] }
  0x39   : > { %2554 = vmatpush.bf16.msrb.mxu0 %v11232_v30  ;;  %v11197_v30 = vld [vmem:[%s15427_s1 + $0xa0] sm:$0xff]  ;;  %v518_v34 = vsel %vm11880_vm2, %v513_v21, %v517_v22  ;;  %v529_v41 = vshll.u32 %v11982_v27, 16  ;;  %v533_v42 = vshrl.u32 %v11982_v27, 16  ;;  %v712_v43 = vshrl.u32 %v385_v28, 16  ;;  %v387_v13 = vld [vmem:[%s11848_s6 + $0x90] sm:$0xf] }
  0x3a   : > { %v700_v35 = vsel %vm11880_vm2, %v695_v23, %v699_v2  ;;  %v710_v38 = vsel %vm11880_vm2, %v705_v24, %v709_v25  ;;  %v715_v44 = vshll.u32 %v385_v28, 16  ;;  %v725_v46 = vshrl.u32 %v386_v29, 16  ;;  %v388_v14 = vld [vmem:[%s11848_s6 + $0x94] sm:$0xf]  ;;  %v11196_v23 = vld [vmem:[%s15427_s1 + $0x98] sm:$0xff] }
  0x3b   : > { %1558 = vmatpush.bf16.msrb.mxu2 %v11199_v31  ;;  %v11221_v31 = vld [vmem:[%s15427_s1 + $0xe0] sm:$0xff]  ;;  %v836_v48 = vunpack.c.l.b16 %v518_v34  ;;  %v851_v49 = vunpack.c.l.b16 %v700_v35  ;;  %v852_v50 = vunpack.c.l.b16 %v710_v38  ;;  %v522_v51 = vrot.slane %v520_v36, 4  ;;  %v11220_v24 = vld [vmem:[%s15427_s1 + $0xd8] sm:$0xff] }
  0x3c   : > { %1873 = vmatpush.bf16.msrb.mxu3 %v11223_v32  ;;  %v508_v32 = vsel %vm11880_vm2, %v503_v20, %v507_v60  ;;  %v535_v54 = vrot.slane %v533_v42, 4  ;;  %v714_v56 = vrot.slane %v712_v43, 4  ;;  %v717_v57 = vrot.slane %v715_v44, 5  ;;  %v422_v60 = vld [vmem:[%s11848_s6 + $0x8c] sm:$0x1] }
  0x3d   : > { %2555 = vmatpush.bf16.msrb.mxu0 %v11231_v45  ;;  %v721_v45 = vshll.u32 %v386_v29, 16  ;;  %v835_v47 = vunpack.c.l.b16 %v508_v32  ;;  %v727_v59 = vrot.slane %v725_v46, 4  ;;  %v873_v62 = vpack.c.b16 %v852_v50, %v851_v49  ;;  %v423_v46 = vld [vmem:[%s11848_s6 + $0x98] sm:$0x1] }
  0x3e   : > { %v718_v3 = vor.u32 %v717_v57, %v714_v56  ;;  %v731_v5 = vshll.u32 %v422_v60, 16  ;;  %v547_v20 = vshll.u32 %v371_v9, 16  ;;  %v553_v21 = vshll.u32 %v372_v10, 16  ;;  %v11172_v60 = vld [vmem:[%s11848_s6 + $0x84] sm:$0xff] }
  0x3f   : > { %1559 = vmatpush.bf16.msrb.mxu2 %v11198_v52  ;;  %v525_v52 = vrot.slane %v523_v39, 5  ;;  %v723_v58 = vrot.slane %v721_v45, 5  ;;  %v865_v61 = vpack.c.b16 %v836_v48, %v835_v47  ;;  %v557_v22 = vshrl.u32 %v372_v10, 16  ;;  %v11195_v10 = vld [vmem:[%s15427_s1 + $0x90] sm:$0xff] }
  0x40   : > { %1874 = vmatpush.bf16.msrb.mxu3 %v11222_v53  ;;  %v531_v53 = vrot.slane %v529_v41, 5  ;;  %v736_v25 = vshrl.u32 %v387_v13, 16  ;;  %v739_v26 = vshll.u32 %v387_v13, 16  ;;  %v745_v28 = vshll.u32 %v388_v14, 16  ;;  %v12034_v41 = vld [vmem:[%s11848_s6 + $0x38] sm:$0x1] }
  0x41   : > { %2556 = vmatpush.bf16.msrb.mxu0 %v11230_v0  ;;  %v526_v63 = vor.u32 %v525_v52, %v522_v51  ;;  %v539_v0 = vshll.u32 %v12006_v55, 16  ;;  %v728_v4 = vor.u32 %v727_v59, %v723_v58  ;;  %v749_v29 = vshrl.u32 %v388_v14, 16 }
  0x42   : > { %v536_v2 = vor.u32 %v535_v54, %v531_v53  ;;  %v555_v38 = vrot.slane %v553_v21, 5  ;;  %v559_v39 = vrot.slane %v557_v22, 4  ;;  %v738_v42 = vrot.slane %v736_v25, 4 }
  0x43   : > { %1560 = vmatpush.bf16.msrb.mxu2 %v11197_v30  ;;  %v527_v11 = vrot.slane %v526_v63, 4  ;;  %v541_v12 = vrot.slane %v539_v0, 5  ;;  %v11228_v30 = vld [vmem:[%s15427_s1 + $0x118] sm:$0xff]  ;;  %v741_v43 = vrot.slane %v739_v26, 5  ;;  %v747_v44 = vrot.slane %v745_v28, 5 }
  0x44   : > { %1875 = vmatpush.bf16.msrb.mxu3 %v11221_v31  ;;  %v537_v15 = vrot.slane %v536_v2, 4  ;;  %v751_v45 = vrot.slane %v749_v29, 4  ;;  %v563_v52 = vshll.u32 %v12034_v41, 16  ;;  %v755_v57 = vshll.u32 %v423_v46, 16 }
  0x45   : > { %2557 = vmatpush.bf16.msrb.mxu0 %v11229_v37  ;;  %v532_v31 = vsel %vm11880_vm2, %v527_v11, %v531_v53  ;;  %v549_v37 = vrot.slane %v547_v20, 5  ;;  %v560_v53 = vor.u32 %v559_v39, %v555_v38  ;;  %v742_v54 = vor.u32 %v741_v43, %v738_v42  ;;  %v11219_v11 = vld [vmem:[%s15427_s1 + $0xd0] sm:$0xff]  ;;  %v424_v42 = vld [vmem:[%s11848_s6 + $0xa4] sm:$0x1] }
  0x46   : > { %956 = vmatmul.bf16.gmra.mxu0 %v864_v16  ;;  %996 = vmatmul.bf16.gmra.mxu2 %v872_v17  ;;  %v719_v16 = vrot.slane %v718_v3, 4  ;;  %v729_v17 = vrot.slane %v728_v4, 4  ;;  %v542_v32 = vsel %vm11880_vm2, %v537_v15, %v541_v12  ;;  %v837_v47 = vunpack.c.l.b16 %v532_v31 }
  0x47   : > { %1229 = vmatmul.bf16.gmra.mxu3 %v11170_v18  ;;  %v733_v18 = vrot.slane %v731_v5, 5  ;;  %1561 = vmatpush.bf16.msrb.mxu2 %v11196_v23  ;;  %v838_v48 = vunpack.c.l.b16 %v542_v32  ;;  %v752_v56 = vor.u32 %v751_v45, %v747_v44  ;;  %v565_v63 = vrot.slane %v563_v52, 5  ;;  %v373_v5 = vld [vmem:[%s11848_s6 + $0x3c] sm:$0xf]  ;;  %v11165_v52 = vld [vmem:[%s11848_s6 + $0x30] sm:$0xff] }
  0x48   : > { %1189 = vmatmul.bf16.gmra.mxu1 %v11162_v19  ;;  %v544_v19 = vshrl.u32 %v371_v9, 16  ;;  %1876 = vmatpush.bf16.msrb.mxu3 %v11220_v24  ;;  %v724_v34 = vsel %vm11880_vm2, %v719_v16, %v723_v58  ;;  %v561_v0 = vrot.slane %v560_v53, 4  ;;  %v743_v2 = vrot.slane %v742_v54, 4  ;;  %v390_v9 = vld [vmem:[%s11848_s6 + $0xa0] sm:$0xf]  ;;  %v11227_v16 = vld [vmem:[%s15427_s1 + $0x110] sm:$0xff] }
  0x49   : > { %v734_v35 = vsel %vm11880_vm2, %v729_v17, %v733_v18  ;;  %2558 = vmatpush.bf16.msrb.mxu0 %v11228_v30  ;;  %v853_v49 = vunpack.c.l.b16 %v724_v34  ;;  %v866_v58 = vpack.c.b16 %v838_v48, %v837_v47  ;;  %v753_v3 = vrot.slane %v752_v56, 4  ;;  %v375_v53 = vld [vmem:[%s11848_s6 + $0x48] sm:$0xf]  ;;  %v376_v54 = vld [vmem:[%s11848_s6 + $0x4c] sm:$0xf] }
  0x4a   : > { %v546_v36 = vrot.slane %v544_v19, 4  ;;  %v854_v50 = vunpack.c.l.b16 %v734_v35  ;;  %v757_v4 = vrot.slane %v755_v57, 5  ;;  %v566_v13 = vsel %vm11880_vm2, %v561_v0, %v565_v63  ;;  %v12066_v35 = vld [vmem:[%s11848_s6 + $0x44] sm:$0x1] }
  0x4b   : > { %v748_v14 = vsel %vm11880_vm2, %v743_v2, %v747_v44  ;;  %v568_v17 = vshrl.u32 %v373_v5, 16  ;;  %v571_v18 = vshll.u32 %v373_v5, 16  ;;  %1562 = vmatpush.bf16.msrb.mxu2 %v11195_v10  ;;  %v769_v23 = vshll.u32 %v390_v9, 16  ;;  %v11194_v5 = vld [vmem:[%s15427_s1 + $0x88] sm:$0xff] }
  0x4c   : > { %v550_v51 = vor.u32 %v549_v37, %v546_v36  ;;  %v874_v59 = vpack.c.b16 %v854_v50, %v853_v49  ;;  %v758_v15 = vsel %vm11880_vm2, %v753_v3, %v757_v4  ;;  %1877 = vmatpush.bf16.msrb.mxu3 %v11219_v11  ;;  %v773_v24 = vshrl.u32 %v390_v9, 16 }
  0x4d   : > { %2559 = vmatpush.bf16.msrb.mxu0 %v11227_v16  ;;  %v840_v26 = vunpack.c.l.b16 %v566_v13  ;;  %v855_v28 = vunpack.c.l.b16 %v748_v14  ;;  %v856_v29 = vunpack.c.l.b16 %v758_v15  ;;  %v570_v30 = vrot.slane %v568_v17, 4  ;;  %v11226_v13 = vld [vmem:[%s15427_s1 + $0x108] sm:$0xff]  ;;  %v11240_v14 = vld [vmem:[%s15427_s1 + $0x178] sm:$0xff] }
  0x4e   : > { %v573_v31 = vrot.slane %v571_v18, 5  ;;  %v775_v39 = vrot.slane %v773_v24, 4  ;;  %v587_v46 = vshll.u32 %v12066_v35, 16  ;;  %v779_v50 = vshll.u32 %v424_v42, 16  ;;  %2980 = vmatpush.bf16.msrb.mxu1 %v11240_v14 }
  0x4f   : > { %v875_v44 = vpack.c.b16 %v856_v29, %v855_v28  ;;  %v592_v0 = vshrl.u32 %v375_v53, 16  ;;  %v595_v2 = vshll.u32 %v375_v53, 16  ;;  %v601_v3 = vshll.u32 %v376_v54, 16  ;;  %1563 = vmatpush.bf16.msrb.mxu2 %v11194_v5  ;;  %v425_v29 = vld [vmem:[%s11848_s6 + $0xb0] sm:$0x1] }
  0x50   : > { %v574_v45 = vor.u32 %v573_v31, %v570_v30  ;;  %v589_v57 = vrot.slane %v587_v46, 5  ;;  %v781_v63 = vrot.slane %v779_v50, 5  ;;  %v605_v4 = vshrl.u32 %v376_v54, 16  ;;  %v11174_v46 = vld [vmem:[%s11848_s6 + $0x9c] sm:$0xff]  ;;  %v377_v54 = vld [vmem:[%s11848_s6 + $0x54] sm:$0xf] }
  0x51   : > { %2560 = vmatpush.bf16.msrb.mxu0 %v11226_v13  ;;  %v616_v5 = vshrl.u32 %v377_v54, 16 }
  0x52   : > { %v575_v56 = vrot.slane %v574_v45, 4 }
  0x56   : > { %961 = vmatmul.bf16.gmra.mxu0 %v865_v61  ;;  %1001 = vmatmul.bf16.gmra.mxu2 %v873_v62  ;;  %v11164_v61 = vld [vmem:[%s11848_s6 + $0x24] sm:$0xff]  ;;  %v551_v62 = vrot.slane %v550_v51, 4  ;;  %v11173_v51 = vld [vmem:[%s11848_s6 + $0x90] sm:$0xff] }
  0x57   : > { %1234 = vmatmul.bf16.gmra.mxu3 %v11171_v6  ;;  %v12042_v6 = vld [vmem:[%s11848_s6 + $0x40] sm:$0xf] }
  0x58   : > { %1194 = vmatmul.bf16.gmra.mxu1 %v11163_v8  ;;  %v389_v8 = vld [vmem:[%s11848_s6 + $0x9c] sm:$0xf]  ;;  %v556_v12 = vsel %vm11880_vm2, %v551_v62, %v555_v38  ;;  %v577_v19 = vshll.u32 %v12042_v6, 16  ;;  %v581_v20 = vshrl.u32 %v12042_v6, 16  ;;  %v771_v38 = vrot.slane %v769_v23, 5 }
  0x59   : > { %v760_v21 = vshrl.u32 %v389_v8, 16  ;;  %v763_v22 = vshll.u32 %v389_v8, 16  ;;  %v839_v25 = vunpack.c.l.b16 %v556_v12  ;;  %v11218_v8 = vld [vmem:[%s15427_s1 + $0xc8] sm:$0xff]  ;;  %v12097_v23 = vld [vmem:[%s11848_s6 + $0x50] sm:$0x1] }
  0x5a   : > { %v579_v32 = vrot.slane %v577_v19, 5  ;;  %v583_v34 = vrot.slane %v581_v20, 4  ;;  %v776_v49 = vor.u32 %v775_v39, %v771_v38  ;;  %1878 = vmatpush.bf16.msrb.mxu3 %v11218_v8  ;;  %v594_v19 = vrot.slane %v592_v0, 4 }
  0x5b   : > { %v762_v36 = vrot.slane %v760_v21, 4  ;;  %v765_v37 = vrot.slane %v763_v22, 5  ;;  %v867_v43 = vpack.c.b16 %v840_v26, %v839_v25  ;;  %v597_v20 = vrot.slane %v595_v2, 5 }
  0x5c   : > { %v584_v47 = vor.u32 %v583_v34, %v579_v32  ;;  %v777_v62 = vrot.slane %v776_v49, 4  ;;  %v580_v15 = vsel %vm11880_vm2, %v575_v56, %v579_v32  ;;  %v603_v21 = vrot.slane %v601_v3, 5  ;;  %v378_v56 = vld [vmem:[%s11848_s6 + $0x58] sm:$0xf]  ;;  %v11238_v3 = vld [vmem:[%s15427_s1 + $0x168] sm:$0xff] }
  0x5d   : > { %v766_v48 = vor.u32 %v765_v37, %v762_v36  ;;  %v607_v22 = vrot.slane %v605_v4, 4  ;;  %v841_v30 = vunpack.c.l.b16 %v580_v15  ;;  %v598_v36 = vor.u32 %v597_v20, %v594_v19  ;;  %v11225_v4 = vld [vmem:[%s15427_s1 + $0x100] sm:$0xff] }
  0x5e   : > { %v782_v18 = vsel %vm11880_vm2, %v777_v62, %v781_v63  ;;  %v611_v37 = vshll.u32 %v12097_v23, 16  ;;  %v619_v8 = vshll.u32 %v377_v54, 16  ;;  %2561 = vmatpush.bf16.msrb.mxu0 %v11225_v4  ;;  %v11237_v19 = vld [vmem:[%s15427_s1 + $0x160] sm:$0xff]  ;;  %v618_v20 = vrot.slane %v616_v5, 4  ;;  %v11264_v54 = vld [vmem:[%s15427_s1 + $0x1b8] sm:$0xff] }
  0x5f   : > { %v858_v34 = vunpack.c.l.b16 %v782_v18  ;;  %v11233_v5 = vld [vmem:[%s15427_s1 + $0x140] sm:$0xff] }
  0x60   : > { %v613_v49 = vrot.slane %v611_v37, 5 }
  0x66   : > { %966 = vmatmul.bf16.gmra.mxu0 %v866_v58  ;;  %1006 = vmatmul.bf16.gmra.mxu2 %v874_v59  ;;  %v391_v58 = vld [vmem:[%s11848_s6 + $0xa8] sm:$0xf]  ;;  %v392_v59 = vld [vmem:[%s11848_s6 + $0xac] sm:$0xf] }
  0x67   : > { %1239 = vmatmul.bf16.gmra.mxu3 %v11172_v60  ;;  %v585_v60 = vrot.slane %v584_v47, 4  ;;  %v784_v9 = vshrl.u32 %v391_v58, 16  ;;  %v787_v10 = vshll.u32 %v391_v58, 16  ;;  %v793_v11 = vshll.u32 %v392_v59, 16  ;;  %v11166_v47 = vld [vmem:[%s11848_s6 + $0x3c] sm:$0xff]  ;;  %v11239_v58 = vld [vmem:[%s15427_s1 + $0x170] sm:$0xff] }
  0x68   : > { %1199 = vmatmul.bf16.gmra.mxu1 %v11164_v61  ;;  %v767_v61 = vrot.slane %v766_v48, 4  ;;  %v797_v12 = vshrl.u32 %v392_v59, 16  ;;  %v599_v48 = vrot.slane %v598_v36, 4  ;;  %v394_v59 = vld [vmem:[%s11848_s6 + $0xb8] sm:$0xf] }
  0x69   : > { %v590_v16 = vsel %vm11880_vm2, %v585_v60, %v589_v57  ;;  %v786_v24 = vrot.slane %v784_v9, 4  ;;  %v789_v25 = vrot.slane %v787_v10, 5  ;;  %v795_v26 = vrot.slane %v793_v11, 5  ;;  %v393_v57 = vld [vmem:[%s11848_s6 + $0xb4] sm:$0xf]  ;;  %v11193_v60 = vld [vmem:[%s15427_s1 + $0x80] sm:$0xff]  ;;  %2981 = vmatpush.bf16.msrb.mxu1 %v11239_v58 }
  0x6a   : > { %v772_v17 = vsel %vm11880_vm2, %v767_v61, %v771_v38  ;;  %v799_v28 = vrot.slane %v797_v12, 4  ;;  %v842_v31 = vunpack.c.l.b16 %v590_v16  ;;  %v608_v38 = vor.u32 %v607_v22, %v603_v21  ;;  %v11217_v61 = vld [vmem:[%s15427_s1 + $0xc0] sm:$0xff]  ;;  %1564 = vmatpush.bf16.msrb.mxu2 %v11193_v60  ;;  %v12154_v58 = vld [vmem:[%s11848_s6 + $0x10] sm:$0xf] }
  0x6b   : > { %v857_v32 = vunpack.c.l.b16 %v772_v17  ;;  %v790_v39 = vor.u32 %v789_v25, %v786_v24  ;;  %v604_v62 = vsel %vm11880_vm2, %v599_v48, %v603_v21  ;;  %v625_v9 = vshll.u32 %v378_v56, 16  ;;  %1879 = vmatpush.bf16.msrb.mxu3 %v11217_v61  ;;  %v12134_v25 = vld [vmem:[%s11848_s6 + $0x5c] sm:$0x1] }
  0x6c   : > { %v800_v42 = vor.u32 %v799_v28, %v795_v26  ;;  %v609_v50 = vrot.slane %v608_v38, 4  ;;  %v629_v10 = vshrl.u32 %v378_v56, 16  ;;  %v808_v11 = vshrl.u32 %v393_v57, 16  ;;  %v11272_v56 = vld [vmem:[%s15427_s1 + $0x1f8] sm:$0xff] }
  0x6d   : > { %v876_v45 = vpack.c.b16 %v858_v34, %v857_v32  ;;  %v811_v12 = vshll.u32 %v393_v57, 16  ;;  %v817_v13 = vshll.u32 %v394_v59, 16  ;;  %v821_v14 = vshrl.u32 %v394_v59, 16  ;;  %2982 = vmatpush.bf16.msrb.mxu1 %v11238_v3  ;;  %v10084_v57 = vld [vmem:[%s11848_s6 + $0xc] sm:$0xf] }
  0x6e   : > { %v614_v63 = vsel %vm11880_vm2, %v609_v50, %v613_v49  ;;  %v843_v15 = vunpack.c.l.b16 %v604_v62  ;;  %v621_v21 = vrot.slane %v619_v8, 5  ;;  %v627_v22 = vrot.slane %v625_v9, 5  ;;  %3295 = vmatpush.bf16.msra.mxu2 %v11264_v54  ;;  %v11280_v8 = vld [vmem:[%s15427_s1 + $0x238] sm:$0xff] }
  0x6f   : > { %v844_v16 = vunpack.c.l.b16 %v614_v63  ;;  %v631_v24 = vrot.slane %v629_v10, 4  ;;  %v813_v28 = vrot.slane %v811_v12, 5  ;;  %v635_v37 = vshll.u32 %v12134_v25, 16  ;;  %3977 = vmatpush.bf16.msra.mxu3 %v11272_v56  ;;  %v11234_v63 = vld [vmem:[%s15427_s1 + $0x148] sm:$0xff]  ;;  %4403 = vmatpush.bf16.msra.mxu0 %v11280_v8 }
  0x70   : > { %v622_v36 = vor.u32 %v621_v21, %v618_v20  ;;  %v2068_v3 = vshll.u32 %v12154_v58, 16  ;;  %v2072_v4 = vshrl.u32 %v12154_v58, 16  ;;  %v11611_v20 = vld [vmem:[%s11848_s6 + $0x4] sm:$0xf] }
  0x71   : > { %2983 = vmatpush.bf16.msrb.mxu1 %v11237_v19  ;;  %v869_v32 = vpack.c.b16 %v844_v16, %v843_v15  ;;  %v632_v38 = vor.u32 %v631_v24, %v627_v22  ;;  %v637_v48 = vrot.slane %v635_v37, 5  ;;  %v1335_v21 = vrot.slane %v11611_v20, 5  ;;  %v11168_v24 = vld [vmem:[%s11848_s6 + $0x54] sm:$0xff]  ;;  %v11612_v37 = vld [vmem:[%s11848_s6 + $0x8] sm:$0x1] }
  0x72   : > { %v2070_v15 = vrot.slane %v2068_v3, 5  ;;  %v2074_v16 = vrot.slane %v2072_v4, 4 }
  0x73   : > { %v633_v49 = vrot.slane %v632_v38, 4  ;;  %v1338_v38 = vrot.slane %v11612_v37, 5  ;;  %v10090_v37 = vld [vmem:[%s11848_s6 + $0x24] sm:$0xf] }
  0x75   : > { %v638_v60 = vsel %vm11880_vm2, %v633_v49, %v637_v48  ;;  %v12189_v49 = vld [vmem:[%s11848_s6 + $0x1c] sm:$0xf] }
  0x76   : > { %971 = vmatmul.bf16.gmra.mxu0 %v867_v43  ;;  %1011 = vmatmul.bf16.gmra.mxu2 %v875_v44  ;;  %v803_v43 = vshll.u32 %v425_v29, 16  ;;  %v868_v44 = vpack.c.b16 %v842_v31, %v841_v30  ;;  %v819_v29 = vrot.slane %v817_v13, 5  ;;  %v823_v30 = vrot.slane %v821_v14, 4  ;;  %v426_v31 = vld [vmem:[%s11848_s6 + $0xbc] sm:$0x1] }
  0x77   : > { %1244 = vmatmul.bf16.gmra.mxu3 %v11173_v51  ;;  %v791_v51 = vrot.slane %v790_v39, 4  ;;  %v846_v10 = vunpack.c.l.b16 %v638_v60 }
  0x78   : > { %1204 = vmatmul.bf16.gmra.mxu1 %v11165_v52  ;;  %v801_v52 = vrot.slane %v800_v42, 4  ;;  %v805_v53 = vrot.slane %v803_v43, 5  ;;  %v824_v42 = vor.u32 %v823_v30, %v819_v29  ;;  %v827_v43 = vshll.u32 %v426_v31, 16 }
  0x79   : > { %v796_v0 = vsel %vm11880_vm2, %v791_v51, %v795_v26  ;;  %v810_v26 = vrot.slane %v808_v11, 4  ;;  %v2758_v31 = vrot.slane %v12154_v58, 5  ;;  %v2096_v58 = vshrl.u32 %v12189_v49, 16 }
  0x7a   : > { %v806_v2 = vsel %vm11880_vm2, %v801_v52, %v805_v53  ;;  %v859_v17 = vunpack.c.l.b16 %v796_v0  ;;  %v825_v51 = vrot.slane %v824_v42, 4  ;;  %v829_v52 = vrot.slane %v827_v43, 5  ;;  %v11235_v53 = vld [vmem:[%s15427_s1 + $0x150] sm:$0xff] }
  0x7b   : > { %v860_v18 = vunpack.c.l.b16 %v806_v2  ;;  %v814_v39 = vor.u32 %v813_v28, %v810_v26  ;;  %v2059_v0 = vshrl.u32 %v10084_v57, 16  ;;  %v2062_v2 = vshll.u32 %v10084_v57, 16  ;;  %v1265_v26 = vld [vmem:[%s11848_s6] sm:$0xe] }
  0x7c   : > { %v830_v62 = vsel %vm11880_vm2, %v825_v51, %v829_v52  ;;  %v2092_v57 = vshll.u32 %v12189_v49, 16 }
  0x7d   : > { %v877_v34 = vpack.c.b16 %v860_v18, %v859_v17  ;;  %v815_v50 = vrot.slane %v814_v39, 4  ;;  %v862_v12 = vunpack.c.l.b16 %v830_v62  ;;  %v2061_v13 = vrot.slane %v2059_v0, 4  ;;  %v10086_v17 = vld [vmem:[%s11848_s6 + $0x14] sm:$0x1] }
  0x7e   : > { %v2064_v14 = vrot.slane %v2062_v2, 5  ;;  %v2078_v30 = vshll.u32 %v10086_v17, 16  ;;  %v2761_v48 = vrot.slane %v10086_v17, 5  ;;  %v2094_v8 = vrot.slane %v2092_v57, 5 }
  0x7f   : > { %v820_v61 = vsel %vm11880_vm2, %v815_v50, %v819_v29  ;;  %v2075_v29 = vor.u32 %v2074_v16, %v2070_v15 }
  0x80   : > { %v861_v11 = vunpack.c.l.b16 %v820_v61  ;;  %v2065_v28 = vor.u32 %v2064_v14, %v2061_v13  ;;  %v1266_v13 = vld [vmem:[%s11848_s6 + $0xc] sm:$0xe]  ;;  %v11613_v14 = vld [vmem:[%s11848_s6 + $0x10] sm:$0xf] }
  0x81   : > { %v2076_v43 = vrot.slane %v2075_v29, 4  ;;  %v10181_v29 = vld [vmem:[%s11848_s6 + $0x18] sm:$0xe] }
  0x82   : > { %v878_v19 = vpack.c.b16 %v862_v12, %v861_v11  ;;  %v2066_v42 = vrot.slane %v2065_v28, 4  ;;  %v9893_v28 = vrot.slane %v1266_v13, 9  ;;  %v10092_v13 = vld [vmem:[%s11848_s6 + $0x2c] sm:$0x1] }
  0x84   : > { %v2071_v54 = vsel %vm11880_vm2, %v2066_v42, %v2070_v15  ;;  %v1342_v15 = vrot.slane %v11613_v14, 5  ;;  %v11271_v42 = vld [vmem:[%s15427_s1 + $0x1f0] sm:$0xff] }
  0x85   : > { %3978 = vmatpush.bf16.msra.mxu3 %v11271_v42 }
  0x86   : > { %976 = vmatmul.bf16.gmra.mxu0 %v868_v44  ;;  %1016 = vmatmul.bf16.gmra.mxu2 %v876_v45  ;;  %v11236_v44 = vld [vmem:[%s15427_s1 + $0x158] sm:$0xff]  ;;  %v11175_v45 = vld [vmem:[%s11848_s6 + $0xa8] sm:$0xff] }
  0x87   : > { %1249 = vmatmul.bf16.gmra.mxu3 %v11174_v46  ;;  %v11167_v46 = vld [vmem:[%s11848_s6 + $0x48] sm:$0xff]  ;;  %2984 = vmatpush.bf16.msrb.mxu1 %v11236_v44  ;;  %v2080_v44 = vrot.slane %v2078_v30, 5  ;;  %v1344_v30 = vrot.slane %v1342_v15, 4 }
  0x88   : > { %1209 = vmatmul.bf16.gmra.mxu1 %v11166_v47  ;;  %v623_v47 = vrot.slane %v622_v36, 4  ;;  %v1337_v36 = vrot.slane %v1335_v21, 4 }
  0x89   : > { %v2081_v56 = vsel %vm11880_vm2, %v2076_v43, %v2080_v44  ;;  %v10213_v43 = vrot.slane %v10181_v29, 9 }
  0x8a   : > { %v628_v59 = vsel %vm11880_vm2, %v623_v47, %v627_v22  ;;  %v11176_v22 = vld [vmem:[%s11848_s6 + $0xb4] sm:$0xff]  ;;  %v2760_v47 = vrot.slane %v2758_v31, 4  ;;  %v1339_v51 = vsel %vm12183_vm5, %v1337_v36, %v1338_v38  ;;  %v2443_v0 = vunpack.c.l.b16 %v2081_v56 }
  0x8b   : > { %2985 = vmatpush.bf16.msrb.mxu1 %v11235_v53  ;;  %v845_v9 = vunpack.c.l.b16 %v628_v59  ;;  %v1446_v62 = vunpack.c.l.b16 %v1339_v51  ;;  %v11263_v38 = vld [vmem:[%s15427_s1 + $0x1b0] sm:$0xff]  ;;  %v2107_v51 = vshrl.u32 %v10090_v37, 16 }
  0x8c   : > { %v2762_v60 = vsel %vm12183_vm5, %v2760_v47, %v2761_v48  ;;  %v1343_v47 = vsel %vm12183_vm5, %v9893_v28, %v1342_v15  ;;  %3296 = vmatpush.bf16.msra.mxu2 %v11263_v38  ;;  %v1352_v38 = vrot.slane %v11974_v1, 5 }
  0x8d   : > { %v870_v18 = vpack.c.b16 %v846_v10, %v845_v9  ;;  %v2098_v9 = vrot.slane %v2096_v58, 4  ;;  %v10089_v10 = vld [vmem:[%s11848_s6 + $0x20] sm:$0x1] }
  0x8f   : > { %2986 = vmatpush.bf16.msrb.mxu1 %v11234_v63  ;;  %v2442_v63 = vunpack.c.l.b16 %v2071_v54  ;;  %v2099_v20 = vor.u32 %v2098_v9, %v2094_v8 }
  0x91   : > { %v2474_v12 = vpack.c.b16 %v2443_v0, %v2442_v63  ;;  %v1447_v63 = vunpack.c.l.b16 %v1343_v47 }
  0x93   : > { %2987 = vmatpush.bf16.msrb.mxu1 %v11233_v5  ;;  %v2869_v5 = vunpack.c.l.b16 %v2762_v60 }
  0x96   : > { %981 = vmatmul.bf16.gmra.mxu0 %v869_v32  ;;  %1021 = vmatmul.bf16.gmra.mxu2 %v877_v34  ;;  %v10180_v32 = vld [vmem:[%s11848_s6 + $0xc] sm:$0xe]  ;;  %v9892_v34 = vrot.slane %v1265_v26, 9 }
  0x97   : > { %1254 = vmatmul.bf16.gmra.mxu3 %v11175_v45  ;;  %v10087_v45 = vld [vmem:[%s11848_s6 + $0x18] sm:$0xf] }
  0x98   : > { %1214 = vmatmul.bf16.gmra.mxu1 %v11167_v46  ;;  %v10212_v46 = vrot.slane %v10180_v32, 9  ;;  %v1336_v50 = vsel %vm12183_vm5, %v9892_v34, %v1335_v21  ;;  %v2083_v52 = vshrl.u32 %v10087_v45, 16  ;;  %v2086_v53 = vshll.u32 %v10087_v45, 16 }
  0x99   : > { %v1445_v61 = vunpack.c.l.b16 %v1336_v50  ;;  %v2102_v21 = vshll.u32 %v10089_v10, 16  ;;  %v2100_v34 = vrot.slane %v2099_v20, 4  ;;  %v2768_v45 = vrot.slane %v10089_v10, 5 }
  0x9a   : > { %v2759_v59 = vsel %vm12183_vm5, %v10212_v46, %v2758_v31  ;;  %v2085_v2 = vrot.slane %v2083_v52, 4  ;;  %v2088_v3 = vrot.slane %v2086_v53, 5  ;;  %v1345_v31 = vrot.slane %v11910_v7, 5  ;;  %v12222_v46 = vld [vmem:[%s11848_s6 + $0x28] sm:$0xf] }
  0x9b   : > { %v2868_v4 = vunpack.c.l.b16 %v2759_v59  ;;  %v1477_v11 = vpack.c.b16 %v1446_v62, %v1445_v61  ;;  %v2104_v36 = vrot.slane %v2102_v21, 5  ;;  %v2110_v52 = vshll.u32 %v10090_v37, 16  ;;  %v10182_v37 = vld [vmem:[%s11848_s6 + $0x24] sm:$0xe] }
  0x9c   : > { %v2089_v16 = vor.u32 %v2088_v3, %v2085_v2  ;;  %v2116_v57 = vshll.u32 %v12222_v46, 16  ;;  %v2120_v58 = vshrl.u32 %v12222_v46, 16  ;;  %v11279_v2 = vld [vmem:[%s15427_s1 + $0x230] sm:$0xff] }
  0x9d   : > { %v2105_v56 = vsel %vm11880_vm2, %v2100_v34, %v2104_v36  ;;  %4404 = vmatpush.bf16.msra.mxu0 %v11279_v2 }
  0x9e   : > { %v2090_v32 = vrot.slane %v2089_v16, 4 }
  0xa0   : > { %v2095_v50 = vsel %vm11880_vm2, %v2090_v32, %v2094_v8  ;;  %v2112_v8 = vrot.slane %v2110_v52, 5  ;;  %v2772_v32 = vrot.slane %v12222_v46, 5  ;;  %v12258_v46 = vld [vmem:[%s11848_s6 + $0x34] sm:$0xf] }
  0xa1   : > { %v2444_v3 = vunpack.c.l.b16 %v2095_v50 }
  0xa2   : > { %v2774_v47 = vrot.slane %v2772_v32, 4 }
  0xa6   : > { %986 = vmatmul.bf16.gmra.mxu0 %v870_v18  ;;  %1026 = vmatmul.bf16.gmra.mxu2 %v878_v19  ;;  %v11201_v18 = vld [vmem:[%s11848_s6 + $0xc] sm:$0xff]  ;;  %v2900_v19 = vpack.c.b16 %v2869_v5, %v2868_v4  ;;  %v2445_v4 = vunpack.c.l.b16 %v2105_v56  ;;  %v2109_v5 = vrot.slane %v2107_v51, 4 }
  0xa7   : > { %1259 = vmatmul.bf16.gmra.mxu3 %v11176_v22 }
  0xa8   : > { %1219 = vmatmul.bf16.gmra.mxu1 %v11168_v24  ;;  %v2765_v24 = vrot.slane %v12189_v49, 5  ;;  %v1346_v49 = vsel %vm12183_vm5, %v1344_v30, %v1345_v31  ;;  %v2113_v20 = vor.u32 %v2112_v8, %v2109_v5  ;;  %v2126_v30 = vshll.u32 %v10092_v13, 16 }
  0xa9   : > { %v1448_v0 = vunpack.c.l.b16 %v1346_v49 }
  0xaa   : > { %v2767_v44 = vrot.slane %v2765_v24, 4  ;;  %v2766_v60 = vsel %vm12183_vm5, %v10213_v43, %v2765_v24  ;;  %v11202_v24 = vld [vmem:[%s11848_s6 + $0x18] sm:$0xff]  ;;  %v2114_v42 = vrot.slane %v2113_v20, 4 }
  0xab   : > { %v2870_v9 = vunpack.c.l.b16 %v2766_v60  ;;  %v1478_v16 = vpack.c.b16 %v1448_v0, %v1447_v63  ;;  %v2140_v60 = vshll.u32 %v12258_v46, 16 }
  0xac   : > { %v2769_v61 = vsel %vm12183_vm5, %v2767_v44, %v2768_v45  ;;  %v2128_v44 = vrot.slane %v2126_v30, 5  ;;  %v10093_v45 = vld [vmem:[%s11848_s6 + $0x30] sm:$0xf] }
  0xad   : > { %v2871_v10 = vunpack.c.l.b16 %v2769_v61  ;;  %v2134_v56 = vshll.u32 %v10093_v45, 16  ;;  %v2144_v61 = vshrl.u32 %v12258_v46, 16 }
  0xaf   : > { %v2901_v28 = vpack.c.b16 %v2871_v10, %v2870_v9 }
  0xb3   : > { %v952_v17 = vpop.f32.mrf.mxu0 }
  0xb5   : > { %v1185_v22 = vpop.f32.mrf.mxu1 }
  0xb6   : > { %v12210_v26 = vadd.f32 %v1185_v22, %v952_v17  ;;  %1565 = vmatmul.bf16.vlgmr.msrb.gmra.mxu2 %v1477_v11  ;;  %2562 = vmatmul.bf16.vlgmr.msrb.gmra.mxu0 %v2474_v12  ;;  %v2118_v11 = vrot.slane %v2116_v57, 5  ;;  %v2122_v12 = vrot.slane %v2120_v58, 4  ;;  %v2475_v17 = vpack.c.b16 %v2445_v4, %v2444_v3 }
  0xb7   : > { %1880 = vmatmul.bf16.vlgmr.msrb.gmra.mxu3 %v11201_v18  ;;  %v1267_v18 = vld [vmem:[%s11848_s6 + $0x18] sm:$0xe] }
  0xb8   : > { %2988 = vmatmul.bf16.vlgmr.msrb.gmra.mxu1 %v2900_v19  ;;  %v1349_v19 = vrot.slane %v11945_v33, 5  ;;  %v2123_v29 = vor.u32 %v2122_v12, %v2118_v11  ;;  %v9894_v36 = vrot.slane %v1267_v18, 9  ;;  %v2119_v1 = vsel %vm11880_vm2, %v2114_v42, %v2118_v11 }
  0xb9   : > { %v992_v7 = vpop.f32.mrf.mxu2  ;;  %v2446_v8 = vunpack.c.l.b16 %v2119_v1  ;;  %v2136_v11 = vrot.slane %v2134_v56, 5 }
  0xba   : > { %v1225_v48 = vpop.f32.mrf.mxu3  ;;  %v1351_v33 = vrot.slane %v1349_v19, 4  ;;  %v2124_v43 = vrot.slane %v2123_v29, 4  ;;  %v1350_v50 = vsel %vm12183_vm5, %v9894_v36, %v1349_v19 }
  0xbb   : > { %v12230_v53 = vadd.f32 %v1225_v48, %v992_v7  ;;  %v954_v54 = vpop.f32.mrf.mxu0  ;;  %v10214_v7 = vrot.slane %v10182_v37, 9  ;;  %v2775_v48 = vrot.slane %v10092_v13, 5  ;;  %v1449_v4 = vunpack.c.l.b16 %v1350_v50  ;;  %v11270_v50 = vld [vmem:[%s15427_s1 + $0x1e8] sm:$0xff] }
  0xbc   : > { %v1353_v52 = vsel %vm12183_vm5, %v1351_v33, %v1352_v38  ;;  %v2779_v38 = vrot.slane %v12258_v46, 5  ;;  %v11262_v46 = vld [vmem:[%s15427_s1 + $0x1a8] sm:$0xff]  ;;  %3979 = vmatpush.bf16.msra.mxu3 %v11270_v50 }
  0xbd   : > { %v1187_v59 = vpop.f32.mrf.mxu1  ;;  %v2773_v0 = vsel %vm12183_vm5, %v10214_v7, %v2772_v32  ;;  %v2776_v2 = vsel %vm12183_vm5, %v2774_v47, %v2775_v48  ;;  %v1450_v5 = vunpack.c.l.b16 %v1353_v52  ;;  %3297 = vmatpush.bf16.msra.mxu2 %v11262_v46 }
  0xbe   : > { %v12240_v62 = vadd.f32 %v1187_v59, %v954_v54  ;;  %v2131_v54 = vshrl.u32 %v10093_v45, 16  ;;  %v2129_v59 = vsel %vm11880_vm2, %v2124_v43, %v2128_v44  ;;  %v2872_v12 = vunpack.c.l.b16 %v2773_v0  ;;  %v10183_v44 = vld [vmem:[%s11848_s6 + $0x30] sm:$0xe] }
  0xbf   : > { %v2447_v9 = vunpack.c.l.b16 %v2129_v59  ;;  %v2873_v13 = vunpack.c.l.b16 %v2776_v2  ;;  %v1479_v19 = vpack.c.b16 %v1450_v5, %v1449_v4  ;;  %v1359_v45 = vrot.slane %v12006_v55, 5 }
  0xc0   : > { %v2133_v10 = vrot.slane %v2131_v54, 4  ;;  %v2781_v52 = vrot.slane %v2779_v38, 4  ;;  %v12297_v54 = vld [vmem:[%s11848_s6 + $0x40] sm:$0xf] }
  0xc1   : > { %v994_v14 = vpop.f32.mrf.mxu2  ;;  %v2476_v20 = vpack.c.b16 %v2447_v9, %v2446_v8  ;;  %v2902_v32 = vpack.c.b16 %v2873_v13, %v2872_v12  ;;  %v2164_v5 = vshll.u32 %v12297_v54, 16  ;;  %v2168_v8 = vshrl.u32 %v12297_v54, 16 }
  0xc2   : > { %v1227_v15 = vpop.f32.mrf.mxu3  ;;  %v2786_v50 = vrot.slane %v12297_v54, 5  ;;  %v12333_v54 = vld [vmem:[%s11848_s6 + $0x4c] sm:$0xf] }
  0xc3   : > { %v12248_v21 = vadd.f32 %v1227_v15, %v994_v14  ;;  %v957_v22 = vpop.f32.mrf.mxu0  ;;  %v2142_v14 = vrot.slane %v2140_v60, 5  ;;  %v2146_v15 = vrot.slane %v2144_v61, 4 }
  0xc5   : > { %v1190_v31 = vpop.f32.mrf.mxu1  ;;  %v2147_v36 = vor.u32 %v2146_v15, %v2142_v14  ;;  %v11278_v15 = vld [vmem:[%s15427_s1 + $0x228] sm:$0xff] }
  0xc6   : > { %v12252_v34 = vadd.f32 %v1190_v31, %v957_v22  ;;  %1570 = vmatmul.bf16.gmra.mxu2 %v1478_v16  ;;  %2567 = vmatmul.bf16.gmra.mxu0 %v2475_v17  ;;  %v10095_v16 = vld [vmem:[%s11848_s6 + $0x38] sm:$0x1]  ;;  %v1268_v22 = vld [vmem:[%s11848_s6 + $0x24] sm:$0xe] }
  0xc7   : > { %1885 = vmatmul.bf16.gmra.mxu3 %v11202_v24  ;;  %v1356_v24 = vrot.slane %v11982_v27, 5  ;;  %v11203_v31 = vld [vmem:[%s11848_s6 + $0x24] sm:$0xff]  ;;  %v2150_v37 = vshll.u32 %v10095_v16, 16  ;;  %v9895_v43 = vrot.slane %v1268_v22, 9  ;;  %v2148_v47 = vrot.slane %v2147_v36, 4  ;;  %4405 = vmatpush.bf16.msra.mxu0 %v11278_v15 }
  0xc8   : > { %2993 = vmatmul.bf16.gmra.mxu1 %v2901_v28  ;;  %v2137_v28 = vor.u32 %v2136_v11, %v2133_v10  ;;  %v2782_v1 = vrot.slane %v10095_v16, 5 }
  0xc9   : > { %v997_v49 = vpop.f32.mrf.mxu2  ;;  %v1358_v27 = vrot.slane %v1356_v24, 4  ;;  %v2152_v48 = vrot.slane %v2150_v37, 5  ;;  %v1357_v56 = vsel %vm12183_vm5, %v9895_v43, %v1356_v24  ;;  %v2166_v24 = vrot.slane %v2164_v5, 5 }
  0xca   : > { %v1230_v51 = vpop.f32.mrf.mxu3  ;;  %v2138_v7 = vrot.slane %v2137_v28, 4  ;;  %v2783_v11 = vsel %vm12183_vm5, %v2781_v52, %v2782_v1  ;;  %v1451_v13 = vunpack.c.l.b16 %v1357_v56  ;;  %v2170_v28 = vrot.slane %v2168_v8, 4  ;;  %v10184_v1 = vld [vmem:[%s11848_s6 + $0x3c] sm:$0xe] }
  0xcb   : > { %v12266_v57 = vadd.f32 %v1230_v51, %v997_v49  ;;  %v959_v58 = vpop.f32.mrf.mxu0  ;;  %v10096_v49 = vld [vmem:[%s11848_s6 + $0x3c] sm:$0xf]  ;;  %v10215_v51 = vrot.slane %v10183_v44, 9  ;;  %v1360_v59 = vsel %vm12183_vm5, %v1358_v27, %v1359_v45  ;;  %v2153_v4 = vsel %vm11880_vm2, %v2148_v47, %v2152_v48 }
  0xcc   : > { %v2143_v60 = vsel %vm11880_vm2, %v2138_v7, %v2142_v14  ;;  %v2155_v61 = vshrl.u32 %v10096_v49, 16  ;;  %v1452_v14 = vunpack.c.l.b16 %v1360_v59  ;;  %v2875_v22 = vunpack.c.l.b16 %v2783_v11  ;;  %v11204_v7 = vld [vmem:[%s11848_s6 + $0x30] sm:$0xff] }
  0xcd   : > { %v1192_v63 = vpop.f32.mrf.mxu1  ;;  %v2780_v10 = vsel %vm12183_vm5, %v10215_v51, %v2779_v38  ;;  %v2448_v16 = vunpack.c.l.b16 %v2143_v60  ;;  %v11614_v38 = vld [vmem:[%s11848_s6 + $0x34] sm:$0xf]  ;;  %v2171_v48 = vor.u32 %v2170_v28, %v2166_v24  ;;  %v1366_v56 = vrot.slane %v12034_v41, 5 }
  0xce   : > { %v12276_v3 = vadd.f32 %v1192_v63, %v959_v58  ;;  %v2158_v63 = vshll.u32 %v10096_v49, 16  ;;  %v1480_v36 = vpack.c.b16 %v1452_v14, %v1451_v13  ;;  %v1363_v43 = vrot.slane %v11614_v38, 5 }
  0xcf   : > { %v2172_v59 = vrot.slane %v2171_v48, 4 }
  0xd1   : > { %v999_v17 = vpop.f32.mrf.mxu2 }
  0xd2   : > { %v1232_v18 = vpop.f32.mrf.mxu3 }
  0xd3   : > { %v12281_v29 = vadd.f32 %v1232_v18, %v999_v17  ;;  %v962_v30 = vpop.f32.mrf.mxu0  ;;  %v2449_v17 = vunpack.c.l.b16 %v2153_v4  ;;  %v2157_v18 = vrot.slane %v2155_v61, 4  ;;  %v10099_v61 = vld [vmem:[%s11848_s6 + $0x48] sm:$0xf] }
  0xd4   : > { %v2179_v11 = vshrl.u32 %v10099_v61, 16  ;;  %v2182_v13 = vshll.u32 %v10099_v61, 16 }
  0xd5   : > { %v1195_v33 = vpop.f32.mrf.mxu1  ;;  %v2477_v37 = vpack.c.b16 %v2449_v17, %v2448_v16  ;;  %v2188_v17 = vshll.u32 %v12333_v54, 16 }
  0xd6   : > { %v12285_v42 = vadd.f32 %v1195_v33, %v962_v30  ;;  %1575 = vmatmul.bf16.gmra.mxu2 %v1479_v19  ;;  %2572 = vmatmul.bf16.gmra.mxu0 %v2476_v20  ;;  %v2160_v19 = vrot.slane %v2158_v63, 5  ;;  %v2874_v20 = vunpack.c.l.b16 %v2780_v10  ;;  %v10098_v30 = vld [vmem:[%s11848_s6 + $0x44] sm:$0x1]  ;;  %v1269_v33 = vld [vmem:[%s11848_s6 + $0x30] sm:$0xe]  ;;  %v10216_v63 = vrot.slane %v10184_v1, 9 }
  0xd7   : > { %1890 = vmatmul.bf16.gmra.mxu3 %v11203_v31  ;;  %v2174_v49 = vshll.u32 %v10098_v30, 16  ;;  %v9896_v52 = vrot.slane %v1269_v33, 9  ;;  %v2789_v4 = vrot.slane %v10098_v30, 5 }
  0xd8   : > { %2998 = vmatmul.bf16.gmra.mxu1 %v2902_v32  ;;  %v2161_v44 = vor.u32 %v2160_v19, %v2157_v18  ;;  %v2903_v47 = vpack.c.b16 %v2875_v22, %v2874_v20  ;;  %v2192_v18 = vshrl.u32 %v12333_v54, 16  ;;  %v2787_v20 = vsel %vm12183_vm5, %v10216_v63, %v2786_v50 }
  0xd9   : > { %v1002_v55 = vpop.f32.mrf.mxu2  ;;  %v2176_v60 = vrot.slane %v2174_v49, 5  ;;  %v1364_v8 = vsel %vm12183_vm5, %v9896_v52, %v1363_v43  ;;  %v2876_v33 = vunpack.c.l.b16 %v2787_v20  ;;  %v2793_v63 = vrot.slane %v12333_v54, 5  ;;  %v11261_v54 = vld [vmem:[%s15427_s1 + $0x1a0] sm:$0xff] }
  0xda   : > { %v1235_v58 = vpop.f32.mrf.mxu3  ;;  %v1453_v28 = vunpack.c.l.b16 %v1364_v8  ;;  %v1373_v8 = vrot.slane %v12066_v35, 5  ;;  %3298 = vmatpush.bf16.msra.mxu2 %v11261_v54 }
  0xdb   : > { %v12305_v0 = vadd.f32 %v1235_v58, %v1002_v55  ;;  %v964_v2 = vpop.f32.mrf.mxu0  ;;  %v1365_v55 = vrot.slane %v1363_v43, 4  ;;  %v2162_v58 = vrot.slane %v2161_v44, 4  ;;  %v2177_v16 = vsel %vm11880_vm2, %v2172_v59, %v2176_v60 }
  0xdc   : > { %v2190_v43 = vrot.slane %v2188_v17, 5  ;;  %v2194_v44 = vrot.slane %v2192_v18, 4  ;;  %v12372_v18 = vld [vmem:[%s11848_s6 + $0x58] sm:$0xf] }
  0xdd   : > { %v1197_v9 = vpop.f32.mrf.mxu1  ;;  %v1367_v10 = vsel %vm12183_vm5, %v1365_v55, %v1366_v56  ;;  %v2167_v41 = vsel %vm11880_vm2, %v2162_v58, %v2166_v24  ;;  %v11205_v56 = vld [vmem:[%s11848_s6 + $0x3c] sm:$0xff] }
  0xde   : > { %v12315_v12 = vadd.f32 %v1197_v9, %v964_v2  ;;  %v2788_v2 = vrot.slane %v2786_v50, 4  ;;  %v1454_v30 = vunpack.c.l.b16 %v1367_v10  ;;  %v1370_v50 = vrot.slane %v12042_v6, 5 }
  0xdf   : > { %v2195_v59 = vor.u32 %v2194_v44, %v2190_v43 }
  0xe0   : > { %v2790_v22 = vsel %vm12183_vm5, %v2788_v2, %v2789_v4  ;;  %v1481_v48 = vpack.c.b16 %v1454_v30, %v1453_v28  ;;  %v1372_v6 = vrot.slane %v1370_v50, 4 }
  0xe1   : > { %v1004_v31 = vpop.f32.mrf.mxu2  ;;  %v2877_v38 = vunpack.c.l.b16 %v2790_v22  ;;  %v2196_v10 = vrot.slane %v2195_v59, 4 }
  0xe2   : > { %v1237_v32 = vpop.f32.mrf.mxu3  ;;  %v1374_v22 = vsel %vm12183_vm5, %v1372_v6, %v1373_v8  ;;  %v1271_v8 = vld [vmem:[%s11848_s6 + $0x48] sm:$0xe] }
  0xe3   : > { %v12323_v27 = vadd.f32 %v1237_v32, %v1004_v31  ;;  %v967_v45 = vpop.f32.mrf.mxu0  ;;  %v2450_v31 = vunpack.c.l.b16 %v2167_v41  ;;  %v2451_v32 = vunpack.c.l.b16 %v2177_v16  ;;  %v2904_v58 = vpack.c.b16 %v2877_v38, %v2876_v33 }
  0xe4   : > { %v2795_v16 = vrot.slane %v2793_v63, 4  ;;  %v2212_v33 = vshll.u32 %v12372_v18, 16  ;;  %v2216_v38 = vshrl.u32 %v12372_v18, 16 }
  0xe5   : > { %v1200_v46 = vpop.f32.mrf.mxu1  ;;  %v2478_v49 = vpack.c.b16 %v2451_v32, %v2450_v31 }
  0xe6   : > { %v12327_v51 = vadd.f32 %v1200_v46, %v967_v45  ;;  %1580 = vmatmul.bf16.gmra.mxu2 %v1480_v36  ;;  %2577 = vmatmul.bf16.gmra.mxu0 %v2477_v37  ;;  %v2181_v36 = vrot.slane %v2179_v11, 4  ;;  %v2184_v37 = vrot.slane %v2182_v13, 5  ;;  %v10101_v45 = vld [vmem:[%s11848_s6 + $0x50] sm:$0x1]  ;;  %v1270_v46 = vld [vmem:[%s11848_s6 + $0x3c] sm:$0xe] }
  0xe7   : > { %1895 = vmatmul.bf16.gmra.mxu3 %v11204_v7  ;;  %v2198_v60 = vshll.u32 %v10101_v45, 16  ;;  %v9897_v4 = vrot.slane %v1270_v46, 9  ;;  %v10102_v11 = vld [vmem:[%s11848_s6 + $0x54] sm:$0xf]  ;;  %v11269_v13 = vld [vmem:[%s15427_s1 + $0x1e0] sm:$0xff]  ;;  %v2796_v17 = vrot.slane %v10101_v45, 5 }
  0xe8   : > { %3003 = vmatmul.bf16.gmra.mxu1 %v2903_v47  ;;  %v2185_v52 = vor.u32 %v2184_v37, %v2181_v36  ;;  %3980 = vmatpush.bf16.msra.mxu3 %v11269_v13  ;;  %v2203_v30 = vshrl.u32 %v10102_v11, 16  ;;  %v2206_v31 = vshll.u32 %v10102_v11, 16  ;;  %v2214_v59 = vrot.slane %v2212_v33, 5  ;;  %v11206_v13 = vld [vmem:[%s11848_s6 + $0x48] sm:$0xff] }
  0xe9   : > { %v1007_v5 = vpop.f32.mrf.mxu2  ;;  %v2200_v41 = vrot.slane %v2198_v60, 5  ;;  %v2218_v60 = vrot.slane %v2216_v38, 4  ;;  %v10105_v38 = vld [vmem:[%s11848_s6 + $0x60] sm:$0xf] }
  0xea   : > { %v1240_v9 = vpop.f32.mrf.mxu3 }
  0xeb   : > { %v12341_v14 = vadd.f32 %v1240_v9, %v1007_v5  ;;  %v969_v15 = vpop.f32.mrf.mxu0  ;;  %v10185_v5 = vld [vmem:[%s11848_s6 + $0x48] sm:$0xe]  ;;  %v2186_v9 = vrot.slane %v2185_v52, 4  ;;  %v2201_v37 = vsel %vm11880_vm2, %v2196_v10, %v2200_v41  ;;  %v2205_v52 = vrot.slane %v2203_v30, 4 }
  0xed   : > { %v1202_v19 = vpop.f32.mrf.mxu1  ;;  %v2191_v28 = vsel %vm11880_vm2, %v2186_v9, %v2190_v43  ;;  %v2797_v43 = vsel %vm12183_vm5, %v2795_v16, %v2796_v17  ;;  %v11615_v9 = vld [vmem:[%s11848_s6 + $0x4c] sm:$0xf]  ;;  %v2219_v16 = vor.u32 %v2218_v60, %v2214_v59 }
  0xee   : > { %v12351_v24 = vadd.f32 %v1202_v19, %v969_v15  ;;  %v10217_v15 = vrot.slane %v10185_v5, 9  ;;  %v1371_v19 = vsel %vm12183_vm5, %v9897_v4, %v1370_v50  ;;  %v2452_v46 = vunpack.c.l.b16 %v2191_v28  ;;  %v10186_v28 = vld [vmem:[%s11848_s6 + $0x54] sm:$0xe] }
  0xef   : > { %v2453_v50 = vunpack.c.l.b16 %v2201_v37  ;;  %v1377_v10 = vrot.slane %v11615_v9, 5  ;;  %v2220_v37 = vrot.slane %v2219_v16, 4 }
  0xf0   : > { %v2794_v45 = vsel %vm12183_vm5, %v10217_v15, %v2793_v63 }
  0xf1   : > { %v1009_v7 = vpop.f32.mrf.mxu2  ;;  %v2479_v6 = vpack.c.b16 %v2453_v50, %v2452_v46  ;;  %v1379_v30 = vrot.slane %v1377_v10, 4  ;;  %v2227_v50 = vshrl.u32 %v10105_v38, 16 }
  0xf2   : > { %v1242_v47 = vpop.f32.mrf.mxu3 }
  0xf3   : > { %v12356_v1 = vadd.f32 %v1242_v47, %v1009_v7  ;;  %v972_v55 = vpop.f32.mrf.mxu0  ;;  %v1455_v47 = vunpack.c.l.b16 %v1371_v19  ;;  %v2800_v19 = vrot.slane %v12372_v18, 5  ;;  %v12408_v18 = vld [vmem:[%s11848_s6 + $0x64] sm:$0xf] }
  0xf4   : > { %v2236_v60 = vshll.u32 %v12408_v18, 16 }
  0xf5   : > { %v1205_v61 = vpop.f32.mrf.mxu1 }
  0xf6   : > { %v12360_v2 = vadd.f32 %v1205_v61, %v972_v55  ;;  %1585 = vmatmul.bf16.gmra.mxu2 %v1481_v48  ;;  %2582 = vmatmul.bf16.gmra.mxu0 %v2478_v49  ;;  %v1456_v48 = vunpack.c.l.b16 %v1374_v22  ;;  %v11277_v49 = vld [vmem:[%s15427_s1 + $0x220] sm:$0xff]  ;;  %v2208_v55 = vrot.slane %v2206_v31, 5  ;;  %v10104_v61 = vld [vmem:[%s11848_s6 + $0x5c] sm:$0x1]  ;;  %v9898_v22 = vrot.slane %v1271_v8, 9 }
  0xf7   : > { %1900 = vmatmul.bf16.gmra.mxu3 %v11205_v56  ;;  %v2878_v56 = vunpack.c.l.b16 %v2794_v45  ;;  %4406 = vmatpush.bf16.msra.mxu0 %v11277_v49  ;;  %v2222_v17 = vshll.u32 %v10104_v61, 16  ;;  %v1380_v31 = vrot.slane %v12097_v23, 5  ;;  %v2802_v45 = vrot.slane %v2800_v19, 4 }
  0xf8   : > { %3008 = vmatmul.bf16.gmra.mxu1 %v2904_v58  ;;  %v2879_v58 = vunpack.c.l.b16 %v2797_v43  ;;  %v1482_v5 = vpack.c.b16 %v1456_v48, %v1455_v47  ;;  %v2209_v41 = vor.u32 %v2208_v55, %v2205_v52  ;;  %v2803_v43 = vrot.slane %v10104_v61, 5 }
  0xf9   : > { %v1012_v35 = vpop.f32.mrf.mxu2  ;;  %v2224_v33 = vrot.slane %v2222_v17, 5  ;;  %v1378_v48 = vsel %vm12183_vm5, %v9898_v22, %v1377_v10  ;;  %v1381_v46 = vsel %vm12183_vm5, %v1379_v30, %v1380_v31  ;;  %v2230_v52 = vshll.u32 %v10105_v38, 16  ;;  %v1272_v31 = vld [vmem:[%s11848_s6 + $0x54] sm:$0xe] }
  0xfa   : > { %v1245_v20 = vpop.f32.mrf.mxu3  ;;  %v2905_v15 = vpack.c.b16 %v2879_v58, %v2878_v56  ;;  %v2240_v61 = vshrl.u32 %v12408_v18, 16  ;;  %v1458_v8 = vunpack.c.l.b16 %v1381_v46  ;;  %v2238_v16 = vrot.slane %v2236_v60, 5 }
  0xfb   : > { %v12380_v32 = vadd.f32 %v1245_v20, %v1012_v35  ;;  %v974_v36 = vpop.f32.mrf.mxu0  ;;  %v2225_v58 = vsel %vm11880_vm2, %v2220_v37, %v2224_v33  ;;  %v2807_v46 = vrot.slane %v12408_v18, 5  ;;  %v11260_v18 = vld [vmem:[%s15427_s1 + $0x198] sm:$0xff] }
  0xfc   : > { %v2455_v10 = vunpack.c.l.b16 %v2225_v58  ;;  %v2242_v17 = vrot.slane %v2240_v61, 4  ;;  %v1387_v58 = vrot.slane %v12134_v25, 5  ;;  %3299 = vmatpush.bf16.msra.mxu2 %v11260_v18 }
  0xfd   : > { %v1207_v44 = vpop.f32.mrf.mxu1 }
  0xfe   : > { %v12390_v7 = vadd.f32 %v1207_v44, %v974_v36  ;;  %v2210_v36 = vrot.slane %v2209_v41, 4  ;;  %v10218_v44 = vrot.slane %v10186_v28, 9  ;;  %v2229_v41 = vrot.slane %v2227_v50, 4 }
  0xff   : > { %v9899_v50 = vrot.slane %v1272_v31, 9 }
 0x100   : > { %v2215_v23 = vsel %vm11880_vm2, %v2210_v36, %v2214_v59  ;;  %v2804_v59 = vsel %vm12183_vm5, %v2802_v45, %v2803_v43  ;;  %v11616_v36 = vld [vmem:[%s11848_s6 + $0x58] sm:$0xf] }
 0x101   : > { %v1014_v63 = vpop.f32.mrf.mxu2  ;;  %v2454_v9 = vunpack.c.l.b16 %v2215_v23  ;;  %v1384_v37 = vrot.slane %v11616_v36, 5  ;;  %v11207_v45 = vld [vmem:[%s11848_s6 + $0x54] sm:$0xff] }
 0x102   : > { %v1247_v4 = vpop.f32.mrf.mxu3 }
 0x103   : > { %v12398_v11 = vadd.f32 %v1247_v4, %v1014_v63  ;;  %v977_v54 = vpop.f32.mrf.mxu0  ;;  %v2801_v4 = vsel %vm12183_vm5, %v10218_v44, %v2800_v19  ;;  %v2480_v30 = vpack.c.b16 %v2455_v10, %v2454_v9  ;;  %v12447_v10 = vld [vmem:[%s11848_s6 + $0x70] sm:$0xf] }
 0x104   : > { %v2264_v31 = vshrl.u32 %v12447_v10, 16 }
 0x105   : > { %v1210_v35 = vpop.f32.mrf.mxu1 }
 0x106   : > { %v12402_v20 = vadd.f32 %v1210_v35, %v977_v54  ;;  %1590 = vmatmul.bf16.gmra.mxu2 %v1482_v5  ;;  %2587 = vmatmul.bf16.gmra.mxu0 %v2479_v6  ;;  %v1457_v6 = vunpack.c.l.b16 %v1378_v48  ;;  %v2232_v54 = vrot.slane %v2230_v52, 5  ;;  %v10107_v35 = vld [vmem:[%s11848_s6 + $0x68] sm:$0x1]  ;;  %v10187_v52 = vld [vmem:[%s11848_s6 + $0x60] sm:$0xe] }
 0x107   : > { %1905 = vmatmul.bf16.gmra.mxu3 %v11206_v13  ;;  %v2880_v13 = vunpack.c.l.b16 %v2801_v4  ;;  %v2246_v48 = vshll.u32 %v10107_v35, 16  ;;  %v10108_v4 = vld [vmem:[%s11848_s6 + $0x6c] sm:$0xf]  ;;  %v2810_v9 = vrot.slane %v10107_v35, 5 }
 0x108   : > { %3013 = vmatmul.bf16.gmra.mxu1 %v2905_v15  ;;  %v2881_v15 = vunpack.c.l.b16 %v2804_v59  ;;  %v1483_v28 = vpack.c.b16 %v1458_v8, %v1457_v6  ;;  %v2233_v33 = vor.u32 %v2232_v54, %v2229_v41  ;;  %v11268_v59 = vld [vmem:[%s15427_s1 + $0x1d8] sm:$0xff]  ;;  %v10219_v6 = vrot.slane %v10187_v52, 9 }
 0x109   : > { %v1017_v47 = vpop.f32.mrf.mxu2  ;;  %v2809_v8 = vrot.slane %v2807_v46, 4  ;;  %v1385_v41 = vsel %vm12183_vm5, %v9899_v50, %v1384_v37  ;;  %3981 = vmatpush.bf16.msra.mxu3 %v11268_v59  ;;  %v1273_v59 = vld [vmem:[%s11848_s6 + $0x60] sm:$0xe] }
 0x10a   : > { %v1250_v49 = vpop.f32.mrf.mxu3  ;;  %v2906_v43 = vpack.c.b16 %v2881_v15, %v2880_v13  ;;  %v2234_v60 = vrot.slane %v2233_v33, 4 }
 0x10b   : > { %v12416_v55 = vadd.f32 %v1250_v49, %v1017_v47  ;;  %v979_v56 = vpop.f32.mrf.mxu0  ;;  %v2243_v47 = vor.u32 %v2242_v17, %v2238_v16  ;;  %v2251_v17 = vshrl.u32 %v10108_v4, 16 }
 0x10c   : > { %v2239_v15 = vsel %vm11880_vm2, %v2234_v60, %v2238_v16  ;;  %v2811_v16 = vsel %vm12183_vm5, %v2809_v8, %v2810_v9  ;;  %v10110_v60 = vld [vmem:[%s11848_s6 + $0x74] sm:$0x1] }
 0x10d   : > { %v1212_v63 = vpop.f32.mrf.mxu1  ;;  %v2244_v61 = vrot.slane %v2243_v47, 4  ;;  %v2883_v52 = vunpack.c.l.b16 %v2811_v16 }
 0x10e   : > { %v12426_v5 = vadd.f32 %v1212_v63, %v979_v56  ;;  %v1386_v56 = vrot.slane %v1384_v37, 4  ;;  %v2248_v63 = vrot.slane %v2246_v48, 5  ;;  %v2808_v37 = vsel %vm12183_vm5, %v10219_v6, %v2807_v46  ;;  %v11276_v46 = vld [vmem:[%s15427_s1 + $0x218] sm:$0xff]  ;;  %v11617_v6 = vld [vmem:[%s11848_s6 + $0x64] sm:$0xf] }
 0x10f   : > { %v2253_v48 = vrot.slane %v2251_v17, 4  ;;  %v2882_v50 = vunpack.c.l.b16 %v2808_v37  ;;  %v1391_v8 = vrot.slane %v11617_v6, 5  ;;  %4407 = vmatpush.bf16.msra.mxu0 %v11276_v46  ;;  %v2270_v17 = vshll.u32 %v10110_v60, 16  ;;  %v11618_v37 = vld [vmem:[%s11848_s6 + $0x68] sm:$0x1] }
 0x110   : > { %v1388_v13 = vsel %vm12183_vm5, %v1386_v56, %v1387_v58  ;;  %v2266_v58 = vrot.slane %v2264_v31, 4  ;;  %v10188_v31 = vld [vmem:[%s11848_s6 + $0x6c] sm:$0xe]  ;;  %v1394_v16 = vrot.slane %v11618_v37, 5 }
 0x111   : > { %v1019_v19 = vpop.f32.mrf.mxu2 }
 0x112   : > { %v1252_v22 = vpop.f32.mrf.mxu3 }
 0x113   : > { %v12431_v38 = vadd.f32 %v1252_v22, %v1019_v19  ;;  %v982_v44 = vpop.f32.mrf.mxu0  ;;  %v2254_v19 = vshll.u32 %v10108_v4, 16 }
 0x115   : > { %v1215_v49 = vpop.f32.mrf.mxu1 }
 0x116   : > { %v12435_v23 = vadd.f32 %v1215_v49, %v982_v44  ;;  %1595 = vmatmul.bf16.gmra.mxu2 %v1483_v28  ;;  %2592 = vmatmul.bf16.gmra.mxu0 %v2480_v30  ;;  %v2249_v28 = vsel %vm11880_vm2, %v2244_v61, %v2248_v63  ;;  %v2260_v30 = vshll.u32 %v12447_v10, 16  ;;  %v1459_v44 = vunpack.c.l.b16 %v1385_v41 }
 0x117   : > { %1910 = vmatmul.bf16.gmra.mxu3 %v11207_v45  ;;  %v1460_v45 = vunpack.c.l.b16 %v1388_v13  ;;  %v2457_v47 = vunpack.c.l.b16 %v2249_v28  ;;  %v2256_v49 = vrot.slane %v2254_v19, 5  ;;  %v2907_v13 = vpack.c.b16 %v2883_v52, %v2882_v50 }
 0x118   : > { %3018 = vmatmul.bf16.gmra.mxu1 %v2906_v43  ;;  %v2456_v43 = vunpack.c.l.b16 %v2239_v15  ;;  %v2262_v56 = vrot.slane %v2260_v30, 5  ;;  %v9900_v30 = vrot.slane %v1273_v59, 9  ;;  %v2817_v50 = vrot.slane %v10110_v60, 5 }
 0x119   : > { %v1022_v25 = vpop.f32.mrf.mxu2  ;;  %v1484_v4 = vpack.c.b16 %v1460_v45, %v1459_v44  ;;  %v2257_v9 = vor.u32 %v2256_v49, %v2253_v48  ;;  %v10220_v48 = vrot.slane %v10188_v31, 9 }
 0x11a   : > { %v1255_v54 = vpop.f32.mrf.mxu3  ;;  %v2481_v18 = vpack.c.b16 %v2457_v47, %v2456_v43  ;;  %v2267_v15 = vor.u32 %v2266_v58, %v2262_v56  ;;  %v2272_v43 = vrot.slane %v2270_v17, 5  ;;  %v10111_v47 = vld [vmem:[%s11848_s6 + $0x78] sm:$0xf]  ;;  %v1392_v58 = vsel %vm12183_vm5, %v9900_v30, %v1391_v8 }
 0x11b   : > { %v12455_v22 = vadd.f32 %v1255_v54, %v1022_v25  ;;  %v984_v35 = vpop.f32.mrf.mxu0  ;;  %v11208_v54 = vld [vmem:[%s11848_s6 + $0x60] sm:$0xff]  ;;  %v2258_v44 = vrot.slane %v2257_v9, 4 }
 0x11c   : > { %v2268_v45 = vrot.slane %v2267_v15, 4  ;;  %v1461_v15 = vunpack.c.l.b16 %v1392_v58  ;;  %v1274_v58 = vld [vmem:[%s11848_s6 + $0x6c] sm:$0xe] }
 0x11d   : > { %v1217_v36 = vpop.f32.mrf.mxu1 }
 0x11e   : > { %v12465_v33 = vadd.f32 %v1217_v36, %v984_v35  ;;  %v2814_v35 = vrot.slane %v12447_v10, 5  ;;  %v1393_v36 = vrot.slane %v1391_v8, 4  ;;  %v12483_v10 = vld [vmem:[%s11848_s6 + $0x7c] sm:$0xf]  ;;  %v2273_v60 = vsel %vm11880_vm2, %v2268_v45, %v2272_v43  ;;  %v10113_v43 = vld [vmem:[%s11848_s6 + $0x80] sm:$0x1] }
 0x11f   : > { %v2284_v9 = vshll.u32 %v12483_v10, 16  ;;  %v2288_v8 = vshrl.u32 %v12483_v10, 16  ;;  %v2459_v30 = vunpack.c.l.b16 %v2273_v60  ;;  %v2294_v60 = vshll.u32 %v10113_v43, 16 }
 0x120   : > { %v2816_v49 = vrot.slane %v2814_v35, 4 }
 0x121   : > { %v1024_v61 = vpop.f32.mrf.mxu2  ;;  %v2290_v45 = vrot.slane %v2288_v8, 4  ;;  %v2821_v8 = vrot.slane %v12483_v10, 5 }
 0x122   : > { %v1257_v63 = vpop.f32.mrf.mxu3 }
 0x123   : > { %v12473_v25 = vadd.f32 %v1257_v63, %v1024_v61  ;;  %v987_v41 = vpop.f32.mrf.mxu0  ;;  %v1395_v61 = vsel %vm12183_vm5, %v1393_v36, %v1394_v16  ;;  %v2263_v63 = vsel %vm11880_vm2, %v2258_v44, %v2262_v56  ;;  %v2818_v56 = vsel %vm12183_vm5, %v2816_v49, %v2817_v50 }
 0x124   : > { %v1462_v17 = vunpack.c.l.b16 %v1395_v61  ;;  %v2885_v16 = vunpack.c.l.b16 %v2818_v56  ;;  %v2286_v44 = vrot.slane %v2284_v9, 5  ;;  %v11620_v56 = vld [vmem:[%s11848_s6 + $0x74] sm:$0x1]  ;;  %v2823_v10 = vrot.slane %v2821_v8, 4 }
 0x125   : > { %v1220_v19 = vpop.f32.mrf.mxu1 }
 0x126   : > { %v12477_v28 = vadd.f32 %v1220_v19, %v987_v41  ;;  %1600 = vmatmul.bf16.gmra.mxu2 %v1484_v4  ;;  %2597 = vmatmul.bf16.gmra.mxu0 %v2481_v18  ;;  %v2275_v4 = vshrl.u32 %v10111_v47, 16  ;;  %v2278_v18 = vshll.u32 %v10111_v47, 16  ;;  %v2458_v19 = vunpack.c.l.b16 %v2263_v63 }
 0x127   : > { %1915 = vmatmul.bf16.gmra.mxu3 %v11208_v54  ;;  %v2815_v54 = vsel %vm12183_vm5, %v10220_v48, %v2814_v35  ;;  %v11619_v35 = vld [vmem:[%s11848_s6 + $0x70] sm:$0xf]  ;;  %v1485_v50 = vpack.c.b16 %v1462_v17, %v1461_v15  ;;  %v1401_v15 = vrot.slane %v11620_v56, 5  ;;  %v10189_v17 = vld [vmem:[%s11848_s6 + $0x78] sm:$0xe] }
 0x128   : > { %3023 = vmatmul.bf16.gmra.mxu1 %v2907_v13  ;;  %v2277_v31 = vrot.slane %v2275_v4, 4  ;;  %v2280_v36 = vrot.slane %v2278_v18, 5  ;;  %v2884_v37 = vunpack.c.l.b16 %v2815_v54  ;;  %v1398_v48 = vrot.slane %v11619_v35, 5  ;;  %v11209_v4 = vld [vmem:[%s11848_s6 + $0x6c] sm:$0xff] }
 0x129   : > { %v1027_v52 = vpop.f32.mrf.mxu2  ;;  %v11267_v35 = vld [vmem:[%s15427_s1 + $0x1d0] sm:$0xff] }
 0x12a   : > { %v1260_v46 = vpop.f32.mrf.mxu3  ;;  %v2908_v18 = vpack.c.b16 %v2885_v16, %v2884_v37  ;;  %v1400_v54 = vrot.slane %v1398_v48, 4  ;;  %v11259_v37 = vld [vmem:[%s15427_s1 + $0x190] sm:$0xff]  ;;  %v10221_v16 = vrot.slane %v10189_v17, 9  ;;  %3982 = vmatpush.bf16.msra.mxu3 %v11267_v35 }
 0x12b   : > { %v12491_v59 = vadd.f32 %v1260_v46, %v1027_v52  ;;  %v989_v6 = vpop.f32.mrf.mxu0  ;;  %v2482_v52 = vpack.c.b16 %v2459_v30, %v2458_v19  ;;  %v2281_v46 = vor.u32 %v2280_v36, %v2277_v31  ;;  %v2296_v31 = vrot.slane %v2294_v60, 5  ;;  %v10114_v36 = vld [vmem:[%s11848_s6 + $0x84] sm:$0xf]  ;;  %3300 = vmatpush.bf16.msra.mxu2 %v11259_v37 }
 0x12d   : > { %v1222_v41 = vpop.f32.mrf.mxu1  ;;  %v2282_v19 = vrot.slane %v2281_v46, 4 }
 0x12e   : > { %v12501_v13 = vadd.f32 %v1222_v41, %v989_v6  ;;  %v2291_v6 = vor.u32 %v2290_v45, %v2286_v44  ;;  %v9901_v41 = vrot.slane %v1274_v58, 9  ;;  %v2824_v45 = vrot.slane %v10113_v43, 5 }
 0x12f   : > { %v2287_v43 = vsel %vm11880_vm2, %v2282_v19, %v2286_v44 }
 0x130   : > { %v2292_v30 = vrot.slane %v2291_v6, 4  ;;  %v2825_v44 = vsel %vm12183_vm5, %v2823_v10, %v2824_v45  ;;  %v11275_v10 = vld [vmem:[%s15427_s1 + $0x210] sm:$0xff] }
 0x131   : > { %v1029_v47 = vpop.f32.mrf.mxu2  ;;  %4408 = vmatpush.bf16.msra.mxu0 %v11275_v10 }
 0x132   : > { %v1262_v49 = vpop.f32.mrf.mxu3  ;;  %v2297_v60 = vsel %vm11880_vm2, %v2292_v30, %v2296_v31 }
 0x133   : > { %v12506_v61 = vadd.f32 %v1262_v49, %v1029_v47  ;;  %v2563_v63 = vpop.f32.mrf.mxu0  ;;  %v12517_v47 = vld [vmem:[%s11848_s6 + $0x88] sm:$0xf]  ;;  %v2461_v30 = vunpack.c.l.b16 %v2297_v60  ;;  %v1275_v60 = vld [vmem:[%s11848_s6 + $0x78] sm:$0xe] }
 0x134   : > { %v2308_v56 = vshll.u32 %v12517_v47, 16 }
 0x135   : > { %15441 = vst [vmem:[#allocation9_spill] sm:$0xff] %v12506_v61  ;;  %v2989_v9 = vpop.f32.mrf.mxu1  ;;  %v10116_v61 = vld [vmem:[%s11848_s6 + $0x8c] sm:$0x1] }
 0x136   : > { %1605 = vmatmul.bf16.gmra.mxu2 %v1485_v50  ;;  %2602 = vmatmul.bf16.gmra.mxu0 %v2482_v52  ;;  %v1399_v50 = vsel %vm12183_vm5, %v9901_v41, %v1398_v48  ;;  %v1402_v52 = vsel %vm12183_vm5, %v1400_v54, %v1401_v15  ;;  %v2312_v48 = vshrl.u32 %v12517_v47, 16  ;;  %v11312_v15 = vld [vmem:[#allocation3 + $0x78] sm:$0xff] }
 0x137   : > { %1920 = vmatmul.bf16.gmra.mxu3 %v11209_v4  ;;  %v2299_v4 = vshrl.u32 %v10114_v36, 16  ;;  %v1463_v17 = vunpack.c.l.b16 %v1399_v50  ;;  %v1464_v19 = vunpack.c.l.b16 %v1402_v52  ;;  %5637 = vmatpush.bf16.msra.mxu1 %v11312_v15  ;;  %v11621_v50 = vld [vmem:[%s11848_s6 + $0x7c] sm:$0xf] }
 0x138   : > { %3028 = vmatmul.bf16.gmra.mxu1 %v2908_v18  ;;  %v2302_v18 = vshll.u32 %v10114_v36, 16  ;;  %v2460_v36 = vunpack.c.l.b16 %v2287_v43 }
 0x139   : > { %v1566_v49 = vpop.f32.mrf.mxu2  ;;  %v2301_v31 = vrot.slane %v2299_v4, 4  ;;  %v1486_v4 = vpack.c.b16 %v1464_v19, %v1463_v17  ;;  %v10190_v19 = vld [vmem:[%s11848_s6 + $0x84] sm:$0xe] }
 0x13a   : > { %v1646_v58 = vadd.f32 %v1566_v49, %v12210_v26  ;;  %v1881_v46 = vpop.f32.mrf.mxu3  ;;  %v2822_v26 = vsel %vm12183_vm5, %v10221_v16, %v2821_v8  ;;  %v2304_v35 = vrot.slane %v2302_v18, 5  ;;  %v2314_v8 = vrot.slane %v2312_v48, 4  ;;  %v11210_v48 = vld [vmem:[%s11848_s6 + $0x78] sm:$0xff] }
 0x13b   : > { %v2565_v6 = vpop.f32.mrf.mxu0  ;;  %v2886_v49 = vunpack.c.l.b16 %v2822_v26  ;;  %v2483_v18 = vpack.c.b16 %v2461_v30, %v2460_v36 }
 0x13c   : > { %v1961_v41 = vadd.f32 %v1881_v46, %v1646_v58  ;;  %v2887_v58 = vunpack.c.l.b16 %v2825_v44  ;;  %v2310_v46 = vrot.slane %v2308_v56, 5  ;;  %v2305_v56 = vor.u32 %v2304_v35, %v2301_v31 }
 0x13d   : > { %v2991_v54 = vpop.f32.mrf.mxu1  ;;  %v2318_v44 = vshll.u32 %v10116_v61, 16 }
 0x13e   : > { %v2643_v37 = vadd.f32 %v2563_v63, %v1961_v41  ;;  %v1405_v63 = vrot.slane %v11621_v50, 5  ;;  %v2909_v41 = vpack.c.b16 %v2887_v58, %v2886_v49  ;;  %v2315_v26 = vor.u32 %v2314_v8, %v2310_v46  ;;  %v10117_v49 = vld [vmem:[%s11848_s6 + $0x90] sm:$0xf] }
 0x13f   : > { %v2828_v50 = vrot.slane %v12517_v47, 5  ;;  %v2306_v30 = vrot.slane %v2305_v56, 4  ;;  %v2320_v35 = vrot.slane %v2318_v44, 5  ;;  %v10222_v8 = vrot.slane %v10190_v19, 9 }
 0x140   : > { %v12537_v16 = vadd.f32 %v2989_v9, %v2643_v37  ;;  %v2316_v31 = vrot.slane %v2315_v26, 4  ;;  %v2831_v47 = vrot.slane %v10116_v61, 5 }
 0x141   : > { %v1568_v45 = vpop.f32.mrf.mxu2  ;;  %v2830_v10 = vrot.slane %v2828_v50, 4  ;;  %v2311_v56 = vsel %vm11880_vm2, %v2306_v30, %v2310_v46 }
 0x142   : > { %15442 = vst [vmem:[#allocation10_spill] sm:$0xff] %v12537_v16  ;;  %v1647_v52 = vadd.f32 %v1568_v45, %v12240_v62  ;;  %v1883_v43 = vpop.f32.mrf.mxu3  ;;  %v9902_v16 = vrot.slane %v1275_v60, 9  ;;  %v1407_v62 = vrot.slane %v1405_v63, 4  ;;  %v11622_v45 = vld [vmem:[%s11848_s6 + $0x80] sm:$0x1]  ;;  %v2321_v61 = vsel %vm11880_vm2, %v2316_v31, %v2320_v35 }
 0x143   : > { %v2568_v9 = vpop.f32.mrf.mxu0  ;;  %v1408_v17 = vrot.slane %v11622_v45, 5  ;;  %v2832_v46 = vsel %vm12183_vm5, %v2830_v10, %v2831_v47  ;;  %v2462_v45 = vunpack.c.l.b16 %v2311_v56  ;;  %v2463_v19 = vunpack.c.l.b16 %v2321_v61  ;;  %v1276_v56 = vld [vmem:[%s11848_s6 + $0x84] sm:$0xe] }
 0x144   : > { %v1962_v15 = vadd.f32 %v1883_v43, %v1647_v52  ;;  %v12554_v52 = vld [vmem:[%s11848_s6 + $0x94] sm:$0xf]  ;;  %v1406_v60 = vsel %vm12183_vm5, %v9902_v16, %v1405_v63  ;;  %v2889_v35 = vunpack.c.l.b16 %v2832_v46  ;;  %v11211_v61 = vld [vmem:[%s11848_s6 + $0x84] sm:$0xff] }
 0x145   : > { %v2994_v37 = vpop.f32.mrf.mxu1  ;;  %v2332_v26 = vshll.u32 %v12554_v52, 16  ;;  %v2336_v44 = vshrl.u32 %v12554_v52, 16  ;;  %v2835_v46 = vrot.slane %v12554_v52, 5 }
 0x146   : > { %1610 = vmatmul.bf16.gmra.mxu2 %v1486_v4  ;;  %2607 = vmatmul.bf16.gmra.mxu0 %v2483_v18  ;;  %v2644_v36 = vadd.f32 %v2565_v6, %v1962_v15  ;;  %v1409_v6 = vsel %vm12183_vm5, %v1407_v62, %v1408_v17  ;;  %v1465_v15 = vunpack.c.l.b16 %v1406_v60 }
 0x147   : > { %1925 = vmatmul.bf16.gmra.mxu3 %v11210_v48  ;;  %v2326_v48 = vshll.u32 %v10117_v49, 16  ;;  %v1466_v62 = vunpack.c.l.b16 %v1409_v6  ;;  %v2484_v6 = vpack.c.b16 %v2463_v19, %v2462_v45 }
 0x148   : > { %3033 = vmatmul.bf16.gmra.mxu1 %v2909_v41  ;;  %v12551_v58 = vadd.f32 %v2991_v54, %v2644_v36  ;;  %v2323_v54 = vshrl.u32 %v10117_v49, 16  ;;  %v12571_v49 = vrot.slane %v2332_v26, 5 }
 0x149   : > { %v1571_v43 = vpop.f32.mrf.mxu2  ;;  %v2328_v30 = vrot.slane %v2326_v48, 5  ;;  %v1487_v60 = vpack.c.b16 %v1466_v62, %v1465_v15  ;;  %v10191_v15 = vld [vmem:[%s11848_s6 + $0x90] sm:$0xe] }
 0x14a   : > { %v1648_v4 = vadd.f32 %v1571_v43, %v12252_v34  ;;  %v1886_v18 = vpop.f32.mrf.mxu3  ;;  %v2829_v34 = vsel %vm12183_vm5, %v10222_v8, %v2828_v50  ;;  %v2325_v36 = vrot.slane %v2323_v54, 4  ;;  %v2338_v43 = vrot.slane %v2336_v44, 4  ;;  %v10119_v50 = vld [vmem:[%s11848_s6 + $0x98] sm:$0x1] }
 0x14b   : > { %v2570_v41 = vpop.f32.mrf.mxu0  ;;  %v2888_v31 = vunpack.c.l.b16 %v2829_v34 }
 0x14c   : > { %v1963_v16 = vadd.f32 %v1886_v18, %v1648_v4  ;;  %v11623_v18 = vld [vmem:[%s11848_s6 + $0x88] sm:$0xf]  ;;  %v2329_v54 = vor.u32 %v2328_v30, %v2325_v36  ;;  %v2339_v44 = vor.u32 %v2338_v43, %v12571_v49  ;;  %v10120_v30 = vld [vmem:[%s11848_s6 + $0x9c] sm:$0xf]  ;;  %v2837_v43 = vrot.slane %v2835_v46, 4 }
 0x14d   : > { %v2996_v63 = vpop.f32.mrf.mxu1  ;;  %v1412_v10 = vrot.slane %v11623_v18, 5  ;;  %v2910_v26 = vpack.c.b16 %v2889_v35, %v2888_v31  ;;  %v11258_v31 = vld [vmem:[%s15427_s1 + $0x188] sm:$0xff]  ;;  %v10223_v35 = vrot.slane %v10191_v15, 9 }
 0x14e   : > { %v2645_v17 = vadd.f32 %v2568_v9, %v1963_v16  ;;  %v2330_v45 = vrot.slane %v2329_v54, 4  ;;  %v2340_v19 = vrot.slane %v2339_v44, 4  ;;  %3301 = vmatpush.bf16.msra.mxu2 %v11258_v31 }
 0x150   : > { %v12573_v4 = vadd.f32 %v2994_v37, %v2645_v17  ;;  %v2342_v37 = vshll.u32 %v10119_v50, 16  ;;  %v9903_v17 = vrot.slane %v1276_v56, 9 }
 0x151   : > { %v1573_v8 = vpop.f32.mrf.mxu2 }
 0x152   : > { %v1649_v47 = vadd.f32 %v1573_v8, %v12276_v3  ;;  %v1888_v9 = vpop.f32.mrf.mxu3  ;;  %v1414_v3 = vrot.slane %v1412_v10, 4  ;;  %v11624_v8 = vld [vmem:[%s11848_s6 + $0x8c] sm:$0x1]  ;;  %v2344_v36 = vrot.slane %v2342_v37, 5 }
 0x153   : > { %v2573_v48 = vpop.f32.mrf.mxu0  ;;  %v1415_v18 = vrot.slane %v11624_v8, 5  ;;  %v11311_v8 = vld [vmem:[#allocation3 + $0x70] sm:$0xff] }
 0x154   : > { %v1964_v16 = vadd.f32 %v1888_v9, %v1649_v47  ;;  %v2838_v47 = vrot.slane %v10119_v50, 5  ;;  %v12591_v9 = vld [vmem:[%s11848_s6 + $0xa0] sm:$0xf]  ;;  %v2335_v50 = vsel %vm11880_vm2, %v2330_v45, %v12571_v49  ;;  %v2345_v37 = vsel %vm11880_vm2, %v2340_v19, %v2344_v36  ;;  %5638 = vmatpush.bf16.msra.mxu1 %v11311_v8 }
 0x155   : > { %v2999_v34 = vpop.f32.mrf.mxu1  ;;  %v1416_v56 = vsel %vm12183_vm5, %v1414_v3, %v1415_v18  ;;  %v2465_v19 = vunpack.c.l.b16 %v2345_v37 }
 0x156   : > { %1615 = vmatmul.bf16.gmra.mxu2 %v1487_v60  ;;  %2612 = vmatmul.bf16.gmra.mxu0 %v2484_v6  ;;  %v2646_v62 = vadd.f32 %v2570_v41, %v1964_v16  ;;  %v11266_v41 = vld [vmem:[%s15427_s1 + $0x1c8] sm:$0xff]  ;;  %v1413_v6 = vsel %vm12183_vm5, %v9903_v17, %v1412_v10  ;;  %v2356_v10 = vshll.u32 %v12591_v9, 16  ;;  %v2360_v16 = vshrl.u32 %v12591_v9, 16 }
 0x157   : > { %1930 = vmatmul.bf16.gmra.mxu3 %v11211_v61  ;;  %v2347_v61 = vshrl.u32 %v10120_v30, 16  ;;  %v2839_v49 = vsel %vm12183_vm5, %v2837_v43, %v2838_v47  ;;  %v1467_v18 = vunpack.c.l.b16 %v1413_v6  ;;  %v1468_v15 = vunpack.c.l.b16 %v1416_v56  ;;  %v11274_v43 = vld [vmem:[%s15427_s1 + $0x208] sm:$0xff]  ;;  %v11625_v6 = vld [vmem:[%s11848_s6 + $0x94] sm:$0xf] }
 0x158   : > { %3038 = vmatmul.bf16.gmra.mxu1 %v2910_v26  ;;  %v12588_v52 = vadd.f32 %v2996_v63, %v2646_v62  ;;  %v2350_v26 = vshll.u32 %v10120_v30, 16  ;;  %3983 = vmatpush.bf16.msra.mxu3 %v11266_v41  ;;  %v2464_v62 = vunpack.c.l.b16 %v2335_v50  ;;  %v2891_v41 = vunpack.c.l.b16 %v2839_v49 }
 0x159   : > { %v1576_v60 = vpop.f32.mrf.mxu2  ;;  %v2349_v36 = vrot.slane %v2347_v61, 4  ;;  %v1488_v50 = vpack.c.b16 %v1468_v15, %v1467_v18  ;;  %4409 = vmatpush.bf16.msra.mxu0 %v11274_v43  ;;  %v10192_v15 = vld [vmem:[%s11848_s6 + $0x9c] sm:$0xe] }
 0x15a   : > { %v1650_v63 = vadd.f32 %v1576_v60, %v12285_v42  ;;  %v1891_v54 = vpop.f32.mrf.mxu3  ;;  %v2836_v42 = vsel %vm12183_vm5, %v10223_v35, %v2835_v46  ;;  %v2352_v30 = vrot.slane %v2350_v26, 5  ;;  %v2358_v60 = vrot.slane %v2356_v10, 5  ;;  %v1277_v26 = vld [vmem:[%s11848_s6 + $0x90] sm:$0xe] }
 0x15b   : > { %v2575_v44 = vpop.f32.mrf.mxu0  ;;  %v2890_v31 = vunpack.c.l.b16 %v2836_v42  ;;  %v2362_v46 = vrot.slane %v2360_v16, 4  ;;  %v2485_v61 = vpack.c.b16 %v2465_v19, %v2464_v62  ;;  %v11212_v10 = vld [vmem:[%s11848_s6 + $0x90] sm:$0xff] }
 0x15c   : > { %v1965_v17 = vadd.f32 %v1891_v54, %v1650_v63  ;;  %v10122_v63 = vld [vmem:[%s11848_s6 + $0xa4] sm:$0x1]  ;;  %v2353_v37 = vor.u32 %v2352_v30, %v2349_v36 }
 0x15d   : > { %v3001_v3 = vpop.f32.mrf.mxu1  ;;  %v2911_v16 = vpack.c.b16 %v2891_v41, %v2890_v31  ;;  %v2366_v42 = vshll.u32 %v10122_v63, 16  ;;  %v10123_v31 = vld [vmem:[%s11848_s6 + $0xa8] sm:$0xf] }
 0x15e   : > { %v2647_v45 = vadd.f32 %v2573_v48, %v1965_v17  ;;  %v1419_v48 = vrot.slane %v11625_v6, 5  ;;  %v2363_v17 = vor.u32 %v2362_v46, %v2358_v60  ;;  %v9904_v6 = vrot.slane %v1277_v26, 9 }
 0x15f   : > { %v2354_v19 = vrot.slane %v2353_v37, 4  ;;  %v2368_v30 = vrot.slane %v2366_v42, 5  ;;  %v10224_v46 = vrot.slane %v10192_v15, 9 }
 0x160   : > { %v12612_v35 = vadd.f32 %v2999_v34, %v2647_v45  ;;  %v2842_v45 = vrot.slane %v12591_v9, 5  ;;  %v2364_v36 = vrot.slane %v2363_v17, 4  ;;  %v2845_v9 = vrot.slane %v10122_v63, 5 }
 0x161   : > { %v1578_v47 = vpop.f32.mrf.mxu2  ;;  %v1420_v26 = vsel %vm12183_vm5, %v9904_v6, %v1419_v48  ;;  %v2359_v37 = vsel %vm11880_vm2, %v2354_v19, %v2358_v60 }
 0x162   : > { %v1651_v56 = vadd.f32 %v1578_v47, %v12315_v12  ;;  %v1893_v54 = vpop.f32.mrf.mxu3  ;;  %v1421_v12 = vrot.slane %v1419_v48, 4  ;;  %v11626_v47 = vld [vmem:[%s11848_s6 + $0x98] sm:$0x1]  ;;  %v2844_v43 = vrot.slane %v2842_v45, 4  ;;  %v2369_v63 = vsel %vm11880_vm2, %v2364_v36, %v2368_v30 }
 0x163   : > { %v2578_v34 = vpop.f32.mrf.mxu0  ;;  %v1422_v18 = vrot.slane %v11626_v47, 5  ;;  %v1469_v6 = vunpack.c.l.b16 %v1420_v26  ;;  %v2466_v47 = vunpack.c.l.b16 %v2359_v37  ;;  %v2467_v15 = vunpack.c.l.b16 %v2369_v63  ;;  %v1278_v37 = vld [vmem:[%s11848_s6 + $0x9c] sm:$0xe] }
 0x164   : > { %v1966_v49 = vadd.f32 %v1893_v54, %v1651_v56  ;;  %v12629_v56 = vld [vmem:[%s11848_s6 + $0xac] sm:$0xf]  ;;  %v2846_v60 = vsel %vm12183_vm5, %v2844_v43, %v2845_v9  ;;  %v11213_v63 = vld [vmem:[%s11848_s6 + $0x9c] sm:$0xff] }
 0x165   : > { %v3004_v8 = vpop.f32.mrf.mxu1  ;;  %v2380_v17 = vshll.u32 %v12629_v56, 16  ;;  %v2384_v42 = vshrl.u32 %v12629_v56, 16  ;;  %v2893_v30 = vunpack.c.l.b16 %v2846_v60  ;;  %v2849_v60 = vrot.slane %v12629_v56, 5 }
 0x166   : > { %1620 = vmatmul.bf16.gmra.mxu2 %v1488_v50  ;;  %2617 = vmatmul.bf16.gmra.mxu0 %v2485_v61  ;;  %v2648_v62 = vadd.f32 %v2575_v44, %v1966_v49  ;;  %v1423_v44 = vsel %vm12183_vm5, %v1421_v12, %v1422_v18 }
 0x167   : > { %1935 = vmatmul.bf16.gmra.mxu3 %v11212_v10  ;;  %v2374_v10 = vshll.u32 %v10123_v31, 16  ;;  %v1470_v12 = vunpack.c.l.b16 %v1423_v44  ;;  %v2486_v44 = vpack.c.b16 %v2467_v15, %v2466_v47 }
 0x168   : > { %3043 = vmatmul.bf16.gmra.mxu1 %v2911_v16  ;;  %v12626_v41 = vadd.f32 %v3001_v3, %v2648_v62  ;;  %v2371_v3 = vshrl.u32 %v10123_v31, 16  ;;  %v12646_v31 = vrot.slane %v2380_v17, 5 }
 0x169   : > { %v1581_v54 = vpop.f32.mrf.mxu2  ;;  %v2376_v19 = vrot.slane %v2374_v10, 5  ;;  %v1489_v26 = vpack.c.b16 %v1470_v12, %v1469_v6  ;;  %v10193_v6 = vld [vmem:[%s11848_s6 + $0xa8] sm:$0xe] }
 0x16a   : > { %v1652_v50 = vadd.f32 %v1581_v54, %v12327_v51  ;;  %v1896_v61 = vpop.f32.mrf.mxu3  ;;  %v2843_v51 = vsel %vm12183_vm5, %v10224_v46, %v2842_v45  ;;  %v2373_v62 = vrot.slane %v2371_v3, 4  ;;  %v2386_v54 = vrot.slane %v2384_v42, 4  ;;  %v10125_v45 = vld [vmem:[%s11848_s6 + $0xb0] sm:$0x1] }
 0x16b   : > { %v2580_v16 = vpop.f32.mrf.mxu0  ;;  %v2892_v36 = vunpack.c.l.b16 %v2843_v51 }
 0x16c   : > { %v1967_v48 = vadd.f32 %v1896_v61, %v1652_v50  ;;  %v11627_v61 = vld [vmem:[%s11848_s6 + $0xa0] sm:$0xf]  ;;  %v2377_v3 = vor.u32 %v2376_v19, %v2373_v62  ;;  %v2387_v42 = vor.u32 %v2386_v54, %v12646_v31  ;;  %v10126_v19 = vld [vmem:[%s11848_s6 + $0xb4] sm:$0xf]  ;;  %v2851_v54 = vrot.slane %v2849_v60, 4 }
 0x16d   : > { %v3006_v49 = vpop.f32.mrf.mxu1  ;;  %v1426_v43 = vrot.slane %v11627_v61, 5  ;;  %v2912_v17 = vpack.c.b16 %v2893_v30, %v2892_v36  ;;  %v11257_v36 = vld [vmem:[%s15427_s1 + $0x180] sm:$0xff]  ;;  %v10225_v30 = vrot.slane %v10193_v6, 9 }
 0x16e   : > { %v2649_v18 = vadd.f32 %v2578_v34, %v1967_v48  ;;  %v2378_v47 = vrot.slane %v2377_v3, 4  ;;  %v2388_v15 = vrot.slane %v2387_v42, 4  ;;  %3302 = vmatpush.bf16.msra.mxu2 %v11257_v36 }
 0x170   : > { %v12648_v50 = vadd.f32 %v3004_v8, %v2649_v18  ;;  %v2390_v8 = vshll.u32 %v10125_v45, 16  ;;  %v9905_v18 = vrot.slane %v1278_v37, 9 }
 0x171   : > { %v1583_v46 = vpop.f32.mrf.mxu2 }
 0x172   : > { %v1653_v9 = vadd.f32 %v1583_v46, %v12351_v24  ;;  %v1898_v34 = vpop.f32.mrf.mxu3  ;;  %v1428_v24 = vrot.slane %v1426_v43, 4  ;;  %v11628_v46 = vld [vmem:[%s11848_s6 + $0xa4] sm:$0x1]  ;;  %v2392_v62 = vrot.slane %v2390_v8, 5 }
 0x173   : > { %v2583_v10 = vpop.f32.mrf.mxu0  ;;  %v1429_v61 = vrot.slane %v11628_v46, 5  ;;  %v11310_v46 = vld [vmem:[#allocation3 + $0x68] sm:$0xff] }
 0x174   : > { %v1968_v48 = vadd.f32 %v1898_v34, %v1653_v9  ;;  %v2852_v9 = vrot.slane %v10125_v45, 5  ;;  %v12666_v34 = vld [vmem:[%s11848_s6 + $0xb8] sm:$0xf]  ;;  %v2383_v45 = vsel %vm11880_vm2, %v2378_v47, %v12646_v31  ;;  %v2393_v8 = vsel %vm11880_vm2, %v2388_v15, %v2392_v62  ;;  %5639 = vmatpush.bf16.msra.mxu1 %v11310_v46 }
 0x175   : > { %v3009_v51 = vpop.f32.mrf.mxu1  ;;  %v1430_v37 = vsel %vm12183_vm5, %v1428_v24, %v1429_v61  ;;  %v2469_v15 = vunpack.c.l.b16 %v2393_v8 }
 0x176   : > { %1625 = vmatmul.bf16.gmra.mxu2 %v1489_v26  ;;  %2622 = vmatmul.bf16.gmra.mxu0 %v2486_v44  ;;  %v2650_v12 = vadd.f32 %v2580_v16, %v1968_v48  ;;  %v11265_v16 = vld [vmem:[%s15427_s1 + $0x1c0] sm:$0xff]  ;;  %v1427_v44 = vsel %vm12183_vm5, %v9905_v18, %v1426_v43  ;;  %v2404_v43 = vshll.u32 %v12666_v34, 16  ;;  %v2408_v48 = vshrl.u32 %v12666_v34, 16 }
 0x177   : > { %1940 = vmatmul.bf16.gmra.mxu3 %v11213_v63  ;;  %v2395_v63 = vshrl.u32 %v10126_v19, 16  ;;  %v2853_v31 = vsel %vm12183_vm5, %v2851_v54, %v2852_v9  ;;  %v1471_v61 = vunpack.c.l.b16 %v1427_v44  ;;  %v1472_v6 = vunpack.c.l.b16 %v1430_v37  ;;  %v11273_v54 = vld [vmem:[%s15427_s1 + $0x200] sm:$0xff]  ;;  %v11629_v44 = vld [vmem:[%s11848_s6 + $0xac] sm:$0xf] }
 0x178   : > { %3048 = vmatmul.bf16.gmra.mxu1 %v2912_v17  ;;  %v12663_v56 = vadd.f32 %v3006_v49, %v2650_v12  ;;  %v2398_v17 = vshll.u32 %v10126_v19, 16  ;;  %3984 = vmatpush.bf16.msra.mxu3 %v11265_v16  ;;  %v2468_v12 = vunpack.c.l.b16 %v2383_v45  ;;  %v2895_v16 = vunpack.c.l.b16 %v2853_v31 }
 0x179   : > { %v1586_v26 = vpop.f32.mrf.mxu2  ;;  %v2397_v62 = vrot.slane %v2395_v63, 4  ;;  %v1490_v45 = vpack.c.b16 %v1472_v6, %v1471_v61  ;;  %4410 = vmatpush.bf16.msra.mxu0 %v11273_v54  ;;  %v10194_v6 = vld [vmem:[%s11848_s6 + $0xb4] sm:$0xe] }
 0x17a   : > { %v1654_v49 = vadd.f32 %v1586_v26, %v12360_v2  ;;  %v1901_v3 = vpop.f32.mrf.mxu3  ;;  %v2850_v2 = vsel %vm12183_vm5, %v10225_v30, %v2849_v60  ;;  %v2400_v19 = vrot.slane %v2398_v17, 5  ;;  %v2406_v26 = vrot.slane %v2404_v43, 5  ;;  %v1279_v17 = vld [vmem:[%s11848_s6 + $0xa8] sm:$0xe] }
 0x17b   : > { %v2585_v42 = vpop.f32.mrf.mxu0  ;;  %v2894_v36 = vunpack.c.l.b16 %v2850_v2  ;;  %v2410_v60 = vrot.slane %v2408_v48, 4  ;;  %v2487_v63 = vpack.c.b16 %v2469_v15, %v2468_v12  ;;  %v11214_v43 = vld [vmem:[%s11848_s6 + $0xa8] sm:$0xff] }
 0x17c   : > { %v1969_v18 = vadd.f32 %v1901_v3, %v1654_v49  ;;  %v10128_v49 = vld [vmem:[%s11848_s6 + $0xbc] sm:$0x1]  ;;  %v2401_v8 = vor.u32 %v2400_v19, %v2397_v62 }
 0x17d   : > { %v12683_v24 = vpop.f32.mrf.mxu1  ;;  %v2913_v48 = vpack.c.b16 %v2895_v16, %v2894_v36  ;;  %v2414_v2 = vshll.u32 %v10128_v49, 16  ;;  %v10129_v36 = vld [vmem:[%s11848_s6 + $0xc0] sm:$0xf]  ;;  %v10226_v16 = vrot.slane %v10194_v6, 9  ;;  %v2859_v54 = vrot.slane %v10128_v49, 5 }
 0x17e   : > { %v2651_v47 = vadd.f32 %v2583_v10, %v1969_v18  ;;  %v1433_v10 = vrot.slane %v11629_v44, 5  ;;  %v2411_v18 = vor.u32 %v2410_v60, %v2406_v26  ;;  %v9906_v44 = vrot.slane %v1279_v17, 9 }
 0x17f   : > { %v2402_v15 = vrot.slane %v2401_v8, 4  ;;  %v2416_v19 = vrot.slane %v2414_v2, 5  ;;  %v2419_v8 = vshrl.u32 %v10129_v36, 16 }
 0x180   : > { %v12689_v30 = vadd.f32 %v3009_v51, %v2651_v47  ;;  %v2856_v47 = vrot.slane %v12666_v34, 5  ;;  %v2412_v62 = vrot.slane %v2411_v18, 4  ;;  %v12706_v34 = vld [vmem:[%s11848_s6 + $0xc4] sm:$0xf] }
 0x181   : > { %v1588_v9 = vpop.f32.mrf.mxu2  ;;  %v2407_v17 = vsel %vm11880_vm2, %v2402_v15, %v2406_v26  ;;  %v2428_v18 = vshll.u32 %v12706_v34, 16  ;;  %v2432_v2 = vshrl.u32 %v12706_v34, 16  ;;  %v2421_v15 = vrot.slane %v2419_v8, 4 }
 0x182   : > { %15443 = vst [vmem:[#allocation11_spill] sm:$0xff] %v12689_v30  ;;  %v1655_v37 = vadd.f32 %v1588_v9, %v12390_v7  ;;  %v1903_v3 = vpop.f32.mrf.mxu3  ;;  %v1435_v7 = vrot.slane %v1433_v10, 4  ;;  %v11630_v9 = vld [vmem:[%s11848_s6 + $0xb0] sm:$0x1]  ;;  %v2858_v60 = vrot.slane %v2856_v47, 4  ;;  %v2417_v49 = vsel %vm11880_vm2, %v2412_v62, %v2416_v19 }
 0x183   : > { %v2588_v51 = vpop.f32.mrf.mxu0  ;;  %v1436_v61 = vrot.slane %v11630_v9, 5  ;;  %v2470_v9 = vunpack.c.l.b16 %v2407_v17  ;;  %v2471_v6 = vunpack.c.l.b16 %v2417_v49  ;;  %v11215_v49 = vld [vmem:[%s11848_s6 + $0xb4] sm:$0xff] }
 0x184   : > { %v1970_v31 = vadd.f32 %v1903_v3, %v1655_v37  ;;  %v1434_v3 = vsel %vm12183_vm5, %v9906_v44, %v1433_v10  ;;  %v2860_v26 = vsel %vm12183_vm5, %v2858_v60, %v2859_v54 }
 0x185   : > { %v3014_v46 = vpop.f32.mrf.mxu1  ;;  %v1473_v44 = vunpack.c.l.b16 %v1434_v3  ;;  %v2488_v3 = vpack.c.b16 %v2471_v6, %v2470_v9 }
 0x186   : > { %1630 = vmatmul.bf16.gmra.mxu2 %v1490_v45  ;;  %2627 = vmatmul.bf16.gmra.mxu0 %v2487_v63  ;;  %v12702_v12 = vadd.f32 %v2585_v42, %v1970_v31  ;;  %v1437_v45 = vsel %vm12183_vm5, %v1435_v7, %v1436_v61 }
 0x187   : > { %1945 = vmatmul.bf16.gmra.mxu3 %v11214_v43  ;;  %v2422_v43 = vshll.u32 %v10129_v36, 16  ;;  %v1474_v7 = vunpack.c.l.b16 %v1437_v45  ;;  %v2897_v36 = vunpack.c.l.b16 %v2860_v26  ;;  %v11631_v45 = vld [vmem:[%s11848_s6 + $0xb8] sm:$0xf]  ;;  %v2863_v26 = vrot.slane %v12706_v34, 5  ;;  %v12739_v34 = vld [vmem:[%s11848_s6 + $0x1c] sm:$0xf] }
 0x188   : > { %3053 = vmatmul.bf16.gmra.mxu1 %v2913_v48  ;;  %v1440_v17 = vrot.slane %v11631_v45, 5 }
 0x189   : > { %v1591_v37 = vpop.f32.mrf.mxu2  ;;  %v2424_v62 = vrot.slane %v2422_v43, 5  ;;  %v1491_v30 = vpack.c.b16 %v1474_v7, %v1473_v44 }
 0x18a   : > { %v1656_v42 = vadd.f32 %v1591_v37, %v12402_v20  ;;  %v1906_v63 = vpop.f32.mrf.mxu3  ;;  %v2857_v20 = vsel %vm12183_vm5, %v10226_v16, %v2856_v47  ;;  %v2430_v37 = vrot.slane %v2428_v18, 5  ;;  %v10131_v47 = vld [vmem:[%s11848_s6 + $0xc8] sm:$0x1]  ;;  %v1442_v9 = vrot.slane %v1440_v17, 4 }
 0x18b   : > { %v2590_v48 = vpop.f32.mrf.mxu0  ;;  %v2896_v19 = vunpack.c.l.b16 %v2857_v20  ;;  %v2425_v8 = vor.u32 %v2424_v62, %v2421_v15 }
 0x18c   : > { %v1971_v10 = vadd.f32 %v1906_v63, %v1656_v42  ;;  %v2434_v42 = vrot.slane %v2432_v2, 4  ;;  %v2438_v2 = vshll.u32 %v10131_v47, 16 }
 0x18d   : > { %v12719_v31 = vpop.f32.mrf.mxu1  ;;  %v2426_v15 = vrot.slane %v2425_v8, 4 }
 0x18e   : > { %v2653_v61 = vadd.f32 %v2588_v51, %v1971_v10  ;;  %v1280_v51 = vld [vmem:[%s11848_s6 + $0xb4] sm:$0xe]  ;;  %v2914_v10 = vpack.c.b16 %v2897_v36, %v2896_v19  ;;  %v2435_v18 = vor.u32 %v2434_v42, %v2430_v37  ;;  %v2440_v19 = vrot.slane %v2438_v2, 5  ;;  %v10404_v36 = vld [vmem:[%s11848_s6 + $0x18] sm:$0xf] }
 0x18f   : > { %v9907_v44 = vrot.slane %v1280_v51, 9  ;;  %v2431_v45 = vsel %vm11880_vm2, %v2426_v15, %v2430_v37  ;;  %v11309_v37 = vld [vmem:[#allocation3 + $0x60] sm:$0xff] }
 0x190   : > { %v12725_v63 = vadd.f32 %v3014_v46, %v2653_v61  ;;  %v11632_v61 = vld [vmem:[%s11848_s6 + $0xbc] sm:$0x1]  ;;  %v2436_v62 = vrot.slane %v2435_v18, 4  ;;  %v3491_v18 = vshll.u32 %v12739_v34, 16  ;;  %5640 = vmatpush.bf16.msra.mxu1 %v11309_v37 }
 0x191   : > { %v1593_v16 = vpop.f32.mrf.mxu2  ;;  %v1443_v6 = vrot.slane %v11632_v61, 5 }
 0x192   : > { %v1657_v60 = vadd.f32 %v1593_v16, %v12426_v5  ;;  %v1908_v54 = vpop.f32.mrf.mxu3  ;;  %v10195_v5 = vld [vmem:[%s11848_s6 + $0xc0] sm:$0xe]  ;;  %v2865_v16 = vrot.slane %v2863_v26, 4 }
 0x193   : > { %v2593_v43 = vpop.f32.mrf.mxu0  ;;  %v10227_v42 = vrot.slane %v10195_v5, 9  ;;  %v1444_v51 = vsel %vm12183_vm5, %v1442_v9, %v1443_v6  ;;  %v2472_v6 = vunpack.c.l.b16 %v2431_v45 }
 0x194   : > { %v1972_v46 = vadd.f32 %v1908_v54, %v1657_v60  ;;  %v2866_v60 = vrot.slane %v10131_v47, 5  ;;  %v3482_v47 = vshrl.u32 %v10404_v36, 16  ;;  %v1476_v61 = vunpack.c.l.b16 %v1444_v51 }
 0x195   : > { %v3019_v20 = vpop.f32.mrf.mxu1 }
 0x196   : > { %1635 = vmatmul.bf16.gmra.mxu2 %v1491_v30  ;;  %2632 = vmatmul.bf16.gmra.mxu0 %v2488_v3  ;;  %v12734_v7 = vadd.f32 %v2590_v48, %v1972_v46  ;;  %v1441_v48 = vsel %vm12183_vm5, %v9907_v44, %v1440_v17  ;;  %v2864_v17 = vsel %vm12183_vm5, %v10227_v42, %v2863_v26  ;;  %v3495_v44 = vshrl.u32 %v12739_v34, 16 }
 0x197   : > { %1950 = vmatmul.bf16.gmra.mxu3 %v11215_v49  ;;  %v2441_v49 = vsel %vm11880_vm2, %v2436_v62, %v2440_v19  ;;  %v2867_v46 = vsel %vm12183_vm5, %v2865_v16, %v2866_v60  ;;  %v1475_v5 = vunpack.c.l.b16 %v1441_v48  ;;  %v2898_v62 = vunpack.c.l.b16 %v2864_v17  ;;  %v10500_v17 = vld [vmem:[%s11848_s6 + $0x18] sm:$0xe] }
 0x198   : > { %3058 = vmatmul.bf16.gmra.mxu1 %v2914_v10  ;;  %v3485_v10 = vshll.u32 %v10404_v36, 16  ;;  %v2473_v15 = vunpack.c.l.b16 %v2441_v49  ;;  %v2899_v19 = vunpack.c.l.b16 %v2867_v46  ;;  %v3484_v36 = vrot.slane %v3482_v47, 4  ;;  %v11216_v49 = vld [vmem:[%s11848_s6 + $0xc0] sm:$0xff] }
 0x199   : > { %v1596_v54 = vpop.f32.mrf.mxu2  ;;  %v3493_v42 = vrot.slane %v3491_v18, 5  ;;  %v3497_v16 = vrot.slane %v3495_v44, 4  ;;  %v4181_v46 = vrot.slane %v12739_v34, 5  ;;  %v10408_v34 = vld [vmem:[%s11848_s6 + $0x28] sm:$0xf] }
 0x19a   : > { %v1658_v30 = vadd.f32 %v1596_v54, %v12435_v23  ;;  %v1911_v3 = vpop.f32.mrf.mxu3  ;;  %v3487_v26 = vrot.slane %v3485_v10, 5  ;;  %v2489_v51 = vpack.c.b16 %v2473_v15, %v2472_v6 }
 0x19b   : > { %v2595_v8 = vpop.f32.mrf.mxu0  ;;  %v3498_v18 = vor.u32 %v3497_v16, %v3493_v42 }
 0x19c   : > { %v1973_v2 = vadd.f32 %v1911_v3, %v1658_v30  ;;  %v10406_v30 = vld [vmem:[%s11848_s6 + $0x20] sm:$0x1]  ;;  %v3488_v10 = vor.u32 %v3487_v26, %v3484_v36 }
 0x19d   : > { %v12751_v23 = vpop.f32.mrf.mxu1  ;;  %v3501_v44 = vshll.u32 %v10406_v30, 16  ;;  %v3499_v15 = vrot.slane %v3498_v18, 4 }
 0x19e   : > { %v2655_v9 = vadd.f32 %v2593_v43, %v1973_v2  ;;  %v1492_v43 = vpack.c.b16 %v1476_v61, %v1475_v5  ;;  %v2915_v2 = vpack.c.b16 %v2899_v19, %v2898_v62  ;;  %v4183_v5 = vrot.slane %v4181_v46, 4  ;;  %v10407_v61 = vld [vmem:[%s11848_s6 + $0x24] sm:$0xf] }
 0x19f   : > { %v3489_v6 = vrot.slane %v3488_v10, 4  ;;  %v3503_v62 = vrot.slane %v3501_v44, 5  ;;  %v3506_v16 = vshrl.u32 %v10407_v61, 16 }
 0x1a0   : > { %v12758_v54 = vadd.f32 %v3019_v20, %v2655_v9  ;;  %v4184_v9 = vrot.slane %v10406_v30, 5  ;;  %v3515_v30 = vshll.u32 %v10408_v34, 16 }
 0x1a1   : > { %v1598_v60 = vpop.f32.mrf.mxu2  ;;  %v3508_v10 = vrot.slane %v3506_v16, 4 }
 0x1a2   : > { %v1659_v3 = vadd.f32 %v1598_v60, %v12465_v33  ;;  %v1913_v48 = vpop.f32.mrf.mxu3  ;;  %v10532_v33 = vrot.slane %v10500_v17, 9 }
 0x1a3   : > { %v2598_v45 = vpop.f32.mrf.mxu0 }
 0x1a4   : > { %v1974_v47 = vadd.f32 %v1913_v48, %v1659_v3  ;;  %v4182_v26 = vsel %vm12183_vm5, %v10532_v33, %v4181_v46  ;;  %v4185_v48 = vsel %vm12183_vm5, %v4183_v5, %v4184_v9  ;;  %v10409_v5 = vld [vmem:[%s11848_s6 + $0x2c] sm:$0x1]  ;;  %v3517_v9 = vrot.slane %v3515_v30, 5 }
 0x1a5   : > { %v3024_v20 = vpop.f32.mrf.mxu1  ;;  %v4291_v17 = vunpack.c.l.b16 %v4182_v26  ;;  %v3525_v26 = vshll.u32 %v10409_v5, 16 }
 0x1a6   : > { %1640 = vmatmul.bf16.gmra.mxu2 %v1492_v43  ;;  %2637 = vmatmul.bf16.gmra.mxu0 %v2489_v51  ;;  %v12765_v37 = vadd.f32 %v2595_v8, %v1974_v47  ;;  %v3509_v8 = vshll.u32 %v10407_v61, 16  ;;  %v3519_v43 = vshrl.u32 %v10408_v34, 16  ;;  %v4292_v47 = vunpack.c.l.b16 %v4185_v48 }
 0x1a7   : > { %1955 = vmatmul.bf16.gmra.mxu3 %v11216_v49  ;;  %v3494_v49 = vsel %vm11880_vm2, %v3489_v6, %v3493_v42 }
 0x1a8   : > { %3063 = vmatmul.bf16.gmra.mxu1 %v2915_v2  ;;  %v3511_v18 = vrot.slane %v3509_v8, 5  ;;  %v3865_v44 = vunpack.c.l.b16 %v3494_v49  ;;  %v3521_v61 = vrot.slane %v3519_v43, 4  ;;  %v4188_v8 = vrot.slane %v10408_v34, 5  ;;  %v10501_v49 = vld [vmem:[%s11848_s6 + $0x24] sm:$0xe] }
 0x1a9   : > { %v1601_v19 = vpop.f32.mrf.mxu2 }
 0x1aa   : > { %v1660_v60 = vadd.f32 %v1601_v19, %v12477_v28  ;;  %v1916_v36 = vpop.f32.mrf.mxu3  ;;  %v3504_v28 = vsel %vm11880_vm2, %v3499_v15, %v3503_v62  ;;  %v11241_v62 = vld [vmem:[%s11848_s6 + $0x18] sm:$0xff]  ;;  %v3522_v16 = vor.u32 %v3521_v61, %v3517_v9 }
 0x1ab   : > { %v2600_v3 = vpop.f32.mrf.mxu0  ;;  %v3866_v33 = vunpack.c.l.b16 %v3504_v28 }
 0x1ac   : > { %v1975_v51 = vadd.f32 %v1916_v36, %v1660_v60  ;;  %v4323_v60 = vpack.c.b16 %v4292_v47, %v4291_v17  ;;  %v3512_v36 = vor.u32 %v3511_v18, %v3508_v10  ;;  %v3523_v28 = vrot.slane %v3522_v16, 4  ;;  %v10410_v10 = vld [vmem:[%s11848_s6 + $0x30] sm:$0xf] }
 0x1ad   : > { %v12778_v2 = vpop.f32.mrf.mxu1  ;;  %v3897_v48 = vpack.c.b16 %v3866_v33, %v3865_v44  ;;  %v10533_v17 = vrot.slane %v10501_v49, 9  ;;  %v4191_v47 = vrot.slane %v10409_v5, 5  ;;  %v10411_v44 = vld [vmem:[%s11848_s6 + $0x34] sm:$0xf]  ;;  %v3530_v5 = vshrl.u32 %v10410_v10, 16 }
 0x1ae   : > { %v2657_v46 = vadd.f32 %v2598_v45, %v1975_v51  ;;  %v3513_v43 = vrot.slane %v3512_v36, 4  ;;  %v3533_v36 = vshll.u32 %v10410_v10, 16  ;;  %v10412_v10 = vld [vmem:[%s11848_s6 + $0x38] sm:$0x1] }
 0x1b0   : > { %v12781_v19 = vadd.f32 %v3024_v20, %v2657_v46  ;;  %v4190_v46 = vrot.slane %v4188_v8, 4  ;;  %v3518_v61 = vsel %vm11880_vm2, %v3513_v43, %v3517_v9  ;;  %v3532_v43 = vrot.slane %v3530_v5, 4 }
 0x1b1   : > { %v1603_v42 = vpop.f32.mrf.mxu2  ;;  %v3867_v49 = vunpack.c.l.b16 %v3518_v61 }
 0x1b2   : > { %v1661_v6 = vadd.f32 %v1603_v42, %v12501_v13  ;;  %v1918_v15 = vpop.f32.mrf.mxu3  ;;  %v3527_v13 = vrot.slane %v3525_v26, 5  ;;  %v3543_v26 = vshrl.u32 %v10411_v44, 16 }
 0x1b3   : > { %v2603_v45 = vpop.f32.mrf.mxu0 }
 0x1b4   : > { %v1976_v51 = vadd.f32 %v1918_v15, %v1661_v6  ;;  %v4189_v6 = vsel %vm12183_vm5, %v10533_v17, %v4188_v8  ;;  %v4192_v15 = vsel %vm12183_vm5, %v4190_v46, %v4191_v47  ;;  %v3545_v46 = vrot.slane %v3543_v26, 4 }
 0x1b5   : > { %v3029_v30 = vpop.f32.mrf.mxu1  ;;  %v4293_v16 = vunpack.c.l.b16 %v4189_v6 }
 0x1b6   : > { %3303 = vmatmul.bf16.vlgmr.msra.gmra.mxu2 %v11241_v62  ;;  %4411 = vmatmul.bf16.vlgmr.msra.gmra.mxu0 %v4323_v60  ;;  %v12786_v20 = vadd.f32 %v2600_v3, %v1976_v51  ;;  %v3528_v3 = vsel %vm11880_vm2, %v3523_v28, %v3527_v13  ;;  %v4294_v51 = vunpack.c.l.b16 %v4192_v15  ;;  %v3535_v28 = vrot.slane %v3533_v36, 5  ;;  %v10502_v15 = vld [vmem:[%s11848_s6 + $0x30] sm:$0xe] }
 0x1b7   : > { %3985 = vmatmul.bf16.vlgmr.msra.gmra.mxu3 %v3897_v48  ;;  %v11308_v48 = vld [vmem:[#allocation3 + $0x58] sm:$0xff]  ;;  %v3868_v8 = vunpack.c.l.b16 %v3528_v3  ;;  %v3549_v36 = vshll.u32 %v10412_v10, 16  ;;  %v10534_v26 = vrot.slane %v10502_v15, 9 }
 0x1b8   : > { %5641 = vmatpush.bf16.msra.mxu1 %v11308_v48  ;;  %v4198_v48 = vrot.slane %v10412_v10, 5 }
 0x1b9   : > { %v1606_v18 = vpop.f32.mrf.mxu2  ;;  %v3898_v6 = vpack.c.b16 %v3868_v8, %v3867_v49  ;;  %v3551_v49 = vrot.slane %v3549_v36, 5  ;;  %v10414_v8 = vld [vmem:[%s11848_s6 + $0x40] sm:$0xf] }
 0x1ba   : > { %v1662_v34 = vadd.f32 %v1606_v18, %v12230_v53  ;;  %v1921_v33 = vpop.f32.mrf.mxu3  ;;  %v3539_v53 = vshll.u32 %v10411_v44, 16  ;;  %v3563_v10 = vshll.u32 %v10414_v8, 16 }
 0x1bb   : > { %v2605_v42 = vpop.f32.mrf.mxu0 }
 0x1bc   : > { %v1977_v62 = vadd.f32 %v1921_v33, %v1662_v34  ;;  %v3541_v17 = vrot.slane %v3539_v53, 5  ;;  %v11242_v33 = vld [vmem:[%s11848_s6 + $0x24] sm:$0xff] }
 0x1bd   : > { %v12799_v60 = vpop.f32.mrf.mxu1 }
 0x1be   : > { %15444 = vst [vmem:[#allocation12_spill] sm:$0xff] %v12799_v60  ;;  %v2659_v9 = vadd.f32 %v2603_v45, %v1977_v62  ;;  %v4324_v60 = vpack.c.b16 %v4294_v51, %v4293_v16  ;;  %v4195_v62 = vrot.slane %v10411_v44, 5  ;;  %v3546_v5 = vor.u32 %v3545_v46, %v3541_v17 }
 0x1c0   : > { %v12801_v13 = vadd.f32 %v3029_v30, %v2659_v9  ;;  %v3536_v30 = vor.u32 %v3535_v28, %v3532_v43  ;;  %v10413_v9 = vld [vmem:[%s11848_s6 + $0x3c] sm:$0xf]  ;;  %v3547_v51 = vrot.slane %v3546_v5, 4  ;;  %v4196_v43 = vsel %vm12183_vm5, %v10534_v26, %v4195_v62 }
 0x1c1   : > { %v1608_v47 = vpop.f32.mrf.mxu2  ;;  %v3554_v28 = vshrl.u32 %v10413_v9, 16 }
 0x1c2   : > { %v1663_v18 = vadd.f32 %v1608_v47, %v12248_v21  ;;  %v1923_v34 = vpop.f32.mrf.mxu3  ;;  %v4197_v21 = vrot.slane %v4195_v62, 4  ;;  %v3537_v16 = vrot.slane %v3536_v30, 4  ;;  %v4295_v62 = vunpack.c.l.b16 %v4196_v43 }
 0x1c3   : > { %v2608_v45 = vpop.f32.mrf.mxu0  ;;  %v3556_v5 = vrot.slane %v3554_v28, 4 }
 0x1c4   : > { %v1978_v61 = vadd.f32 %v1923_v34, %v1663_v18  ;;  %v4199_v46 = vsel %vm12183_vm5, %v4197_v21, %v4198_v48  ;;  %v3567_v34 = vshrl.u32 %v10414_v8, 16  ;;  %v10415_v21 = vld [vmem:[%s11848_s6 + $0x44] sm:$0x1]  ;;  %v3565_v48 = vrot.slane %v3563_v10, 5 }
 0x1c5   : > { %v3034_v3 = vpop.f32.mrf.mxu1  ;;  %v4296_v30 = vunpack.c.l.b16 %v4199_v46  ;;  %v3573_v43 = vshll.u32 %v10415_v21, 16 }
 0x1c6   : > { %3308 = vmatmul.bf16.gmra.mxu2 %v11242_v33  ;;  %4416 = vmatmul.bf16.gmra.mxu0 %v4324_v60  ;;  %v12807_v53 = vadd.f32 %v2605_v42, %v1978_v61  ;;  %v3557_v60 = vshll.u32 %v10413_v9, 16 }
 0x1c7   : > { %3990 = vmatmul.bf16.gmra.mxu3 %v3898_v6  ;;  %v3542_v6 = vsel %vm11880_vm2, %v3537_v16, %v3541_v17 }
 0x1c8   : > { %v3559_v36 = vrot.slane %v3557_v60, 5  ;;  %v3869_v26 = vunpack.c.l.b16 %v3542_v6  ;;  %v4202_v60 = vrot.slane %v10414_v8, 5  ;;  %v10503_v6 = vld [vmem:[%s11848_s6 + $0x3c] sm:$0xe] }
 0x1c9   : > { %v1611_v44 = vpop.f32.mrf.mxu2 }
 0x1ca   : > { %v1664_v47 = vadd.f32 %v1611_v44, %v12266_v57  ;;  %v1926_v18 = vpop.f32.mrf.mxu3  ;;  %v3552_v57 = vsel %vm11880_vm2, %v3547_v51, %v3551_v49  ;;  %v3569_v44 = vrot.slane %v3567_v34, 4  ;;  %v11243_v49 = vld [vmem:[%s11848_s6 + $0x30] sm:$0xff] }
 0x1cb   : > { %v2610_v42 = vpop.f32.mrf.mxu0  ;;  %v3870_v9 = vunpack.c.l.b16 %v3552_v57 }
 0x1cc   : > { %v1979_v33 = vadd.f32 %v1926_v18, %v1664_v47  ;;  %v4325_v18 = vpack.c.b16 %v4296_v30, %v4295_v62  ;;  %v3570_v28 = vor.u32 %v3569_v44, %v3565_v48  ;;  %v10535_v62 = vrot.slane %v10503_v6, 9 }
 0x1cd   : > { %v12820_v15 = vpop.f32.mrf.mxu1  ;;  %v3899_v46 = vpack.c.b16 %v3870_v9, %v3869_v26  ;;  %v4205_v30 = vrot.slane %v10415_v21, 5  ;;  %v10417_v26 = vld [vmem:[%s11848_s6 + $0x4c] sm:$0xf] }
 0x1ce   : > { %15445 = vst [vmem:[#allocation13_spill] sm:$0xff] %v12820_v15  ;;  %v2661_v61 = vadd.f32 %v2608_v45, %v1979_v33  ;;  %v3560_v15 = vor.u32 %v3559_v36, %v3556_v5  ;;  %v3571_v57 = vrot.slane %v3570_v28, 4  ;;  %v10416_v5 = vld [vmem:[%s11848_s6 + $0x48] sm:$0xf] }
 0x1cf   : > { %v3578_v21 = vshrl.u32 %v10416_v5, 16 }
 0x1d0   : > { %v12823_v47 = vadd.f32 %v3034_v3, %v2661_v61  ;;  %v3561_v34 = vrot.slane %v3560_v15, 4  ;;  %v4204_v61 = vrot.slane %v4202_v60, 4  ;;  %v4203_v15 = vsel %vm12183_vm5, %v10535_v62, %v4202_v60 }
 0x1d1   : > { %v1613_v17 = vpop.f32.mrf.mxu2  ;;  %v4297_v28 = vunpack.c.l.b16 %v4203_v15 }
 0x1d2   : > { %v1665_v16 = vadd.f32 %v1613_v17, %v12281_v29  ;;  %v1928_v51 = vpop.f32.mrf.mxu3  ;;  %v3575_v29 = vrot.slane %v3573_v43, 5  ;;  %v3566_v44 = vsel %vm11880_vm2, %v3561_v34, %v3565_v48  ;;  %v3591_v43 = vshrl.u32 %v10417_v26, 16 }
 0x1d3   : > { %v2613_v45 = vpop.f32.mrf.mxu0  ;;  %v3871_v6 = vunpack.c.l.b16 %v3566_v44  ;;  %v3580_v34 = vrot.slane %v3578_v21, 4 }
 0x1d4   : > { %v1980_v33 = vadd.f32 %v1928_v51, %v1665_v16  ;;  %v4206_v16 = vsel %vm12183_vm5, %v4204_v61, %v4205_v30  ;;  %v3593_v61 = vrot.slane %v3591_v43, 4 }
 0x1d5   : > { %v3039_v10 = vpop.f32.mrf.mxu1 }
 0x1d6   : > { %3313 = vmatmul.bf16.gmra.mxu2 %v11243_v49  ;;  %4421 = vmatmul.bf16.gmra.mxu0 %v4325_v18  ;;  %v12828_v3 = vadd.f32 %v2610_v42, %v1980_v33  ;;  %v3576_v42 = vsel %vm11880_vm2, %v3571_v57, %v3575_v29  ;;  %v3581_v18 = vshll.u32 %v10416_v5, 16  ;;  %v4298_v33 = vunpack.c.l.b16 %v4206_v16  ;;  %v10418_v5 = vld [vmem:[%s11848_s6 + $0x50] sm:$0x1]  ;;  %v10504_v16 = vld [vmem:[%s11848_s6 + $0x48] sm:$0xe] }
 0x1d7   : > { %3995 = vmatmul.bf16.gmra.mxu3 %v3899_v46  ;;  %v11307_v46 = vld [vmem:[#allocation3 + $0x50] sm:$0xff]  ;;  %v3872_v60 = vunpack.c.l.b16 %v3576_v42  ;;  %v10536_v43 = vrot.slane %v10504_v16, 9 }
 0x1d8   : > { %5642 = vmatpush.bf16.msra.mxu1 %v11307_v46  ;;  %v3583_v57 = vrot.slane %v3581_v18, 5  ;;  %v3597_v18 = vshll.u32 %v10418_v5, 16  ;;  %v4212_v46 = vrot.slane %v10418_v5, 5 }
 0x1d9   : > { %v1616_v36 = vpop.f32.mrf.mxu2  ;;  %v3900_v15 = vpack.c.b16 %v3872_v60, %v3871_v6  ;;  %v10420_v60 = vld [vmem:[%s11848_s6 + $0x58] sm:$0xf] }
 0x1da   : > { %v1666_v8 = vadd.f32 %v1616_v36, %v12305_v0  ;;  %v1931_v9 = vpop.f32.mrf.mxu3  ;;  %v3587_v0 = vshll.u32 %v10417_v26, 16  ;;  %v3599_v6 = vrot.slane %v3597_v18, 5  ;;  %v3611_v5 = vshll.u32 %v10420_v60, 16 }
 0x1db   : > { %v2615_v17 = vpop.f32.mrf.mxu0 }
 0x1dc   : > { %v1981_v51 = vadd.f32 %v1931_v9, %v1666_v8  ;;  %v3589_v62 = vrot.slane %v3587_v0, 5  ;;  %v11244_v9 = vld [vmem:[%s11848_s6 + $0x3c] sm:$0xff] }
 0x1dd   : > { %v12841_v49 = vpop.f32.mrf.mxu1 }
 0x1de   : > { %15446 = vst [vmem:[#allocation14_spill] sm:$0xff] %v12841_v49  ;;  %v2663_v48 = vadd.f32 %v2613_v45, %v1981_v51  ;;  %v4326_v49 = vpack.c.b16 %v4298_v33, %v4297_v28  ;;  %v4209_v51 = vrot.slane %v10417_v26, 5  ;;  %v3594_v21 = vor.u32 %v3593_v61, %v3589_v62 }
 0x1e0   : > { %v12843_v29 = vadd.f32 %v3039_v10, %v2663_v48  ;;  %v3584_v10 = vor.u32 %v3583_v57, %v3580_v34  ;;  %v10419_v48 = vld [vmem:[%s11848_s6 + $0x54] sm:$0xf]  ;;  %v3595_v33 = vrot.slane %v3594_v21, 4  ;;  %v4210_v34 = vsel %vm12183_vm5, %v10536_v43, %v4209_v51 }
 0x1e1   : > { %v1618_v30 = vpop.f32.mrf.mxu2  ;;  %v3602_v57 = vshrl.u32 %v10419_v48, 16 }
 0x1e2   : > { %v1667_v36 = vadd.f32 %v1618_v30, %v12323_v27  ;;  %v1933_v8 = vpop.f32.mrf.mxu3  ;;  %v4211_v27 = vrot.slane %v4209_v51, 4  ;;  %v3585_v28 = vrot.slane %v3584_v10, 4  ;;  %v4299_v51 = vunpack.c.l.b16 %v4210_v34 }
 0x1e3   : > { %v2618_v45 = vpop.f32.mrf.mxu0  ;;  %v3604_v21 = vrot.slane %v3602_v57, 4 }
 0x1e4   : > { %v1982_v44 = vadd.f32 %v1933_v8, %v1667_v36  ;;  %v4213_v61 = vsel %vm12183_vm5, %v4211_v27, %v4212_v46  ;;  %v3615_v8 = vshrl.u32 %v10420_v60, 16  ;;  %v10421_v27 = vld [vmem:[%s11848_s6 + $0x5c] sm:$0x1]  ;;  %v3613_v46 = vrot.slane %v3611_v5, 5 }
 0x1e5   : > { %v3044_v42 = vpop.f32.mrf.mxu1  ;;  %v4300_v10 = vunpack.c.l.b16 %v4213_v61  ;;  %v3621_v34 = vshll.u32 %v10421_v27, 16 }
 0x1e6   : > { %3318 = vmatmul.bf16.gmra.mxu2 %v11244_v9  ;;  %4426 = vmatmul.bf16.gmra.mxu0 %v4326_v49  ;;  %v12849_v0 = vadd.f32 %v2615_v17, %v1982_v44  ;;  %v3605_v49 = vshll.u32 %v10419_v48, 16 }
 0x1e7   : > { %4000 = vmatmul.bf16.gmra.mxu3 %v3900_v15  ;;  %v3590_v15 = vsel %vm11880_vm2, %v3585_v28, %v3589_v62 }
 0x1e8   : > { %v3607_v18 = vrot.slane %v3605_v49, 5  ;;  %v3873_v43 = vunpack.c.l.b16 %v3590_v15  ;;  %v4216_v49 = vrot.slane %v10420_v60, 5  ;;  %v10505_v15 = vld [vmem:[%s11848_s6 + $0x54] sm:$0xe] }
 0x1e9   : > { %v1621_v26 = vpop.f32.mrf.mxu2 }
 0x1ea   : > { %v1668_v30 = vadd.f32 %v1621_v26, %v12341_v14  ;;  %v1936_v36 = vpop.f32.mrf.mxu3  ;;  %v3600_v14 = vsel %vm11880_vm2, %v3595_v33, %v3599_v6  ;;  %v3617_v26 = vrot.slane %v3615_v8, 4  ;;  %v11245_v6 = vld [vmem:[%s11848_s6 + $0x48] sm:$0xff] }
 0x1eb   : > { %v2620_v17 = vpop.f32.mrf.mxu0  ;;  %v3874_v48 = vunpack.c.l.b16 %v3600_v14 }
 0x1ec   : > { %v1983_v9 = vadd.f32 %v1936_v36, %v1668_v30  ;;  %v4327_v36 = vpack.c.b16 %v4300_v10, %v4299_v51  ;;  %v3618_v57 = vor.u32 %v3617_v26, %v3613_v46  ;;  %v10537_v51 = vrot.slane %v10505_v15, 9 }
 0x1ed   : > { %v12862_v16 = vpop.f32.mrf.mxu1  ;;  %v3901_v61 = vpack.c.b16 %v3874_v48, %v3873_v43  ;;  %v4219_v10 = vrot.slane %v10421_v27, 5  ;;  %v10423_v43 = vld [vmem:[%s11848_s6 + $0x64] sm:$0xf] }
 0x1ee   : > { %15447 = vst [vmem:[#allocation15_spill] sm:$0xff] %v12862_v16  ;;  %v2665_v44 = vadd.f32 %v2618_v45, %v1983_v9  ;;  %v3608_v16 = vor.u32 %v3607_v18, %v3604_v21  ;;  %v3619_v14 = vrot.slane %v3618_v57, 4  ;;  %v10422_v21 = vld [vmem:[%s11848_s6 + $0x60] sm:$0xf] }
 0x1ef   : > { %v3626_v27 = vshrl.u32 %v10422_v21, 16 }
 0x1f0   : > { %v12865_v30 = vadd.f32 %v3044_v42, %v2665_v44  ;;  %v3609_v8 = vrot.slane %v3608_v16, 4  ;;  %v4218_v44 = vrot.slane %v4216_v49, 4  ;;  %v4217_v16 = vsel %vm12183_vm5, %v10537_v51, %v4216_v49 }
 0x1f1   : > { %v1623_v62 = vpop.f32.mrf.mxu2  ;;  %v4301_v57 = vunpack.c.l.b16 %v4217_v16 }
 0x1f2   : > { %15448 = vst [vmem:[#allocation16_spill] sm:$0xff] %v12865_v30  ;;  %v1669_v28 = vadd.f32 %v1623_v62, %v12356_v1  ;;  %v1938_v33 = vpop.f32.mrf.mxu3  ;;  %v3623_v1 = vrot.slane %v3621_v34, 5  ;;  %v3614_v26 = vsel %vm11880_vm2, %v3609_v8, %v3613_v46  ;;  %v3639_v34 = vshrl.u32 %v10423_v43, 16 }
 0x1f3   : > { %v2623_v45 = vpop.f32.mrf.mxu0  ;;  %v3875_v15 = vunpack.c.l.b16 %v3614_v26  ;;  %v3628_v8 = vrot.slane %v3626_v27, 4  ;;  %v4223_v26 = vrot.slane %v10423_v43, 5 }
 0x1f4   : > { %v1984_v9 = vadd.f32 %v1938_v33, %v1669_v28  ;;  %v4220_v28 = vsel %vm12183_vm5, %v4218_v44, %v4219_v10  ;;  %v3641_v44 = vrot.slane %v3639_v34, 4 }
 0x1f5   : > { %v3049_v5 = vpop.f32.mrf.mxu1 }
 0x1f6   : > { %3323 = vmatmul.bf16.gmra.mxu2 %v11245_v6  ;;  %4431 = vmatmul.bf16.gmra.mxu0 %v4327_v36  ;;  %v12870_v42 = vadd.f32 %v2620_v17, %v1984_v9  ;;  %v3624_v17 = vsel %vm11880_vm2, %v3619_v14, %v3623_v1  ;;  %v3629_v36 = vshll.u32 %v10422_v21, 16  ;;  %v4302_v9 = vunpack.c.l.b16 %v4220_v28  ;;  %v10424_v21 = vld [vmem:[%s11848_s6 + $0x68] sm:$0x1] }
 0x1f7   : > { %4005 = vmatmul.bf16.gmra.mxu3 %v3901_v61  ;;  %v11306_v61 = vld [vmem:[#allocation3 + $0x48] sm:$0xff]  ;;  %v3876_v49 = vunpack.c.l.b16 %v3624_v17 }
 0x1f8   : > { %15449 = vst [vmem:[#allocation17_spill] sm:$0xff] %v12870_v42  ;;  %5643 = vmatpush.bf16.msra.mxu1 %v11306_v61  ;;  %v3631_v14 = vrot.slane %v3629_v36, 5  ;;  %v3645_v61 = vshll.u32 %v10424_v21, 16 }
 0x1f9   : > { %v1626_v18 = vpop.f32.mrf.mxu2  ;;  %v3902_v28 = vpack.c.b16 %v3876_v49, %v3875_v15 }
 0x1fa   : > { %v1670_v60 = vadd.f32 %v1626_v18, %v12380_v32  ;;  %v1941_v48 = vpop.f32.mrf.mxu3  ;;  %v3635_v32 = vshll.u32 %v10423_v43, 16  ;;  %v3632_v27 = vor.u32 %v3631_v14, %v3628_v8  ;;  %v3647_v49 = vrot.slane %v3645_v61, 5 }
 0x1fb   : > { %v2625_v62 = vpop.f32.mrf.mxu0 }
 0x1fc   : > { %v1985_v33 = vadd.f32 %v1941_v48, %v1670_v60  ;;  %v3637_v51 = vrot.slane %v3635_v32, 5  ;;  %v11246_v48 = vld [vmem:[%s11848_s6 + $0x54] sm:$0xff] }
 0x1fd   : > { %v12883_v6 = vpop.f32.mrf.mxu1 }
 0x1fe   : > { %15450 = vst [vmem:[#allocation18_spill] sm:$0xff] %v12883_v6  ;;  %v2667_v46 = vadd.f32 %v2623_v45, %v1985_v33  ;;  %v4328_v45 = vpack.c.b16 %v4302_v9, %v4301_v57  ;;  %v10506_v33 = vld [vmem:[%s11848_s6 + $0x60] sm:$0xe]  ;;  %v12895_v57 = vld [vmem:[%s11848_s6 + $0x70] sm:$0xf]  ;;  %v3633_v9 = vrot.slane %v3632_v27, 4 }
 0x1ff   : > { %v10538_v34 = vrot.slane %v10506_v33, 9 }
 0x200   : > { %v12885_v1 = vadd.f32 %v3049_v5, %v2667_v46  ;;  %v3642_v5 = vor.u32 %v3641_v44, %v3637_v51  ;;  %v4225_v46 = vrot.slane %v4223_v26, 4  ;;  %v3638_v33 = vsel %vm11880_vm2, %v3633_v9, %v3637_v51 }
 0x201   : > { %v1628_v10 = vpop.f32.mrf.mxu2 }
 0x202   : > { %15451 = vst [vmem:[#allocation19_spill] sm:$0xff] %v12885_v1  ;;  %v1671_v18 = vadd.f32 %v1628_v10, %v12398_v11  ;;  %v1943_v60 = vpop.f32.mrf.mxu3  ;;  %v10425_v11 = vld [vmem:[%s11848_s6 + $0x6c] sm:$0xf]  ;;  %v4226_v10 = vrot.slane %v10424_v21, 5  ;;  %v3643_v15 = vrot.slane %v3642_v5, 4 }
 0x203   : > { %v2628_v16 = vpop.f32.mrf.mxu0  ;;  %v3653_v8 = vshll.u32 %v10425_v11, 16 }
 0x204   : > { %v1986_v17 = vadd.f32 %v1943_v60, %v1671_v18  ;;  %v3650_v18 = vshrl.u32 %v10425_v11, 16  ;;  %v3659_v60 = vshll.u32 %v12895_v57, 16 }
 0x205   : > { %v3054_v36 = vpop.f32.mrf.mxu1 }
 0x206   : > { %3328 = vmatmul.bf16.gmra.mxu2 %v11246_v48  ;;  %4436 = vmatmul.bf16.gmra.mxu0 %v4328_v45  ;;  %v12891_v32 = vadd.f32 %v2625_v62, %v1986_v17  ;;  %v4224_v62 = vsel %vm12183_vm5, %v10538_v34, %v4223_v26  ;;  %v3663_v48 = vshrl.u32 %v12895_v57, 16  ;;  %v4227_v45 = vsel %vm12183_vm5, %v4225_v46, %v4226_v10  ;;  %v10427_v46 = vld [vmem:[%s11848_s6 + $0x74] sm:$0x1] }
 0x207   : > { %4010 = vmatmul.bf16.gmra.mxu3 %v3902_v28  ;;  %v4303_v17 = vunpack.c.l.b16 %v4224_v62  ;;  %v3652_v27 = vrot.slane %v3650_v18, 4  ;;  %v3655_v26 = vrot.slane %v3653_v8, 5  ;;  %v4304_v61 = vunpack.c.l.b16 %v4227_v45  ;;  %v11247_v18 = vld [vmem:[%s11848_s6 + $0x60] sm:$0xff] }
 0x208   : > { %15452 = vst [vmem:[#allocation20_spill] sm:$0xff] %v12891_v32  ;;  %v3661_v34 = vrot.slane %v3659_v60, 5  ;;  %v3665_v11 = vrot.slane %v3663_v48, 4  ;;  %v4230_v48 = vrot.slane %v12895_v57, 5 }
 0x209   : > { %v1631_v43 = vpop.f32.mrf.mxu2  ;;  %v3656_v9 = vor.u32 %v3655_v26, %v3652_v27  ;;  %v4329_v8 = vpack.c.b16 %v4304_v61, %v4303_v17  ;;  %v12921_v26 = vld [vmem:[%s11848_s6 + $0x7c] sm:$0xf] }
 0x20a   : > { %v1672_v14 = vadd.f32 %v1631_v43, %v12416_v55  ;;  %v1946_v44 = vpop.f32.mrf.mxu3  ;;  %v3648_v55 = vsel %vm11880_vm2, %v3643_v15, %v3647_v49  ;;  %v3877_v43 = vunpack.c.l.b16 %v3638_v33 }
 0x20b   : > { %v2630_v21 = vpop.f32.mrf.mxu0  ;;  %v3878_v6 = vunpack.c.l.b16 %v3648_v55  ;;  %v3657_v33 = vrot.slane %v3656_v9, 4  ;;  %v11743_v55 = vmov 0   ;;  %v3683_v9 = vshll.u32 %v12921_v26, 16 }
 0x20c   : > { %v1987_v28 = vadd.f32 %v1946_v44, %v1672_v14  ;;  %v3669_v14 = vshll.u32 %v10427_v46, 16  ;;  %v10507_v44 = vld [vmem:[%s11848_s6 + $0x6c] sm:$0xe]  ;;  %241 = vst [vmem:[#allocation2] sm:$0xf] %v11743_v55 }
 0x20d   : > { %v12908_v32 = vpop.f32.mrf.mxu1  ;;  %v3903_v60 = vpack.c.b16 %v3878_v6, %v3877_v43  ;;  %242 = vst [vmem:[#allocation2 + $0x4] sm:$0xf] %v11743_v55  ;;  %v4233_v6 = vrot.slane %v10427_v46, 5 }
 0x20e   : > { %v2669_v5 = vadd.f32 %v2628_v16, %v1987_v28  ;;  %15453 = vst [vmem:[#allocation21_spill] sm:$0xff] %v12908_v32  ;;  %v3666_v16 = vor.u32 %v3665_v11, %v3661_v34  ;;  %v10428_v28 = vld [vmem:[%s11848_s6 + $0x78] sm:$0xf]  ;;  %v3671_v17 = vrot.slane %v3669_v14, 5 }
 0x20f   : > { %v3674_v61 = vshrl.u32 %v10428_v28, 16  ;;  %v3677_v57 = vshll.u32 %v10428_v28, 16  ;;  %243 = vst [vmem:[#allocation2 + $0x8] sm:$0x1] %v11743_v55 }
 0x210   : > { %v12911_v10 = vadd.f32 %v3054_v36, %v2669_v5  ;;  %v10539_v36 = vrot.slane %v10507_v44, 9  ;;  %v3667_v27 = vrot.slane %v3666_v16, 4  ;;  %v4232_v5 = vrot.slane %v4230_v48, 4  ;;  %245 = vst [vmem:[#allocation2 + $0xcc] sm:$0xf] %v11743_v55 }
 0x211   : > { %v1633_v51 = vpop.f32.mrf.mxu2  ;;  %246 = vst [vmem:[#allocation2 + $0xd0] sm:$0xf] %v11743_v55  ;;  %v3676_v14 = vrot.slane %v3674_v61, 4  ;;  %v3679_v44 = vrot.slane %v3677_v57, 5  ;;  %v10430_v61 = vld [vmem:[%s11848_s6 + $0x80] sm:$0x1] }
 0x212   : > { %15454 = vst [vmem:[#allocation22_spill] sm:$0xff] %v12911_v10  ;;  %v1673_v15 = vadd.f32 %v1633_v51, %v12431_v38  ;;  %v1948_v49 = vpop.f32.mrf.mxu3  ;;  %v3662_v51 = vsel %vm11880_vm2, %v3657_v33, %v3661_v34  ;;  %v4234_v34 = vsel %vm12183_vm5, %v4232_v5, %v4233_v6  ;;  %v12942_v33 = vrot.slane %v3683_v9, 5 }
 0x213   : > { %v2633_v62 = vpop.f32.mrf.mxu0  ;;  %247 = vst [vmem:[#allocation2 + $0xd4] sm:$0x1] %v11743_v55  ;;  %v3879_v28 = vunpack.c.l.b16 %v3662_v51  ;;  %v4306_v6 = vunpack.c.l.b16 %v4234_v34  ;;  %v15459_v57 = vmov 0  ;;  %v4237_v55 = vrot.slane %v12921_v26, 5 }
 0x214   : > { %v1988_v45 = vadd.f32 %v1948_v49, %v1673_v15  ;;  %v3687_v15 = vshrl.u32 %v12921_v26, 16  ;;  %v15460_v57 = vsel %vm12947_vm10, 4294967295, %v15459_v57  ;;  %v11248_v26 = vld [vmem:[%s11848_s6 + $0x6c] sm:$0xff] }
 0x215   : > { %v3059_v43 = vpop.f32.mrf.mxu1  ;;  %15461 = vst [vmem:[#allocation25_spill] sm:$0xff] %v15460_v57 }
 0x216   : > { %3333 = vmatmul.bf16.gmra.mxu2 %v11247_v18  ;;  %4441 = vmatmul.bf16.gmra.mxu0 %v4329_v8  ;;  %v12918_v38 = vadd.f32 %v2630_v21, %v1988_v45  ;;  %v4231_v21 = vsel %vm12183_vm5, %v10539_v36, %v4230_v48  ;;  %v3672_v18 = vsel %vm11880_vm2, %v3667_v27, %v3671_v17  ;;  %v254_v8 = vld [vmem:[#allocation2 + $0xc] sm:$0x1]  ;;  %v251_v45 = vld [vmem:[#allocation2] sm:$0x1]  ;;  %v3689_v36 = vrot.slane %v3687_v15, 4 }
 0x217   : > { %4015 = vmatmul.bf16.gmra.mxu3 %v3903_v60  ;;  %v15456_v60 = vmov 0  ;;  %v255_v48 = vsel %vm12936_vm8, 0, %v254_v8  ;;  %v3880_v17 = vunpack.c.l.b16 %v3672_v18  ;;  %v4305_v5 = vunpack.c.l.b16 %v4231_v21  ;;  %v307_v21 = vld [vmem:[#allocation2 + $0x8] sm:$0x1] }
 0x218   : > { %15455 = vst [vmem:[#allocation23_spill] sm:$0xff] %v12918_v38  ;;  %v15457_v60 = vsel %vm12936_vm8, 4294967295, %v15456_v60  ;;  %v252_v51 = vsel %vm12936_vm8, 0, %v251_v45  ;;  %v308_v18 = vsel %vm12947_vm10, 0, %v307_v21  ;;  %v5061_v21 = vld [vmem:[#allocation2 + $0x4] sm:$0xf] }
 0x219   : > { %v1636_v11 = vpop.f32.mrf.mxu2  ;;  %15458 = vst [vmem:[#allocation24_spill] sm:$0xff] %v15457_v60 }
 0x21a   : > { %v1674_v49 = vadd.f32 %v1636_v11, %v12455_v22  ;;  %v1951_v46 = vpop.f32.mrf.mxu3  ;;  %256 = vst [vmem:[#allocation2 + $0xc] sm:$0x1] %v255_v48  ;;  %v3680_v11 = vor.u32 %v3679_v44, %v3676_v14  ;;  %v3904_v14 = vpack.c.b16 %v3880_v17, %v3879_v28  ;;  %v4330_v44 = vpack.c.b16 %v4306_v6, %v4305_v5  ;;  %v12968_v28 = vld [vmem:[%s11848_s6 + $0x88] sm:$0xf] }
 0x21b   : > { %v2635_v16 = vpop.f32.mrf.mxu0  ;;  %253 = vst [vmem:[#allocation2] sm:$0x1] %v252_v51  ;;  %v5151_v17 = vshll.u32 %v5061_v21, 16  ;;  %v5155_v5 = vshrl.u32 %v5061_v21, 16  ;;  %v310_v21 = vld [vmem:[#allocation2 + $0x14] sm:$0x1] }
 0x21c   : > { %v1989_v22 = vadd.f32 %v1951_v46, %v1674_v49  ;;  %v3690_v49 = vor.u32 %v3689_v36, %v12942_v33  ;;  %v3693_v46 = vshll.u32 %v10430_v61, 16  ;;  %309 = vst [vmem:[#allocation2 + $0x8] sm:$0x1] %v308_v18  ;;  %v3681_v48 = vrot.slane %v3680_v11, 4 }
 0x21d   : > { %v4240_v36 = vrot.slane %v10430_v61, 5  ;;  %v5153_v18 = vrot.slane %v5151_v17, 5 }
 0x21e   : > { %v2671_v27 = vadd.f32 %v2633_v62, %v1989_v22  ;;  %v10508_v62 = vld [vmem:[%s11848_s6 + $0x78] sm:$0xe]  ;;  %v12962_v22 = vpop.f32.mrf.mxu1  ;;  %v3691_v32 = vrot.slane %v3690_v49, 4  ;;  %v3695_v38 = vrot.slane %v3693_v46, 5  ;;  %v3686_v6 = vsel %vm11880_vm2, %v3681_v48, %v12942_v33 }
 0x21f   : > { %15463 = vst [vmem:[#allocation27_spill] sm:$0xff] %v12962_v22  ;;  %v10540_v45 = vrot.slane %v10508_v62, 9  ;;  %v3711_v33 = vshrl.u32 %v12968_v28, 16 }
 0x220   : > { %v12954_v9 = vadd.f32 %v3059_v43, %v2671_v27  ;;  %v4239_v27 = vrot.slane %v4237_v55, 4 }
 0x221   : > { %v1638_v15 = vpop.f32.mrf.mxu2  ;;  %v4238_v61 = vsel %vm12183_vm5, %v10540_v45, %v4237_v55  ;;  %v5157_v55 = vrot.slane %v5155_v5, 4 }
 0x222   : > { %15462 = vst [vmem:[#allocation26_spill] sm:$0xff] %v12954_v9  ;;  %v1675_v8 = vadd.f32 %v1638_v15, %v12473_v25  ;;  %v1953_v34 = vpop.f32.mrf.mxu3  ;;  %v10431_v9 = vld [vmem:[%s11848_s6 + $0x84] sm:$0xf]  ;;  %v4241_v11 = vsel %vm12183_vm5, %v4239_v27, %v4240_v36  ;;  %v5060_v15 = vld [vmem:[#allocation2] sm:$0xf]  ;;  %v4307_v45 = vunpack.c.l.b16 %v4238_v61  ;;  %v11305_v61 = vld [vmem:[#allocation3 + $0x40] sm:$0xff] }
 0x223   : > { %v2638_v43 = vpop.f32.mrf.mxu0  ;;  %v3698_v62 = vshrl.u32 %v10431_v9, 16  ;;  %v3701_v49 = vshll.u32 %v10431_v9, 16  ;;  %v5145_v46 = vshll.u32 %v5060_v15, 16  ;;  %5644 = vmatpush.bf16.msra.mxu1 %v11305_v61 }
 0x224   : > { %v1990_v51 = vadd.f32 %v1953_v34, %v1675_v8  ;;  %v3696_v34 = vsel %vm11880_vm2, %v3691_v32, %v3695_v38  ;;  %v311_v38 = vsel %vm12947_vm10, 0, %v310_v21 }
 0x225   : > { %v5147_v9 = vrot.slane %v5145_v46, 5  ;;  %v3700_v17 = vrot.slane %v3698_v62, 4  ;;  %v3703_v10 = vrot.slane %v3701_v49, 5  ;;  %312 = vst [vmem:[#allocation2 + $0x14] sm:$0x1] %v311_v38 }
 0x226   : > { %3338 = vmatmul.bf16.gmra.mxu2 %v11248_v26  ;;  %4446 = vmatmul.bf16.gmra.mxu0 %v4330_v44  ;;  %v12965_v25 = vadd.f32 %v2635_v16, %v1990_v51  ;;  %v5142_v16 = vshrl.u32 %v5060_v15, 16  ;;  %v3707_v26 = vshll.u32 %v12968_v28, 16  ;;  %v4308_v51 = vunpack.c.l.b16 %v4241_v11 }
 0x227   : > { %4020 = vmatmul.bf16.gmra.mxu3 %v3904_v14  ;;  %v5108_v14 = vld [vmem:[#allocation2 + $0x8] sm:$0x1]  ;;  %v5158_v15 = vor.u32 %v5157_v55, %v5153_v18  ;;  %v3713_v11 = vrot.slane %v3711_v33, 4  ;;  %v3881_v55 = vunpack.c.l.b16 %v3686_v6  ;;  %v3704_v38 = vor.u32 %v3703_v10, %v3700_v17  ;;  %v12999_v33 = vld [vmem:[%s11848_s6 + $0x94] sm:$0xf] }
 0x228   : > { %15464 = vst [vmem:[#allocation28_spill] sm:$0xff] %v12965_v25  ;;  %v5144_v27 = vrot.slane %v5142_v16, 4  ;;  %v5161_v22 = vshll.u32 %v5108_v14, 16  ;;  %v12985_v25 = vld [vmem:[%s11848_s6 + $0x8c] sm:$0x1]  ;;  %v12987_v16 = vrot.slane %v3707_v26, 5 }
 0x229   : > { %v1641_v8 = vpop.f32.mrf.mxu2  ;;  %v5159_v62 = vrot.slane %v5158_v15, 4  ;;  %v3717_v49 = vshll.u32 %v12985_v25, 16  ;;  %v15466_v15 = vld [vmem:[#allocation9_spill] sm:$0xff] }
 0x22a   : > { %v1676_v44 = vadd.f32 %v1641_v8, %v12491_v59  ;;  %v1956_v48 = vpop.f32.mrf.mxu3  ;;  %v5148_v5 = vor.u32 %v5147_v9, %v5144_v27  ;;  %v3064_v59 = vpop.f32.mrf.mxu1  ;;  %v5163_v14 = vrot.slane %v5161_v22, 5  ;;  %v10509_v27 = vld [vmem:[%s11848_s6 + $0x84] sm:$0xe]  ;;  %v10434_v9 = vld [vmem:[%s11848_s6 + $0x90] sm:$0xf]  ;;  %v3714_v6 = vor.u32 %v3713_v11, %v12987_v16 }
 0x22b   : > { %v2640_v36 = vpop.f32.mrf.mxu0  ;;  %v10541_v10 = vrot.slane %v10509_v27, 9  ;;  %v3722_v17 = vshrl.u32 %v10434_v9, 16  ;;  %v3725_v61 = vshll.u32 %v10434_v9, 16  ;;  %v3735_v11 = vshrl.u32 %v12999_v33, 16  ;;  %v13015_v9 = vld [vmem:[%s11848_s6 + $0x98] sm:$0x1] }
 0x22c   : > { %v1991_v32 = vadd.f32 %v1956_v48, %v1676_v44  ;;  %v5149_v8 = vrot.slane %v5148_v5, 4  ;;  %v3882_v44 = vunpack.c.l.b16 %v3696_v34  ;;  %v4331_v48 = vpack.c.b16 %v4308_v51, %v4307_v45 }
 0x22d   : > { %v4244_v34 = vrot.slane %v12968_v28, 5  ;;  %v3705_v28 = vrot.slane %v3704_v38, 4  ;;  %v4247_v27 = vrot.slane %v12985_v25, 5  ;;  %v3724_v38 = vrot.slane %v3722_v17, 4 }
 0x22e   : > { %v2673_v46 = vadd.f32 %v2638_v43, %v1991_v32  ;;  %v5154_v26 = vsel %vm11880_vm2, %v5149_v8, %v5153_v18  ;;  %v5164_v43 = vsel %vm11880_vm2, %v5159_v62, %v5163_v14  ;;  %v257_v8 = vld [vmem:[#allocation2 + $0x18] sm:$0x1]  ;;  %v3731_v14 = vshll.u32 %v12999_v33, 16 }
 0x22f   : > { %v5525_v45 = vunpack.c.l.b16 %v5154_v26  ;;  %v5526_v51 = vunpack.c.l.b16 %v5164_v43  ;;  %v258_v26 = vsel %vm12936_vm8, 0, %v257_v8  ;;  %v3715_v43 = vrot.slane %v3714_v6, 4 }
 0x230   : > { %v12992_v21 = vadd.f32 %v3064_v59, %v2673_v46  ;;  %v11249_v59 = vld [vmem:[%s11848_s6 + $0x78] sm:$0xff]  ;;  %v3905_v46 = vpack.c.b16 %v3882_v44, %v3881_v55  ;;  %259 = vst [vmem:[#allocation2 + $0x18] sm:$0x1] %v258_v26  ;;  %v4245_v44 = vsel %vm12183_vm5, %v10541_v10, %v4244_v34  ;;  %v3727_v6 = vrot.slane %v3725_v61, 5 }
 0x231   : > { %v1643_v22 = vpop.f32.mrf.mxu2  ;;  %v5557_v62 = vpack.c.b16 %v5526_v51, %v5525_v45  ;;  %v3737_v25 = vrot.slane %v3735_v11, 4  ;;  %v3710_v45 = vsel %vm11880_vm2, %v3705_v28, %v12987_v16  ;;  %v3741_v51 = vshll.u32 %v13015_v9, 16 }
 0x232   : > { %15465 = vst [vmem:[#allocation29_spill] sm:$0xff] %v12992_v21  ;;  %v1677_v32 = vadd.f32 %v1643_v22, %v15466_v15  ;;  %v1958_v5 = vpop.f32.mrf.mxu3  ;;  %v3719_v22 = vrot.slane %v3717_v49, 5  ;;  %v4246_v15 = vrot.slane %v4244_v34, 4  ;;  %v13017_v49 = vrot.slane %v3731_v14, 5  ;;  %v313_v14 = vld [vmem:[#allocation2 + $0x20] sm:$0x1] }
 0x233   : > { %v4412_v18 = vpop.f32.mrf.mxu0  ;;  %5645 = vmatmul.bf16.vlgmr.msra.gmra.mxu1 %v5557_v62  ;;  %v4309_v34 = vunpack.c.l.b16 %v4245_v44  ;;  %v3728_v61 = vor.u32 %v3727_v6, %v3724_v38  ;;  %v4251_v28 = vrot.slane %v12999_v33, 5  ;;  %v3883_v6 = vunpack.c.l.b16 %v3710_v45  ;;  %v11304_v33 = vld [vmem:[#allocation3 + $0x38] sm:$0xff] }
 0x234   : > { %v1992_v21 = vadd.f32 %v1958_v5, %v1677_v32  ;;  %v10437_v32 = vld [vmem:[%s11848_s6 + $0x9c] sm:$0xf]  ;;  %v13029_v5 = vld [vmem:[%s11848_s6 + $0xa0] sm:$0xf]  ;;  %v3738_v11 = vor.u32 %v3737_v25, %v13017_v49  ;;  %v4254_v1 = vrot.slane %v13015_v9, 5  ;;  %5870 = vmatpush.bf16.msrb.mxu2 %v11304_v33  ;;  %v11250_v9 = vld [vmem:[%s11848_s6 + $0x84] sm:$0xff] }
 0x235   : > { %v3746_v8 = vshrl.u32 %v10437_v32, 16  ;;  %v3749_v16 = vshll.u32 %v10437_v32, 16  ;;  %v3755_v26 = vshll.u32 %v13029_v5, 16  ;;  %v11320_v32 = vld [vmem:[#allocation3 + $0xb8] sm:$0xff] }
 0x236   : > { %3343 = vmatmul.bf16.gmra.mxu2 %v11249_v59  ;;  %4451 = vmatmul.bf16.gmra.mxu0 %v4331_v48  ;;  %v13010_v55 = vadd.f32 %v2640_v36, %v1992_v21  ;;  %v3720_v36 = vsel %vm11880_vm2, %v3715_v43, %v3719_v22  ;;  %v4248_v21 = vsel %vm12183_vm5, %v4246_v15, %v4247_v27  ;;  %v15468_v59 = vld [vmem:[#allocation10_spill] sm:$0xff]  ;;  %v3759_v43 = vshrl.u32 %v13029_v5, 16  ;;  %v11344_v33 = vld [vmem:[#allocation3 + $0xf8] sm:$0xff] }
 0x237   : > { %4025 = vmatmul.bf16.gmra.mxu3 %v3905_v46  ;;  %v10510_v46 = vld [vmem:[%s11848_s6 + $0x90] sm:$0xe]  ;;  %v13040_v15 = vld [vmem:[%s15428_s2] ss:$0 sm:$0xff]  ;;  %v314_v27 = vsel %vm12947_vm10, 0, %v313_v14  ;;  %v3748_v44 = vrot.slane %v3746_v8, 4  ;;  %v4310_v25 = vunpack.c.l.b16 %v4248_v21  ;;  %6562 = vmatpush.bf16.msrb.mxu0 %v11344_v33 }
 0x238   : > { %15467 = vst [vmem:[#allocation9_spill] sm:$0xff] %v13010_v55  ;;  %v3751_v38 = vrot.slane %v3749_v16, 5  ;;  %6248 = vmatpush.bf16.msrb.mxu3 %v11320_v32  ;;  %v3739_v42 = vrot.slane %v3738_v11, 4  ;;  %v4253_v14 = vrot.slane %v4251_v28, 4  ;;  %v3757_v8 = vrot.slane %v3755_v26, 5 }
 0x239   : > { %v3304_v48 = vpop.f32.mrf.mxu2  ;;  %315 = vst [vmem:[#allocation2 + $0x20] sm:$0x1] %v314_v27  ;;  %v3761_v16 = vrot.slane %v3759_v43, 4  ;;  %v10511_v32 = vld [vmem:[%s11848_s6 + $0x9c] sm:$0xe] }
 0x23a   : > { %v3384_v10 = vadd.f32 %v3304_v48, %v15468_v59  ;;  %v3986_v17 = vpop.f32.mrf.mxu3  ;;  %v3884_v48 = vunpack.c.l.b16 %v3720_v36  ;;  %v10542_v59 = vrot.slane %v10510_v46, 9  ;;  %v13047_v36 = vld [vmem:[%s11848_s6 + $0xa4] sm:$0x1]  ;;  %v3752_v21 = vor.u32 %v3751_v38, %v3748_v44 }
 0x23b   : > { %v4414_v62 = vpop.f32.mrf.mxu0  ;;  %v4332_v46 = vpack.c.b16 %v4310_v25, %v4309_v34  ;;  %v260_v34 = vld [vmem:[#allocation2 + $0x24] sm:$0x1]  ;;  %v3762_v44 = vor.u32 %v3761_v16, %v3757_v8 }
 0x23c   : > { %v4066_v22 = vadd.f32 %v3986_v17, %v3384_v10  ;;  %v3729_v10 = vrot.slane %v3728_v61, 4  ;;  %v3743_v17 = vrot.slane %v3741_v51, 5  ;;  %v3906_v27 = vpack.c.b16 %v3884_v48, %v3883_v6 }
 0x23d   : > { %v4252_v26 = vsel %vm12183_vm5, %v10542_v59, %v4251_v28  ;;  %v3753_v6 = vrot.slane %v3752_v21, 4  ;;  %v4258_v28 = vrot.slane %v13029_v5, 5  ;;  %v11392_v21 = vld [vmem:[#allocation3 + $0x1f8] sm:$0xff] }
 0x23e   : > { %v4492_v55 = vadd.f32 %v4412_v18, %v4066_v22  ;;  %v3734_v11 = vsel %vm11880_vm2, %v3729_v10, %v13017_v49  ;;  %v4255_v22 = vsel %vm12183_vm5, %v4253_v14, %v4254_v1  ;;  %v261_v49 = vsel %vm12936_vm8, 0, %v260_v34 }
 0x23f   : > { %262 = vst [vmem:[#allocation2 + $0x24] sm:$0x1] %v261_v49  ;;  %v13064_v1 = vunpack.c.l.b16 %v3734_v11  ;;  %v4311_v25 = vunpack.c.l.b16 %v4252_v26  ;;  %v4312_v10 = vunpack.c.l.b16 %v4255_v22  ;;  %v13095_v49 = vld [vmem:[%s11848_s6 + $0xac] sm:$0xf] }
 0x240   : > { %v4527_v45 = vadd.f32 %v13040_v15, %v4492_v55  ;;  %v3744_v55 = vsel %vm11880_vm2, %v3739_v42, %v3743_v17  ;;  %v3763_v17 = vrot.slane %v3762_v44, 4  ;;  %v316_v44 = vld [vmem:[#allocation2 + $0x2c] sm:$0x1] }
 0x241   : > { %v3306_v30 = vpop.f32.mrf.mxu2  ;;  %v13067_v59 = vunpack.c.l.b16 %v3744_v55  ;;  %v13087_v34 = vpack.c.b16 %v4312_v10, %v4311_v25  ;;  %v3779_v10 = vshll.u32 %v13095_v49, 16 }
 0x242   : > { %v4559_v18 = vmax.f32 %v4527_v45, 0.0  ;;  %v3385_v51 = vadd.f32 %v3306_v30, %v12551_v58  ;;  %v3988_v61 = vpop.f32.mrf.mxu3  ;;  %v3765_v58 = vshll.u32 %v13047_v36, 16 }
 0x243   : > { %v4417_v43 = vpop.f32.mrf.mxu0 }
 0x244   : > { %v4591_v30 = vpack.c.bf16 %v4559_v18, %v4559_v18  ;;  %v4067_v38 = vadd.f32 %v3988_v61, %v3385_v51  ;;  %v3767_v14 = vrot.slane %v3765_v58, 5  ;;  %v10543_v18 = vrot.slane %v10511_v32, 9 }
 0x245   : > { %v4260_v51 = vrot.slane %v4258_v28, 4 }
 0x246   : > { %v4626_v48 = vshrl.u32 %v4591_v30, 16  ;;  %v4493_v42 = vadd.f32 %v4414_v62, %v4067_v38  ;;  %3348 = vmatmul.bf16.gmra.mxu2 %v11250_v9  ;;  %4456 = vmatmul.bf16.gmra.mxu0 %v4332_v46  ;;  %v4629_v45 = vshll.u32 %v4591_v30, 16  ;;  %v3758_v62 = vsel %vm11880_vm2, %v3753_v6, %v3757_v8  ;;  %v10440_v38 = vld [vmem:[%s11848_s6 + $0xa8] sm:$0xf] }
 0x247   : > { %4030 = vmatmul.bf16.gmra.mxu3 %v3906_v27  ;;  %v4948_v27 = vld [vmem:[#allocation2 + $0xc] sm:$0xf]  ;;  %v4261_v8 = vrot.slane %v13047_v36, 5  ;;  %v3768_v58 = vsel %vm11880_vm2, %v3763_v17, %v3767_v14  ;;  %v13091_v30 = vunpack.c.l.b16 %v3758_v62  ;;  %v13103_v25 = vsel %vm12183_vm5, %v10543_v18, %v4258_v28 }
 0x248   : > { %v13069_v16 = vrot.slane %v4626_v48, 7  ;;  %v4528_v5 = vadd.f32 %v13040_v15, %v4493_v42  ;;  %v317_v48 = vsel %vm12947_vm10, 0, %v316_v44  ;;  %v11352_v42 = vld [vmem:[#allocation3 + $0x138] sm:$0xff]  ;;  %v3770_v33 = vshrl.u32 %v10440_v38, 16 }
 0x249   : > { %v3309_v46 = vpop.f32.mrf.mxu2  ;;  %v3773_v32 = vshll.u32 %v10440_v38, 16  ;;  %318 = vst [vmem:[#allocation2 + $0x2c] sm:$0x1] %v317_v48  ;;  %7244 = vmatpush.bf16.msrb.mxu1 %v11352_v42  ;;  %v13111_v62 = vunpack.c.l.b16 %v3768_v58  ;;  %v13116_v18 = vrot.slane %v3779_v10, 5  ;;  %v4313_v58 = vunpack.c.l.b16 %v13103_v25 }
 0x24a   : > { %v4631_v61 = vor.u32 %v4629_v45, %v13069_v16  ;;  %v4560_v9 = vmax.f32 %v4528_v5, 0.0  ;;  %v3386_v11 = vadd.f32 %v3309_v46, %v12573_v4  ;;  %v3991_v26 = vpop.f32.mrf.mxu3  ;;  %v13108_v45 = vsel %vm12183_vm5, %v4260_v51, %v4261_v8  ;;  %v4952_v8 = vld [vmem:[#allocation2 + $0x14] sm:$0x1] }
 0x24b   : > { %v13083_v55 = vpop.f32.mrf.mxu0  ;;  %v3783_v5 = vshrl.u32 %v13095_v49, 16  ;;  %v3772_v28 = vrot.slane %v3770_v33, 4  ;;  %v3775_v46 = vrot.slane %v3773_v32, 5  ;;  %v4632_v51 = vrot.slane %v13069_v16, 4  ;;  %v11251_v16 = vld [vmem:[%s11848_s6 + $0x90] sm:$0xff] }
 0x24c   : > { %v4949_v4 = vsel %vm13076_vm12, %v4631_v61, %v4948_v27  ;;  %v4592_v36 = vpack.c.bf16 %v4560_v9, %v4560_v9  ;;  %v4068_v6 = vadd.f32 %v3991_v26, %v3386_v11  ;;  %v13114_v27 = vld [vmem:[%s11848_s6 + $0xb0] sm:$0x1]  ;;  %v10512_v32 = vld [vmem:[%s11848_s6 + $0xa8] sm:$0xe]  ;;  %v4265_v25 = vrot.slane %v13095_v49, 5 }
 0x24d   : > { %4950 = vst [vmem:[#allocation2 + $0xc] sm:$0xf] %v4949_v4  ;;  %v3785_v11 = vrot.slane %v3783_v5, 4  ;;  %v3776_v38 = vor.u32 %v3775_v46, %v3772_v28  ;;  %v3789_v4 = vshll.u32 %v13114_v27, 16 }
 0x24e   : > { %v4634_v17 = vshrl.u32 %v4592_v36, 16  ;;  %v4494_v14 = vadd.f32 %v4417_v43, %v4068_v6  ;;  %v4637_v9 = vshll.u32 %v4592_v36, 16 }
 0x24f   : > { %v3777_v5 = vrot.slane %v3776_v38, 4  ;;  %v3786_v22 = vor.u32 %v3785_v11, %v13116_v18  ;;  %v10544_v38 = vrot.slane %v10512_v32, 9  ;;  %v13154_v32 = vadd.f32 %v12683_v24, %v12702_v12 }
 0x250   : > { %v4636_v61 = vrot.slane %v4634_v17, 7  ;;  %v4529_v43 = vadd.f32 %v13040_v15, %v4494_v14  ;;  %v4314_v17 = vunpack.c.l.b16 %v13108_v45  ;;  %v263_v14 = vld [vmem:[#allocation2 + $0x30] sm:$0x1] }
 0x251   : > { %v3311_v44 = vpop.f32.mrf.mxu2 }
 0x252   : > { %v4639_v36 = vor.u32 %v4637_v9, %v4636_v61  ;;  %v4641_v6 = vrot.slane %v4636_v61, 4  ;;  %v4561_v48 = vmax.f32 %v4529_v43, 0.0  ;;  %v3387_v42 = vadd.f32 %v3311_v44, %v12588_v52  ;;  %v3993_v33 = vpop.f32.mrf.mxu3 }
 0x253   : > { %v4422_v10 = vpop.f32.mrf.mxu0  ;;  %v264_v43 = vsel %vm12936_vm8, 0, %v263_v14  ;;  %v3791_v44 = vrot.slane %v3789_v4, 5 }
 0x254   : > { %v4640_v28 = vsel %vm13122_vm14, %v4632_v51, %v4639_v36  ;;  %v4953_v46 = vsel %vm12936_vm8, %v4641_v6, %v4952_v8  ;;  %v4593_v61 = vpack.c.bf16 %v4561_v48, %v4561_v48  ;;  %v4069_v52 = vadd.f32 %v3993_v33, %v3387_v42  ;;  %v5062_v9 = vld [vmem:[#allocation2 + $0xc] sm:$0xf]  ;;  %265 = vst [vmem:[#allocation2 + $0x30] sm:$0x1] %v264_v43 }
 0x255   : > { %4951 = vst [vmem:[#allocation2 + $0x10] sm:$0xf] %v4640_v28  ;;  %v5166_v45 = vshrl.u32 %v5062_v9, 16  ;;  %v5169_v51 = vshll.u32 %v5062_v9, 16  ;;  %v3782_v8 = vsel %vm11880_vm2, %v3777_v5, %v13116_v18  ;;  %v15473_v6 = vpack.c.b16 %v13067_v59, %v13064_v1  ;;  %v4955_v18 = vld [vmem:[#allocation2 + $0x18] sm:$0xf] }
 0x256   : > { %4954 = vst [vmem:[#allocation2 + $0x14] sm:$0x1] %v4953_v46  ;;  %v4643_v11 = vshrl.u32 %v4593_v61, 16  ;;  %v4495_v49 = vadd.f32 %v13083_v55, %v4069_v52  ;;  %3353 = vmatmul.bf16.gmra.mxu2 %v11251_v16  ;;  %4461 = vmatmul.bf16.gmra.mxu0 %v13087_v34  ;;  %v4646_v36 = vshll.u32 %v4593_v61, 16  ;;  %v3787_v48 = vrot.slane %v3786_v22, 4 }
 0x257   : > { %4035 = vmatmul.bf16.gmra.mxu3 %v15473_v6  ;;  %v5168_v4 = vrot.slane %v5166_v45, 4  ;;  %v4267_v42 = vrot.slane %v4265_v25, 4  ;;  %v5171_v16 = vrot.slane %v5169_v51, 5  ;;  %v4268_v34 = vrot.slane %v13114_v27, 5  ;;  %v6683_v26 = vld [vmem:[#allocation2 + $0xc] sm:$0xf] }
 0x258   : > { %v13148_v33 = vrot.slane %v4643_v11, 7  ;;  %v4530_v55 = vadd.f32 %v13040_v15, %v4495_v49  ;;  %v3908_v1 = vpack.c.b16 %v13111_v62, %v13091_v30  ;;  %v13160_v59 = vsel %vm12183_vm5, %v10544_v38, %v4265_v25  ;;  %v10443_v11 = vld [vmem:[%s11848_s6 + $0xb4] sm:$0xf] }
 0x259   : > { %v3314_v14 = vpop.f32.mrf.mxu2  ;;  %v3792_v24 = vsel %vm11880_vm2, %v3787_v48, %v3791_v44  ;;  %v13169_v61 = vpack.c.b16 %v4314_v17, %v4313_v58  ;;  %v5172_v52 = vor.u32 %v5171_v16, %v5168_v4  ;;  %v13171_v9 = vunpack.c.l.b16 %v3782_v8  ;;  %v11303_v48 = vld [vmem:[#allocation3 + $0x30] sm:$0xff] }
 0x25a   : > { %v4648_v22 = vor.u32 %v4646_v36, %v13148_v33  ;;  %v4562_v5 = vmax.f32 %v4530_v55, 0.0  ;;  %v3388_v28 = vadd.f32 %v3314_v14, %v12612_v35  ;;  %v3996_v27 = vpop.f32.mrf.mxu3  ;;  %v4649_v12 = vrot.slane %v13148_v33, 4  ;;  %v11319_v16 = vld [vmem:[#allocation3 + $0xb0] sm:$0xff]  ;;  %5871 = vmatpush.bf16.msrb.mxu2 %v11303_v48 }
 0x25b   : > { %v13167_v46 = vpop.f32.mrf.mxu0  ;;  %v4269_v35 = vsel %vm12183_vm5, %v4267_v42, %v4268_v34  ;;  %v5173_v49 = vrot.slane %v5172_v52, 4  ;;  %v13178_v36 = vunpack.c.l.b16 %v3792_v24  ;;  %v4315_v58 = vunpack.c.l.b16 %v13160_v59  ;;  %6249 = vmatpush.bf16.msrb.mxu3 %v11319_v16 }
 0x25c   : > { %v4956_v25 = vsel %vm13076_vm12, %v4648_v22, %v4955_v18  ;;  %v4594_v43 = vpack.c.bf16 %v4562_v5, %v4562_v5  ;;  %v4070_v45 = vadd.f32 %v3996_v27, %v3388_v28  ;;  %v5063_v38 = vld [vmem:[#allocation2 + $0x10] sm:$0xf]  ;;  %v319_v18 = vld [vmem:[#allocation2 + $0x38] sm:$0x1]  ;;  %v4316_v42 = vunpack.c.l.b16 %v4269_v35 }
 0x25d   : > { %4957 = vst [vmem:[#allocation2 + $0x18] sm:$0xf] %v4956_v25  ;;  %v5109_v44 = vld [vmem:[#allocation2 + $0x14] sm:$0x1]  ;;  %v5175_v51 = vshll.u32 %v5063_v38, 16  ;;  %v5179_v4 = vshrl.u32 %v5063_v38, 16  ;;  %v3909_v52 = vpack.c.b16 %v13178_v36, %v13171_v9 }
 0x25e   : > { %v4651_v17 = vshrl.u32 %v4594_v43, 16  ;;  %v4654_v8 = vshll.u32 %v4594_v43, 16  ;;  %v4496_v6 = vadd.f32 %v4422_v10, %v4070_v45  ;;  %v5185_v55 = vshll.u32 %v5109_v44, 16  ;;  %v13185_v28 = vld [vmem:[%s11848_s6 + $0xb8] sm:$0xf] }
 0x25f   : > { %v5177_v33 = vrot.slane %v5175_v51, 5  ;;  %v3794_v34 = vshrl.u32 %v10443_v11, 16  ;;  %v5181_v5 = vrot.slane %v5179_v4, 4  ;;  %v320_v59 = vsel %vm12947_vm10, 0, %v319_v18  ;;  %v4959_v10 = vld [vmem:[#allocation2 + $0x20] sm:$0x1] }
 0x260   : > { %v4653_v14 = vrot.slane %v4651_v17, 7  ;;  %v4531_v22 = vadd.f32 %v13040_v15, %v4496_v6  ;;  %321 = vst [vmem:[#allocation2 + $0x38] sm:$0x1] %v320_v59  ;;  %v3797_v43 = vshll.u32 %v10443_v11, 16  ;;  %v11252_v17 = vld [vmem:[%s11848_s6 + $0x9c] sm:$0xff]  ;;  %v3803_v16 = vshll.u32 %v13185_v28, 16 }
 0x261   : > { %v3316_v27 = vpop.f32.mrf.mxu2  ;;  %v5178_v24 = vsel %vm11880_vm2, %v5173_v49, %v5177_v33  ;;  %v3796_v25 = vrot.slane %v3794_v34, 4  ;;  %v5182_v4 = vor.u32 %v5181_v5, %v5177_v33  ;;  %v5187_v49 = vrot.slane %v5185_v55, 5  ;;  %v266_v33 = vld [vmem:[#allocation2 + $0x3c] sm:$0x1] }
 0x262   : > { %v4656_v45 = vor.u32 %v4654_v8, %v4653_v14  ;;  %v4658_v38 = vrot.slane %v4653_v14, 4  ;;  %v4563_v35 = vmax.f32 %v4531_v22, 0.0  ;;  %v3389_v44 = vadd.f32 %v3316_v27, %v12626_v41  ;;  %v3998_v51 = vpop.f32.mrf.mxu3  ;;  %v13201_v41 = vld [vmem:[%s11848_s6 + $0xbc] sm:$0x1]  ;;  %v13206_v27 = vld [vmem:[%s11848_s6 + $0xb4] sm:$0xe] }
 0x263   : > { %v13193_v6 = vpop.f32.mrf.mxu0  ;;  %v3799_v48 = vrot.slane %v3797_v43, 5  ;;  %v5183_v22 = vrot.slane %v5182_v4, 4  ;;  %v13203_v59 = vpack.c.b16 %v4316_v42, %v4315_v58  ;;  %v3807_v30 = vshrl.u32 %v13185_v28, 16 }
 0x264   : > { %v4657_v18 = vsel %vm13122_vm14, %v4649_v12, %v4656_v45  ;;  %v4960_v11 = vsel %vm12936_vm8, %v4658_v38, %v4959_v10  ;;  %v4595_v8 = vpack.c.bf16 %v4563_v35, %v4563_v35  ;;  %v4071_v34 = vadd.f32 %v3998_v51, %v3389_v44  ;;  %v5064_v14 = vld [vmem:[#allocation2 + $0x18] sm:$0xf]  ;;  %v11343_v45 = vld [vmem:[#allocation3 + $0xf0] sm:$0xff]  ;;  %v4962_v51 = vld [vmem:[#allocation2 + $0x24] sm:$0xf] }
 0x265   : > { %4958 = vst [vmem:[#allocation2 + $0x1c] sm:$0xf] %v4657_v18  ;;  %v5190_v55 = vshrl.u32 %v5064_v14, 16  ;;  %v3800_v5 = vor.u32 %v3799_v48, %v3796_v25  ;;  %v5527_v10 = vunpack.c.l.b16 %v5178_v24  ;;  %v267_v38 = vsel %vm12936_vm8, 0, %v266_v33  ;;  %6563 = vmatpush.bf16.msrb.mxu0 %v11343_v45 }
 0x266   : > { %4961 = vst [vmem:[#allocation2 + $0x20] sm:$0x1] %v4960_v11  ;;  %v4660_v43 = vshrl.u32 %v4595_v8, 16  ;;  %v4497_v12 = vadd.f32 %v13167_v46, %v4071_v34  ;;  %3358 = vmatmul.bf16.gmra.mxu2 %v11252_v17  ;;  %4466 = vmatmul.bf16.gmra.mxu0 %v13169_v61  ;;  %v4663_v35 = vshll.u32 %v4595_v8, 16  ;;  %v5188_v58 = vsel %vm11880_vm2, %v5183_v22, %v5187_v49 }
 0x267   : > { %4040 = vmatmul.bf16.gmra.mxu3 %v3908_v1  ;;  %268 = vst [vmem:[#allocation2 + $0x3c] sm:$0x1] %v267_v38  ;;  %v5192_v42 = vrot.slane %v5190_v55, 4  ;;  %v5193_v25 = vshll.u32 %v5064_v14, 16  ;;  %v5528_v24 = vunpack.c.l.b16 %v5188_v58  ;;  %v3801_v44 = vrot.slane %v3800_v5, 4 }
 0x268   : > { %v13217_v46 = vrot.slane %v4660_v43, 7  ;;  %v4532_v61 = vadd.f32 %v13040_v15, %v4497_v12  ;;  %v3805_v48 = vrot.slane %v3803_v16, 5  ;;  %v3813_v62 = vshll.u32 %v13201_v41, 16 }
 0x269   : > { %v3319_v17 = vpop.f32.mrf.mxu2  ;;  %v5195_v4 = vrot.slane %v5193_v25, 5  ;;  %v10545_v8 = vrot.slane %v13206_v27, 9  ;;  %v5558_v14 = vpack.c.b16 %v5528_v24, %v5527_v10  ;;  %v3809_v55 = vrot.slane %v3807_v30, 4 }
 0x26a   : > { %v4665_v1 = vor.u32 %v4663_v35, %v13217_v46  ;;  %v4564_v49 = vmax.f32 %v4532_v61, 0.0  ;;  %v3390_v18 = vadd.f32 %v3319_v17, %v12648_v50  ;;  %v4001_v11 = vpop.f32.mrf.mxu3  ;;  %v4666_v34 = vrot.slane %v13217_v46, 4  ;;  %v11351_v61 = vld [vmem:[#allocation3 + $0x130] sm:$0xff]  ;;  %v322_v17 = vld [vmem:[#allocation2 + $0x44] sm:$0x1] }
 0x26b   : > { %v13226_v22 = vpop.f32.mrf.mxu0  ;;  %v5196_v33 = vor.u32 %v5195_v4, %v5192_v42  ;;  %v3815_v45 = vrot.slane %v3813_v62, 5  ;;  %5650 = vmatmul.bf16.gmra.mxu1 %v5558_v14  ;;  %v3806_v10 = vsel %vm11880_vm2, %v3801_v44, %v3805_v48  ;;  %v3810_v35 = vor.u32 %v3809_v55, %v3805_v48  ;;  %v4966_v48 = vld [vmem:[#allocation2 + $0x2c] sm:$0x1] }
 0x26c   : > { %v4963_v16 = vsel %vm13076_vm12, %v4665_v1, %v4962_v51  ;;  %v4596_v5 = vpack.c.bf16 %v4564_v49, %v4564_v49  ;;  %v4072_v43 = vadd.f32 %v4001_v11, %v3390_v18  ;;  %v13230_v12 = vld [vmem:[#allocation2 + $0x1c] sm:$0xf]  ;;  %v4272_v30 = vrot.slane %v13185_v28, 5  ;;  %7245 = vmatpush.bf16.msrb.mxu1 %v11351_v61  ;;  %v10446_v61 = vld [vmem:[%s11848_s6 + $0xc0] sm:$0xf] }
 0x26d   : > { %4964 = vst [vmem:[#allocation2 + $0x24] sm:$0xf] %v4963_v16  ;;  %v5110_v50 = vld [vmem:[#allocation2 + $0x20] sm:$0x1]  ;;  %v5197_v38 = vrot.slane %v5196_v33, 4  ;;  %v5199_v27 = vshll.u32 %v13230_v12, 16  ;;  %v13245_v14 = vunpack.c.l.b16 %v3806_v10 }
 0x26e   : > { %v4668_v58 = vshrl.u32 %v4596_v5, 16  ;;  %v4671_v42 = vshll.u32 %v4596_v5, 16  ;;  %v4498_v25 = vadd.f32 %v13193_v6, %v4072_v43  ;;  %v5203_v46 = vshrl.u32 %v13230_v12, 16 }
 0x26f   : > { %v5201_v24 = vrot.slane %v5199_v27, 5  ;;  %v5209_v51 = vshll.u32 %v5110_v50, 16  ;;  %v3811_v4 = vrot.slane %v3810_v35, 4  ;;  %v323_v44 = vsel %vm12947_vm10, 0, %v322_v17  ;;  %v11253_v50 = vld [vmem:[%s11848_s6 + $0xa8] sm:$0xff] }
 0x270   : > { %v4670_v62 = vrot.slane %v4668_v58, 7  ;;  %v4533_v1 = vadd.f32 %v13040_v15, %v4498_v25  ;;  %v5205_v49 = vrot.slane %v5203_v46, 4  ;;  %324 = vst [vmem:[#allocation2 + $0x44] sm:$0x1] %v323_v44  ;;  %v13249_v28 = vsel %vm12183_vm5, %v10545_v8, %v4272_v30 }
 0x271   : > { %v3321_v6 = vpop.f32.mrf.mxu2  ;;  %v5202_v18 = vsel %vm11880_vm2, %v5197_v38, %v5201_v24  ;;  %v3816_v11 = vsel %vm11880_vm2, %v3811_v4, %v3815_v45  ;;  %v5211_v35 = vrot.slane %v5209_v51, 5  ;;  %v4274_v45 = vrot.slane %v4272_v30, 4  ;;  %v269_v51 = vld [vmem:[#allocation2 + $0x48] sm:$0x1] }
 0x272   : > { %v4673_v33 = vor.u32 %v4671_v42, %v4670_v62  ;;  %v4675_v55 = vrot.slane %v4670_v62, 4  ;;  %v4565_v16 = vmax.f32 %v4533_v1, 0.0  ;;  %v3391_v5 = vadd.f32 %v3321_v6, %v12663_v56  ;;  %v4003_v43 = vpop.f32.mrf.mxu3 }
 0x273   : > { %v13253_v27 = vpop.f32.mrf.mxu0  ;;  %v5206_v38 = vor.u32 %v5205_v49, %v5201_v24  ;;  %v5529_v58 = vunpack.c.l.b16 %v5202_v18  ;;  %v13260_v17 = vunpack.c.l.b16 %v3816_v11  ;;  %v4275_v4 = vrot.slane %v13201_v41, 5  ;;  %v4969_v11 = vld [vmem:[#allocation2 + $0x30] sm:$0xf] }
 0x274   : > { %v4674_v10 = vsel %vm13122_vm14, %v4666_v34, %v4673_v33  ;;  %v4967_v8 = vsel %vm12936_vm8, %v4675_v55, %v4966_v48  ;;  %v4597_v42 = vpack.c.bf16 %v4565_v16, %v4565_v16  ;;  %v4073_v25 = vadd.f32 %v4003_v43, %v3391_v5  ;;  %v5066_v46 = vld [vmem:[#allocation2 + $0x24] sm:$0xf]  ;;  %v15474_v43 = vld [vmem:[#allocation11_spill] sm:$0xff] }
 0x275   : > { %4965 = vst [vmem:[#allocation2 + $0x28] sm:$0xf] %v4674_v10  ;;  %v5207_v56 = vrot.slane %v5206_v38, 4  ;;  %v4317_v24 = vunpack.c.l.b16 %v13249_v28  ;;  %v270_v1 = vsel %vm12936_vm8, 0, %v269_v51  ;;  %v4276_v49 = vsel %vm12183_vm5, %v4274_v45, %v4275_v4  ;;  %v7367_v57 = vld [vmem:[#allocation2 + $0x24] sm:$0xe] }
 0x276   : > { %4968 = vst [vmem:[#allocation2 + $0x2c] sm:$0x1] %v4967_v8  ;;  %v4677_v30 = vshrl.u32 %v4597_v42, 16  ;;  %v4680_v62 = vshll.u32 %v4597_v42, 16  ;;  %v4499_v34 = vadd.f32 %v13226_v22, %v4073_v25  ;;  %3363 = vmatmul.bf16.gmra.mxu2 %v11253_v50  ;;  %4471 = vmatmul.bf16.gmra.mxu0 %v13203_v59  ;;  %v5214_v44 = vshrl.u32 %v5066_v46, 16 }
 0x277   : > { %4045 = vmatmul.bf16.gmra.mxu3 %v3909_v52  ;;  %v5212_v41 = vsel %vm11880_vm2, %v5207_v56, %v5211_v35  ;;  %271 = vst [vmem:[#allocation2 + $0x48] sm:$0x1] %v270_v1  ;;  %v5217_v48 = vshll.u32 %v5066_v46, 16  ;;  %v4318_v18 = vunpack.c.l.b16 %v4276_v49  ;;  %v3818_v36 = vshrl.u32 %v10446_v61, 16 }
 0x278   : > { %v13275_v22 = vrot.slane %v4677_v30, 7  ;;  %v4534_v59 = vadd.f32 %v13040_v15, %v4499_v34  ;;  %v5530_v6 = vunpack.c.l.b16 %v5212_v41  ;;  %v5216_v33 = vrot.slane %v5214_v44, 4  ;;  %v11302_v44 = vld [vmem:[#allocation3 + $0x28] sm:$0xff] }
 0x279   : > { %v3324_v28 = vpop.f32.mrf.mxu2  ;;  %v5219_v9 = vrot.slane %v5217_v48, 5  ;;  %v3821_v52 = vshll.u32 %v10446_v61, 16  ;;  %v13280_v55 = vadd.f32 %v12719_v31, %v12734_v7  ;;  %v3820_v42 = vrot.slane %v3818_v36, 4  ;;  %v13292_v7 = vld [vmem:[%s11848_s6 + $0xc4] sm:$0xf]  ;;  %5872 = vmatpush.bf16.msrb.mxu2 %v11302_v44 }
 0x27a   : > { %v4682_v16 = vor.u32 %v4680_v62, %v13275_v22  ;;  %v4566_v5 = vmax.f32 %v4534_v59, 0.0  ;;  %v3392_v50 = vadd.f32 %v3324_v28, %v15474_v43  ;;  %v4006_v38 = vpop.f32.mrf.mxu3  ;;  %v4683_v35 = vrot.slane %v13275_v22, 4  ;;  %v11318_v59 = vld [vmem:[#allocation3 + $0xa8] sm:$0xff] }
 0x27b   : > { %v5559_v45 = vpack.c.b16 %v5530_v6, %v5529_v58  ;;  %v13285_v10 = vpop.f32.mrf.mxu0  ;;  %v5220_v8 = vor.u32 %v5219_v9, %v5216_v33  ;;  %v3823_v56 = vrot.slane %v3821_v52, 5  ;;  %v3910_v4 = vpack.c.b16 %v13260_v17, %v13245_v14  ;;  %v325_v6 = vld [vmem:[#allocation2 + $0x50] sm:$0x1]  ;;  %v11342_v33 = vld [vmem:[#allocation3 + $0xe8] sm:$0xff]  ;;  %6250 = vmatpush.bf16.msrb.mxu3 %v11318_v59 }
 0x27c   : > { %v4970_v25 = vsel %vm13076_vm12, %v4682_v16, %v4969_v11  ;;  %v4598_v46 = vpack.c.bf16 %v4566_v5, %v4566_v5  ;;  %v4074_v61 = vadd.f32 %v4006_v38, %v3392_v50  ;;  %v13289_v31 = vld [vmem:[#allocation2 + $0x28] sm:$0xf]  ;;  %v4336_v58 = vpack.c.b16 %v4318_v18, %v4317_v24  ;;  %v4973_v24 = vld [vmem:[#allocation2 + $0x38] sm:$0x1]  ;;  %6564 = vmatpush.bf16.msrb.mxu0 %v11342_v33 }
 0x27d   : > { %4971 = vst [vmem:[#allocation2 + $0x30] sm:$0xf] %v4970_v25  ;;  %5655 = vmatmul.bf16.gmra.mxu1 %v5559_v45  ;;  %v13296_v51 = vld [vmem:[#allocation2 + $0x2c] sm:$0x1]  ;;  %v5221_v30 = vrot.slane %v5220_v8, 4  ;;  %v5223_v62 = vshll.u32 %v13289_v31, 16  ;;  %v3824_v11 = vor.u32 %v3823_v56, %v3820_v42 }
 0x27e   : > { %v4685_v34 = vshrl.u32 %v4598_v46, 16  ;;  %v4688_v1 = vshll.u32 %v4598_v46, 16  ;;  %v4500_v41 = vadd.f32 %v13253_v27, %v4074_v61  ;;  %v5227_v49 = vshrl.u32 %v13289_v31, 16  ;;  %v11254_v42 = vld [vmem:[%s11848_s6 + $0xb4] sm:$0xff]  ;;  %v10448_v25 = vld [vmem:[%s11848_s6 + $0xc8] sm:$0x1] }
 0x27f   : > { %v5225_v48 = vrot.slane %v5223_v62, 5  ;;  %v5233_v22 = vshll.u32 %v13296_v51, 16  ;;  %v3827_v14 = vshll.u32 %v13292_v7, 16  ;;  %v326_v27 = vsel %vm12947_vm10, 0, %v325_v6 }
 0x280   : > { %v4687_v17 = vrot.slane %v4685_v34, 7  ;;  %v4535_v18 = vadd.f32 %v13040_v15, %v4500_v41  ;;  %v5229_v28 = vrot.slane %v5227_v49, 4  ;;  %327 = vst [vmem:[#allocation2 + $0x50] sm:$0x1] %v326_v27  ;;  %v3825_v16 = vrot.slane %v3824_v11, 4 }
 0x281   : > { %v3326_v9 = vpop.f32.mrf.mxu2  ;;  %v5226_v36 = vsel %vm11880_vm2, %v5221_v30, %v5225_v48  ;;  %v5235_v52 = vrot.slane %v5233_v22, 5  ;;  %v3829_v5 = vrot.slane %v3827_v14, 5  ;;  %v3831_v62 = vshrl.u32 %v13292_v7, 16  ;;  %v10514_v34 = vld [vmem:[%s11848_s6 + $0xc0] sm:$0xe] }
 0x282   : > { %v4690_v43 = vor.u32 %v4688_v1, %v4687_v17  ;;  %v4692_v50 = vrot.slane %v4687_v17, 4  ;;  %v4567_v38 = vmax.f32 %v4535_v18, 0.0  ;;  %v3393_v45 = vadd.f32 %v3326_v9, %v13154_v32  ;;  %v4008_v8 = vpop.f32.mrf.mxu3  ;;  %v272_v27 = vld [vmem:[#allocation2 + $0x54] sm:$0x1]  ;;  %v4976_v9 = vld [vmem:[#allocation2 + $0x3c] sm:$0xf] }
 0x283   : > { %v13311_v46 = vpop.f32.mrf.mxu0  ;;  %v5230_v61 = vor.u32 %v5229_v28, %v5225_v48  ;;  %v5531_v56 = vunpack.c.l.b16 %v5226_v36  ;;  %v3830_v30 = vsel %vm11880_vm2, %v3825_v16, %v3829_v5  ;;  %v3833_v22 = vrot.slane %v3831_v62, 4 }
 0x284   : > { %v4691_v1 = vsel %vm13122_vm14, %v4683_v35, %v4690_v43  ;;  %v4974_v32 = vsel %vm12936_vm8, %v4692_v50, %v4973_v24  ;;  %v4599_v41 = vpack.c.bf16 %v4567_v38, %v4567_v38  ;;  %v4075_v49 = vadd.f32 %v4008_v8, %v3393_v45  ;;  %v11317_v38 = vld [vmem:[#allocation3 + $0xa0] sm:$0xff] }
 0x285   : > { %4972 = vst [vmem:[#allocation2 + $0x34] sm:$0xf] %v4691_v1  ;;  %v5231_v44 = vrot.slane %v5230_v61, 4  ;;  %v3837_v59 = vshll.u32 %v10448_v25, 16  ;;  %v13321_v48 = vunpack.c.l.b16 %v3830_v30  ;;  %v10546_v17 = vrot.slane %v10514_v34, 9  ;;  %6251 = vmatpush.bf16.msrb.mxu3 %v11317_v38 }
 0x286   : > { %4975 = vst [vmem:[#allocation2 + $0x38] sm:$0x1] %v4974_v32  ;;  %v4694_v6 = vshrl.u32 %v4599_v41, 16  ;;  %v4697_v11 = vshll.u32 %v4599_v41, 16  ;;  %v4501_v14 = vadd.f32 %v13285_v10, %v4075_v49  ;;  %3368 = vmatmul.bf16.gmra.mxu2 %v11254_v42  ;;  %4476 = vmatmul.bf16.gmra.mxu0 %v4336_v58  ;;  %v3834_v24 = vor.u32 %v3833_v22, %v3829_v5  ;;  %v11301_v5 = vld [vmem:[#allocation3 + $0x20] sm:$0xff] }
 0x287   : > { %4050 = vmatmul.bf16.gmra.mxu3 %v3910_v4  ;;  %v5236_v35 = vsel %vm11880_vm2, %v5231_v44, %v5235_v52  ;;  %v3839_v18 = vrot.slane %v3837_v59, 5  ;;  %v4279_v28 = vrot.slane %v13292_v7, 5  ;;  %v4282_v43 = vrot.slane %v10448_v25, 5  ;;  %v11341_v7 = vld [vmem:[#allocation3 + $0xe0] sm:$0xff]  ;;  %v5068_v30 = vld [vmem:[#allocation2 + $0x30] sm:$0xf]  ;;  %5873 = vmatpush.bf16.msrb.mxu2 %v11301_v5 }
 0x288   : > { %v13327_v33 = vrot.slane %v4694_v6, 7  ;;  %v4536_v36 = vadd.f32 %v13040_v15, %v4501_v14  ;;  %v5532_v16 = vunpack.c.l.b16 %v5236_v35  ;;  %v3835_v50 = vrot.slane %v3834_v24, 4  ;;  %6565 = vmatpush.bf16.msrb.mxu0 %v11341_v7  ;;  %v11255_v7 = vld [vmem:[%s11848_s6 + $0xc0] sm:$0xff] }
 0x289   : > { %v3329_v10 = vpop.f32.mrf.mxu2  ;;  %v4280_v4 = vsel %vm12183_vm5, %v10546_v17, %v4279_v28  ;;  %v4281_v58 = vrot.slane %v4279_v28, 4  ;;  %v273_v52 = vsel %vm12936_vm8, 0, %v272_v27  ;;  %v13354_v6 = vadd.f32 %v12751_v23, %v12765_v37 }
 0x28a   : > { %v4699_v45 = vor.u32 %v4697_v11, %v13327_v33  ;;  %v4700_v8 = vrot.slane %v13327_v33, 4  ;;  %v4568_v42 = vmax.f32 %v4536_v36, 0.0  ;;  %v3394_v61 = vadd.f32 %v3329_v10, %v12725_v63  ;;  %v4011_v25 = vpop.f32.mrf.mxu3  ;;  %274 = vst [vmem:[#allocation2 + $0x54] sm:$0x1] %v273_v52  ;;  %v328_v36 = vld [vmem:[#allocation2 + $0x5c] sm:$0x1] }
 0x28b   : > { %v5560_v62 = vpack.c.b16 %v5532_v16, %v5531_v56  ;;  %v13337_v34 = vpop.f32.mrf.mxu0  ;;  %v3840_v1 = vsel %vm11880_vm2, %v3835_v50, %v3839_v18  ;;  %v4283_v32 = vsel %vm12183_vm5, %v4281_v58, %v4282_v43  ;;  %v4319_v41 = vunpack.c.l.b16 %v4280_v4  ;;  %v13350_v56 = vld [vmem:[%s11848_s6 + $0xcc] sm:$0xf]  ;;  %v11300_v16 = vld [vmem:[#allocation3 + $0x18] sm:$0xff] }
 0x28c   : > { %v4977_v49 = vsel %vm13076_vm12, %v4699_v45, %v4976_v9  ;;  %v4600_v63 = vpack.c.bf16 %v4568_v42, %v4568_v42  ;;  %v4076_v44 = vadd.f32 %v4011_v25, %v3394_v61  ;;  %v13345_v22 = vunpack.c.l.b16 %v3840_v1  ;;  %v13347_v59 = vld [vmem:[#allocation2 + $0x34] sm:$0xf]  ;;  %v11350_v9 = vld [vmem:[#allocation3 + $0x128] sm:$0xff]  ;;  %5874 = vmatpush.bf16.msrb.mxu2 %v11300_v16  ;;  %v11299_v16 = vld [vmem:[#allocation3 + $0x10] sm:$0xff] }
 0x28d   : > { %4978 = vst [vmem:[#allocation2 + $0x3c] sm:$0xf] %v4977_v49  ;;  %5660 = vmatmul.bf16.gmra.mxu1 %v5560_v62  ;;  %v4320_v11 = vunpack.c.l.b16 %v4283_v32  ;;  %v5112_v14 = vld [vmem:[#allocation2 + $0x38] sm:$0x1]  ;;  %v5238_v17 = vshrl.u32 %v5068_v30, 16  ;;  %v5241_v35 = vshll.u32 %v5068_v30, 16 }
 0x28e   : > { %v4702_v24 = vshrl.u32 %v4600_v63, 16  ;;  %v4705_v18 = vshll.u32 %v4600_v63, 16  ;;  %v4502_v28 = vadd.f32 %v13311_v46, %v4076_v44  ;;  %v3911_v27 = vpack.c.b16 %v13345_v22, %v13321_v48  ;;  %v11316_v50 = vld [vmem:[#allocation3 + $0x98] sm:$0xff]  ;;  %7246 = vmatpush.bf16.msrb.mxu1 %v11350_v9  ;;  %v4980_v48 = vld [vmem:[#allocation2 + $0x44] sm:$0x1] }
 0x28f   : > { %v4337_v43 = vpack.c.b16 %v4320_v11, %v4319_v41  ;;  %v5240_v23 = vrot.slane %v5238_v17, 4  ;;  %v5243_v37 = vrot.slane %v5241_v35, 5  ;;  %v5247_v10 = vshll.u32 %v13347_v59, 16  ;;  %v11340_v4 = vld [vmem:[#allocation3 + $0xd8] sm:$0xff]  ;;  %6252 = vmatpush.bf16.msrb.mxu3 %v11316_v50 }
 0x290   : > { %v4704_v58 = vrot.slane %v4702_v24, 7  ;;  %v4537_v52 = vadd.f32 %v13040_v15, %v4502_v28  ;;  %v5251_v5 = vshrl.u32 %v13347_v59, 16  ;;  %v5257_v46 = vshll.u32 %v5112_v14, 16  ;;  %6566 = vmatpush.bf16.msrb.mxu0 %v11340_v4  ;;  %v13368_v41 = vld [vmem:[%s11848_s6 + $0xd0] sm:$0xf]  ;;  %5875 = vmatpush.bf16.msrb.mxu2 %v11299_v16 }
 0x291   : > { %v3331_v38 = vpop.f32.mrf.mxu2  ;;  %v5244_v45 = vor.u32 %v5243_v37, %v5240_v23  ;;  %v5249_v42 = vrot.slane %v5247_v10, 5  ;;  %v329_v61 = vsel %vm12947_vm10, 0, %v328_v36  ;;  %v3842_v25 = vshrl.u32 %v13350_v56, 16  ;;  %v13379_v24 = vld [vmem:[%s11848_s6 + $0xd4] sm:$0x1]  ;;  %v11315_v23 = vld [vmem:[#allocation3 + $0x90] sm:$0xff] }
 0x292   : > { %v4707_v30 = vor.u32 %v4705_v18, %v4704_v58  ;;  %v4709_v15 = vrot.slane %v4704_v58, 4  ;;  %v4569_v62 = vmax.f32 %v4537_v52, 0.0  ;;  %v3395_v1 = vadd.f32 %v3331_v38, %v13280_v55  ;;  %v4013_v32 = vpop.f32.mrf.mxu3  ;;  %330 = vst [vmem:[#allocation2 + $0x5c] sm:$0x1] %v329_v61  ;;  %v10515_v18 = vld [vmem:[%s11848_s6 + $0xcc] sm:$0xe] }
 0x293   : > { %v13370_v49 = vpop.f32.mrf.mxu0  ;;  %v5245_v63 = vrot.slane %v5244_v45, 4  ;;  %v5253_v44 = vrot.slane %v5251_v5, 4  ;;  %v5259_v22 = vrot.slane %v5257_v46, 5  ;;  %v3844_v11 = vrot.slane %v3842_v25, 4  ;;  %6253 = vmatpush.bf16.msrb.mxu3 %v11315_v23 }
 0x294   : > { %v4708_v14 = vsel %vm13122_vm14, %v4700_v8, %v4707_v30  ;;  %v4981_v17 = vsel %vm12936_vm8, %v4709_v15, %v4980_v48  ;;  %v4601_v35 = vpack.c.bf16 %v4569_v62, %v4569_v62  ;;  %v4077_v55 = vadd.f32 %v4013_v32, %v3395_v1  ;;  %v13393_v48 = vld [vmem:[%s15428_s2] ss:$0 sm:$0xff] }
 0x295   : > { %4979 = vst [vmem:[#allocation2 + $0x40] sm:$0xf] %v4708_v14  ;;  %v5250_v28 = vsel %vm11880_vm2, %v5245_v63, %v5249_v42  ;;  %v5254_v9 = vor.u32 %v5253_v44, %v5249_v42  ;;  %v3845_v36 = vshll.u32 %v13350_v56, 16  ;;  %v3851_v33 = vshll.u32 %v13368_v41, 16  ;;  %v11339_v56 = vld [vmem:[#allocation3 + $0xd0] sm:$0xff]  ;;  %v11298_v30 = vld [vmem:[#allocation3 + $0x8] sm:$0xff] }
 0x296   : > { %4982 = vst [vmem:[#allocation2 + $0x44] sm:$0x1] %v4981_v17  ;;  %v4711_v8 = vshrl.u32 %v4601_v35, 16  ;;  %v4714_v37 = vshll.u32 %v4601_v35, 16  ;;  %v4503_v10 = vadd.f32 %v13337_v34, %v4077_v55  ;;  %3373 = vmatmul.bf16.gmra.mxu2 %v11255_v7  ;;  %4481 = vmatmul.bf16.gmra.mxu0 %v4337_v43  ;;  %v5533_v50 = vunpack.c.l.b16 %v5250_v28  ;;  %v11314_v15 = vld [vmem:[#allocation3 + $0x88] sm:$0xff] }
 0x297   : > { %4055 = vmatmul.bf16.gmra.mxu3 %v3911_v27  ;;  %v5255_v4 = vrot.slane %v5254_v9, 4  ;;  %v3847_v58 = vrot.slane %v3845_v36, 5  ;;  %v3853_v52 = vrot.slane %v3851_v33, 5  ;;  %v3855_v5 = vshrl.u32 %v13368_v41, 16  ;;  %v4983_v27 = vld [vmem:[#allocation2 + $0x48] sm:$0xf]  ;;  %6567 = vmatpush.bf16.msrb.mxu0 %v11339_v56 }
 0x298   : > { %v13388_v46 = vrot.slane %v4711_v8, 7  ;;  %v4538_v34 = vadd.f32 %v13393_v48, %v4503_v10  ;;  %v3861_v43 = vshll.u32 %v13379_v24, 16  ;;  %v10547_v38 = vrot.slane %v10515_v18, 9  ;;  %v11338_v14 = vld [vmem:[#allocation3 + $0xc8] sm:$0xff]  ;;  %5876 = vmatpush.bf16.msrb.mxu2 %v11298_v30  ;;  %6254 = vmatpush.bf16.msrb.mxu3 %v11314_v15  ;;  %v5070_v8 = vld [vmem:[#allocation2 + $0x3c] sm:$0xf] }
 0x299   : > { %v3334_v7 = vpop.f32.mrf.mxu2  ;;  %v5260_v45 = vsel %vm11880_vm2, %v5255_v4, %v5259_v22  ;;  %v3848_v42 = vor.u32 %v3847_v58, %v3844_v11  ;;  %v3857_v61 = vrot.slane %v3855_v5, 4  ;;  %v4286_v25 = vrot.slane %v13368_v41, 5  ;;  %v275_v36 = vld [vmem:[#allocation2 + $0x60] sm:$0x1]  ;;  %v11297_v56 = vld [vmem:[#allocation3] sm:$0xff] }
 0x29a   : > { %v4716_v62 = vor.u32 %v4714_v37, %v13388_v46  ;;  %v4717_v1 = vrot.slane %v13388_v46, 4  ;;  %v4570_v32 = vmax.f32 %v4538_v34, 0.0  ;;  %v3396_v63 = vadd.f32 %v3334_v7, %v12758_v54  ;;  %v4016_v44 = vpop.f32.mrf.mxu3  ;;  %v11313_v34 = vld [vmem:[#allocation3 + $0x80] sm:$0xff] }
 0x29b   : > { %v5534_v17 = vunpack.c.l.b16 %v5260_v45  ;;  %v13403_v35 = vpop.f32.mrf.mxu0  ;;  %v3849_v22 = vrot.slane %v3848_v42, 4  ;;  %v3858_v11 = vor.u32 %v3857_v61, %v3853_v52  ;;  %v3863_v55 = vrot.slane %v3861_v43, 5  ;;  %6568 = vmatpush.bf16.msrb.mxu0 %v11338_v14  ;;  %v4987_v61 = vld [vmem:[#allocation2 + $0x50] sm:$0x1] }
 0x29c   : > { %v4984_v41 = vsel %vm13076_vm12, %v4716_v62, %v4983_v27  ;;  %v4602_v18 = vpack.c.bf16 %v4570_v32, %v4570_v32  ;;  %v4078_v28 = vadd.f32 %v4016_v44, %v3396_v63  ;;  %v4287_v9 = vsel %vm12183_vm5, %v10547_v38, %v4286_v25  ;;  %v13412_v5 = vld [vmem:[#allocation2 + $0x40] sm:$0xf]  ;;  %v11337_v27 = vld [vmem:[#allocation3 + $0xc0] sm:$0xff]  ;;  %5877 = vmatpush.bf16.msrb.mxu2 %v11297_v56 }
 0x29d   : > { %4985 = vst [vmem:[#allocation2 + $0x48] sm:$0xf] %v4984_v41  ;;  %v5561_v54 = vpack.c.b16 %v5534_v17, %v5533_v50  ;;  %v3854_v33 = vsel %vm11880_vm2, %v3849_v22, %v3853_v52  ;;  %v3859_v16 = vrot.slane %v3858_v11, 4  ;;  %v4288_v23 = vrot.slane %v4286_v25, 4  ;;  %6255 = vmatpush.bf16.msrb.mxu3 %v11313_v34  ;;  %v11256_v22 = vld [vmem:[%s11848_s6 + $0xcc] sm:$0xff] }
 0x29e   : > { %v4719_v37 = vshrl.u32 %v4602_v18, 16  ;;  %v4722_v10 = vshll.u32 %v4602_v18, 16  ;;  %v4504_v4 = vadd.f32 %v13370_v49, %v4078_v28  ;;  %v3895_v58 = vunpack.c.l.b16 %v3854_v33  ;;  %v13428_v18 = vld [vmem:[#allocation2 + $0x44] sm:$0x1] }
 0x29f   : > { %5665 = vmatmul.bf16.gmra.mxu1 %v5561_v54  ;;  %v3864_v50 = vsel %vm11880_vm2, %v3859_v16, %v3863_v55  ;;  %v4289_v43 = vrot.slane %v13379_v24, 5  ;;  %v4321_v52 = vunpack.c.l.b16 %v4287_v9  ;;  %v276_v38 = vsel %vm12936_vm8, 0, %v275_v36  ;;  %6569 = vmatpush.bf16.msrb.mxu0 %v11337_v27  ;;  %v331_v16 = vld [vmem:[#allocation2 + $0x68] sm:$0x1] }
 0x2a0   : > { %v4721_v7 = vrot.slane %v4719_v37, 7  ;;  %v4539_v45 = vadd.f32 %v13393_v48, %v4504_v4  ;;  %v3896_v49 = vunpack.c.l.b16 %v3864_v50  ;;  %277 = vst [vmem:[#allocation2 + $0x60] sm:$0x1] %v276_v38  ;;  %v5262_v42 = vshrl.u32 %v5070_v8, 16 }
 0x2a1   : > { %v3336_v25 = vpop.f32.mrf.mxu2  ;;  %v4290_v30 = vsel %vm12183_vm5, %v4288_v23, %v4289_v43  ;;  %v5265_v24 = vshll.u32 %v5070_v8, 16  ;;  %v5271_v15 = vshll.u32 %v13412_v5, 16  ;;  %v5275_v62 = vshrl.u32 %v13412_v5, 16  ;;  %v5959_v23 = vld [vmem:[#allocation2] sm:$0xe] }
 0x2a2   : > { %v4724_v32 = vor.u32 %v4722_v10, %v4721_v7  ;;  %v4726_v63 = vrot.slane %v4721_v7, 4  ;;  %v4571_v44 = vmax.f32 %v4539_v45, 0.0  ;;  %v3397_v14 = vadd.f32 %v3336_v25, %v13354_v6  ;;  %v4018_v17 = vpop.f32.mrf.mxu3  ;;  %v11634_v7 = vld [vmem:[#allocation2 + $0x4] sm:$0xf]  ;;  %v4990_v45 = vld [vmem:[#allocation2 + $0x54] sm:$0xf] }
 0x2a3   : > { %v13426_v11 = vpop.f32.mrf.mxu0  ;;  %v3912_v55 = vpack.c.b16 %v3896_v49, %v3895_v58  ;;  %v4322_v41 = vunpack.c.l.b16 %v4290_v30  ;;  %v5264_v28 = vrot.slane %v5262_v42, 4  ;;  %v5267_v9 = vrot.slane %v5265_v24, 5  ;;  %v11635_v30 = vld [vmem:[#allocation2 + $0x8] sm:$0x1]  ;;  %8667 = vmatpush.bf16.msra.mxu0 %v11392_v21 }
 0x2a4   : > { %v4725_v36 = vsel %vm13122_vm14, %v4717_v1, %v4724_v32  ;;  %v4988_v54 = vsel %vm12936_vm8, %v4726_v63, %v4987_v61  ;;  %v4603_v33 = vpack.c.bf16 %v4571_v44, %v4571_v44  ;;  %v4079_v6 = vadd.f32 %v4018_v17, %v3397_v14  ;;  %v5072_v38 = vld [vmem:[#allocation2 + $0x48] sm:$0xf]  ;;  %v278_v44 = vld [vmem:[#allocation2 + $0x6c] sm:$0x1] }
 0x2a5   : > { %4986 = vst [vmem:[#allocation2 + $0x4c] sm:$0xf] %v4725_v36  ;;  %v4338_v8 = vpack.c.b16 %v4322_v41, %v4321_v52  ;;  %v5268_v37 = vor.u32 %v5267_v9, %v5264_v28  ;;  %v5273_v10 = vrot.slane %v5271_v15, 5  ;;  %v5277_v4 = vrot.slane %v5275_v62, 4 }
 0x2a6   : > { %v13438_v58 = vadd.f32 %v12778_v2, %v12786_v20  ;;  %4989 = vst [vmem:[#allocation2 + $0x50] sm:$0x1] %v4988_v54  ;;  %v4728_v46 = vshrl.u32 %v4603_v33, 16  ;;  %v4505_v1 = vadd.f32 %v13403_v35, %v4079_v6  ;;  %3378 = vmatmul.bf16.gmra.mxu2 %v11256_v22  ;;  %v5281_v56 = vshll.u32 %v13428_v18, 16 }
 0x2a7   : > { %4060 = vmatmul.bf16.gmra.mxu3 %v3912_v55  ;;  %4486 = vmatmul.bf16.gmra.mxu0 %v4338_v8  ;;  %v5269_v34 = vrot.slane %v5268_v37, 4  ;;  %v5278_v50 = vor.u32 %v5277_v4, %v5273_v10  ;;  %v332_v43 = vsel %vm12947_vm10, 0, %v331_v16  ;;  %v10708_v52 = vrot.slane %v5959_v23, 9 }
 0x2a8   : > { %v13444_v27 = vrot.slane %v4728_v46, 7  ;;  %v4731_v2 = vshll.u32 %v4603_v33, 16  ;;  %v4540_v20 = vadd.f32 %v13393_v48, %v4505_v1  ;;  %333 = vst [vmem:[#allocation2 + $0x68] sm:$0x1] %v332_v43  ;;  %v6026_v35 = vrot.slane %v11634_v7, 5 }
 0x2a9   : > { %v3339_v49 = vpop.f32.mrf.mxu2  ;;  %v5274_v42 = vsel %vm11880_vm2, %v5269_v34, %v5273_v10  ;;  %v5279_v61 = vrot.slane %v5278_v50, 4  ;;  %v5283_v25 = vrot.slane %v5281_v56, 5  ;;  %v6029_v24 = vrot.slane %v11635_v30, 5  ;;  %v11349_v56 = vld [vmem:[#allocation3 + $0x120] sm:$0xff] }
 0x2aa   : > { %v4733_v15 = vor.u32 %v4731_v2, %v13444_v27  ;;  %v4572_v62 = vmax.f32 %v4540_v20, 0.0  ;;  %v3398_v32 = vadd.f32 %v3339_v49, %v12781_v19  ;;  %v4021_v63 = vpop.f32.mrf.mxu3  ;;  %v5286_v14 = vshrl.u32 %v5072_v38, 16  ;;  %7247 = vmatpush.bf16.msrb.mxu1 %v11349_v56 }
 0x2ab   : > { %v5284_v17 = vsel %vm11880_vm2, %v5279_v61, %v5283_v25  ;;  %v5535_v22 = vunpack.c.l.b16 %v5274_v42  ;;  %v4449_v55 = vpop.f32.mrf.mxu0  ;;  %v6027_v41 = vsel %vm12183_vm5, %v10708_v52, %v6026_v35  ;;  %v6028_v28 = vrot.slane %v6026_v35, 4  ;;  %v334_v35 = vld [vmem:[#allocation2 + $0x74] sm:$0x1]  ;;  %v11636_v25 = vld [vmem:[#allocation2 + $0x10] sm:$0xf] }
 0x2ac   : > { %v4991_v9 = vsel %vm13076_vm12, %v4733_v15, %v4990_v45  ;;  %v4604_v36 = vpack.c.bf16 %v4572_v62, %v4572_v62  ;;  %v4080_v54 = vadd.f32 %v4021_v63, %v3398_v32  ;;  %v5536_v33 = vunpack.c.l.b16 %v5284_v17  ;;  %v13457_v6 = vld [vmem:[#allocation2 + $0x4c] sm:$0xf]  ;;  %v4994_v45 = vld [vmem:[#allocation2 + $0x5c] sm:$0x1]  ;;  %v11281_v63 = vld [vmem:[#allocation2] sm:$0xff] }
 0x2ad   : > { %v4734_v19 = vrot.slane %v13444_v27, 4  ;;  %4992 = vst [vmem:[#allocation2 + $0x54] sm:$0xf] %v4991_v9  ;;  %v6030_v16 = vsel %vm12183_vm5, %v6028_v28, %v6029_v24  ;;  %v6136_v23 = vunpack.c.l.b16 %v6027_v41  ;;  %v279_v8 = vsel %vm12936_vm8, 0, %v278_v44  ;;  %v13464_v37 = vld [vmem:[#allocation2 + $0x50] sm:$0x1] }
 0x2ae   : > { %v4736_v10 = vshrl.u32 %v4604_v36, 16  ;;  %v4506_v4 = vadd.f32 %v13426_v11, %v4080_v54  ;;  %v5562_v46 = vpack.c.b16 %v5536_v33, %v5535_v22  ;;  %280 = vst [vmem:[#allocation2 + $0x6c] sm:$0x1] %v279_v8  ;;  %v5288_v1 = vrot.slane %v5286_v14, 4 }
 0x2af   : > { %v6137_v34 = vunpack.c.l.b16 %v6030_v16  ;;  %v5289_v50 = vshll.u32 %v5072_v38, 16  ;;  %v5295_v43 = vshll.u32 %v13457_v6, 16  ;;  %v5299_v52 = vshrl.u32 %v13457_v6, 16 }
 0x2b0   : > { %v4738_v27 = vrot.slane %v4736_v10, 7  ;;  %v4739_v2 = vshll.u32 %v4604_v36, 16  ;;  %v4541_v20 = vadd.f32 %v13393_v48, %v4506_v4  ;;  %5670 = vmatmul.bf16.gmra.mxu1 %v5562_v46  ;;  %v5305_v7 = vshll.u32 %v13464_v37, 16 }
 0x2b1   : > { %v3341_v11 = vpop.f32.mrf.mxu2  ;;  %v5291_v49 = vrot.slane %v5289_v50, 5  ;;  %v5297_v42 = vrot.slane %v5295_v43, 5  ;;  %v5301_v61 = vrot.slane %v5299_v52, 4  ;;  %v6033_v38 = vrot.slane %v11636_v25, 5  ;;  %v5960_v52 = vld [vmem:[#allocation2 + $0xc] sm:$0xe] }
 0x2b2   : > { %v4741_v30 = vor.u32 %v4739_v2, %v4738_v27  ;;  %v4743_v24 = vrot.slane %v4738_v27, 4  ;;  %v4573_v15 = vmax.f32 %v4541_v20, 0.0  ;;  %v3399_v62 = vadd.f32 %v3341_v11, %v13438_v58  ;;  %v4023_v32 = vpop.f32.mrf.mxu3  ;;  %v11321_v58 = vld [vmem:[#allocation2 + $0xc] sm:$0xff]  ;;  %v4997_v27 = vld [vmem:[#allocation2 + $0x60] sm:$0xf] }
 0x2b3   : > { %v4452_v44 = vpop.f32.mrf.mxu0  ;;  %v6168_v14 = vpack.c.b16 %v6137_v34, %v6136_v23  ;;  %v5292_v17 = vor.u32 %v5291_v49, %v5288_v1  ;;  %v5302_v22 = vor.u32 %v5301_v61, %v5297_v42  ;;  %v335_v41 = vsel %vm12947_vm10, 0, %v334_v35  ;;  %v281_v1 = vld [vmem:[#allocation2 + $0x78] sm:$0x1]  ;;  %v11637_v2 = vld [vmem:[#allocation2 + $0x14] sm:$0x1] }
 0x2b4   : > { %v4742_v28 = vsel %vm13122_vm14, %v4734_v19, %v4741_v30  ;;  %v4995_v9 = vsel %vm12936_vm8, %v4743_v24, %v4994_v45  ;;  %v4605_v36 = vpack.c.bf16 %v4573_v15, %v4573_v15  ;;  %v4081_v54 = vadd.f32 %v4023_v32, %v3399_v62  ;;  %336 = vst [vmem:[#allocation2 + $0x74] sm:$0x1] %v335_v41  ;;  %v5074_v41 = vld [vmem:[#allocation2 + $0x54] sm:$0xf] }
 0x2b5   : > { %4993 = vst [vmem:[#allocation2 + $0x58] sm:$0xf] %v4742_v28  ;;  %v5293_v33 = vrot.slane %v5292_v17, 4  ;;  %v5303_v16 = vrot.slane %v5302_v22, 4  ;;  %v5307_v8 = vrot.slane %v5305_v7, 5  ;;  %v6035_v46 = vrot.slane %v6033_v38, 4 }
 0x2b6   : > { %4996 = vst [vmem:[#allocation2 + $0x5c] sm:$0x1] %v4995_v9  ;;  %v4745_v23 = vshrl.u32 %v4605_v36, 16  ;;  %v4507_v10 = vadd.f32 %v4449_v55, %v4081_v54  ;;  %5878 = vmatmul.bf16.vlgmr.msrb.gmra.mxu2 %v11281_v63  ;;  %v4748_v34 = vshll.u32 %v4605_v36, 16  ;;  %v6036_v20 = vrot.slane %v11637_v2, 5 }
 0x2b7   : > { %6256 = vmatmul.bf16.vlgmr.msrb.gmra.mxu3 %v6168_v14  ;;  %6570 = vmatmul.bf16.vlgmr.msrb.gmra.mxu0 %v11321_v58  ;;  %v5298_v19 = vsel %vm11880_vm2, %v5293_v33, %v5297_v42  ;;  %v5308_v4 = vsel %vm11880_vm2, %v5303_v16, %v5307_v8  ;;  %v282_v7 = vsel %vm12936_vm8, 0, %v281_v1  ;;  %v10709_v30 = vrot.slane %v5960_v52, 9 }
 0x2b8   : > { %v13482_v56 = vrot.slane %v4745_v23, 7  ;;  %v4542_v50 = vadd.f32 %v13393_v48, %v4507_v10  ;;  %v5538_v43 = vunpack.c.l.b16 %v5308_v4  ;;  %v5537_v42 = vunpack.c.l.b16 %v5298_v19  ;;  %283 = vst [vmem:[#allocation2 + $0x78] sm:$0x1] %v282_v7 }
 0x2b9   : > { %v3344_v55 = vpop.f32.mrf.mxu2  ;;  %v6037_v24 = vsel %vm12183_vm5, %v6035_v46, %v6036_v20  ;;  %v6040_v15 = vrot.slane %v13230_v12, 5  ;;  %v6034_v22 = vsel %vm12183_vm5, %v10709_v30, %v6033_v38  ;;  %v5310_v33 = vshrl.u32 %v5074_v41, 16 }
 0x2ba   : > { %v4750_v35 = vor.u32 %v4748_v34, %v13482_v56  ;;  %v4574_v45 = vmax.f32 %v4542_v50, 0.0  ;;  %v3400_v11 = vadd.f32 %v3344_v55, %v12801_v13  ;;  %v4026_v49 = vpop.f32.mrf.mxu3  ;;  %v4751_v61 = vrot.slane %v13482_v56, 4  ;;  %v15475_v13 = vld [vmem:[#allocation12_spill] sm:$0xff] }
 0x2bb   : > { %v4454_v25 = vpop.f32.mrf.mxu0  ;;  %v5563_v14 = vpack.c.b16 %v5538_v43, %v5537_v42  ;;  %v3086_v17 = vadd.f32 %v15475_v13, %v12807_v53  ;;  %v6139_v54 = vunpack.c.l.b16 %v6037_v24  ;;  %v5313_v8 = vshll.u32 %v5074_v41, 16  ;;  %v337_v53 = vld [vmem:[#allocation2 + $0x80] sm:$0x1]  ;;  %v11322_v13 = vld [vmem:[#allocation2 + $0x18] sm:$0xff] }
 0x2bc   : > { %v4998_v62 = vsel %vm13076_vm12, %v4750_v35, %v4997_v27  ;;  %v4606_v32 = vpack.c.bf16 %v4574_v45, %v4574_v45  ;;  %v4082_v63 = vadd.f32 %v4026_v49, %v3400_v11  ;;  %v13499_v28 = vld [vmem:[#allocation2 + $0x58] sm:$0xf]  ;;  %v5312_v38 = vrot.slane %v5310_v33, 4 }
 0x2bd   : > { %4999 = vst [vmem:[#allocation2 + $0x60] sm:$0xf] %v4998_v62  ;;  %v13501_v58 = vld [vmem:[#allocation2 + $0x5c] sm:$0x1]  ;;  %v5319_v23 = vshll.u32 %v13499_v28, 16  ;;  %v5323_v10 = vshrl.u32 %v13499_v28, 16  ;;  %v6138_v35 = vunpack.c.l.b16 %v6034_v22 }
 0x2be   : > { %v4753_v9 = vshrl.u32 %v4606_v32, 16  ;;  %v4508_v36 = vadd.f32 %v4452_v44, %v4082_v63  ;;  %v4756_v16 = vshll.u32 %v4606_v32, 16  ;;  %v338_v46 = vsel %vm12947_vm10, 0, %v337_v53  ;;  %v5001_v44 = vld [vmem:[#allocation2 + $0x68] sm:$0x1]  ;;  %v11282_v63 = vld [vmem:[#allocation2 + $0xc] sm:$0xff] }
 0x2bf   : > { %v5315_v56 = vrot.slane %v5313_v8, 5  ;;  %v5321_v34 = vrot.slane %v5319_v23, 5  ;;  %v5325_v50 = vrot.slane %v5323_v10, 4  ;;  %v5329_v43 = vshll.u32 %v13501_v58, 16  ;;  %339 = vst [vmem:[#allocation2 + $0x80] sm:$0x1] %v338_v46 }
 0x2c0   : > { %v4755_v19 = vrot.slane %v4753_v9, 7  ;;  %v4543_v4 = vadd.f32 %v13393_v48, %v4508_v36  ;;  %5675 = vmatmul.bf16.gmra.mxu1 %v5563_v14  ;;  %v5961_v49 = vld [vmem:[#allocation2 + $0x18] sm:$0xe]  ;;  %v6042_v42 = vrot.slane %v6040_v15, 4  ;;  %v6169_v14 = vpack.c.b16 %v6139_v54, %v6138_v35  ;;  %v11638_v23 = vld [vmem:[#allocation2 + $0x20] sm:$0x1] }
 0x2c1   : > { %v3346_v1 = vpop.f32.mrf.mxu2  ;;  %v5316_v45 = vor.u32 %v5315_v56, %v5312_v38  ;;  %v5326_v11 = vor.u32 %v5325_v50, %v5321_v34  ;;  %v5331_v41 = vrot.slane %v5329_v43, 5  ;;  %v10710_v33 = vrot.slane %v5961_v49, 9  ;;  %v5962_v38 = vld [vmem:[#allocation2 + $0x24] sm:$0xe]  ;;  %v5004_v46 = vld [vmem:[#allocation2 + $0x6c] sm:$0xf] }
 0x2c2   : > { %v4758_v52 = vor.u32 %v4756_v16, %v4755_v19  ;;  %v4760_v27 = vrot.slane %v4755_v19, 4  ;;  %v4575_v55 = vmax.f32 %v4543_v4, 0.0  ;;  %v3401_v2 = vadd.f32 %v3346_v1, %v3086_v17  ;;  %v4028_v20 = vpop.f32.mrf.mxu3  ;;  %v284_v16 = vld [vmem:[#allocation2 + $0x84] sm:$0x1] }
 0x2c3   : > { %v4457_v7 = vpop.f32.mrf.mxu0  ;;  %v5317_v17 = vrot.slane %v5316_v45, 4  ;;  %v5327_v22 = vrot.slane %v5326_v11, 4  ;;  %v6043_v54 = vrot.slane %v11638_v23, 5  ;;  %v285_v10 = vsel %vm12936_vm8, 0, %v284_v16  ;;  %v15476_v11 = vld [vmem:[#allocation13_spill] sm:$0xff] }
 0x2c4   : > { %v4759_v30 = vsel %vm13122_vm14, %v4751_v61, %v4758_v52  ;;  %v5002_v24 = vsel %vm12936_vm8, %v4760_v27, %v5001_v44  ;;  %v4607_v62 = vpack.c.bf16 %v4575_v55, %v4575_v55  ;;  %v4083_v32 = vadd.f32 %v4028_v20, %v3401_v2  ;;  %286 = vst [vmem:[#allocation2 + $0x84] sm:$0x1] %v285_v10  ;;  %v5008_v23 = vld [vmem:[#allocation2 + $0x74] sm:$0x1] }
 0x2c5   : > { %5000 = vst [vmem:[#allocation2 + $0x64] sm:$0xf] %v4759_v30  ;;  %v5322_v61 = vsel %vm11880_vm2, %v5317_v17, %v5321_v34  ;;  %v5332_v8 = vsel %vm11880_vm2, %v5327_v22, %v5331_v41  ;;  %v13528_v1 = vsel %vm12183_vm5, %v10710_v33, %v6040_v15  ;;  %v13532_v56 = vsel %vm12183_vm5, %v6042_v42, %v6043_v54 }
 0x2c6   : > { %5003 = vst [vmem:[#allocation2 + $0x68] sm:$0x1] %v5002_v24  ;;  %v4762_v9 = vshrl.u32 %v4607_v62, 16  ;;  %v4509_v36 = vadd.f32 %v4454_v25, %v4083_v32  ;;  %5883 = vmatmul.bf16.gmra.mxu2 %v11282_v63  ;;  %v4765_v19 = vshll.u32 %v4607_v62, 16  ;;  %v5540_v4 = vunpack.c.l.b16 %v5332_v8  ;;  %v340_v8 = vld [vmem:[#allocation2 + $0x8c] sm:$0x1] }
 0x2c7   : > { %6261 = vmatmul.bf16.gmra.mxu3 %v6169_v14  ;;  %6575 = vmatmul.bf16.gmra.mxu0 %v11322_v13  ;;  %v6047_v34 = vrot.slane %v13289_v31, 5  ;;  %v5539_v55 = vunpack.c.l.b16 %v5322_v61  ;;  %v10711_v12 = vrot.slane %v5962_v38, 9  ;;  %v3088_v49 = vadd.f32 %v15476_v11, %v12828_v3  ;;  %v11348_v13 = vld [vmem:[#allocation3 + $0x118] sm:$0xff] }
 0x2c8   : > { %v13521_v53 = vrot.slane %v4762_v9, 7  ;;  %v4544_v25 = vadd.f32 %v13393_v48, %v4509_v36  ;;  %v6140_v31 = vunpack.c.l.b16 %v13528_v1  ;;  %v6141_v42 = vunpack.c.l.b16 %v13532_v56  ;;  %v13556_v36 = vpop.f32.mrf.mxu1  ;;  %7248 = vmatpush.bf16.msrb.mxu1 %v11348_v13 }
 0x2c9   : > { %v3349_v44 = vpop.f32.mrf.mxu2  ;;  %v5564_v45 = vpack.c.b16 %v5540_v4, %v5539_v55  ;;  %v13549_v24 = vsel %vm12183_vm5, %v10711_v12, %v6047_v34  ;;  %v6049_v17 = vrot.slane %v6047_v34, 4  ;;  %v6749_v21 = vshrl.u32 %v6683_v26, 16 }
 0x2ca   : > { %v4767_v50 = vor.u32 %v4765_v19, %v13521_v53  ;;  %v4576_v43 = vmax.f32 %v4544_v25, 0.0  ;;  %v3402_v52 = vadd.f32 %v3349_v44, %v12823_v47  ;;  %v4031_v27 = vpop.f32.mrf.mxu3  ;;  %v5076_v47 = vld [vmem:[#allocation2 + $0x60] sm:$0xf]  ;;  %v4768_v3 = vrot.slane %v13521_v53, 4 }
 0x2cb   : > { %v13537_v2 = vpop.f32.mrf.mxu0  ;;  %v5334_v14 = vshrl.u32 %v5076_v47, 16  ;;  %v5337_v22 = vshll.u32 %v5076_v47, 16  ;;  %v6170_v11 = vpack.c.b16 %v6141_v42, %v6140_v31 }
 0x2cc   : > { %v5005_v15 = vsel %vm13076_vm12, %v4767_v50, %v5004_v46  ;;  %v4608_v20 = vpack.c.bf16 %v4576_v43, %v4576_v43  ;;  %v4084_v35 = vadd.f32 %v4031_v27, %v3402_v52  ;;  %v13545_v30 = vld [vmem:[#allocation2 + $0x64] sm:$0xf]  ;;  %v341_v43 = vsel %vm12947_vm10, 0, %v340_v8  ;;  %v13565_v27 = vld [vmem:[#allocation2 + $0x30] sm:$0xe] }
 0x2cd   : > { %5006 = vst [vmem:[#allocation2 + $0x6c] sm:$0xf] %v5005_v15  ;;  %v13551_v63 = vld [vmem:[#allocation2 + $0x68] sm:$0x1]  ;;  %v5343_v41 = vshll.u32 %v13545_v30, 16  ;;  %v5347_v9 = vshrl.u32 %v13545_v30, 16 }
 0x2ce   : > { %v4770_v62 = vshrl.u32 %v4608_v20, 16  ;;  %v4510_v32 = vadd.f32 %v4457_v7, %v4084_v35  ;;  %v4773_v16 = vshll.u32 %v4608_v20, 16  ;;  %v5336_v7 = vrot.slane %v5334_v14, 4  ;;  %v11283_v35 = vld [vmem:[#allocation2 + $0x18] sm:$0xff]  ;;  %342 = vst [vmem:[#allocation2 + $0x8c] sm:$0x1] %v341_v43 }
 0x2cf   : > { %v5339_v10 = vrot.slane %v5337_v22, 5  ;;  %v5345_v19 = vrot.slane %v5343_v41, 5  ;;  %v5349_v25 = vrot.slane %v5347_v9, 4  ;;  %v5353_v53 = vshll.u32 %v13551_v63, 16 }
 0x2d0   : > { %v4772_v33 = vrot.slane %v4770_v62, 7  ;;  %v4545_v61 = vadd.f32 %v13393_v48, %v4510_v32  ;;  %5680 = vmatmul.bf16.gmra.mxu1 %v5564_v45  ;;  %v6050_v52 = vrot.slane %v13296_v51, 5  ;;  %v5964_v45 = vld [vmem:[#allocation2 + $0x3c] sm:$0xe]  ;;  %v10712_v22 = vrot.slane %v13565_v27, 9 }
 0x2d1   : > { %v3351_v54 = vpop.f32.mrf.mxu2  ;;  %v5340_v34 = vor.u32 %v5339_v10, %v5336_v7  ;;  %v5350_v50 = vor.u32 %v5349_v25, %v5345_v19  ;;  %v5355_v32 = vrot.slane %v5353_v53, 5  ;;  %v6142_v41 = vunpack.c.l.b16 %v13549_v24  ;;  %v5011_v7 = vld [vmem:[#allocation2 + $0x78] sm:$0xf] }
 0x2d2   : > { %v4775_v4 = vor.u32 %v4773_v16, %v4772_v33  ;;  %v4777_v38 = vrot.slane %v4772_v33, 4  ;;  %v4577_v46 = vmax.f32 %v4545_v61, 0.0  ;;  %v3403_v44 = vadd.f32 %v3351_v54, %v3088_v49  ;;  %v4033_v1 = vpop.f32.mrf.mxu3  ;;  %v11323_v49 = vld [vmem:[#allocation2 + $0x24] sm:$0xff] }
 0x2d3   : > { %v13560_v56 = vpop.f32.mrf.mxu0  ;;  %v5341_v47 = vrot.slane %v5340_v34, 4  ;;  %v5351_v62 = vrot.slane %v5350_v50, 4  ;;  %v6051_v13 = vsel %vm12183_vm5, %v6049_v17, %v6050_v52  ;;  %v13584_v17 = vpop.f32.mrf.mxu1  ;;  %v6054_v54 = vrot.slane %v13347_v59, 5 }
 0x2d4   : > { %v4776_v55 = vsel %vm13122_vm14, %v4768_v3, %v4775_v4  ;;  %v5009_v12 = vsel %vm12936_vm8, %v4777_v38, %v5008_v23  ;;  %v4609_v15 = vpack.c.bf16 %v4577_v46, %v4577_v46  ;;  %v4085_v20 = vadd.f32 %v4033_v1, %v3403_v44  ;;  %v287_v3 = vld [vmem:[#allocation2 + $0x90] sm:$0x1] }
 0x2d5   : > { %5007 = vst [vmem:[#allocation2 + $0x70] sm:$0xf] %v4776_v55  ;;  %v5346_v31 = vsel %vm11880_vm2, %v5341_v47, %v5345_v19  ;;  %v5356_v42 = vsel %vm11880_vm2, %v5351_v62, %v5355_v32  ;;  %v6143_v23 = vunpack.c.l.b16 %v6051_v13  ;;  %v10713_v10 = vrot.slane %v5964_v45, 9 }
 0x2d6   : > { %5010 = vst [vmem:[#allocation2 + $0x74] sm:$0x1] %v5009_v12  ;;  %v4779_v51 = vshrl.u32 %v4609_v15, 16  ;;  %v4511_v14 = vadd.f32 %v13537_v2, %v4085_v20  ;;  %5888 = vmatmul.bf16.gmra.mxu2 %v11283_v35  ;;  %v288_v2 = vsel %vm12936_vm8, 0, %v287_v3  ;;  %v4782_v33 = vshll.u32 %v4609_v15, 16  ;;  %v15477_v12 = vld [vmem:[#allocation14_spill] sm:$0xff] }
 0x2d7   : > { %6266 = vmatmul.bf16.gmra.mxu3 %v6170_v11  ;;  %6580 = vmatmul.bf16.gmra.mxu0 %v11323_v49  ;;  %v5542_v61 = vunpack.c.l.b16 %v5356_v42  ;;  %289 = vst [vmem:[#allocation2 + $0x90] sm:$0x1] %v288_v2  ;;  %v6061_v24 = vrot.slane %v13412_v5, 5  ;;  %v5541_v38 = vunpack.c.l.b16 %v5346_v31  ;;  %v6064_v50 = vrot.slane %v13428_v18, 5  ;;  %v5078_v20 = vld [vmem:[#allocation2 + $0x6c] sm:$0xf] }
 0x2d8   : > { %v13582_v9 = vrot.slane %v4779_v51, 7  ;;  %v4546_v16 = vadd.f32 %v13393_v48, %v4511_v14  ;;  %v6171_v15 = vpack.c.b16 %v6143_v23, %v6142_v41  ;;  %v5358_v47 = vshrl.u32 %v5078_v20, 16  ;;  %v343_v42 = vld [vmem:[#allocation2 + $0x98] sm:$0x1]  ;;  %v5015_v2 = vld [vmem:[#allocation2 + $0x80] sm:$0x1] }
 0x2d9   : > { %v3354_v8 = vpop.f32.mrf.mxu2  ;;  %v6062_v1 = vsel %vm12183_vm5, %v10713_v10, %v6061_v24  ;;  %v6063_v34 = vrot.slane %v6061_v24, 4  ;;  %v5565_v55 = vpack.c.b16 %v5542_v61, %v5541_v38  ;;  %v5361_v51 = vshll.u32 %v5078_v20, 16 }
 0x2da   : > { %v4784_v19 = vor.u32 %v4782_v33, %v13582_v9  ;;  %v4578_v25 = vmax.f32 %v4546_v16, 0.0  ;;  %v3404_v53 = vadd.f32 %v3354_v8, %v12843_v29  ;;  %v4036_v4 = vpop.f32.mrf.mxu3  ;;  %v4785_v46 = vrot.slane %v13582_v9, 4 }
 0x2db   : > { %v4464_v44 = vpop.f32.mrf.mxu0  ;;  %v3090_v29 = vadd.f32 %v15477_v12, %v12849_v0  ;;  %v6065_v45 = vsel %vm12183_vm5, %v6063_v34, %v6064_v50  ;;  %v6146_v62 = vunpack.c.l.b16 %v6062_v1  ;;  %v5360_v31 = vrot.slane %v5358_v47, 4  ;;  %v13610_v23 = vpop.f32.mrf.mxu1  ;;  %v5965_v12 = vld [vmem:[#allocation2 + $0x48] sm:$0xe] }
 0x2dc   : > { %v5012_v43 = vsel %vm13076_vm12, %v4784_v19, %v5011_v7  ;;  %v4610_v5 = vpack.c.bf16 %v4578_v25, %v4578_v25  ;;  %v4086_v52 = vadd.f32 %v4036_v4, %v3404_v53  ;;  %v13599_v35 = vld [vmem:[#allocation2 + $0x70] sm:$0xf]  ;;  %v6147_v41 = vunpack.c.l.b16 %v6065_v45 }
 0x2dd   : > { %5013 = vst [vmem:[#allocation2 + $0x78] sm:$0xf] %v5012_v43  ;;  %v13604_v49 = vld [vmem:[#allocation2 + $0x74] sm:$0x1]  ;;  %v5367_v14 = vshll.u32 %v13599_v35, 16  ;;  %v5371_v0 = vshrl.u32 %v13599_v35, 16 }
 0x2de   : > { %v4787_v11 = vshrl.u32 %v4610_v5, 16  ;;  %v4512_v18 = vadd.f32 %v13560_v56, %v4086_v52  ;;  %v4790_v32 = vshll.u32 %v4610_v5, 16  ;;  %v5363_v56 = vrot.slane %v5361_v51, 5  ;;  %v11284_v52 = vld [vmem:[#allocation2 + $0x24] sm:$0xff] }
 0x2df   : > { %v5369_v33 = vrot.slane %v5367_v14, 5  ;;  %v5373_v16 = vrot.slane %v5371_v0, 4  ;;  %v5377_v61 = vshll.u32 %v13604_v49, 16  ;;  %v344_v38 = vsel %vm12947_vm10, 0, %v343_v42 }
 0x2e0   : > { %v4789_v13 = vrot.slane %v4787_v11, 7  ;;  %v4547_v3 = vadd.f32 %v13393_v48, %v4512_v18  ;;  %5685 = vmatmul.bf16.gmra.mxu1 %v5565_v55  ;;  %v5364_v53 = vor.u32 %v5363_v56, %v5360_v31  ;;  %v13616_v1 = vpack.c.b16 %v6147_v41, %v6146_v62  ;;  %v11324_v55 = vld [vmem:[#allocation2 + $0x30] sm:$0xff]  ;;  %345 = vst [vmem:[#allocation2 + $0x98] sm:$0x1] %v344_v38 }
 0x2e1   : > { %v3356_v9 = vpop.f32.mrf.mxu2  ;;  %v5374_v4 = vor.u32 %v5373_v16, %v5369_v33  ;;  %v5379_v45 = vrot.slane %v5377_v61, 5  ;;  %v6056_v11 = vrot.slane %v6054_v54, 4 }
 0x2e2   : > { %v4792_v7 = vor.u32 %v4790_v32, %v4789_v13  ;;  %v4794_v8 = vrot.slane %v4789_v13, 4  ;;  %v4579_v10 = vmax.f32 %v4547_v3, 0.0  ;;  %v3405_v24 = vadd.f32 %v3356_v9, %v3090_v29  ;;  %v4038_v19 = vpop.f32.mrf.mxu3  ;;  %v290_v32 = vld [vmem:[#allocation2 + $0x9c] sm:$0x1] }
 0x2e3   : > { %v13612_v25 = vpop.f32.mrf.mxu0  ;;  %v5365_v29 = vrot.slane %v5364_v53, 4  ;;  %v5375_v20 = vrot.slane %v5374_v4, 4  ;;  %v291_v0 = vsel %vm12936_vm8, 0, %v290_v32  ;;  %v6068_v13 = vrot.slane %v13457_v6, 5  ;;  %v15478_v6 = vld [vmem:[#allocation16_spill] sm:$0xff]  ;;  %v11347_v32 = vld [vmem:[#allocation3 + $0x110] sm:$0xff] }
 0x2e4   : > { %v4793_v34 = vsel %vm13122_vm14, %v4785_v46, %v4792_v7  ;;  %v5016_v50 = vsel %vm12936_vm8, %v4794_v8, %v5015_v2  ;;  %v4611_v43 = vpack.c.bf16 %v4579_v10, %v4579_v10  ;;  %v4087_v5 = vadd.f32 %v4038_v19, %v3405_v24  ;;  %v11639_v46 = vld [vmem:[#allocation2 + $0x38] sm:$0x1]  ;;  %292 = vst [vmem:[#allocation2 + $0x9c] sm:$0x1] %v291_v0 }
 0x2e5   : > { %5014 = vst [vmem:[#allocation2 + $0x7c] sm:$0xf] %v4793_v34  ;;  %v6057_v62 = vrot.slane %v11639_v46, 5  ;;  %v5370_v51 = vsel %vm11880_vm2, %v5365_v29, %v5369_v33  ;;  %v5380_v14 = vsel %vm11880_vm2, %v5375_v20, %v5379_v45  ;;  %v10714_v9 = vrot.slane %v5965_v12, 9  ;;  %v5080_v45 = vld [vmem:[#allocation2 + $0x78] sm:$0xf]  ;;  %7249 = vmatpush.bf16.msrb.mxu1 %v11347_v32 }
 0x2e6   : > { %5017 = vst [vmem:[#allocation2 + $0x80] sm:$0x1] %v5016_v50  ;;  %v4796_v18 = vshrl.u32 %v4611_v43, 16  ;;  %v4513_v47 = vadd.f32 %v4464_v44, %v4087_v5  ;;  %5893 = vmatmul.bf16.gmra.mxu2 %v11284_v52  ;;  %v4799_v44 = vshll.u32 %v4611_v43, 16  ;;  %v5544_v42 = vunpack.c.l.b16 %v5380_v14  ;;  %v15479_v52 = vld [vmem:[#allocation17_spill] sm:$0xff] }
 0x2e7   : > { %6271 = vmatmul.bf16.gmra.mxu3 %v6171_v15  ;;  %6585 = vmatmul.bf16.gmra.mxu0 %v11324_v55  ;;  %v5018_v15 = vld [vmem:[#allocation2 + $0x84] sm:$0xf]  ;;  %v5543_v2 = vunpack.c.l.b16 %v5370_v51  ;;  %v6070_v56 = vrot.slane %v6068_v13, 4  ;;  %v6071_v33 = vrot.slane %v13464_v37, 5  ;;  %v6058_v24 = vsel %vm12183_vm5, %v6056_v11, %v6057_v62  ;;  %v15480_v55 = vld [vmem:[#allocation15_spill] sm:$0xff] }
 0x2e8   : > { %v13631_v3 = vrot.slane %v4796_v18, 7  ;;  %v4548_v31 = vadd.f32 %v13393_v48, %v4513_v47  ;;  %v13636_v7 = vpop.f32.mrf.mxu1  ;;  %v6069_v38 = vsel %vm12183_vm5, %v10714_v9, %v6068_v13  ;;  %v3092_v12 = vadd.f32 %v15480_v55, %v15479_v52  ;;  %v11325_v55 = vld [vmem:[#allocation2 + $0x3c] sm:$0xff] }
 0x2e9   : > { %v3359_v41 = vpop.f32.mrf.mxu2  ;;  %v5566_v53 = vpack.c.b16 %v5544_v42, %v5543_v2  ;;  %v6072_v37 = vsel %vm12183_vm5, %v6070_v56, %v6071_v33  ;;  %v6055_v29 = vsel %vm12183_vm5, %v10712_v22, %v6054_v54  ;;  %v6145_v20 = vunpack.c.l.b16 %v6058_v24 }
 0x2ea   : > { %v4801_v16 = vor.u32 %v4799_v44, %v13631_v3  ;;  %v4580_v61 = vmax.f32 %v4548_v31, 0.0  ;;  %v3406_v8 = vadd.f32 %v3359_v41, %v15478_v6  ;;  %v4041_v10 = vpop.f32.mrf.mxu3  ;;  %v4802_v19 = vrot.slane %v13631_v3, 4  ;;  %v346_v3 = vld [vmem:[#allocation2 + $0xa4] sm:$0x1] }
 0x2eb   : > { %v4469_v4 = vpop.f32.mrf.mxu0  ;;  %v6149_v5 = vunpack.c.l.b16 %v6072_v37  ;;  %v5382_v62 = vshrl.u32 %v5080_v45, 16  ;;  %v6148_v51 = vunpack.c.l.b16 %v6069_v38  ;;  %v5385_v0 = vshll.u32 %v5080_v45, 16 }
 0x2ec   : > { %v5019_v34 = vsel %vm13076_vm12, %v4801_v16, %v5018_v15  ;;  %v4612_v50 = vpack.c.bf16 %v4580_v61, %v4580_v61  ;;  %v4088_v43 = vadd.f32 %v4041_v10, %v3406_v8  ;;  %v13656_v11 = vld [vmem:[#allocation2 + $0x7c] sm:$0xf]  ;;  %v6144_v8 = vunpack.c.l.b16 %v6055_v29 }
 0x2ed   : > { %5020 = vst [vmem:[#allocation2 + $0x84] sm:$0xf] %v5019_v34  ;;  %v13659_v46 = vld [vmem:[#allocation2 + $0x80] sm:$0x1]  ;;  %v5391_v59 = vshll.u32 %v13656_v11, 16  ;;  %v5395_v27 = vshrl.u32 %v13656_v11, 16  ;;  %v13664_v44 = vpack.c.b16 %v6149_v5, %v6148_v51 }
 0x2ee   : > { %v4804_v18 = vshrl.u32 %v4612_v50, 16  ;;  %v4514_v47 = vadd.f32 %v13612_v25, %v4088_v43  ;;  %v4807_v14 = vshll.u32 %v4612_v50, 16  ;;  %v5384_v54 = vrot.slane %v5382_v62, 4  ;;  %v5022_v25 = vld [vmem:[#allocation2 + $0x8c] sm:$0x1]  ;;  %v11285_v43 = vld [vmem:[#allocation2 + $0x30] sm:$0xff] }
 0x2ef   : > { %v5387_v42 = vrot.slane %v5385_v0, 5  ;;  %v5393_v15 = vrot.slane %v5391_v59, 5  ;;  %v5397_v41 = vrot.slane %v5395_v27, 4  ;;  %v5401_v2 = vshll.u32 %v13659_v46, 16  ;;  %v5966_v5 = vld [vmem:[#allocation2 + $0x54] sm:$0xe] }
 0x2f0   : > { %v4806_v13 = vrot.slane %v4804_v18, 7  ;;  %v4549_v22 = vadd.f32 %v13393_v48, %v4514_v47  ;;  %5690 = vmatmul.bf16.gmra.mxu1 %v5566_v53  ;;  %v13667_v16 = vpop.f32.mrf.mxu1  ;;  %v347_v53 = vsel %vm12947_vm10, 0, %v346_v3  ;;  %v6172_v52 = vpack.c.b16 %v6145_v20, %v6144_v8  ;;  %v293_v62 = vld [vmem:[#allocation2 + $0xa8] sm:$0x1] }
 0x2f1   : > { %v3361_v31 = vpop.f32.mrf.mxu2  ;;  %v5388_v10 = vor.u32 %v5387_v42, %v5384_v54  ;;  %v5398_v24 = vor.u32 %v5397_v41, %v5393_v15  ;;  %348 = vst [vmem:[#allocation2 + $0xa4] sm:$0x1] %v347_v53  ;;  %v5403_v45 = vrot.slane %v5401_v2, 5  ;;  %v294_v20 = vsel %vm12936_vm8, 0, %v293_v62  ;;  %v15481_v41 = vld [vmem:[#allocation19_spill] sm:$0xff] }
 0x2f2   : > { %v4809_v9 = vor.u32 %v4807_v14, %v4806_v13  ;;  %v4811_v56 = vrot.slane %v4806_v13, 4  ;;  %v4581_v33 = vmax.f32 %v4549_v22, 0.0  ;;  %v3407_v61 = vadd.f32 %v3361_v31, %v3092_v12  ;;  %v4043_v48 = vpop.f32.mrf.mxu3  ;;  %295 = vst [vmem:[#allocation2 + $0xa8] sm:$0x1] %v294_v20  ;;  %v5025_v13 = vld [vmem:[#allocation2 + $0x90] sm:$0xf] }
 0x2f3   : > { %v4472_v6 = vpop.f32.mrf.mxu0  ;;  %v5389_v12 = vrot.slane %v5388_v10, 4  ;;  %v5399_v29 = vrot.slane %v5398_v24, 4  ;;  %v6075_v51 = vrot.slane %v13499_v28, 5  ;;  %v10715_v3 = vrot.slane %v5966_v5, 9 }
 0x2f4   : > { %v4810_v38 = vsel %vm13122_vm14, %v4802_v19, %v4809_v9  ;;  %v5023_v37 = vsel %vm12936_vm8, %v4811_v56, %v5022_v25  ;;  %v4613_v34 = vpack.c.bf16 %v4581_v33, %v4581_v33  ;;  %v4089_v50 = vadd.f32 %v4043_v48, %v3407_v61 }
 0x2f5   : > { %5021 = vst [vmem:[#allocation2 + $0x88] sm:$0xf] %v4810_v38  ;;  %v5394_v19 = vsel %vm11880_vm2, %v5389_v12, %v5393_v15  ;;  %v5404_v32 = vsel %vm11880_vm2, %v5399_v29, %v5403_v45  ;;  %v6077_v25 = vrot.slane %v6075_v51, 4  ;;  %v6078_v31 = vrot.slane %v13501_v58, 5  ;;  %v15482_v38 = vld [vmem:[#allocation20_spill] sm:$0xff] }
 0x2f6   : > { %5024 = vst [vmem:[#allocation2 + $0x8c] sm:$0x1] %v5023_v37  ;;  %v4813_v18 = vshrl.u32 %v4613_v34, 16  ;;  %v4515_v47 = vadd.f32 %v4469_v4, %v4089_v50  ;;  %5898 = vmatmul.bf16.gmra.mxu2 %v11285_v43  ;;  %v4816_v0 = vshll.u32 %v4613_v34, 16  ;;  %v13687_v4 = vld [vmem:[%s15428_s2] ss:$0 sm:$0xff]  ;;  %v5546_v27 = vunpack.c.l.b16 %v5404_v32 }
 0x2f7   : > { %6276 = vmatmul.bf16.gmra.mxu3 %v6172_v52  ;;  %6590 = vmatmul.bf16.gmra.mxu0 %v11325_v55  ;;  %v5545_v54 = vunpack.c.l.b16 %v5394_v19  ;;  %v6076_v48 = vsel %vm12183_vm5, %v10715_v3, %v6075_v51  ;;  %v6079_v8 = vsel %vm12183_vm5, %v6077_v25, %v6078_v31  ;;  %v15483_v37 = vld [vmem:[#allocation18_spill] sm:$0xff]  ;;  %v349_v51 = vld [vmem:[#allocation2 + $0xb0] sm:$0x1] }
 0x2f8   : > { %v13682_v14 = vrot.slane %v4813_v18, 7  ;;  %v4550_v59 = vadd.f32 %v13687_v4, %v4515_v47  ;;  %v6151_v53 = vunpack.c.l.b16 %v6079_v8  ;;  %v3094_v34 = vadd.f32 %v15483_v37, %v15482_v38  ;;  %v5082_v50 = vld [vmem:[#allocation2 + $0x84] sm:$0xf]  ;;  %v11326_v38 = vld [vmem:[#allocation2 + $0x48] sm:$0xff] }
 0x2f9   : > { %v3364_v22 = vpop.f32.mrf.mxu2  ;;  %v5567_v33 = vpack.c.b16 %v5546_v27, %v5545_v54  ;;  %v5406_v12 = vshrl.u32 %v5082_v50, 16  ;;  %v6150_v29 = vunpack.c.l.b16 %v6076_v48  ;;  %v5409_v18 = vshll.u32 %v5082_v50, 16 }
 0x2fa   : > { %v4818_v28 = vor.u32 %v4816_v0, %v13682_v14  ;;  %v4582_v42 = vmax.f32 %v4550_v59, 0.0  ;;  %v13692_v15 = vpop.f32.mrf.mxu1  ;;  %v3408_v2 = vadd.f32 %v3364_v22, %v15481_v41  ;;  %v4046_v9 = vpop.f32.mrf.mxu3  ;;  %v4819_v56 = vrot.slane %v13682_v14, 4  ;;  %v5029_v0 = vld [vmem:[#allocation2 + $0x98] sm:$0x1] }
 0x2fb   : > { %v4474_v61 = vpop.f32.mrf.mxu0  ;;  %v5408_v20 = vrot.slane %v5406_v12, 4  ;;  %v13711_v14 = vpack.c.b16 %v6151_v53, %v6150_v29  ;;  %v5411_v59 = vrot.slane %v5409_v18, 5  ;;  %v5967_v53 = vld [vmem:[#allocation2 + $0x60] sm:$0xe]  ;;  %v296_v12 = vld [vmem:[#allocation2 + $0xb4] sm:$0x1] }
 0x2fc   : > { %v5026_v58 = vsel %vm13076_vm12, %v4818_v28, %v5025_v13  ;;  %v4614_v10 = vpack.c.bf16 %v4582_v42, %v4582_v42  ;;  %v4090_v24 = vadd.f32 %v4046_v9, %v3408_v2  ;;  %v13704_v43 = vld [vmem:[#allocation2 + $0x88] sm:$0xf]  ;;  %v6082_v18 = vrot.slane %v13545_v30, 5  ;;  %v15484_v30 = vld [vmem:[#allocation22_spill] sm:$0xff] }
 0x2fd   : > { %5027 = vst [vmem:[#allocation2 + $0x90] sm:$0xf] %v5026_v58  ;;  %v13706_v55 = vld [vmem:[#allocation2 + $0x8c] sm:$0x1]  ;;  %v5415_v47 = vshll.u32 %v13704_v43, 16  ;;  %v5419_v62 = vshrl.u32 %v13704_v43, 16  ;;  %v5412_v2 = vor.u32 %v5411_v59, %v5408_v20 }
 0x2fe   : > { %v4821_v5 = vshrl.u32 %v4614_v10, 16  ;;  %v4516_v52 = vadd.f32 %v4472_v6, %v4090_v24  ;;  %v4824_v45 = vshll.u32 %v4614_v10, 16  ;;  %v5425_v22 = vshll.u32 %v13706_v55, 16  ;;  %v11286_v24 = vld [vmem:[#allocation2 + $0x3c] sm:$0xff] }
 0x2ff   : > { %v5417_v27 = vrot.slane %v5415_v47, 5  ;;  %v5421_v13 = vrot.slane %v5419_v62, 4  ;;  %v5413_v37 = vrot.slane %v5412_v2, 4 }
 0x300   : > { %v4823_v19 = vrot.slane %v4821_v5, 7  ;;  %v4551_v32 = vadd.f32 %v13687_v4, %v4516_v52  ;;  %5695 = vmatmul.bf16.gmra.mxu1 %v5567_v33  ;;  %v350_v33 = vsel %vm12947_vm10, 0, %v349_v51  ;;  %v5427_v50 = vrot.slane %v5425_v22, 5 }
 0x301   : > { %v3366_v6 = vpop.f32.mrf.mxu2  ;;  %v5422_v9 = vor.u32 %v5421_v13, %v5417_v27  ;;  %351 = vst [vmem:[#allocation2 + $0xb0] sm:$0x1] %v350_v33  ;;  %v10716_v51 = vrot.slane %v5967_v53, 9 }
 0x302   : > { %v4826_v54 = vor.u32 %v4824_v45, %v4823_v19  ;;  %v4828_v3 = vrot.slane %v4823_v19, 4  ;;  %v4583_v25 = vmax.f32 %v4551_v32, 0.0  ;;  %v13714_v31 = vpop.f32.mrf.mxu1  ;;  %v3409_v28 = vadd.f32 %v3366_v6, %v3094_v34  ;;  %v4048_v42 = vpop.f32.mrf.mxu3 }
 0x303   : > { %v4477_v41 = vpop.f32.mrf.mxu0  ;;  %v5423_v34 = vrot.slane %v5422_v9, 4  ;;  %v297_v45 = vsel %vm12936_vm8, 0, %v296_v12  ;;  %v6085_v6 = vrot.slane %v13551_v63, 5 }
 0x304   : > { %v4827_v48 = vsel %vm13122_vm14, %v4819_v56, %v4826_v54  ;;  %v5030_v8 = vsel %vm12936_vm8, %v4828_v3, %v5029_v0  ;;  %v4615_v58 = vpack.c.bf16 %v4583_v25, %v4583_v25  ;;  %v4091_v10 = vadd.f32 %v4048_v42, %v3409_v28  ;;  %298 = vst [vmem:[#allocation2 + $0xb4] sm:$0x1] %v297_v45 }
 0x305   : > { %5028 = vst [vmem:[#allocation2 + $0x94] sm:$0xf] %v4827_v48  ;;  %v5418_v56 = vsel %vm11880_vm2, %v5413_v37, %v5417_v27  ;;  %v5428_v29 = vsel %vm11880_vm2, %v5423_v34, %v5427_v50  ;;  %v6084_v0 = vrot.slane %v6082_v18, 4  ;;  %v6083_v42 = vsel %vm12183_vm5, %v10716_v51, %v6082_v18 }
 0x306   : > { %5031 = vst [vmem:[#allocation2 + $0x98] sm:$0x1] %v5030_v8  ;;  %v4830_v5 = vshrl.u32 %v4615_v58, 16  ;;  %v4517_v52 = vadd.f32 %v4474_v61, %v4091_v10  ;;  %5903 = vmatmul.bf16.gmra.mxu2 %v11286_v24  ;;  %v4833_v62 = vshll.u32 %v4615_v58, 16  ;;  %v5548_v19 = vunpack.c.l.b16 %v5428_v29  ;;  %v15485_v8 = vld [vmem:[#allocation23_spill] sm:$0xff]  ;;  %v15486_v58 = vld [vmem:[#allocation21_spill] sm:$0xff] }
 0x307   : > { %6281 = vmatmul.bf16.gmra.mxu3 %v13616_v1  ;;  %6595 = vmatmul.bf16.gmra.mxu0 %v11326_v38  ;;  %v5032_v1 = vld [vmem:[#allocation2 + $0x9c] sm:$0xf]  ;;  %v5547_v20 = vunpack.c.l.b16 %v5418_v56  ;;  %v6086_v2 = vsel %vm12183_vm5, %v6084_v0, %v6085_v6  ;;  %v3096_v10 = vadd.f32 %v15486_v58, %v15485_v8  ;;  %v5084_v24 = vld [vmem:[#allocation2 + $0x90] sm:$0xf]  ;;  %v11287_v58 = vld [vmem:[#allocation2 + $0x48] sm:$0xff] }
 0x308   : > { %v13730_v47 = vrot.slane %v4830_v5, 7  ;;  %v4552_v61 = vadd.f32 %v13687_v4, %v4517_v52  ;;  %v6153_v48 = vunpack.c.l.b16 %v6086_v2  ;;  %v5430_v50 = vshrl.u32 %v5084_v24, 16  ;;  %v11346_v5 = vld [vmem:[#allocation3 + $0x108] sm:$0xff] }
 0x309   : > { %v3369_v32 = vpop.f32.mrf.mxu2  ;;  %v5568_v25 = vpack.c.b16 %v5548_v19, %v5547_v20  ;;  %v6152_v52 = vunpack.c.l.b16 %v6083_v42  ;;  %v5433_v56 = vshll.u32 %v5084_v24, 16  ;;  %7250 = vmatpush.bf16.msrb.mxu1 %v11346_v5  ;;  %v5968_v24 = vld [vmem:[#allocation2 + $0x6c] sm:$0xe] }
 0x30a   : > { %v4835_v59 = vor.u32 %v4833_v62, %v13730_v47  ;;  %v4584_v27 = vmax.f32 %v4552_v61, 0.0  ;;  %v13735_v13 = vpop.f32.mrf.mxu1  ;;  %v3410_v22 = vadd.f32 %v3369_v32, %v15484_v30  ;;  %v4051_v54 = vpop.f32.mrf.mxu3  ;;  %v4836_v3 = vrot.slane %v13730_v47, 4  ;;  %v352_v61 = vld [vmem:[#allocation2 + $0xbc] sm:$0x1] }
 0x30b   : > { %v4479_v28 = vpop.f32.mrf.mxu0  ;;  %v5432_v62 = vrot.slane %v5430_v50, 4  ;;  %v13754_v19 = vpack.c.b16 %v6153_v48, %v6152_v52  ;;  %v5435_v32 = vrot.slane %v5433_v56, 5 }
 0x30c   : > { %v5033_v63 = vsel %vm13076_vm12, %v4835_v59, %v5032_v1  ;;  %v4616_v9 = vpack.c.bf16 %v4584_v27, %v4584_v27  ;;  %v4092_v33 = vadd.f32 %v4051_v54, %v3410_v22  ;;  %v13747_v53 = vld [vmem:[#allocation2 + $0x94] sm:$0xf] }
 0x30d   : > { %5034 = vst [vmem:[#allocation2 + $0x9c] sm:$0xf] %v5033_v63  ;;  %v13749_v34 = vld [vmem:[#allocation2 + $0x98] sm:$0x1]  ;;  %v5439_v29 = vshll.u32 %v13747_v53, 16  ;;  %v5443_v45 = vshrl.u32 %v13747_v53, 16  ;;  %v5436_v42 = vor.u32 %v5435_v32, %v5432_v62 }
 0x30e   : > { %v4838_v38 = vshrl.u32 %v4616_v9, 16  ;;  %v4518_v37 = vadd.f32 %v4477_v41, %v4092_v33  ;;  %v4841_v12 = vshll.u32 %v4616_v9, 16  ;;  %v5036_v41 = vld [vmem:[#allocation2 + $0xa4] sm:$0x1]  ;;  %v5449_v0 = vshll.u32 %v13749_v34, 16 }
 0x30f   : > { %v5441_v20 = vrot.slane %v5439_v29, 5  ;;  %v5445_v51 = vrot.slane %v5443_v45, 4  ;;  %v353_v63 = vsel %vm12947_vm10, 0, %v352_v61  ;;  %v6089_v45 = vrot.slane %v13599_v35, 5  ;;  %v5039_v61 = vld [vmem:[#allocation2 + $0xa8] sm:$0xf] }
 0x310   : > { %v4840_v18 = vrot.slane %v4838_v38, 7  ;;  %v4553_v47 = vadd.f32 %v13687_v4, %v4518_v37  ;;  %5700 = vmatmul.bf16.gmra.mxu1 %v5568_v25  ;;  %354 = vst [vmem:[#allocation2 + $0xbc] sm:$0x1] %v353_v63  ;;  %v5437_v38 = vrot.slane %v5436_v42, 4  ;;  %v5451_v50 = vrot.slane %v5449_v0, 5 }
 0x311   : > { %v3371_v1 = vpop.f32.mrf.mxu2  ;;  %v5446_v2 = vor.u32 %v5445_v51, %v5441_v20  ;;  %v6091_v32 = vrot.slane %v6089_v45, 4 }
 0x312   : > { %v4843_v6 = vor.u32 %v4841_v12, %v4840_v18  ;;  %v4845_v59 = vrot.slane %v4840_v18, 4  ;;  %v4585_v27 = vmax.f32 %v4553_v47, 0.0  ;;  %v13757_v30 = vpop.f32.mrf.mxu1  ;;  %v3411_v22 = vadd.f32 %v3371_v1, %v3096_v10  ;;  %v4053_v54 = vpop.f32.mrf.mxu3  ;;  %v11327_v10 = vld [vmem:[#allocation2 + $0x54] sm:$0xff]  ;;  %v299_v12 = vld [vmem:[#allocation2 + $0xc0] sm:$0x1] }
 0x313   : > { %v4482_v25 = vpop.f32.mrf.mxu0  ;;  %v5447_v37 = vrot.slane %v5446_v2, 4  ;;  %v300_v29 = vsel %vm12936_vm8, 0, %v299_v12  ;;  %v10717_v1 = vrot.slane %v5968_v24, 9 }
 0x314   : > { %v4844_v9 = vsel %vm13122_vm14, %v4836_v3, %v4843_v6  ;;  %v5037_v33 = vsel %vm12936_vm8, %v4845_v59, %v5036_v41  ;;  %v4617_v48 = vpack.c.bf16 %v4585_v27, %v4585_v27  ;;  %v4093_v8 = vadd.f32 %v4053_v54, %v3411_v22  ;;  %301 = vst [vmem:[#allocation2 + $0xc0] sm:$0x1] %v300_v29  ;;  %v15487_v6 = vld [vmem:[#allocation26_spill] sm:$0xff] }
 0x315   : > { %5035 = vst [vmem:[#allocation2 + $0xa0] sm:$0xf] %v4844_v9  ;;  %v5442_v3 = vsel %vm11880_vm2, %v5437_v38, %v5441_v20  ;;  %v5452_v56 = vsel %vm11880_vm2, %v5447_v37, %v5451_v50  ;;  %v6092_v20 = vrot.slane %v13604_v49, 5  ;;  %v6090_v42 = vsel %vm12183_vm5, %v10717_v1, %v6089_v45 }
 0x316   : > { %5038 = vst [vmem:[#allocation2 + $0xa4] sm:$0x1] %v5037_v33  ;;  %v4847_v5 = vshrl.u32 %v4617_v48, 16  ;;  %v4519_v52 = vadd.f32 %v4479_v28, %v4093_v8  ;;  %5908 = vmatmul.bf16.gmra.mxu2 %v11287_v58  ;;  %v4850_v47 = vshll.u32 %v4617_v48, 16  ;;  %v5550_v62 = vunpack.c.l.b16 %v5452_v56  ;;  %v15488_v8 = vld [vmem:[#allocation28_spill] sm:$0xff]  ;;  %v15489_v58 = vld [vmem:[#allocation27_spill] sm:$0xff] }
 0x317   : > { %6286 = vmatmul.bf16.gmra.mxu3 %v13664_v44  ;;  %6600 = vmatmul.bf16.gmra.mxu0 %v11327_v10  ;;  %v5549_v41 = vunpack.c.l.b16 %v5442_v3  ;;  %v6093_v2 = vsel %vm12183_vm5, %v6091_v32, %v6092_v20  ;;  %v3098_v24 = vadd.f32 %v15489_v58, %v15488_v8  ;;  %v5086_v10 = vld [vmem:[#allocation2 + $0x9c] sm:$0xf]  ;;  %v6154_v12 = vunpack.c.l.b16 %v6090_v42 }
 0x318   : > { %v4849_v18 = vrot.slane %v4847_v5, 7  ;;  %v4554_v28 = vadd.f32 %v13687_v4, %v4519_v52  ;;  %v6155_v48 = vunpack.c.l.b16 %v6093_v2  ;;  %v5454_v52 = vshrl.u32 %v5086_v10, 16 }
 0x319   : > { %v3374_v44 = vpop.f32.mrf.mxu2  ;;  %v5569_v35 = vpack.c.b16 %v5550_v62, %v5549_v41  ;;  %v5457_v56 = vshll.u32 %v5086_v10, 16  ;;  %v355_v62 = vld [vmem:[#allocation2 + $0xc8] sm:$0x1]  ;;  %v11288_v10 = vld [vmem:[#allocation2 + $0x54] sm:$0xff] }
 0x31a   : > { %v4852_v51 = vor.u32 %v4850_v47, %v4849_v18  ;;  %v4586_v0 = vmax.f32 %v4554_v28, 0.0  ;;  %v3412_v59 = vadd.f32 %v3374_v44, %v15487_v6  ;;  %v4056_v27 = vpop.f32.mrf.mxu3  ;;  %v4853_v22 = vrot.slane %v4849_v18, 4  ;;  %v5043_v44 = vld [vmem:[#allocation2 + $0xb0] sm:$0x1] }
 0x31b   : > { %v4484_v54 = vpop.f32.mrf.mxu0  ;;  %v5456_v28 = vrot.slane %v5454_v52, 4  ;;  %v5459_v41 = vrot.slane %v5457_v56, 5 }
 0x31c   : > { %v5040_v63 = vsel %vm13076_vm12, %v4852_v51, %v5039_v61  ;;  %v4618_v9 = vpack.c.bf16 %v4586_v0, %v4586_v0  ;;  %v13782_v33 = vpop.f32.mrf.mxu1  ;;  %v4094_v49 = vadd.f32 %v4056_v27, %v3412_v59  ;;  %v13786_v38 = vld [vmem:[#allocation2 + $0xa0] sm:$0xf]  ;;  %v13793_v61 = vpack.c.b16 %v6155_v48, %v6154_v12 }
 0x31d   : > { %5041 = vst [vmem:[#allocation2 + $0xa8] sm:$0xf] %v5040_v63  ;;  %v13788_v5 = vld [vmem:[#allocation2 + $0xa4] sm:$0x1]  ;;  %v5463_v29 = vshll.u32 %v13786_v38, 16  ;;  %v5467_v45 = vshrl.u32 %v13786_v38, 16  ;;  %v5460_v42 = vor.u32 %v5459_v41, %v5456_v28 }
 0x31e   : > { %v4855_v37 = vshrl.u32 %v4618_v9, 16  ;;  %v4520_v50 = vadd.f32 %v4482_v25, %v4094_v49  ;;  %v4858_v3 = vshll.u32 %v4618_v9, 16  ;;  %v5473_v20 = vshll.u32 %v13788_v5, 16 }
 0x31f   : > { %v5465_v1 = vrot.slane %v5463_v29, 5  ;;  %v5469_v32 = vrot.slane %v5467_v45, 4  ;;  %v11345_v45 = vld [vmem:[#allocation3 + $0x100] sm:$0xff] }
 0x320   : > { %v4857_v18 = vrot.slane %v4855_v37, 7  ;;  %v4555_v47 = vadd.f32 %v13687_v4, %v4520_v50  ;;  %5705 = vmatmul.bf16.gmra.mxu1 %v5569_v35  ;;  %v356_v35 = vsel %vm12947_vm10, 0, %v355_v62  ;;  %v5461_v37 = vrot.slane %v5460_v42, 4 }
 0x321   : > { %v3376_v25 = vpop.f32.mrf.mxu2  ;;  %v5470_v2 = vor.u32 %v5469_v32, %v5465_v1  ;;  %357 = vst [vmem:[#allocation2 + $0xc8] sm:$0x1] %v356_v35  ;;  %v5475_v52 = vrot.slane %v5473_v20, 5  ;;  %7251 = vmatpush.bf16.msrb.mxu1 %v11345_v45  ;;  %v6099_v35 = vrot.slane %v13659_v46, 5 }
 0x322   : > { %v4860_v51 = vor.u32 %v4858_v3, %v4857_v18  ;;  %v4862_v0 = vrot.slane %v4857_v18, 4  ;;  %v4587_v6 = vmax.f32 %v4555_v47, 0.0  ;;  %v3413_v59 = vadd.f32 %v3376_v25, %v3098_v24  ;;  %v4058_v27 = vpop.f32.mrf.mxu3  ;;  %v11328_v24 = vld [vmem:[#allocation2 + $0x60] sm:$0xff]  ;;  %v5969_v18 = vld [vmem:[#allocation2 + $0x78] sm:$0xe] }
 0x323   : > { %v5471_v50 = vrot.slane %v5470_v2, 4  ;;  %v5466_v56 = vsel %vm11880_vm2, %v5461_v37, %v5465_v1  ;;  %v5046_v25 = vld [vmem:[#allocation2 + $0xb4] sm:$0xf] }
 0x324   : > { %v4861_v63 = vsel %vm13122_vm14, %v4853_v22, %v4860_v51  ;;  %v5044_v9 = vsel %vm12936_vm8, %v4862_v0, %v5043_v44  ;;  %v4619_v49 = vpack.c.bf16 %v4587_v6, %v4587_v6  ;;  %v13802_v48 = vpop.f32.mrf.mxu1  ;;  %v4095_v8 = vadd.f32 %v4058_v27, %v3413_v59  ;;  %v4487_v58 = vpop.f32.mrf.mxu0  ;;  %v5088_v22 = vld [vmem:[#allocation2 + $0xa8] sm:$0xf]  ;;  %v15490_v0 = vld [vmem:[#allocation29_spill] sm:$0xff] }
 0x325   : > { %5042 = vst [vmem:[#allocation2 + $0xac] sm:$0xf] %v4861_v63  ;;  %v5476_v29 = vsel %vm11880_vm2, %v5471_v50, %v5475_v52  ;;  %v5551_v41 = vunpack.c.l.b16 %v5466_v56  ;;  %v5478_v32 = vshrl.u32 %v5088_v22, 16  ;;  %v5481_v20 = vshll.u32 %v5088_v22, 16 }
 0x326   : > { %5045 = vst [vmem:[#allocation2 + $0xb0] sm:$0x1] %v5044_v9  ;;  %v4864_v12 = vshrl.u32 %v4619_v49, 16  ;;  %v4521_v3 = vadd.f32 %v4484_v54, %v4095_v8  ;;  %5913 = vmatmul.bf16.gmra.mxu2 %v11288_v10  ;;  %v4867_v28 = vshll.u32 %v4619_v49, 16  ;;  %v5552_v44 = vunpack.c.l.b16 %v5476_v29  ;;  %v15491_v29 = vld [vmem:[#allocation9_spill] sm:$0xff] }
 0x327   : > { %6291 = vmatmul.bf16.gmra.mxu3 %v13711_v14  ;;  %6605 = vmatmul.bf16.gmra.mxu0 %v11328_v24  ;;  %v6096_v14 = vrot.slane %v13656_v11, 5  ;;  %v10718_v27 = vrot.slane %v5969_v18, 9  ;;  %v5480_v37 = vrot.slane %v5478_v32, 4  ;;  %v5483_v50 = vrot.slane %v5481_v20, 5  ;;  %v11360_v32 = vld [vmem:[#allocation3 + $0x178] sm:$0xff] }
 0x328   : > { %v4866_v47 = vrot.slane %v4864_v12, 7  ;;  %v4556_v62 = vadd.f32 %v13687_v4, %v4521_v3  ;;  %v5570_v42 = vpack.c.b16 %v5552_v44, %v5551_v41  ;;  %v3100_v45 = vadd.f32 %v13556_v36, %v15491_v29  ;;  %7670 = vmatpush.bf16.msra.mxu2 %v11360_v32 }
 0x329   : > { %v3379_v54 = vpop.f32.mrf.mxu2  ;;  %v6098_v2 = vrot.slane %v6096_v14, 4  ;;  %v6097_v11 = vsel %vm12183_vm5, %v10718_v27, %v6096_v14  ;;  %v5050_v14 = vld [vmem:[#allocation2 + $0xbc] sm:$0x1] }
 0x32a   : > { %v4869_v51 = vor.u32 %v4867_v28, %v4866_v47  ;;  %v4588_v1 = vmax.f32 %v4556_v62, 0.0  ;;  %v3414_v6 = vadd.f32 %v3379_v54, %v15490_v0  ;;  %v4061_v59 = vpop.f32.mrf.mxu3  ;;  %v6156_v28 = vunpack.c.l.b16 %v6097_v11  ;;  %v11289_v11 = vld [vmem:[#allocation2 + $0x60] sm:$0xff] }
 0x32b   : > { %v6100_v46 = vsel %vm12183_vm5, %v6098_v2, %v6099_v35  ;;  %v4870_v20 = vrot.slane %v4866_v47, 4 }
 0x32c   : > { %v5047_v63 = vsel %vm13076_vm12, %v4869_v51, %v5046_v25  ;;  %v4620_v9 = vpack.c.bf16 %v4588_v1, %v4588_v1  ;;  %v4096_v49 = vadd.f32 %v4061_v59, %v3414_v6  ;;  %v4489_v8 = vpop.f32.mrf.mxu0  ;;  %v13815_v10 = vld [vmem:[#allocation2 + $0xac] sm:$0xf]  ;;  %v6157_v62 = vunpack.c.l.b16 %v6100_v46 }
 0x32d   : > { %5048 = vst [vmem:[#allocation2 + $0xb4] sm:$0xf] %v5047_v63  ;;  %v13819_v24 = vpop.f32.mrf.mxu1  ;;  %v5487_v52 = vshll.u32 %v13815_v10, 16  ;;  %v13824_v22 = vld [vmem:[#allocation2 + $0xb0] sm:$0x1]  ;;  %v5491_v56 = vshrl.u32 %v13815_v10, 16  ;;  %v5484_v51 = vor.u32 %v5483_v50, %v5480_v37 }
 0x32e   : > { %v4872_v12 = vshrl.u32 %v4620_v9, 16  ;;  %v4522_v3 = vadd.f32 %v4487_v58, %v4096_v49  ;;  %v4875_v25 = vshll.u32 %v4620_v9, 16  ;;  %v5497_v1 = vshll.u32 %v13824_v22, 16  ;;  %v11329_v37 = vld [vmem:[#allocation2 + $0x6c] sm:$0xff] }
 0x32f   : > { %v5489_v18 = vrot.slane %v5487_v52, 5  ;;  %v5493_v41 = vrot.slane %v5491_v56, 4  ;;  %v13831_v0 = vpack.c.b16 %v6157_v62, %v6156_v28  ;;  %v5485_v46 = vrot.slane %v5484_v51, 4  ;;  %v11384_v56 = vld [vmem:[#allocation3 + $0x1b8] sm:$0xff] }
 0x330   : > { %v4874_v44 = vrot.slane %v4872_v12, 7  ;;  %v4557_v54 = vadd.f32 %v13687_v4, %v4522_v3  ;;  %5710 = vmatmul.bf16.gmra.mxu1 %v5570_v42  ;;  %v5499_v3 = vrot.slane %v5497_v1, 5  ;;  %7985 = vmatpush.bf16.msra.mxu3 %v11384_v56  ;;  %v11400_v56 = vld [vmem:[#allocation3 + $0x238] sm:$0xff] }
 0x331   : > { %v3381_v58 = vpop.f32.mrf.mxu2  ;;  %v5494_v35 = vor.u32 %v5493_v41, %v5489_v18  ;;  %v5490_v28 = vsel %vm11880_vm2, %v5485_v46, %v5489_v18  ;;  %9093 = vmatpush.bf16.msra.mxu1 %v11400_v56 }
 0x332   : > { %v4877_v6 = vor.u32 %v4875_v25, %v4874_v44  ;;  %v4879_v36 = vrot.slane %v4874_v44, 4  ;;  %v4589_v59 = vmax.f32 %v4557_v54, 0.0  ;;  %v3415_v27 = vadd.f32 %v3381_v58, %v3100_v45  ;;  %v4063_v2 = vpop.f32.mrf.mxu3 }
 0x333   : > { %v5495_v12 = vrot.slane %v5494_v35, 4 }
 0x334   : > { %v4878_v42 = vsel %vm13122_vm14, %v4870_v20, %v4877_v6  ;;  %v5051_v47 = vsel %vm12936_vm8, %v4879_v36, %v5050_v14  ;;  %v4621_v63 = vpack.c.bf16 %v4589_v59, %v4589_v59  ;;  %v4097_v9 = vadd.f32 %v4063_v2, %v3415_v27  ;;  %v13837_v49 = vpop.f32.mrf.mxu0  ;;  %v5090_v50 = vld [vmem:[#allocation2 + $0xb4] sm:$0xf]  ;;  %v5053_v14 = vld [vmem:[#allocation2 + $0xc0] sm:$0xf] }
 0x335   : > { %5049 = vst [vmem:[#allocation2 + $0xb8] sm:$0xf] %v4878_v42  ;;  %v13839_v52 = vpop.f32.mrf.mxu1  ;;  %v5500_v62 = vsel %vm11880_vm2, %v5495_v12, %v5499_v3  ;;  %v5502_v44 = vshrl.u32 %v5090_v50, 16  ;;  %v5505_v25 = vshll.u32 %v5090_v50, 16  ;;  %v5553_v6 = vunpack.c.l.b16 %v5490_v28 }
 0x336   : > { %5052 = vst [vmem:[#allocation2 + $0xbc] sm:$0x1] %v5051_v47  ;;  %v4881_v29 = vshrl.u32 %v4621_v63, 16  ;;  %v4523_v45 = vadd.f32 %v4489_v8, %v4097_v9  ;;  %5918 = vmatmul.bf16.gmra.mxu2 %v11289_v11  ;;  %v4884_v41 = vshll.u32 %v4621_v63, 16  ;;  %v5554_v20 = vunpack.c.l.b16 %v5500_v62 }
 0x337   : > { %6296 = vmatmul.bf16.gmra.mxu3 %v13754_v19  ;;  %6610 = vmatmul.bf16.gmra.mxu0 %v11329_v37  ;;  %v5504_v18 = vrot.slane %v5502_v44, 4  ;;  %v5507_v36 = vrot.slane %v5505_v25, 5 }
 0x338   : > { %v4883_v54 = vrot.slane %v4881_v29, 7  ;;  %v4558_v32 = vadd.f32 %v13687_v4, %v4523_v45  ;;  %v5571_v35 = vpack.c.b16 %v5554_v20, %v5553_v6  ;;  %v5057_v29 = vld [vmem:[#allocation2 + $0xc8] sm:$0x1]  ;;  %v11290_v6 = vld [vmem:[#allocation2 + $0x6c] sm:$0xff] }
 0x339   : > { %v5879_v8 = vpop.f32.mrf.mxu2  ;;  %v5508_v28 = vor.u32 %v5507_v36, %v5504_v18 }
 0x33a   : > { %v4886_v58 = vor.u32 %v4884_v41, %v4883_v54  ;;  %v4590_v51 = vmax.f32 %v4558_v32, 0.0  ;;  %v5880_v19 = vadd.f32 %v5879_v8, %v13584_v17  ;;  %v6257_v1 = vpop.f32.mrf.mxu3  ;;  %v4887_v44 = vrot.slane %v4883_v54, 4  ;;  %v13872_v54 = vld [vmem:[#allocation2 + $0x10] sm:$0xf] }
 0x33b   : > { %v5509_v36 = vrot.slane %v5508_v28, 4 }
 0x33c   : > { %v5054_v59 = vsel %vm13076_vm12, %v4886_v58, %v5053_v14  ;;  %v4622_v27 = vpack.c.bf16 %v4590_v51, %v4590_v51  ;;  %v13850_v2 = vadd.f32 %v6257_v1, %v5880_v19  ;;  %v13852_v4 = vpop.f32.mrf.mxu0  ;;  %v13854_v42 = vld [vmem:[#allocation2 + $0xb8] sm:$0xf] }
 0x33d   : > { %5055 = vst [vmem:[#allocation2 + $0xc0] sm:$0xf] %v5054_v59  ;;  %v13856_v47 = vpop.f32.mrf.mxu1  ;;  %v13858_v63 = vld [vmem:[#allocation2 + $0xbc] sm:$0x1]  ;;  %v5511_v17 = vshll.u32 %v13854_v42, 16  ;;  %v5515_v9 = vshrl.u32 %v13854_v42, 16 }
 0x33e   : > { %v4889_v11 = vshrl.u32 %v4622_v27, 16  ;;  %v5521_v46 = vshll.u32 %v13858_v63, 16  ;;  %v4892_v3 = vshll.u32 %v4622_v27, 16 }
 0x33f   : > { %v5513_v37 = vrot.slane %v5511_v17, 5  ;;  %v5517_v50 = vrot.slane %v5515_v9, 4  ;;  %v6762_v17 = vshrl.u32 %v13872_v54, 16 }
 0x340   : > { %v4891_v12 = vrot.slane %v4889_v11, 7  ;;  %5715 = vmatmul.bf16.gmra.mxu1 %v5571_v35  ;;  %v5523_v8 = vrot.slane %v5521_v46, 5  ;;  %v6758_v35 = vshll.u32 %v13872_v54, 16 }
 0x341   : > { %v5881_v45 = vpop.f32.mrf.mxu2  ;;  %v5518_v62 = vor.u32 %v5517_v50, %v5513_v37  ;;  %v5514_v27 = vsel %vm11880_vm2, %v5509_v36, %v5513_v37  ;;  %v6752_v50 = vshll.u32 %v6683_v26, 16 }
 0x342   : > { %v4894_v25 = vor.u32 %v4892_v3, %v4891_v12  ;;  %v4896_v41 = vrot.slane %v4891_v12, 4  ;;  %v5882_v32 = vadd.f32 %v5881_v45, %v13610_v23  ;;  %v6259_v20 = vpop.f32.mrf.mxu3  ;;  %v11330_v23 = vld [vmem:[#allocation2 + $0x78] sm:$0xff]  ;;  %v5555_v3 = vunpack.c.l.b16 %v5514_v27 }
 0x343   : > { %v5519_v14 = vrot.slane %v5518_v62, 4  ;;  %v6760_v56 = vrot.slane %v6758_v35, 5  ;;  %v6751_v62 = vrot.slane %v6749_v21, 4  ;;  %v11291_v27 = vld [vmem:[#allocation2 + $0x78] sm:$0xff]  ;;  %v11331_v21 = vld [vmem:[#allocation2 + $0x84] sm:$0xff] }
 0x344   : > { %v4895_v58 = vsel %vm13122_vm14, %v4887_v44, %v4894_v25  ;;  %v5058_v51 = vsel %vm12936_vm8, %v4896_v41, %v5057_v29  ;;  %v13868_v19 = vadd.f32 %v6259_v20, %v5882_v32  ;;  %v13870_v1 = vpop.f32.mrf.mxu0  ;;  %v6764_v29 = vrot.slane %v6762_v17, 4  ;;  %v13890_v25 = vld [vmem:[#allocation2 + $0x14] sm:$0x1]  ;;  %v6686_v32 = vld [vmem:[#allocation2 + $0x18] sm:$0xf]  ;;  %v11359_v20 = vld [vmem:[#allocation3 + $0x170] sm:$0xff] }
 0x345   : > { %15492 = vst [vmem:[#allocation10_spill] sm:$0xff] %v13870_v1  ;;  %v13874_v18 = vpop.f32.mrf.mxu1  ;;  %v5524_v59 = vsel %vm11880_vm2, %v5519_v14, %v5523_v8  ;;  %v6754_v44 = vrot.slane %v6752_v50, 5  ;;  %v6768_v8 = vshll.u32 %v13890_v25, 16  ;;  %7671 = vmatpush.bf16.msra.mxu2 %v11359_v20  ;;  %v6773_v36 = vshrl.u32 %v6686_v32, 16  ;;  %v8790_v1 = vld [vmem:[#allocation2 + $0x30] sm:$0xe] }
 0x346   : > { %5056 = vst [vmem:[#allocation2 + $0xc4] sm:$0xf] %v4895_v58  ;;  %5923 = vmatmul.bf16.gmra.mxu2 %v11290_v6  ;;  %v5556_v9 = vunpack.c.l.b16 %v5524_v59  ;;  %v6765_v41 = vor.u32 %v6764_v29, %v6760_v56  ;;  %v13893_v58 = vld [vmem:[#allocation2 + $0x1c] sm:$0xf]  ;;  %v6776_v35 = vshll.u32 %v6686_v32, 16 }
 0x347   : > { %5059 = vst [vmem:[#allocation2 + $0xc8] sm:$0x1] %v5058_v51  ;;  %6301 = vmatmul.bf16.gmra.mxu3 %v13793_v61  ;;  %6615 = vmatmul.bf16.gmra.mxu0 %v11330_v23  ;;  %v6755_v14 = vor.u32 %v6754_v44, %v6751_v62  ;;  %v6782_v17 = vshll.u32 %v13893_v58, 16 }
 0x348   : > { %v5572_v61 = vpack.c.b16 %v5556_v9, %v5555_v3  ;;  %v6766_v23 = vrot.slane %v6765_v41, 4  ;;  %v6786_v9 = vshrl.u32 %v13893_v58, 16  ;;  %v6778_v62 = vrot.slane %v6776_v35, 5 }
 0x349   : > { %v5884_v11 = vpop.f32.mrf.mxu2  ;;  %v6756_v50 = vrot.slane %v6755_v14, 4  ;;  %v13910_v44 = vrot.slane %v6782_v17, 5  ;;  %v11391_v17 = vld [vmem:[#allocation3 + $0x1f0] sm:$0xff] }
 0x34a   : > { %v5885_v46 = vadd.f32 %v5884_v11, %v13636_v7  ;;  %v6262_v12 = vpop.f32.mrf.mxu3  ;;  %v6788_v41 = vrot.slane %v6786_v9, 4  ;;  %8668 = vmatpush.bf16.msra.mxu0 %v11391_v17 }
 0x34b   : > { %v6761_v3 = vsel %vm11880_vm2, %v6756_v50, %v6760_v56 }
 0x34c   : > { %v13884_v45 = vadd.f32 %v6262_v12, %v5885_v46  ;;  %v13886_v28 = vpop.f32.mrf.mxu0  ;;  %v6770_v46 = vrot.slane %v6768_v8, 5  ;;  %v6103_v12 = vrot.slane %v13704_v43, 5  ;;  %v5970_v8 = vld [vmem:[#allocation2 + $0x84] sm:$0xe] }
 0x34d   : > { %15494 = vst [vmem:[#allocation12_spill] sm:$0xff] %v13886_v28  ;;  %v13888_v37 = vpop.f32.mrf.mxu1  ;;  %v11334_v28 = vld [vmem:[#allocation2 + $0xa8] sm:$0xff] }
 0x34e   : > { %15493 = vst [vmem:[#allocation11_spill] sm:$0xff] %v13884_v45  ;;  %v6771_v29 = vsel %vm11880_vm2, %v6766_v23, %v6770_v46  ;;  %v6105_v14 = vrot.slane %v6103_v12, 4  ;;  %v6106_v23 = vrot.slane %v13706_v55, 5  ;;  %v7366_v46 = vld [vmem:[#allocation2 + $0x18] sm:$0xe] }
 0x34f   : > { %v7133_v43 = vunpack.c.l.b16 %v6771_v29  ;;  %v11399_v29 = vld [vmem:[#allocation3 + $0x230] sm:$0xff] }
 0x350   : > { %5720 = vmatmul.bf16.gmra.mxu1 %v5572_v61  ;;  %v6775_v61 = vrot.slane %v6773_v36, 4 }
 0x351   : > { %v5886_v7 = vpop.f32.mrf.mxu2  ;;  %9094 = vmatpush.bf16.msra.mxu1 %v11399_v29 }
 0x352   : > { %v5887_v51 = vadd.f32 %v5886_v7, %v13667_v16  ;;  %v6264_v6 = vpop.f32.mrf.mxu3  ;;  %v11383_v16 = vld [vmem:[#allocation3 + $0x1b0] sm:$0xff]  ;;  %v6779_v36 = vor.u32 %v6778_v62, %v6775_v61  ;;  %v7455_v61 = vrot.slane %v13893_v58, 5 }
 0x353   : > { %7986 = vmatpush.bf16.msra.mxu3 %v11383_v16 }
 0x354   : > { %v13896_v59 = vadd.f32 %v6264_v6, %v5887_v51  ;;  %v13898_v26 = vpop.f32.mrf.mxu0  ;;  %v6688_v51 = vld [vmem:[#allocation2 + $0x20] sm:$0x1] }
 0x355   : > { %15496 = vst [vmem:[#allocation14_spill] sm:$0xff] %v13898_v26  ;;  %v13902_v11 = vpop.f32.mrf.mxu1  ;;  %v6792_v50 = vshll.u32 %v6688_v51, 16  ;;  %v7458_v58 = vrot.slane %v6688_v51, 5  ;;  %v6110_v51 = vrot.slane %v13747_v53, 5 }
 0x356   : > { %15495 = vst [vmem:[#allocation13_spill] sm:$0xff] %v13896_v59  ;;  %5928 = vmatmul.bf16.gmra.mxu2 %v11291_v27  ;;  %v6789_v27 = vor.u32 %v6788_v41, %v13910_v44 }
 0x357   : > { %6306 = vmatmul.bf16.gmra.mxu3 %v13831_v0  ;;  %6620 = vmatmul.bf16.gmra.mxu0 %v11331_v21  ;;  %v7132_v0 = vunpack.c.l.b16 %v6761_v3  ;;  %v6107_v21 = vsel %vm12183_vm5, %v6105_v14, %v6106_v23  ;;  %v6780_v3 = vrot.slane %v6779_v36, 4  ;;  %v7457_v36 = vrot.slane %v7455_v61, 4 }
 0x358   : > { %v6790_v55 = vrot.slane %v6789_v27, 4  ;;  %v6159_v41 = vunpack.c.l.b16 %v6107_v21  ;;  %v6112_v53 = vrot.slane %v6110_v51, 4 }
 0x359   : > { %v5889_v32 = vpop.f32.mrf.mxu2  ;;  %v7164_v9 = vpack.c.b16 %v7133_v43, %v7132_v0  ;;  %v6785_v14 = vsel %vm11880_vm2, %v6780_v3, %v13910_v44  ;;  %v6794_v0 = vrot.slane %v6792_v50, 5  ;;  %v7459_v29 = vsel %vm12183_vm5, %v7457_v36, %v7458_v58 }
 0x35a   : > { %v5890_v20 = vadd.f32 %v5889_v32, %v13692_v15  ;;  %v6267_v7 = vpop.f32.mrf.mxu3  ;;  %v10719_v15 = vrot.slane %v5970_v8, 9  ;;  %v6689_v32 = vld [vmem:[#allocation2 + $0x24] sm:$0xf]  ;;  %v6690_v8 = vld [vmem:[#allocation2 + $0x28] sm:$0xf] }
 0x35b   : > { %v6800_v21 = vshll.u32 %v6689_v32, 16  ;;  %v6810_v3 = vshrl.u32 %v6690_v8, 16 }
 0x35c   : > { %v13913_v6 = vadd.f32 %v6267_v7, %v5890_v20  ;;  %v13915_v56 = vpop.f32.mrf.mxu0  ;;  %v6104_v16 = vsel %vm12183_vm5, %v10719_v15, %v6103_v12  ;;  %v10885_v20 = vrot.slane %v7366_v46, 9  ;;  %v6797_v15 = vshrl.u32 %v6689_v32, 16  ;;  %v11332_v46 = vld [vmem:[#allocation2 + $0x90] sm:$0xff] }
 0x35d   : > { %15498 = vst [vmem:[#allocation17_spill] sm:$0xff] %v13915_v56  ;;  %v13919_v35 = vpop.f32.mrf.mxu1  ;;  %v6158_v12 = vunpack.c.l.b16 %v6104_v16  ;;  %v6806_v16 = vshll.u32 %v6690_v8, 16 }
 0x35e   : > { %15497 = vst [vmem:[#allocation16_spill] sm:$0xff] %v13913_v6  ;;  %v7456_v23 = vsel %vm12183_vm5, %v10885_v20, %v7455_v61  ;;  %v11294_v6 = vld [vmem:[#allocation2 + $0x9c] sm:$0xff] }
 0x35f   : > { %v6179_v50 = vpack.c.b16 %v6159_v41, %v6158_v12  ;;  %v7560_v61 = vunpack.c.l.b16 %v7456_v23  ;;  %v6802_v41 = vrot.slane %v6800_v21, 5  ;;  %v6812_v12 = vrot.slane %v6810_v3, 4  ;;  %v6691_v23 = vld [vmem:[#allocation2 + $0x2c] sm:$0x1] }
 0x360   : > { %7252 = vmatmul.bf16.vlgmr.msrb.gmra.mxu1 %v7164_v9  ;;  %v11292_v9 = vld [vmem:[#allocation2 + $0x84] sm:$0xff] }
 0x361   : > { %v5891_v62 = vpop.f32.mrf.mxu2 }
 0x362   : > { %v5892_v7 = vadd.f32 %v5891_v62, %v13714_v31  ;;  %v6269_v43 = vpop.f32.mrf.mxu3  ;;  %v6795_v31 = vsel %vm11880_vm2, %v6790_v55, %v6794_v0  ;;  %v7561_v62 = vunpack.c.l.b16 %v7459_v29  ;;  %v7134_v55 = vunpack.c.l.b16 %v6785_v14 }
 0x363   : > { %v7135_v20 = vunpack.c.l.b16 %v6795_v31  ;;  %v13945_v0 = vrot.slane %v6806_v16, 5  ;;  %v6113_v14 = vrot.slane %v13749_v34, 5  ;;  %v6693_v34 = vld [vmem:[#allocation2 + $0x34] sm:$0xf] }
 0x364   : > { %v13932_v27 = vadd.f32 %v6269_v43, %v5892_v7  ;;  %v13934_v17 = vpop.f32.mrf.mxu0  ;;  %v13943_v7 = vpack.c.b16 %v7561_v62, %v7560_v61  ;;  %v6799_v43 = vrot.slane %v6797_v15, 4  ;;  %v7462_v15 = vrot.slane %v6690_v8, 5  ;;  %v11358_v8 = vld [vmem:[#allocation3 + $0x168] sm:$0xff] }
 0x365   : > { %15500 = vst [vmem:[#allocation19_spill] sm:$0xff] %v13934_v17  ;;  %v13938_v44 = vpop.f32.mrf.mxu1  ;;  %v7165_v29 = vpack.c.b16 %v7135_v20, %v7134_v55  ;;  %v6813_v61 = vor.u32 %v6812_v12, %v13945_v0  ;;  %v6114_v62 = vsel %vm12183_vm5, %v6112_v53, %v6113_v14  ;;  %7672 = vmatpush.bf16.msra.mxu2 %v11358_v8 }
 0x366   : > { %15499 = vst [vmem:[#allocation15_spill] sm:$0xff] %v13932_v27  ;;  %5933 = vmatmul.bf16.gmra.mxu2 %v11292_v9  ;;  %v5971_v9 = vld [vmem:[#allocation2 + $0x90] sm:$0xe]  ;;  %v6803_v3 = vor.u32 %v6802_v41, %v6799_v43  ;;  %v7464_v55 = vrot.slane %v7462_v15, 4  ;;  %v14026_v27 = vld [vmem:[#allocation2 + $0xc] sm:$0xe] }
 0x367   : > { %6311 = vmatmul.bf16.gmra.mxu3 %v6179_v50  ;;  %6625 = vmatmul.bf16.gmra.mxu0 %v11332_v46  ;;  %v10886_v46 = vrot.slane %v7367_v57, 9  ;;  %v10720_v16 = vrot.slane %v5971_v9, 9  ;;  %v7368_v41 = vld [vmem:[#allocation2 + $0x30] sm:$0xe] }
 0x368   : > { %v6804_v9 = vrot.slane %v6803_v3, 4  ;;  %v10887_v17 = vrot.slane %v7368_v41, 9  ;;  %v11293_v3 = vld [vmem:[#allocation2 + $0x90] sm:$0xff] }
 0x369   : > { %v5894_v32 = vpop.f32.mrf.mxu2  ;;  %v7463_v20 = vsel %vm12183_vm5, %v10886_v46, %v7462_v15  ;;  %v6111_v57 = vsel %vm12183_vm5, %v10720_v16, %v6110_v51 }
 0x36a   : > { %v5895_v36 = vadd.f32 %v5894_v32, %v13735_v13  ;;  %v6272_v58 = vpop.f32.mrf.mxu3  ;;  %v6816_v13 = vshll.u32 %v6691_v23, 16  ;;  %v7465_v32 = vrot.slane %v6691_v23, 5  ;;  %v7562_v53 = vunpack.c.l.b16 %v7463_v20 }
 0x36b   : > { %v6814_v23 = vrot.slane %v6813_v61, 4  ;;  %v6160_v51 = vunpack.c.l.b16 %v6111_v57 }
 0x36c   : > { %v13948_v50 = vadd.f32 %v6272_v58, %v5895_v36  ;;  %v13950_v31 = vpop.f32.mrf.mxu0  ;;  %v6692_v36 = vld [vmem:[#allocation2 + $0x30] sm:$0xf]  ;;  %v7466_v43 = vsel %vm12183_vm5, %v7464_v55, %v7465_v32  ;;  %v6161_v58 = vunpack.c.l.b16 %v6114_v62  ;;  %v6818_v60 = vrot.slane %v6816_v13, 5  ;;  %v11333_v13 = vld [vmem:[#allocation2 + $0x9c] sm:$0xff] }
 0x36d   : > { %15502 = vst [vmem:[#allocation18_spill] sm:$0xff] %v13950_v31  ;;  %v13953_v21 = vpop.f32.mrf.mxu1  ;;  %v7563_v14 = vunpack.c.l.b16 %v7466_v43  ;;  %v6821_v31 = vshrl.u32 %v6692_v36, 16  ;;  %v7469_v55 = vrot.slane %v6693_v34, 5  ;;  %v6824_v20 = vshll.u32 %v6692_v36, 16 }
 0x36e   : > { %15501 = vst [vmem:[#allocation20_spill] sm:$0xff] %v13948_v50  ;;  %v6830_v43 = vshll.u32 %v6693_v34, 16  ;;  %v6180_v61 = vpack.c.b16 %v6161_v58, %v6160_v51  ;;  %v11382_v50 = vld [vmem:[#allocation3 + $0x1a8] sm:$0xff]  ;;  %v6809_v36 = vsel %vm11880_vm2, %v6804_v9, %v13945_v0 }
 0x36f   : > { %v13967_v16 = vpack.c.b16 %v7563_v14, %v7562_v53  ;;  %v7470_v57 = vsel %vm12183_vm5, %v10887_v17, %v7469_v55  ;;  %v7471_v8 = vrot.slane %v7469_v55, 4  ;;  %v6117_v53 = vrot.slane %v13786_v38, 5  ;;  %7987 = vmatpush.bf16.msra.mxu3 %v11382_v50 }
 0x370   : > { %7257 = vmatmul.bf16.gmra.mxu1 %v7165_v29  ;;  %v13965_v29 = vld [vmem:[#allocation2 + $0x38] sm:$0x1]  ;;  %v6823_v14 = vrot.slane %v6821_v31, 4  ;;  %v6826_v17 = vrot.slane %v6824_v20, 5  ;;  %v13986_v38 = vrot.slane %v6830_v43, 5  ;;  %v7136_v31 = vunpack.c.l.b16 %v6809_v36 }
 0x371   : > { %v5896_v12 = vpop.f32.mrf.mxu2  ;;  %v7472_v41 = vrot.slane %v13965_v29, 5  ;;  %v6119_v9 = vrot.slane %v6117_v53, 4  ;;  %v5972_v20 = vld [vmem:[#allocation2 + $0x9c] sm:$0xe] }
 0x372   : > { %v5897_v46 = vadd.f32 %v5896_v12, %v13757_v30  ;;  %v6274_v15 = vpop.f32.mrf.mxu3  ;;  %v6834_v30 = vshrl.u32 %v6693_v34, 16  ;;  %v6819_v34 = vsel %vm11880_vm2, %v6814_v23, %v6818_v60  ;;  %v7369_v23 = vld [vmem:[#allocation2 + $0x3c] sm:$0xe]  ;;  %v6827_v43 = vor.u32 %v6826_v17, %v6823_v14 }
 0x373   : > { %v7473_v58 = vsel %vm12183_vm5, %v7471_v8, %v7472_v41  ;;  %v7137_v0 = vunpack.c.l.b16 %v6819_v34  ;;  %v13996_v41 = vld [vmem:[#allocation2 + $0x44] sm:$0x1]  ;;  %v10888_v36 = vrot.slane %v7369_v23, 9  ;;  %v6840_v14 = vshll.u32 %v13965_v29, 16 }
 0x374   : > { %v13969_v32 = vadd.f32 %v6274_v15, %v5897_v46  ;;  %v13971_v62 = vpop.f32.mrf.mxu0  ;;  %v6695_v46 = vld [vmem:[#allocation2 + $0x3c] sm:$0xf]  ;;  %v7564_v15 = vunpack.c.l.b16 %v7470_v57  ;;  %v7565_v51 = vunpack.c.l.b16 %v7473_v58  ;;  %v6120_v57 = vrot.slane %v13788_v5, 5  ;;  %v11398_v29 = vld [vmem:[#allocation3 + $0x228] sm:$0xff] }
 0x375   : > { %15504 = vst [vmem:[#allocation23_spill] sm:$0xff] %v13971_v62  ;;  %v13973_v12 = vpop.f32.mrf.mxu1  ;;  %v13989_v62 = vld [vmem:[#allocation2 + $0x40] sm:$0xf]  ;;  %v6845_v50 = vshrl.u32 %v6695_v46, 16  ;;  %v6828_v23 = vrot.slane %v6827_v43, 4  ;;  %9095 = vmatpush.bf16.msra.mxu1 %v11398_v29  ;;  %v11381_v29 = vld [vmem:[#allocation3 + $0x1a0] sm:$0xff] }
 0x376   : > { %15503 = vst [vmem:[#allocation22_spill] sm:$0xff] %v13969_v32  ;;  %5938 = vmatmul.bf16.gmra.mxu2 %v11293_v3  ;;  %v6836_v3 = vrot.slane %v6834_v30, 4  ;;  %v13991_v60 = vpack.c.b16 %v7565_v51, %v7564_v15  ;;  %v6848_v30 = vshll.u32 %v6695_v46, 16  ;;  %v11390_v51 = vld [vmem:[#allocation3 + $0x1e8] sm:$0xff]  ;;  %v6121_v5 = vsel %vm12183_vm5, %v6119_v9, %v6120_v57  ;;  %7988 = vmatpush.bf16.msra.mxu3 %v11381_v29  ;;  %v14070_v29 = vld [vmem:[#allocation2 + $0x2c] sm:$0x1] }
 0x377   : > { %6316 = vmatmul.bf16.gmra.mxu3 %v6180_v61  ;;  %6630 = vmatmul.bf16.gmra.mxu0 %v11333_v13 }
 0x378   : > { %v6837_v15 = vor.u32 %v6836_v3, %v13986_v38  ;;  %8669 = vmatpush.bf16.msra.mxu0 %v11390_v51  ;;  %v14017_v9 = vrot.slane %v6848_v30, 5  ;;  %v6163_v51 = vunpack.c.l.b16 %v6121_v5 }
 0x379   : > { %v5899_v55 = vpop.f32.mrf.mxu2 }
 0x37a   : > { %v5900_v61 = vadd.f32 %v5899_v55, %v13782_v33  ;;  %v6277_v13 = vpop.f32.mrf.mxu3  ;;  %v13998_v33 = vld [vmem:[#allocation2 + $0x1c] sm:$0xf]  ;;  %v7476_v55 = vrot.slane %v13989_v62, 5 }
 0x37b   : > { %v8871_v3 = vrot.slane %v13998_v33, 5 }
 0x37c   : > { %v13993_v8 = vadd.f32 %v6277_v13, %v5900_v61  ;;  %v14002_v58 = vpop.f32.mrf.mxu0  ;;  %v7166_v61 = vpack.c.b16 %v7137_v0, %v7136_v31  ;;  %v10721_v13 = vrot.slane %v5972_v20, 9  ;;  %v7477_v17 = vsel %vm12183_vm5, %v10888_v36, %v7476_v55  ;;  %v14019_v20 = vld [vmem:[#allocation2 + $0x20] sm:$0x1] }
 0x37d   : > { %v14000_v34 = vpop.f32.mrf.mxu1  ;;  %15506 = vst [vmem:[#allocation26_spill] sm:$0xff] %v14002_v58  ;;  %v7478_v46 = vrot.slane %v7476_v55, 4  ;;  %v7479_v58 = vrot.slane %v13996_v41, 5  ;;  %v14015_v31 = vrot.slane %v6845_v50, 4  ;;  %v6838_v36 = vrot.slane %v6837_v15, 4 }
 0x37e   : > { %15505 = vst [vmem:[#allocation21_spill] sm:$0xff] %v13993_v8  ;;  %v8788_v8 = vld [vmem:[#allocation2 + $0x18] sm:$0xe]  ;;  %v6118_v0 = vsel %vm12183_vm5, %v10721_v13, %v6117_v53  ;;  %v6854_v55 = vshll.u32 %v13989_v62, 16  ;;  %v7566_v53 = vunpack.c.l.b16 %v7477_v17  ;;  %v6858_v13 = vshrl.u32 %v13989_v62, 16 }
 0x37f   : > { %v7480_v32 = vsel %vm12183_vm5, %v7478_v46, %v7479_v58  ;;  %v11060_v43 = vrot.slane %v8788_v8, 9  ;;  %v6162_v30 = vunpack.c.l.b16 %v6118_v0  ;;  %v8873_v26 = vrot.slane %v8871_v3, 4  ;;  %v14031_v46 = vld [vmem:[#allocation2 + $0x4c] sm:$0xf]  ;;  %v11357_v0 = vld [vmem:[#allocation3 + $0x160] sm:$0xff] }
 0x380   : > { %7262 = vmatmul.bf16.gmra.mxu1 %v7166_v61  ;;  %v7567_v50 = vunpack.c.l.b16 %v7480_v32  ;;  %v8874_v15 = vrot.slane %v14019_v20, 5  ;;  %v6842_v58 = vrot.slane %v6840_v14, 5  ;;  %v6833_v17 = vsel %vm11880_vm2, %v6828_v23, %v13986_v38  ;;  %7673 = vmatpush.bf16.msra.mxu2 %v11357_v0 }
 0x381   : > { %v5901_v57 = vpop.f32.mrf.mxu2  ;;  %v8872_v32 = vsel %vm12183_vm5, %v11060_v43, %v8871_v3  ;;  %v6181_v62 = vpack.c.b16 %v6163_v51, %v6162_v30  ;;  %v6124_v3 = vrot.slane %v13815_v10, 5  ;;  %v6851_v51 = vor.u32 %v14017_v9, %v14015_v31  ;;  %v8789_v9 = vld [vmem:[#allocation2 + $0x24] sm:$0xe]  ;;  %v5973_v10 = vld [vmem:[#allocation2 + $0xa8] sm:$0xe] }
 0x382   : > { %v5902_v61 = vadd.f32 %v5901_v57, %v13802_v48  ;;  %v6279_v56 = vpop.f32.mrf.mxu3  ;;  %v14033_v48 = vpack.c.b16 %v7567_v50, %v7566_v53  ;;  %v11389_v57 = vld [vmem:[#allocation3 + $0x1e0] sm:$0xff]  ;;  %v8875_v14 = vsel %vm12183_vm5, %v8873_v26, %v8874_v15  ;;  %v14050_v53 = vld [vmem:[#allocation2 + $0x28] sm:$0xf]  ;;  %v6860_v50 = vrot.slane %v6858_v13, 4 }
 0x383   : > { %v8982_v38 = vunpack.c.l.b16 %v8875_v14  ;;  %v7370_v26 = vld [vmem:[#allocation2 + $0x48] sm:$0xe]  ;;  %v7138_v43 = vunpack.c.l.b16 %v6833_v17  ;;  %v7483_v31 = vrot.slane %v14031_v46, 5  ;;  %8670 = vmatpush.bf16.msra.mxu0 %v11389_v57  ;;  %v8878_v13 = vrot.slane %v14050_v53, 5 }
 0x384   : > { %v14029_v5 = vadd.f32 %v6279_v56, %v5902_v61  ;;  %15508 = vst [vmem:[#allocation27_spill] sm:$0xff] %v14033_v48  ;;  %v6864_v56 = vshll.u32 %v13996_v41, 16  ;;  %v6843_v61 = vsel %vm11880_vm2, %v6838_v36, %v6842_v58  ;;  %v14052_v23 = vpop.f32.mrf.mxu0  ;;  %v14054_v41 = vrot.slane %v6854_v55, 5  ;;  %v14056_v36 = vld [vmem:[#allocation2 + $0x48] sm:$0xf]  ;;  %v11388_v48 = vld [vmem:[#allocation3 + $0x1d8] sm:$0xff] }
 0x385   : > { %v14037_v8 = vpop.f32.mrf.mxu1  ;;  %15509 = vst [vmem:[#allocation29_spill] sm:$0xff] %v14052_v23  ;;  %v7139_v15 = vunpack.c.l.b16 %v6843_v61  ;;  %v6126_v17 = vrot.slane %v6124_v3, 4  ;;  %v14068_v0 = vrot.slane %v6851_v51, 4  ;;  %v10889_v14 = vrot.slane %v7370_v26, 9 }
 0x386   : > { %15507 = vst [vmem:[#allocation28_spill] sm:$0xff] %v14029_v5  ;;  %5943 = vmatmul.bf16.gmra.mxu2 %v11294_v6  ;;  %v8981_v6 = vunpack.c.l.b16 %v8872_v32  ;;  %v14060_v58 = vrot.slane %v6864_v56, 5  ;;  %v6127_v56 = vrot.slane %v13824_v22, 5  ;;  %v6861_v57 = vor.u32 %v6860_v50, %v14054_v41  ;;  %v11356_v5 = vld [vmem:[#allocation3 + $0x158] sm:$0xff] }
 0x387   : > { %6321 = vmatmul.bf16.gmra.mxu3 %v6181_v62  ;;  %6635 = vmatmul.bf16.gmra.mxu0 %v11334_v28  ;;  %v14062_v28 = vld [vmem:[#allocation2 + $0x50] sm:$0x1]  ;;  %v6869_v61 = vshrl.u32 %v14056_v36, 16  ;;  %v7485_v51 = vrot.slane %v7483_v31, 4  ;;  %v7167_v26 = vpack.c.b16 %v7139_v15, %v7138_v43  ;;  %v6872_v50 = vshll.u32 %v14056_v36, 16 }
 0x388   : > { %v14064_v55 = vpack.c.b16 %v8982_v38, %v8981_v6  ;;  %v11061_v38 = vrot.slane %v8789_v9, 9  ;;  %v11380_v22 = vld [vmem:[#allocation3 + $0x198] sm:$0xff]  ;;  %v8880_v59 = vrot.slane %v8878_v13, 4  ;;  %v8881_v9 = vrot.slane %v14070_v29, 5  ;;  %7674 = vmatpush.bf16.msra.mxu2 %v11356_v5  ;;  %8671 = vmatpush.bf16.msra.mxu0 %v11388_v48 }
 0x389   : > { %v5904_v30 = vpop.f32.mrf.mxu2  ;;  %7989 = vmatpush.bf16.msra.mxu3 %v11380_v22  ;;  %v14103_v22 = vld [vmem:[#allocation2 + $0x38] sm:$0x1] }
 0x38a   : > { %15510 = vst [vmem:[#allocation9_spill] sm:$0xff] %v14064_v55  ;;  %v5905_v32 = vadd.f32 %v5904_v30, %v13819_v24  ;;  %v6282_v62 = vpop.f32.mrf.mxu3  ;;  %v14077_v55 = vld [vmem:[#allocation2 + $0x34] sm:$0xf]  ;;  %v7484_v24 = vsel %vm12183_vm5, %v10889_v14, %v7483_v31  ;;  %v7486_v30 = vrot.slane %v14062_v28, 5  ;;  %v8879_v14 = vsel %vm12183_vm5, %v11061_v38, %v8878_v13  ;;  %v11387_v13 = vld [vmem:[#allocation3 + $0x1d0] sm:$0xff] }
 0x38b   : > { %v7568_v43 = vunpack.c.l.b16 %v7484_v24  ;;  %v8882_v36 = vsel %vm12183_vm5, %v8880_v59, %v8881_v9  ;;  %v8885_v5 = vrot.slane %v14077_v55, 5  ;;  %v6882_v59 = vshrl.u32 %v14031_v46, 16 }
 0x38c   : > { %v14075_v6 = vadd.f32 %v6282_v62, %v5905_v32  ;;  %v10722_v32 = vrot.slane %v5973_v10, 9  ;;  %v6128_v62 = vsel %vm12183_vm5, %v6126_v17, %v6127_v56  ;;  %v7487_v31 = vsel %vm12183_vm5, %v7485_v51, %v7486_v30  ;;  %v11355_v56 = vld [vmem:[#allocation3 + $0x150] sm:$0xff]  ;;  %v14100_v38 = vpop.f32.mrf.mxu0  ;;  %8672 = vmatpush.bf16.msra.mxu0 %v11387_v13  ;;  %v11378_v13 = vld [vmem:[#allocation3 + $0x188] sm:$0xff] }
 0x38d   : > { %v14082_v23 = vpop.f32.mrf.mxu1  ;;  %v7569_v15 = vunpack.c.l.b16 %v7487_v31  ;;  %v6878_v17 = vshll.u32 %v14031_v46, 16  ;;  %v11379_v51 = vld [vmem:[#allocation3 + $0x190] sm:$0xff]  ;;  %15512 = vst [vmem:[#allocation31_spill] sm:$0xff] %v14100_v38  ;;  %v6165_v30 = vunpack.c.l.b16 %v6128_v62  ;;  %v15434_v31 = vrot.slane %v13872_v54, 5  ;;  %7675 = vmatpush.bf16.msra.mxu2 %v11355_v56 }
 0x38e   : > { %15511 = vst [vmem:[#allocation30_spill] sm:$0xff] %v14075_v6  ;;  %v14092_v6 = vrot.slane %v6861_v57, 4  ;;  %v6125_v10 = vsel %vm12183_vm5, %v10722_v32, %v6124_v3  ;;  %v8984_v57 = vunpack.c.l.b16 %v8882_v36  ;;  %v8983_v3 = vunpack.c.l.b16 %v8879_v14  ;;  %7990 = vmatpush.bf16.msra.mxu3 %v11379_v51 }
 0x38f   : > { %v6857_v32 = vsel %vm11880_vm2, %v14068_v0, %v14054_v41  ;;  %v11062_v36 = vrot.slane %v8790_v1, 9  ;;  %v6164_v38 = vunpack.c.l.b16 %v6125_v10  ;;  %v14113_v62 = vrot.slane %v6869_v61, 4 }
 0x390   : > { %7267 = vmatmul.bf16.gmra.mxu1 %v7167_v26  ;;  %v14105_v26 = vpack.c.b16 %v7569_v15, %v7568_v43  ;;  %v14115_v46 = vrot.slane %v6872_v50, 5  ;;  %v14117_v43 = vpack.c.b16 %v8984_v57, %v8983_v3  ;;  %v11335_v15 = vld [vmem:[#allocation2 + $0xb4] sm:$0xff]  ;;  %v8887_v0 = vrot.slane %v8885_v5, 4  ;;  %v11354_v57 = vld [vmem:[#allocation3 + $0x148] sm:$0xff] }
 0x391   : > { %v5906_v24 = vpop.f32.mrf.mxu2  ;;  %v8886_v41 = vsel %vm12183_vm5, %v11062_v36, %v8885_v5  ;;  %v8888_v1 = vrot.slane %v14103_v22, 5  ;;  %v6182_v61 = vpack.c.b16 %v6165_v30, %v6164_v38  ;;  %v6867_v50 = vsel %vm11880_vm2, %v14092_v6, %v14060_v58  ;;  %v8106_v38 = vld [vmem:[#allocation2 + $0x18] sm:$0xf]  ;;  %7676 = vmatpush.bf16.msra.mxu2 %v11354_v57  ;;  %v14160_v57 = vld [vmem:[#allocation2 + $0x5c] sm:$0x1] }
 0x392   : > { %15513 = vst [vmem:[#allocation32_spill] sm:$0xff] %v14105_v26  ;;  %v5907_v48 = vadd.f32 %v5906_v24, %v13839_v52  ;;  %v6284_v9 = vpop.f32.mrf.mxu3  ;;  %v11295_v52 = vld [vmem:[#allocation2 + $0xa8] sm:$0xff]  ;;  %v14130_v56 = vrot.slane %v6878_v17, 5  ;;  %v14132_v51 = vrot.slane %v6882_v59, 4  ;;  %v11386_v24 = vld [vmem:[#allocation3 + $0x1c8] sm:$0xff]  ;;  %v14134_v3 = vunpack.c.l.b16 %v6857_v32  ;;  %7991 = vmatpush.bf16.msra.mxu3 %v11378_v13  ;;  %v11377_v5 = vld [vmem:[#allocation3 + $0x180] sm:$0xff] }
 0x393   : > { %15514 = vst [vmem:[#allocation33_spill] sm:$0xff] %v14117_v43  ;;  %v8889_v30 = vsel %vm12183_vm5, %v8887_v0, %v8888_v1  ;;  %v8181_v58 = vshll.u32 %v13998_v33, 16  ;;  %v8185_v6 = vshrl.u32 %v13998_v33, 16  ;;  %v14142_v17 = vld [vmem:[#allocation2 + $0x58] sm:$0xf]  ;;  %v7141_v36 = vunpack.c.l.b16 %v6867_v50  ;;  %8673 = vmatpush.bf16.msra.mxu0 %v11386_v24 }
 0x394   : > { %v14119_v14 = vadd.f32 %v6284_v9, %v5907_v48  ;;  %v7371_v59 = vld [vmem:[#allocation2 + $0x54] sm:$0xe]  ;;  %v8985_v9 = vunpack.c.l.b16 %v8886_v41  ;;  %v8986_v32 = vunpack.c.l.b16 %v8889_v30  ;;  %v11353_v48 = vld [vmem:[#allocation3 + $0x140] sm:$0xff]  ;;  %v14154_v0 = vld [vmem:[#allocation2 + $0x40] sm:$0xf]  ;;  %v7490_v41 = vrot.slane %v14142_v17, 5  ;;  %v14167_v26 = vpop.f32.mrf.mxu0 }
 0x395   : > { %v14124_v10 = vpop.f32.mrf.mxu1  ;;  %v8172_v50 = vshrl.u32 %v8106_v38, 16  ;;  %v8175_v43 = vshll.u32 %v8106_v38, 16  ;;  %15520 = vst [vmem:[#allocation37_spill] sm:$0xff] %v14167_v26  ;;  %v14170_v24 = vrot.slane %v8181_v58, 5  ;;  %v8892_v45 = vrot.slane %v14154_v0, 5  ;;  %7677 = vmatpush.bf16.msra.mxu2 %v11353_v48 }
 0x396   : > { %15515 = vst [vmem:[#allocation34_spill] sm:$0xff] %v14119_v14  ;;  %5948 = vmatmul.bf16.gmra.mxu2 %v11295_v52  ;;  %v6875_v52 = vor.u32 %v14115_v46, %v14113_v62  ;;  %v6885_v62 = vor.u32 %v14132_v51, %v14130_v56  ;;  %v6888_v46 = vshll.u32 %v14062_v28, 16  ;;  %v10890_v14 = vrot.slane %v7371_v59, 9  ;;  %v5974_v51 = vld [vmem:[#allocation2 + $0xb4] sm:$0xe]  ;;  %7992 = vmatpush.bf16.msra.mxu3 %v11377_v5 }
 0x397   : > { %15516 = vst [vmem:[#allocation35_spill] sm:$0xff] %v14124_v10  ;;  %6326 = vmatmul.bf16.gmra.mxu3 %v6182_v61  ;;  %6640 = vmatmul.bf16.gmra.mxu0 %v11335_v15  ;;  %v15517_v15 = vrot.slane %v14026_v27, 9  ;;  %v11385_v61 = vld [vmem:[#allocation3 + $0x1c0] sm:$0xff]  ;;  %v14162_v27 = vpack.c.b16 %v8986_v32, %v8985_v9  ;;  %v6134_v28 = vrot.slane %v13858_v63, 5  ;;  %v8187_v10 = vrot.slane %v8185_v6, 4 }
 0x398   : > { %v7492_v32 = vrot.slane %v7490_v41, 4  ;;  %v7493_v38 = vrot.slane %v14160_v57, 5  ;;  %v6876_v63 = vrot.slane %v6875_v52, 4  ;;  %8674 = vmatpush.bf16.msra.mxu0 %v11385_v61  ;;  %v15521_v58 = vrot.slane %v13872_v54, 5  ;;  %v14187_v26 = vld [vmem:[#allocation2 + $0x44] sm:$0x1] }
 0x399   : > { %v14152_v33 = vsel %vm12183_vm5, %v15517_v15, %v15434_v31  ;;  %v5909_v1 = vpop.f32.mrf.mxu2  ;;  %15518 = vst [vmem:[#allocation36_spill] sm:$0xff] %v14162_v27  ;;  %v15519_v15 = vrot.slane %v13854_v42, 5  ;;  %v8177_v48 = vrot.slane %v8175_v43, 5  ;;  %v6890_v27 = vrot.slane %v6888_v46, 5 }
 0x39a   : > { %v5910_v13 = vadd.f32 %v5909_v1, %v13856_v47  ;;  %v6287_v30 = vpop.f32.mrf.mxu3  ;;  %v7491_v47 = vsel %vm12183_vm5, %v10890_v14, %v7490_v41  ;;  %v7168_v1 = vpack.c.b16 %v7141_v36, %v14134_v3  ;;  %v7450_v6 = vrot.slane %v15521_v58, 4 }
 0x39b   : > { %v6133_v31 = vrot.slane %v15519_v15, 4  ;;  %v8174_v15 = vrot.slane %v8172_v50, 4  ;;  %v7494_v14 = vsel %vm12183_vm5, %v7492_v32, %v7493_v38  ;;  %v6886_v41 = vrot.slane %v6885_v62, 4  ;;  %v11397_v50 = vld [vmem:[#allocation3 + $0x220] sm:$0xff] }
 0x39c   : > { %v14173_v9 = vadd.f32 %v6287_v30, %v5910_v13  ;;  %v8791_v13 = vld [vmem:[#allocation2 + $0x3c] sm:$0xe]  ;;  %v10723_v30 = vrot.slane %v5974_v51, 9  ;;  %v7570_v3 = vunpack.c.l.b16 %v7491_v47  ;;  %v7571_v36 = vunpack.c.l.b16 %v7494_v14  ;;  %9096 = vmatpush.bf16.msra.mxu1 %v11397_v50 }
 0x39d   : > { %v14178_v59 = vpop.f32.mrf.mxu1  ;;  %v6135_v5 = vsel %vm12183_vm5, %v6133_v31, %v6134_v28  ;;  %v15522_v54 = vrot.slane %v13854_v42, 5  ;;  %v8188_v61 = vor.u32 %v8187_v10, %v14170_v24  ;;  %v8109_v31 = vld [vmem:[#allocation2 + $0x24] sm:$0xf]  ;;  %v11063_v43 = vrot.slane %v8791_v13, 9 }
 0x39e   : > { %v8894_v51 = vrot.slane %v8892_v45, 4  ;;  %v6167_v32 = vunpack.c.l.b16 %v6135_v5  ;;  %v15523_v62 = vrot.slane %v13890_v25, 5  ;;  %v8191_v47 = vshll.u32 %v14019_v20, 16 }
 0x39f   : > { %v6132_v52 = vsel %vm12183_vm5, %v10723_v30, %v15522_v54  ;;  %v14201_v42 = vpack.c.b16 %v7571_v36, %v7570_v3  ;;  %v8178_v10 = vor.u32 %v8177_v48, %v8174_v15  ;;  %v8893_v58 = vsel %vm12183_vm5, %v11063_v43, %v8892_v45  ;;  %v14216_v45 = vpop.f32.mrf.mxu0  ;;  %v11336_v54 = vld [vmem:[#allocation2 + $0xc0] sm:$0xff] }
 0x3a0   : > { %7272 = vmatmul.bf16.gmra.mxu1 %v7168_v1  ;;  %v14198_v46 = vsel %vm12183_vm5, %v7450_v6, %v15523_v62  ;;  %v8895_v13 = vrot.slane %v14187_v26, 5  ;;  %v6166_v30 = vunpack.c.l.b16 %v6132_v52  ;;  %v6881_v25 = vsel %vm11880_vm2, %v6876_v63, %v14130_v56  ;;  %15525 = vst [vmem:[#allocation39_spill] sm:$0xff] %v14216_v45  ;;  %v7372_v62 = vld [vmem:[#allocation2 + $0x60] sm:$0xe] }
 0x3a1   : > { %v5911_v28 = vpop.f32.mrf.mxu2  ;;  %v6891_v20 = vsel %vm11880_vm2, %v6886_v41, %v6890_v27  ;;  %v8196_v6 = vshrl.u32 %v8109_v31, 16  ;;  %v8189_v14 = vrot.slane %v8188_v61, 4  ;;  %v8199_v15 = vshll.u32 %v8109_v31, 16  ;;  %v6701_v61 = vld [vmem:[#allocation2 + $0x54] sm:$0xf] }
 0x3a2   : > { %v5912_v38 = vadd.f32 %v5911_v28, %v13874_v18  ;;  %v6289_v1 = vpop.f32.mrf.mxu3  ;;  %v11296_v18 = vld [vmem:[#allocation2 + $0xb4] sm:$0xff]  ;;  %v8896_v48 = vsel %vm12183_vm5, %v8894_v51, %v8895_v13  ;;  %v6183_v36 = vpack.c.b16 %v6167_v32, %v6166_v30  ;;  %v8205_v56 = vshll.u32 %v14050_v53, 16  ;;  %v14226_v32 = vld [vmem:[#allocation2 + $0x64] sm:$0xf] }
 0x3a3   : > { %v8987_v63 = vunpack.c.l.b16 %v8893_v58  ;;  %v8988_v52 = vunpack.c.l.b16 %v8896_v48  ;;  %v7558_v27 = vunpack.c.l.b16 %v14152_v33  ;;  %v8179_v41 = vrot.slane %v8178_v10, 4 }
 0x3a4   : > { %v14212_v5 = vadd.f32 %v6289_v1, %v5912_v38  ;;  %v8193_v50 = vrot.slane %v8191_v47, 5  ;;  %v8209_v31 = vshrl.u32 %v14050_v53, 16  ;;  %v7559_v43 = vunpack.c.l.b16 %v14198_v46  ;;  %v14232_v47 = vld [vmem:[#allocation2 + $0x4c] sm:$0xf] }
 0x3a5   : > { %v14218_v3 = vpop.f32.mrf.mxu1  ;;  %v6902_v51 = vshll.u32 %v14142_v17, 16  ;;  %v6906_v28 = vshrl.u32 %v14142_v17, 16  ;;  %v14228_v38 = vpack.c.b16 %v8988_v52, %v8987_v63  ;;  %v7142_v1 = vunpack.c.l.b16 %v6881_v25  ;;  %v14244_v25 = vld [vmem:[#allocation2 + $0x68] sm:$0x1] }
 0x3a6   : > { %15524 = vst [vmem:[#allocation38_spill] sm:$0xff] %v14212_v5  ;;  %5953 = vmatmul.bf16.gmra.mxu2 %v11296_v18  ;;  %v7143_v33 = vunpack.c.l.b16 %v6891_v20  ;;  %v14230_v10 = vrot.slane %v8196_v6, 4  ;;  %v7497_v53 = vrot.slane %v14226_v32, 5  ;;  %v8184_v46 = vsel %vm11880_vm2, %v8179_v41, %v14170_v24 }
 0x3a7   : > { %6331 = vmatmul.bf16.gmra.mxu3 %v6183_v36  ;;  %6645 = vmatmul.bf16.gmra.mxu0 %v11336_v54  ;;  %15526 = vst [vmem:[#allocation40_spill] sm:$0xff] %v14228_v38  ;;  %v8194_v17 = vsel %vm11880_vm2, %v8189_v14, %v8193_v50  ;;  %v14240_v13 = vrot.slane %v8199_v15, 5  ;;  %v14242_v30 = vrot.slane %v8205_v56, 5  ;;  %v6893_v18 = vshrl.u32 %v6701_v61, 16 }
 0x3a8   : > { %v6896_v48 = vshll.u32 %v6701_v61, 16  ;;  %v10891_v36 = vrot.slane %v7372_v62, 9  ;;  %v14247_v54 = vrot.slane %v6902_v51, 5  ;;  %v6908_v63 = vrot.slane %v6906_v28, 4  ;;  %v8792_v62 = vld [vmem:[#allocation2 + $0x48] sm:$0xe] }
 0x3a9   : > { %v5914_v58 = vpop.f32.mrf.mxu2  ;;  %v8211_v52 = vrot.slane %v8209_v31, 4  ;;  %v8899_v24 = vrot.slane %v14232_v47, 5  ;;  %v7499_v15 = vrot.slane %v7497_v53, 4  ;;  %v7500_v56 = vrot.slane %v14244_v25, 5 }
 0x3aa   : > { %v5915_v20 = vadd.f32 %v5914_v58, %v13888_v37  ;;  %v6292_v6 = vpop.f32.mrf.mxu3  ;;  %v7498_v14 = vsel %vm12183_vm5, %v10891_v36, %v7497_v53  ;;  %v7169_v37 = vpack.c.b16 %v7143_v33, %v7142_v1  ;;  %v7590_v58 = vpack.c.b16 %v7559_v43, %v7558_v27  ;;  %v14264_v36 = vld [vmem:[#allocation2 + $0x50] sm:$0x1] }
 0x3ab   : > { %v8555_v61 = vunpack.c.l.b16 %v8184_v46  ;;  %v8556_v51 = vunpack.c.l.b16 %v8194_v17  ;;  %v6895_v38 = vrot.slane %v6893_v18, 4  ;;  %v6898_v28 = vrot.slane %v6896_v48, 5  ;;  %v8112_v43 = vld [vmem:[#allocation2 + $0x30] sm:$0xf] }
 0x3ac   : > { %v14250_v41 = vadd.f32 %v6292_v6, %v5915_v20  ;;  %v7501_v31 = vsel %vm12183_vm5, %v7499_v15, %v7500_v56  ;;  %v14259_v20 = vpop.f32.mrf.mxu0  ;;  %v6909_v6 = vor.u32 %v6908_v63, %v14247_v54  ;;  %v8202_v53 = vor.u32 %v14240_v13, %v14230_v10 }
 0x3ad   : > { %v14255_v50 = vpop.f32.mrf.mxu1  ;;  %15528 = vst [vmem:[#allocation42_spill] sm:$0xff] %v14259_v20  ;;  %v7573_v1 = vunpack.c.l.b16 %v7501_v31  ;;  %v8212_v27 = vor.u32 %v8211_v52, %v14242_v30  ;;  %v8229_v33 = vshll.u32 %v14077_v55, 16  ;;  %v11064_v46 = vrot.slane %v8792_v62, 9 }
 0x3ae   : > { %15527 = vst [vmem:[#allocation41_spill] sm:$0xff] %v14250_v41  ;;  %v7572_v41 = vunpack.c.l.b16 %v7498_v14  ;;  %v8901_v17 = vrot.slane %v8899_v24, 4  ;;  %v6912_v48 = vshll.u32 %v14160_v57, 16  ;;  %v8215_v63 = vshll.u32 %v14070_v29, 16 }
 0x3af   : > { %v8233_v15 = vshrl.u32 %v14077_v55, 16  ;;  %v6899_v56 = vor.u32 %v6898_v28, %v6895_v38  ;;  %v8900_v52 = vsel %vm12183_vm5, %v11064_v46, %v8899_v24  ;;  %v8587_v62 = vpack.c.b16 %v8556_v51, %v8555_v61  ;;  %v11361_v38 = vld [vmem:[#allocation2 + $0x18] sm:$0xff] }
 0x3b0   : > { %7277 = vmatmul.bf16.gmra.mxu1 %v7169_v37  ;;  %v14271_v10 = vpack.c.b16 %v7573_v1, %v7572_v41  ;;  %v8902_v37 = vrot.slane %v14264_v36, 5  ;;  %v6910_v31 = vrot.slane %v6909_v6, 4  ;;  %v8220_v20 = vshrl.u32 %v8112_v43, 16 }
 0x3b1   : > { %v5916_v18 = vpop.f32.mrf.mxu2  ;;  %v8223_v45 = vshll.u32 %v8112_v43, 16  ;;  %v8213_v29 = vrot.slane %v8212_v27, 4  ;;  %v14279_v5 = vrot.slane %v8229_v33, 5  ;;  %v6914_v41 = vrot.slane %v6912_v48, 5  ;;  %v6704_v43 = vld [vmem:[#allocation2 + $0x60] sm:$0xf] }
 0x3b2   : > { %v5917_v13 = vadd.f32 %v5916_v18, %v13902_v11  ;;  %v6294_v14 = vpop.f32.mrf.mxu3  ;;  %v8903_v55 = vsel %vm12183_vm5, %v8901_v17, %v8902_v37  ;;  %v8235_v28 = vrot.slane %v8233_v15, 4  ;;  %v8989_v24 = vunpack.c.l.b16 %v8900_v52  ;;  %v14289_v17 = vld [vmem:[#allocation2 + $0x70] sm:$0xf]  ;;  %v7373_v18 = vld [vmem:[#allocation2 + $0x6c] sm:$0xe] }
 0x3b3   : > { %v8990_v1 = vunpack.c.l.b16 %v8903_v55  ;;  %v6900_v61 = vrot.slane %v6899_v56, 4  ;;  %v8203_v51 = vrot.slane %v8202_v53, 4  ;;  %v8217_v6 = vrot.slane %v8215_v63, 5  ;;  %v14299_v15 = vld [vmem:[#allocation2 + $0x58] sm:$0xf] }
 0x3b4   : > { %v14277_v57 = vadd.f32 %v6294_v14, %v5917_v13  ;;  %v6915_v27 = vsel %vm11880_vm2, %v6910_v31, %v6914_v41  ;;  %v6926_v33 = vshll.u32 %v14226_v32, 16  ;;  %v6930_v46 = vshrl.u32 %v14226_v32, 16  ;;  %v14302_v14 = vpop.f32.mrf.mxu0 }
 0x3b5   : > { %v14283_v11 = vpop.f32.mrf.mxu1  ;;  %v14291_v48 = vpack.c.b16 %v8990_v1, %v8989_v24  ;;  %v8208_v53 = vsel %vm11880_vm2, %v8203_v51, %v14242_v30  ;;  %v8222_v63 = vrot.slane %v8220_v20, 4  ;;  %v7504_v13 = vrot.slane %v14289_v17, 5  ;;  %15531 = vst [vmem:[#allocation45_spill] sm:$0xff] %v14302_v14 }
 0x3b6   : > { %15529 = vst [vmem:[#allocation43_spill] sm:$0xff] %v14277_v57  ;;  %7678 = vmatmul.bf16.vlgmr.msra.gmra.mxu2 %v7590_v58  ;;  %v6905_v58 = vsel %vm11880_vm2, %v6900_v61, %v14247_v54  ;;  %v8218_v56 = vsel %vm11880_vm2, %v8213_v29, %v8217_v6  ;;  %v6917_v52 = vshrl.u32 %v6704_v43, 16  ;;  %v8225_v37 = vrot.slane %v8223_v45, 5  ;;  %v14307_v54 = vld [vmem:[#allocation2 + $0x74] sm:$0x1] }
 0x3b7   : > { %7993 = vmatmul.bf16.vlgmr.msra.gmra.mxu3 %v11361_v38  ;;  %8675 = vmatmul.bf16.vlgmr.msra.gmra.mxu0 %v8587_v62  ;;  %15530 = vst [vmem:[#allocation44_spill] sm:$0xff] %v14291_v48  ;;  %v8236_v62 = vor.u32 %v8235_v28, %v14279_v5  ;;  %v7145_v20 = vunpack.c.l.b16 %v6915_v27  ;;  %v6920_v55 = vshll.u32 %v6704_v43, 16  ;;  %v10892_v38 = vrot.slane %v7373_v18, 9  ;;  %v8793_v18 = vld [vmem:[#allocation2 + $0x54] sm:$0xe] }
 0x3b8   : > { %v7144_v41 = vunpack.c.l.b16 %v6905_v58  ;;  %v14310_v24 = vrot.slane %v6926_v33, 5  ;;  %v6932_v1 = vrot.slane %v6930_v46, 4  ;;  %v8906_v61 = vrot.slane %v14299_v15, 5 }
 0x3b9   : > { %v5919_v32 = vpop.f32.mrf.mxu2  ;;  %v7505_v45 = vsel %vm12183_vm5, %v10892_v38, %v7504_v13  ;;  %v7506_v29 = vrot.slane %v7504_v13, 4  ;;  %v7507_v28 = vrot.slane %v14307_v54, 5  ;;  %v8558_v27 = vunpack.c.l.b16 %v8218_v56  ;;  %v14324_v38 = vld [vmem:[#allocation2 + $0x5c] sm:$0x1] }
 0x3ba   : > { %v5920_v31 = vadd.f32 %v5919_v32, %v13919_v35  ;;  %v6297_v30 = vpop.f32.mrf.mxu3  ;;  %v8557_v35 = vunpack.c.l.b16 %v8208_v53  ;;  %v8239_v43 = vshll.u32 %v14103_v22, 16  ;;  %v7170_v33 = vpack.c.b16 %v7145_v20, %v7144_v41  ;;  %v11396_v53 = vld [vmem:[#allocation3 + $0x218] sm:$0xff]  ;;  %v8115_v56 = vld [vmem:[#allocation2 + $0x3c] sm:$0xf] }
 0x3bb   : > { %v6919_v58 = vrot.slane %v6917_v52, 4  ;;  %v6922_v46 = vrot.slane %v6920_v55, 5  ;;  %v7508_v32 = vsel %vm12183_vm5, %v7506_v29, %v7507_v28  ;;  %v7574_v13 = vunpack.c.l.b16 %v7505_v45  ;;  %9097 = vmatpush.bf16.msra.mxu1 %v11396_v53 }
 0x3bc   : > { %v14313_v51 = vadd.f32 %v6297_v30, %v5920_v31  ;;  %v6933_v31 = vor.u32 %v6932_v1, %v14310_v24  ;;  %v8226_v30 = vor.u32 %v8225_v37, %v8222_v63  ;;  %v7575_v48 = vunpack.c.l.b16 %v7508_v32  ;;  %v14333_v29 = vpop.f32.mrf.mxu0 }
 0x3bd   : > { %v14318_v6 = vpop.f32.mrf.mxu1  ;;  %v11065_v14 = vrot.slane %v8793_v18, 9  ;;  %v8908_v22 = vrot.slane %v8906_v61, 4  ;;  %v8588_v20 = vpack.c.b16 %v8558_v27, %v8557_v35  ;;  %v6936_v52 = vshll.u32 %v14244_v25, 16 }
 0x3be   : > { %15532 = vst [vmem:[#allocation46_spill] sm:$0xff] %v14313_v51  ;;  %v8237_v51 = vrot.slane %v8236_v62, 4  ;;  %v8241_v55 = vrot.slane %v8239_v43, 5  ;;  %v14327_v41 = vpack.c.b16 %v7575_v48, %v7574_v13  ;;  %v6923_v37 = vor.u32 %v6922_v46, %v6919_v58 }
 0x3bf   : > { %v8907_v45 = vsel %vm12183_vm5, %v11065_v14, %v8906_v61  ;;  %v8909_v62 = vrot.slane %v14324_v38, 5  ;;  %v6934_v28 = vrot.slane %v6933_v31, 4  ;;  %v8227_v18 = vrot.slane %v8226_v30, 4  ;;  %v11362_v14 = vld [vmem:[#allocation2 + $0x24] sm:$0xff]  ;;  %v6707_v31 = vld [vmem:[#allocation2 + $0x6c] sm:$0xf] }
 0x3c0   : > { %7282 = vmatmul.bf16.gmra.mxu1 %v7170_v33  ;;  %v8244_v35 = vshrl.u32 %v8115_v56, 16  ;;  %v8247_v27 = vshll.u32 %v8115_v56, 16  ;;  %v8242_v48 = vsel %vm11880_vm2, %v8237_v51, %v8241_v55  ;;  %v6938_v61 = vrot.slane %v6936_v52, 5  ;;  %v7374_v56 = vld [vmem:[#allocation2 + $0x78] sm:$0xe] }
 0x3c1   : > { %v5921_v57 = vpop.f32.mrf.mxu2  ;;  %v8257_v33 = vshrl.u32 %v14154_v0, 16  ;;  %v8991_v58 = vunpack.c.l.b16 %v8907_v45  ;;  %v6924_v32 = vrot.slane %v6923_v37, 4  ;;  %v8232_v51 = vsel %vm11880_vm2, %v8227_v18, %v14279_v5 }
 0x3c2   : > { %v5922_v1 = vadd.f32 %v5921_v57, %v13938_v44  ;;  %v6299_v63 = vpop.f32.mrf.mxu3  ;;  %v8253_v44 = vshll.u32 %v14154_v0, 16  ;;  %v8910_v57 = vsel %vm12183_vm5, %v8908_v22, %v8909_v62  ;;  %v6939_v30 = vsel %vm11880_vm2, %v6934_v28, %v6938_v61  ;;  %v14353_v0 = vld [vmem:[#allocation2 + $0x7c] sm:$0xf]  ;;  %v14367_v62 = vld [vmem:[#allocation2 + $0x80] sm:$0x1] }
 0x3c3   : > { %v8992_v46 = vunpack.c.l.b16 %v8910_v57  ;;  %v6950_v13 = vshll.u32 %v14289_v17, 16  ;;  %v6954_v53 = vshrl.u32 %v14289_v17, 16  ;;  %v14360_v5 = vunpack.c.l.b16 %v8242_v48 }
 0x3c4   : > { %v14335_v25 = vadd.f32 %v6299_v63, %v5922_v1  ;;  %v8246_v52 = vrot.slane %v8244_v35, 4  ;;  %v7511_v55 = vrot.slane %v14353_v0, 5  ;;  %v6941_v63 = vshrl.u32 %v6707_v31, 16 }
 0x3c5   : > { %v14342_v43 = vpop.f32.mrf.mxu1  ;;  %v14355_v22 = vpack.c.b16 %v8992_v46, %v8991_v58  ;;  %v8249_v37 = vrot.slane %v8247_v27, 5  ;;  %v14365_v17 = vrot.slane %v8253_v44, 5  ;;  %v8259_v45 = vrot.slane %v8257_v33, 4 }
 0x3c6   : > { %15533 = vst [vmem:[#allocation47_spill] sm:$0xff] %v14335_v25  ;;  %7683 = vmatmul.bf16.gmra.mxu2 %v13943_v7  ;;  %v6929_v7 = vsel %vm11880_vm2, %v6924_v32, %v14310_v24  ;;  %v7147_v57 = vunpack.c.l.b16 %v6939_v30  ;;  %v6944_v24 = vshll.u32 %v6707_v31, 16  ;;  %v10893_v48 = vrot.slane %v7374_v56, 9  ;;  %v14378_v32 = vpop.f32.mrf.mxu0  ;;  %v8794_v56 = vld [vmem:[#allocation2 + $0x60] sm:$0xe] }
 0x3c7   : > { %7998 = vmatmul.bf16.gmra.mxu3 %v11362_v14  ;;  %8680 = vmatmul.bf16.gmra.mxu0 %v8588_v20  ;;  %15534 = vst [vmem:[#allocation48_spill] sm:$0xff] %v14355_v22  ;;  %v14362_v20 = vld [vmem:[#allocation2 + $0x64] sm:$0xf]  ;;  %v7146_v14 = vunpack.c.l.b16 %v6929_v7  ;;  %v14370_v35 = vrot.slane %v6950_v13, 5  ;;  %v6956_v61 = vrot.slane %v6954_v53, 4  ;;  %v7513_v44 = vrot.slane %v7511_v55, 4 }
 0x3c8   : > { %v8913_v58 = vrot.slane %v14362_v20, 5  ;;  %v7512_v27 = vsel %vm12183_vm5, %v10893_v48, %v7511_v55  ;;  %v7514_v33 = vrot.slane %v14367_v62, 5  ;;  %15536 = vst [vmem:[#allocation50_spill] sm:$0xff] %v14378_v32  ;;  %v8559_v31 = vunpack.c.l.b16 %v8232_v51  ;;  %v14387_v48 = vld [vmem:[#allocation2 + $0x68] sm:$0x1] }
 0x3c9   : > { %v5924_v1 = vpop.f32.mrf.mxu2  ;;  %v8250_v30 = vor.u32 %v8249_v37, %v8246_v52  ;;  %v8260_v13 = vor.u32 %v8259_v45, %v14365_v17  ;;  %v7171_v53 = vpack.c.b16 %v7147_v57, %v7146_v14  ;;  %v6943_v7 = vrot.slane %v6941_v63, 4  ;;  %v8118_v52 = vld [vmem:[#allocation2 + $0x48] sm:$0xf] }
 0x3ca   : > { %v5925_v28 = vadd.f32 %v5924_v1, %v13953_v21  ;;  %v6302_v18 = vpop.f32.mrf.mxu3  ;;  %v6946_v1 = vrot.slane %v6944_v24, 5  ;;  %v8263_v55 = vshll.u32 %v14187_v26, 16  ;;  %v7576_v22 = vunpack.c.l.b16 %v7512_v27 }
 0x3cb   : > { %v8589_v51 = vpack.c.b16 %v14360_v5, %v8559_v31  ;;  %v11066_v37 = vrot.slane %v8794_v56, 9  ;;  %v8915_v45 = vrot.slane %v8913_v58, 4  ;;  %v6960_v63 = vshll.u32 %v14307_v54, 16 }
 0x3cc   : > { %v14373_v46 = vadd.f32 %v6302_v18, %v5925_v28  ;;  %v7515_v28 = vsel %vm12183_vm5, %v7513_v44, %v7514_v33  ;;  %v6957_v18 = vor.u32 %v6956_v61, %v14370_v35  ;;  %v8251_v24 = vrot.slane %v8250_v30, 4 }
 0x3cd   : > { %v14380_v21 = vpop.f32.mrf.mxu1  ;;  %v8261_v14 = vrot.slane %v8260_v13, 4  ;;  %v6947_v33 = vor.u32 %v6946_v1, %v6943_v7  ;;  %v8914_v27 = vsel %vm12183_vm5, %v11066_v37, %v8913_v58  ;;  %v8265_v56 = vrot.slane %v8263_v55, 5  ;;  %v11363_v58 = vld [vmem:[#allocation2 + $0x30] sm:$0xff]  ;;  %v6710_v37 = vld [vmem:[#allocation2 + $0x78] sm:$0xf] }
 0x3ce   : > { %15535 = vst [vmem:[#allocation49_spill] sm:$0xff] %v14373_v46  ;;  %v7577_v46 = vunpack.c.l.b16 %v7515_v28  ;;  %v6958_v5 = vrot.slane %v6957_v18, 4  ;;  %v8256_v31 = vsel %vm11880_vm2, %v8251_v24, %v14365_v17  ;;  %v8268_v54 = vshrl.u32 %v8118_v52, 16  ;;  %v14419_v24 = vld [vmem:[#allocation2 + $0x88] sm:$0xf] }
 0x3cf   : > { %v6962_v7 = vrot.slane %v6960_v63, 5  ;;  %v8281_v1 = vshrl.u32 %v14232_v47, 16  ;;  %v8993_v28 = vunpack.c.l.b16 %v8914_v27  ;;  %v6948_v17 = vrot.slane %v6947_v33, 4 }
 0x3d0   : > { %7287 = vmatmul.bf16.gmra.mxu1 %v7171_v53  ;;  %v14391_v44 = vpack.c.b16 %v7577_v46, %v7576_v22  ;;  %v8916_v53 = vrot.slane %v14387_v48, 5  ;;  %v8271_v22 = vshll.u32 %v8118_v52, 16  ;;  %v8277_v46 = vshll.u32 %v14232_v47, 16 }
 0x3d1   : > { %v5926_v57 = vpop.f32.mrf.mxu2  ;;  %v8266_v55 = vsel %vm11880_vm2, %v8261_v14, %v8265_v56  ;;  %v14411_v52 = vunpack.c.l.b16 %v8256_v31  ;;  %v6974_v47 = vshll.u32 %v14353_v0, 16  ;;  %v6978_v63 = vshrl.u32 %v14353_v0, 16  ;;  %v14431_v56 = vld [vmem:[#allocation2 + $0x8c] sm:$0x1] }
 0x3d2   : > { %v5927_v61 = vadd.f32 %v5926_v57, %v13973_v12  ;;  %v6304_v26 = vpop.f32.mrf.mxu3  ;;  %v8917_v12 = vsel %vm12183_vm5, %v8915_v45, %v8916_v53  ;;  %v14413_v57 = vpop.f32.mrf.mxu0  ;;  %v6963_v45 = vsel %vm11880_vm2, %v6958_v5, %v6962_v7  ;;  %v6953_v14 = vsel %vm11880_vm2, %v6948_v17, %v14370_v35 }
 0x3d3   : > { %v8994_v18 = vunpack.c.l.b16 %v8917_v12  ;;  %15538 = vst [vmem:[#allocation52_spill] sm:$0xff] %v14413_v57  ;;  %v8273_v33 = vrot.slane %v8271_v22, 5  ;;  %v14427_v53 = vunpack.c.l.b16 %v8266_v55  ;;  %v6965_v5 = vshrl.u32 %v6710_v37, 16 }
 0x3d4   : > { %v14400_v30 = vadd.f32 %v6304_v26, %v5927_v61  ;;  %v8270_v26 = vrot.slane %v8268_v54, 4  ;;  %v14429_v31 = vrot.slane %v8277_v46, 5  ;;  %v8283_v0 = vrot.slane %v8281_v1, 4  ;;  %v14440_v46 = vld [vmem:[#allocation2 + $0x70] sm:$0xf] }
 0x3d5   : > { %v14405_v13 = vpop.f32.mrf.mxu1  ;;  %v14421_v61 = vpack.c.b16 %v8994_v18, %v8993_v28  ;;  %v7149_v7 = vunpack.c.l.b16 %v6963_v45  ;;  %v6968_v28 = vshll.u32 %v6710_v37, 16  ;;  %v6651_v35 = vadd.f32 %v13837_v49, %v13850_v2 }
 0x3d6   : > { %15537 = vst [vmem:[#allocation51_spill] sm:$0xff] %v14400_v30  ;;  %7688 = vmatmul.bf16.gmra.mxu2 %v13967_v16  ;;  %v7375_v16 = vld [vmem:[#allocation2 + $0x84] sm:$0xe]  ;;  %v7148_v54 = vunpack.c.l.b16 %v6953_v14  ;;  %v14436_v22 = vrot.slane %v6974_v47, 5  ;;  %v6980_v17 = vrot.slane %v6978_v63, 4  ;;  %v6967_v37 = vrot.slane %v6965_v5, 4 }
 0x3d7   : > { %8003 = vmatmul.bf16.gmra.mxu3 %v11363_v58  ;;  %8685 = vmatmul.bf16.gmra.mxu0 %v8589_v51  ;;  %15539 = vst [vmem:[#allocation53_spill] sm:$0xff] %v14421_v61  ;;  %v7518_v51 = vrot.slane %v14419_v24, 5  ;;  %v10894_v18 = vrot.slane %v7375_v16, 9  ;;  %v8274_v16 = vor.u32 %v8273_v33, %v8270_v26  ;;  %v8287_v49 = vshll.u32 %v14264_v36, 16  ;;  %v11395_v33 = vld [vmem:[#allocation3 + $0x210] sm:$0xff] }
 0x3d8   : > { %v7172_v47 = vpack.c.b16 %v7149_v7, %v7148_v54  ;;  %v6970_v63 = vrot.slane %v6968_v28, 5  ;;  %v8590_v26 = vpack.c.b16 %v14427_v53, %v14411_v52  ;;  %v14455_v36 = vld [vmem:[#allocation2 + $0x74] sm:$0x1]  ;;  %v6984_v7 = vshll.u32 %v14367_v62, 16  ;;  %9098 = vmatpush.bf16.msra.mxu1 %v11395_v33 }
 0x3d9   : > { %v5929_v27 = vpop.f32.mrf.mxu2  ;;  %v7519_v1 = vsel %vm12183_vm5, %v10894_v18, %v7518_v51  ;;  %v7520_v61 = vrot.slane %v7518_v51, 4  ;;  %v8121_v28 = vld [vmem:[#allocation2 + $0x54] sm:$0xf]  ;;  %v14467_v52 = vrot.slane %v8287_v49, 5 }
 0x3da   : > { %v5930_v12 = vadd.f32 %v5929_v27, %v14000_v34  ;;  %v6307_v58 = vpop.f32.mrf.mxu3  ;;  %v7521_v34 = vrot.slane %v14431_v56, 5  ;;  %v8284_v27 = vor.u32 %v8283_v0, %v14429_v31  ;;  %v7578_v51 = vunpack.c.l.b16 %v7519_v1  ;;  %v14457_v5 = vpop.f32.mrf.mxu0 }
 0x3db   : > { %15541 = vst [vmem:[#allocation55_spill] sm:$0xff] %v14457_v5  ;;  %v14577_v5 = vld [vmem:[#allocation2 + $0x98] sm:$0x1] }
 0x3dc   : > { %v14438_v55 = vadd.f32 %v6307_v58, %v5930_v12  ;;  %v7522_v14 = vsel %vm12183_vm5, %v7520_v61, %v7521_v34  ;;  %v8795_v12 = vld [vmem:[#allocation2 + $0x6c] sm:$0xe]  ;;  %v6981_v58 = vor.u32 %v6980_v17, %v14436_v22  ;;  %v14460_v61 = vrot.slane %v8274_v16, 4 }
 0x3dd   : > { %v7253_v45 = vpop.f32.mrf.mxu1  ;;  %v7579_v18 = vunpack.c.l.b16 %v7522_v14  ;;  %v11067_v54 = vrot.slane %v8795_v12, 9  ;;  %v6971_v34 = vor.u32 %v6970_v63, %v6967_v37  ;;  %v8923_v16 = vrot.slane %v14455_v36, 5  ;;  %v11364_v63 = vld [vmem:[#allocation2 + $0x3c] sm:$0xff] }
 0x3de   : > { %15540 = vst [vmem:[#allocation54_spill] sm:$0xff] %v14438_v55  ;;  %v14447_v2 = vadd.f32 %v7253_v45, %v6651_v35  ;;  %v8920_v55 = vrot.slane %v14440_v46, 5  ;;  %v14465_v45 = vrot.slane %v8284_v27, 4  ;;  %v6982_v53 = vrot.slane %v6981_v58, 4  ;;  %v14477_v27 = vld [vmem:[#allocation2 + $0x7c] sm:$0xf] }
 0x3df   : > { %v14462_v35 = vpack.c.b16 %v7579_v18, %v7578_v51  ;;  %v6652_v14 = vadd.f32 %v13852_v4, %v13868_v19  ;;  %v8301_v37 = vshll.u32 %v14299_v15, 16  ;;  %v6986_v51 = vrot.slane %v6984_v7, 5  ;;  %v6713_v19 = vld [vmem:[#allocation2 + $0x84] sm:$0xf] }
 0x3e0   : > { %7292 = vmatmul.bf16.gmra.mxu1 %v7172_v47  ;;  %v8921_v47 = vsel %vm12183_vm5, %v11067_v54, %v8920_v55  ;;  %v8922_v62 = vrot.slane %v8920_v55, 4  ;;  %v8295_v58 = vshll.u32 %v8121_v28, 16  ;;  %v8305_v18 = vshrl.u32 %v14299_v15, 16 }
 0x3e1   : > { %v5931_v0 = vpop.f32.mrf.mxu2  ;;  %v6972_v4 = vrot.slane %v6971_v34, 4  ;;  %v6998_v7 = vshll.u32 %v14419_v24, 16  ;;  %v7002_v15 = vshrl.u32 %v14419_v24, 16  ;;  %v6989_v24 = vshrl.u32 %v6713_v19, 16 }
 0x3e2   : > { %v5932_v17 = vadd.f32 %v5931_v0, %v14037_v8  ;;  %v6309_v1 = vpop.f32.mrf.mxu3  ;;  %v8292_v8 = vshrl.u32 %v8121_v28, 16  ;;  %v8924_v55 = vsel %vm12183_vm5, %v8922_v62, %v8923_v16  ;;  %v8995_v0 = vunpack.c.l.b16 %v8921_v47  ;;  %v8796_v28 = vld [vmem:[#allocation2 + $0x78] sm:$0xe] }
 0x3e3   : > { %v8996_v54 = vunpack.c.l.b16 %v8924_v55  ;;  %v14496_v47 = vrot.slane %v8301_v37, 5  ;;  %v6992_v16 = vshll.u32 %v6713_v19, 16  ;;  %v14506_v37 = vpop.f32.mrf.mxu0  ;;  %v15545_v55 = vld [vmem:[#allocation11_spill] sm:$0xff] }
 0x3e4   : > { %v14474_v12 = vadd.f32 %v6309_v1, %v5932_v17  ;;  %v6987_v17 = vsel %vm11880_vm2, %v6982_v53, %v6986_v51  ;;  %v8927_v1 = vrot.slane %v14477_v27, 5  ;;  %v14494_v34 = vrot.slane %v8292_v8, 4  ;;  %15544 = vst [vmem:[#allocation58_spill] sm:$0xff] %v14506_v37 }
 0x3e5   : > { %v7255_v49 = vpop.f32.mrf.mxu1  ;;  %v6977_v53 = vsel %vm11880_vm2, %v6972_v4, %v14436_v22  ;;  %v11068_v8 = vrot.slane %v8796_v28, 9  ;;  %v6991_v28 = vrot.slane %v6989_v24, 4 }
 0x3e6   : > { %15542 = vst [vmem:[#allocation56_spill] sm:$0xff] %v14474_v12  ;;  %v14482_v33 = vadd.f32 %v7255_v49, %v6652_v14  ;;  %7693 = vmatmul.bf16.gmra.mxu2 %v13991_v60  ;;  %v8290_v60 = vsel %vm11880_vm2, %v14465_v45, %v14467_v52  ;;  %v8307_v14 = vrot.slane %v8305_v18, 4  ;;  %v14503_v49 = vld [vmem:[#allocation2 + $0x80] sm:$0x1]  ;;  %v7151_v45 = vunpack.c.l.b16 %v6987_v17 }
 0x3e7   : > { %8008 = vmatmul.bf16.gmra.mxu3 %v11364_v63  ;;  %8690 = vmatmul.bf16.gmra.mxu0 %v8590_v26  ;;  %v14498_v26 = vpack.c.b16 %v8996_v54, %v8995_v0  ;;  %v8297_v52 = vrot.slane %v8295_v58, 5  ;;  %v15546_v0 = vld [vmem:[#allocation10_spill] sm:$0xff]  ;;  %v7004_v12 = vrot.slane %v7002_v15, 4  ;;  %v8929_v22 = vrot.slane %v8927_v1, 4 }
 0x3e8   : > { %v6653_v54 = vadd.f32 %v15546_v0, %v15545_v55  ;;  %v7150_v18 = vunpack.c.l.b16 %v6977_v53  ;;  %v8928_v19 = vsel %vm12183_vm5, %v11068_v8, %v8927_v1  ;;  %v8280_v58 = vsel %vm11880_vm2, %v14460_v61, %v14429_v31  ;;  %v8124_v55 = vld [vmem:[#allocation2 + $0x60] sm:$0xf] }
 0x3e9   : > { %15543 = vst [vmem:[#allocation57_spill] sm:$0xff] %v14498_v26  ;;  %v5934_v62 = vpop.f32.mrf.mxu2  ;;  %v14510_v26 = vrot.slane %v6998_v7, 5  ;;  %v8308_v7 = vor.u32 %v8307_v14, %v14496_v47  ;;  %v8311_v53 = vshll.u32 %v14324_v38, 16  ;;  %v8997_v0 = vunpack.c.l.b16 %v8928_v19  ;;  %v15549_v38 = vld [vmem:[#allocation35_spill] sm:$0xff]  ;;  %v14533_v19 = vld [vmem:[#allocation2 + $0x94] sm:$0xf] }
 0x3ea   : > { %v5935_v63 = vadd.f32 %v5934_v62, %v14082_v23  ;;  %v6312_v51 = vpop.f32.mrf.mxu3  ;;  %v8930_v23 = vrot.slane %v14503_v49, 5  ;;  %v6994_v62 = vrot.slane %v6992_v16, 5  ;;  %v8563_v31 = vunpack.c.l.b16 %v8280_v58  ;;  %v14535_v58 = vld [vmem:[#allocation2 + $0x88] sm:$0xf] }
 0x3eb   : > { %v7005_v8 = vor.u32 %v7004_v12, %v14510_v26  ;;  %v8298_v61 = vor.u32 %v8297_v52, %v14494_v34  ;;  %v7008_v14 = vshll.u32 %v14431_v56, 16  ;;  %v15550_v34 = vld [vmem:[#allocation13_spill] sm:$0xff]  ;;  %v15551_v52 = vld [vmem:[#allocation12_spill] sm:$0xff]  ;;  %v8325_v56 = vshll.u32 %v14362_v20, 16 }
 0x3ec   : > { %v14512_v4 = vadd.f32 %v6312_v51, %v5935_v63  ;;  %v7173_v63 = vpack.c.b16 %v7151_v45, %v7150_v18  ;;  %v8931_v1 = vsel %vm12183_vm5, %v8929_v22, %v8930_v23  ;;  %v8564_v51 = vunpack.c.l.b16 %v8290_v60 }
 0x3ed   : > { %v7258_v17 = vpop.f32.mrf.mxu1  ;;  %v6995_v16 = vor.u32 %v6994_v62, %v6991_v28  ;;  %v8309_v45 = vrot.slane %v8308_v7, 4  ;;  %v8313_v60 = vrot.slane %v8311_v53, 5  ;;  %v8316_v23 = vshrl.u32 %v8124_v55, 16  ;;  %v8797_v7 = vld [vmem:[#allocation2 + $0x84] sm:$0xe] }
 0x3ee   : > { %15547 = vst [vmem:[#allocation11_spill] sm:$0xff] %v14512_v4  ;;  %v14522_v15 = vadd.f32 %v7258_v17, %v6653_v54  ;;  %v8998_v4 = vunpack.c.l.b16 %v8931_v1  ;;  %v8591_v12 = vpack.c.b16 %v8564_v51, %v8563_v31  ;;  %v7006_v17 = vrot.slane %v7005_v8, 4  ;;  %v14543_v1 = vpop.f32.mrf.mxu0  ;;  %v11365_v51 = vld [vmem:[#allocation2 + $0x48] sm:$0xff] }
 0x3ef   : > { %v6654_v28 = vadd.f32 %v15551_v52, %v15550_v34  ;;  %15553 = vst [vmem:[#allocation13_spill] sm:$0xff] %v14543_v1  ;;  %v6996_v8 = vrot.slane %v6995_v16, 4  ;;  %v8299_v31 = vrot.slane %v8298_v61, 4  ;;  %v14552_v34 = vld [vmem:[#allocation2 + $0x8c] sm:$0x1]  ;;  %v8934_v52 = vrot.slane %v14535_v58, 5 }
 0x3f0   : > { %7297 = vmatmul.bf16.gmra.mxu1 %v7173_v63  ;;  %v14530_v54 = vpack.c.b16 %v8998_v4, %v8997_v0  ;;  %v8319_v63 = vshll.u32 %v8124_v55, 16  ;;  %v8329_v4 = vshrl.u32 %v14362_v20, 16  ;;  %v7010_v0 = vrot.slane %v7008_v14, 5 }
 0x3f1   : > { %v5936_v24 = vpop.f32.mrf.mxu2  ;;  %v8314_v55 = vsel %vm11880_vm2, %v8309_v45, %v8313_v60  ;;  %v7026_v20 = vshrl.u32 %v14533_v19, 16  ;;  %v8318_v16 = vrot.slane %v8316_v23, 4  ;;  %v11069_v45 = vrot.slane %v8797_v7, 9 }
 0x3f2   : > { %15548 = vst [vmem:[#allocation10_spill] sm:$0xff] %v14530_v54  ;;  %v5937_v18 = vadd.f32 %v5936_v24, %v15549_v38  ;;  %v6314_v22 = vpop.f32.mrf.mxu3  ;;  %v6716_v24 = vld [vmem:[#allocation2 + $0x90] sm:$0xf]  ;;  %v7011_v61 = vsel %vm11880_vm2, %v7006_v17, %v7010_v0  ;;  %v8321_v14 = vrot.slane %v8319_v63, 5  ;;  %v7001_v60 = vsel %vm11880_vm2, %v6996_v8, %v14510_v26  ;;  %v15556_v8 = vld [vmem:[#allocation14_spill] sm:$0xff] }
 0x3f3   : > { %v8937_v1 = vrot.slane %v14552_v34, 5  ;;  %v7153_v63 = vunpack.c.l.b16 %v7011_v61  ;;  %v7028_v0 = vrot.slane %v7026_v20, 4  ;;  %v15555_v26 = vld [vmem:[#allocation16_spill] sm:$0xff]  ;;  %v7152_v37 = vunpack.c.l.b16 %v7001_v60 }
 0x3f4   : > { %v14539_v62 = vadd.f32 %v6314_v22, %v5937_v18  ;;  %v15554_v18 = vld [vmem:[#allocation27_spill] sm:$0xff]  ;;  %v7022_v22 = vshll.u32 %v14533_v19, 16  ;;  %v8335_v60 = vshll.u32 %v14387_v48, 16 }
 0x3f5   : > { %v7260_v53 = vpop.f32.mrf.mxu1 }
 0x3f6   : > { %15552 = vst [vmem:[#allocation35_spill] sm:$0xff] %v14539_v62  ;;  %v14547_v38 = vadd.f32 %v7260_v53, %v6654_v28  ;;  %7698 = vmatmul.bf16.gmra.mxu2 %v15554_v18  ;;  %v7013_v28 = vshrl.u32 %v6716_v24, 16  ;;  %v14560_v53 = vrot.slane %v8325_v56, 5  ;;  %v8331_v18 = vrot.slane %v8329_v4, 4 }
 0x3f7   : > { %8013 = vmatmul.bf16.gmra.mxu3 %v11365_v51  ;;  %8695 = vmatmul.bf16.gmra.mxu0 %v8591_v12  ;;  %v7016_v62 = vshll.u32 %v6716_v24, 16  ;;  %v8935_v51 = vsel %vm12183_vm5, %v11069_v45, %v8934_v52  ;;  %v8936_v12 = vrot.slane %v8934_v52, 4  ;;  %v14566_v7 = vrot.slane %v7022_v22, 5 }
 0x3f8   : > { %v6655_v56 = vadd.f32 %v15556_v8, %v15555_v26  ;;  %v8304_v4 = vsel %vm11880_vm2, %v8299_v31, %v14496_v47  ;;  %v8566_v24 = vunpack.c.l.b16 %v8314_v55  ;;  %v7015_v20 = vrot.slane %v7013_v28, 4  ;;  %v14585_v55 = vpop.f32.mrf.mxu0 }
 0x3f9   : > { %v5939_v54 = vpop.f32.mrf.mxu2  ;;  %v8938_v52 = vsel %vm12183_vm5, %v8936_v12, %v8937_v1  ;;  %v7018_v30 = vrot.slane %v7016_v62, 5  ;;  %v8322_v26 = vor.u32 %v8321_v14, %v8318_v16  ;;  %v8332_v8 = vor.u32 %v8331_v18, %v14560_v53  ;;  %15559 = vst [vmem:[#allocation16_spill] sm:$0xff] %v14585_v55  ;;  %v11394_v14 = vld [vmem:[#allocation3 + $0x208] sm:$0xff] }
 0x3fa   : > { %v5940_v23 = vadd.f32 %v5939_v54, %v14178_v59  ;;  %v6317_v17 = vpop.f32.mrf.mxu3  ;;  %v8127_v59 = vld [vmem:[#allocation2 + $0x6c] sm:$0xf]  ;;  %v8999_v54 = vunpack.c.l.b16 %v8935_v51  ;;  %v9000_v61 = vunpack.c.l.b16 %v8938_v52  ;;  %v7174_v47 = vpack.c.b16 %v7153_v63, %v7152_v37  ;;  %9099 = vmatpush.bf16.msra.mxu1 %v11394_v14  ;;  %v8798_v14 = vld [vmem:[#allocation2 + $0x90] sm:$0xe] }
 0x3fb   : > { %v7029_v31 = vor.u32 %v7028_v0, %v14566_v7  ;;  %v8340_v51 = vshrl.u32 %v8127_v59, 16  ;;  %v8343_v12 = vshll.u32 %v8127_v59, 16  ;;  %v8565_v62 = vunpack.c.l.b16 %v8304_v4  ;;  %v11366_v59 = vld [vmem:[#allocation2 + $0x54] sm:$0xff] }
 0x3fc   : > { %v14575_v45 = vadd.f32 %v6317_v17, %v5940_v23  ;;  %v14583_v1 = vpack.c.b16 %v9000_v61, %v8999_v54  ;;  %v8349_v23 = vshll.u32 %v14440_v46, 16  ;;  %v7032_v16 = vshll.u32 %v14577_v5, 16 }
 0x3fd   : > { %v7263_v22 = vpop.f32.mrf.mxu1  ;;  %v8353_v28 = vshrl.u32 %v14440_v46, 16  ;;  %v7019_v18 = vor.u32 %v7018_v30, %v7015_v20  ;;  %v14591_v17 = vrot.slane %v8332_v8, 4  ;;  %v7030_v48 = vrot.slane %v7029_v31, 4  ;;  %v14604_v30 = vld [vmem:[#allocation2 + $0x94] sm:$0xf]  ;;  %v15561_v20 = vld [vmem:[#allocation17_spill] sm:$0xff] }
 0x3fe   : > { %15557 = vst [vmem:[#allocation12_spill] sm:$0xff] %v14575_v45  ;;  %v14580_v57 = vadd.f32 %v7263_v22, %v6655_v56  ;;  %v8592_v56 = vpack.c.b16 %v8566_v24, %v8565_v62  ;;  %v14594_v52 = vrot.slane %v8322_v26, 4  ;;  %v14596_v54 = vrot.slane %v8335_v60, 5  ;;  %v15560_v22 = vld [vmem:[#allocation15_spill] sm:$0xff]  ;;  %v14610_v26 = vld [vmem:[#allocation2 + $0xa0] sm:$0xf] }
 0x3ff   : > { %15558 = vst [vmem:[#allocation27_spill] sm:$0xff] %v14583_v1  ;;  %v14598_v4 = vrot.slane %v8340_v51, 4  ;;  %v14600_v61 = vrot.slane %v8343_v12, 5  ;;  %v14602_v46 = vrot.slane %v8349_v23, 5  ;;  %v7034_v24 = vrot.slane %v7032_v16, 5 }
 0x400   : > { %7302 = vmatmul.bf16.gmra.mxu1 %v7174_v47  ;;  %v14612_v47 = vrot.slane %v8353_v28, 4  ;;  %v7376_v31 = vld [vmem:[#allocation2 + $0x90] sm:$0xe]  ;;  %v7020_v51 = vrot.slane %v7019_v18, 4  ;;  %v8328_v12 = vsel %vm11880_vm2, %v14594_v52, %v14560_v53  ;;  %v8338_v23 = vsel %vm11880_vm2, %v14591_v17, %v14596_v54  ;;  %v6719_v62 = vld [vmem:[#allocation2 + $0x9c] sm:$0xf] }
 0x401   : > { %v5941_v37 = vpop.f32.mrf.mxu2  ;;  %v8373_v16 = vshll.u32 %v14477_v27, 16  ;;  %v15563_v28 = vld [vmem:[#allocation32_spill] sm:$0xff]  ;;  %v15565_v18 = vld [vmem:[#allocation19_spill] sm:$0xff]  ;;  %v14630_v53 = vld [vmem:[#allocation2 + $0x98] sm:$0x1]  ;;  %v7525_v52 = vrot.slane %v14533_v19, 5 }
 0x402   : > { %v5942_v63 = vadd.f32 %v5941_v37, %v14218_v3  ;;  %v6319_v0 = vpop.f32.mrf.mxu3  ;;  %v6656_v3 = vadd.f32 %v15561_v20, %v15560_v22  ;;  %v7035_v22 = vsel %vm11880_vm2, %v7030_v48, %v7034_v24  ;;  %v7046_v17 = vshll.u32 %v14610_v26, 16 }
 0x403   : > { %v7050_v54 = vshrl.u32 %v14610_v26, 16  ;;  %v10895_v20 = vrot.slane %v7376_v31, 9  ;;  %v7528_v48 = vrot.slane %v14577_v5, 5  ;;  %v11070_v24 = vrot.slane %v8798_v14, 9 }
 0x404   : > { %v14608_v8 = vadd.f32 %v6319_v0, %v5942_v63  ;;  %v15564_v63 = vld [vmem:[#allocation20_spill] sm:$0xff]  ;;  %v8944_v31 = vrot.slane %v14630_v53, 5  ;;  %v7155_v45 = vunpack.c.l.b16 %v7035_v22  ;;  %v7040_v55 = vshll.u32 %v6719_v62, 16 }
 0x405   : > { %v7265_v60 = vpop.f32.mrf.mxu1  ;;  %v6657_v0 = vadd.f32 %v15565_v18, %v15564_v63  ;;  %v14640_v63 = vpop.f32.mrf.mxu0  ;;  %v14648_v5 = vrot.slane %v7046_v17, 5 }
 0x406   : > { %15562 = vst [vmem:[#allocation14_spill] sm:$0xff] %v14608_v8  ;;  %v14623_v37 = vadd.f32 %v7265_v60, %v6656_v3  ;;  %7703 = vmatmul.bf16.gmra.mxu2 %v15563_v28  ;;  %v8941_v3 = vrot.slane %v14604_v30, 5  ;;  %v7025_v60 = vsel %vm11880_vm2, %v7020_v51, %v14566_v7  ;;  %v7037_v28 = vshrl.u32 %v6719_v62, 16 }
 0x407   : > { %8018 = vmatmul.bf16.gmra.mxu3 %v11366_v59  ;;  %8700 = vmatmul.bf16.gmra.mxu0 %v8592_v56  ;;  %15566 = vst [vmem:[#allocation15_spill] sm:$0xff] %v14640_v63  ;;  %v7526_v56 = vsel %vm12183_vm5, %v10895_v20, %v7525_v52  ;;  %v7527_v59 = vrot.slane %v7525_v52, 4  ;;  %v7052_v51 = vrot.slane %v7050_v54, 4  ;;  %v7154_v63 = vunpack.c.l.b16 %v7025_v60 }
 0x408   : > { %v8943_v18 = vrot.slane %v8941_v3, 4  ;;  %v8942_v7 = vsel %vm12183_vm5, %v11070_v24, %v8941_v3  ;;  %v7580_v32 = vunpack.c.l.b16 %v7526_v56  ;;  %v7039_v22 = vrot.slane %v7037_v28, 4  ;;  %v14659_v24 = vld [vmem:[#allocation2 + $0xa4] sm:$0x1] }
 0x409   : > { %v5944_v19 = vpop.f32.mrf.mxu2  ;;  %v7529_v14 = vsel %vm12183_vm5, %v7527_v59, %v7528_v48  ;;  %v8377_v62 = vshrl.u32 %v14477_v27, 16  ;;  %v9001_v25 = vunpack.c.l.b16 %v8942_v7  ;;  %v7175_v54 = vpack.c.b16 %v7155_v45, %v7154_v63  ;;  %v8130_v27 = vld [vmem:[#allocation2 + $0x78] sm:$0xf] }
 0x40a   : > { %v5945_v1 = vadd.f32 %v5944_v19, %v14255_v50  ;;  %v6322_v8 = vpop.f32.mrf.mxu3  ;;  %v8945_v52 = vsel %vm12183_vm5, %v8943_v18, %v8944_v31  ;;  %v7581_v50 = vunpack.c.l.b16 %v7529_v14  ;;  %v7042_v48 = vrot.slane %v7040_v55, 5  ;;  %v15568_v14 = vld [vmem:[#allocation22_spill] sm:$0xff] }
 0x40b   : > { %v9002_v3 = vunpack.c.l.b16 %v8945_v52  ;;  %v8356_v60 = vor.u32 %v14612_v47, %v14602_v46  ;;  %v8568_v56 = vunpack.c.l.b16 %v8338_v23  ;;  %v7056_v45 = vshll.u32 %v14659_v24, 16  ;;  %v15569_v52 = vld [vmem:[#allocation18_spill] sm:$0xff] }
 0x40c   : > { %v14654_v20 = vadd.f32 %v6322_v8, %v5945_v1  ;;  %v14661_v59 = vpack.c.b16 %v7581_v50, %v7580_v32  ;;  %v7053_v1 = vor.u32 %v7052_v51, %v14648_v5  ;;  %v8346_v8 = vor.u32 %v14600_v61, %v14598_v4 }
 0x40d   : > { %v7268_v19 = vpop.f32.mrf.mxu1  ;;  %v14668_v28 = vpack.c.b16 %v9002_v3, %v9001_v25  ;;  %v14671_v63 = vrot.slane %v8373_v16, 5  ;;  %v8379_v32 = vrot.slane %v8377_v62, 4  ;;  %v8567_v31 = vunpack.c.l.b16 %v8328_v12  ;;  %v14675_v61 = vpop.f32.mrf.mxu0 }
 0x40e   : > { %v14657_v17 = vadd.f32 %v7268_v19, %v6657_v0  ;;  %v7043_v7 = vor.u32 %v7042_v48, %v7039_v22  ;;  %v8359_v4 = vshll.u32 %v14455_v36, 16  ;;  %v7054_v25 = vrot.slane %v7053_v1, 4  ;;  %v14685_v19 = vld [vmem:[#allocation2 + $0xac] sm:$0xf]  ;;  %v11367_v36 = vld [vmem:[#allocation2 + $0x60] sm:$0xff] }
 0x40f   : > { %15567 = vst [vmem:[#allocation17_spill] sm:$0xff] %v14668_v28  ;;  %v14677_v47 = vrot.slane %v8346_v8, 4  ;;  %v14679_v51 = vrot.slane %v8356_v60, 4  ;;  %v8364_v23 = vshrl.u32 %v8130_v27, 16  ;;  %v6658_v16 = vadd.f32 %v15569_v52, %v15568_v14 }
 0x410   : > { %7307 = vmatmul.bf16.gmra.mxu1 %v7175_v54  ;;  %v8383_v12 = vshll.u32 %v14503_v49, 16  ;;  %v8593_v62 = vpack.c.b16 %v8568_v56, %v8567_v31  ;;  %v7058_v3 = vrot.slane %v7056_v45, 5  ;;  %v8380_v54 = vor.u32 %v8379_v32, %v14671_v63  ;;  %v7377_v45 = vld [vmem:[#allocation2 + $0x9c] sm:$0xe]  ;;  %v8133_v31 = vld [vmem:[#allocation2 + $0x84] sm:$0xf] }
 0x411   : > { %v5946_v0 = vpop.f32.mrf.mxu2  ;;  %v7044_v1 = vrot.slane %v7043_v7, 4  ;;  %v8352_v8 = vsel %vm11880_vm2, %v14677_v47, %v14602_v46  ;;  %v8361_v60 = vrot.slane %v8359_v4, 5  ;;  %v7074_v56 = vshrl.u32 %v14685_v19, 16 }
 0x412   : > { %v5947_v55 = vadd.f32 %v5946_v0, %v14283_v11  ;;  %v6324_v18 = vpop.f32.mrf.mxu3  ;;  %v8367_v11 = vshll.u32 %v8130_v27, 16  ;;  %v6722_v27 = vld [vmem:[#allocation2 + $0xa8] sm:$0xf]  ;;  %v7059_v49 = vsel %vm11880_vm2, %v7054_v25, %v7058_v3  ;;  %v7070_v0 = vshll.u32 %v14685_v19, 16 }
 0x413   : > { %v8362_v32 = vsel %vm11880_vm2, %v14679_v51, %v8361_v60  ;;  %v7049_v4 = vsel %vm11880_vm2, %v7044_v1, %v14648_v5  ;;  %v7061_v25 = vshrl.u32 %v6722_v27, 16  ;;  %v14713_v47 = vrot.slane %v8380_v54, 4  ;;  %v15572_v3 = vld [vmem:[#allocation23_spill] sm:$0xff]  ;;  %v14723_v1 = vld [vmem:[#allocation2 + $0xa0] sm:$0xf] }
 0x414   : > { %v14683_v50 = vadd.f32 %v6324_v18, %v5947_v55  ;;  %v14704_v55 = vrot.slane %v8364_v23, 4  ;;  %v14706_v46 = vrot.slane %v8367_v11, 5  ;;  %v14708_v18 = vrot.slane %v8383_v12, 5 }
 0x415   : > { %v7270_v22 = vpop.f32.mrf.mxu1  ;;  %v7157_v51 = vunpack.c.l.b16 %v7059_v49  ;;  %v7064_v23 = vshll.u32 %v6722_v27, 16  ;;  %v14716_v11 = vrot.slane %v7070_v0, 5  ;;  %v7076_v12 = vrot.slane %v7074_v56, 4  ;;  %v14727_v49 = vpop.f32.mrf.mxu0  ;;  %v14729_v0 = vld [vmem:[#allocation2 + $0xb0] sm:$0x1] }
 0x416   : > { %15570 = vst [vmem:[#allocation32_spill] sm:$0xff] %v14683_v50  ;;  %v14689_v48 = vadd.f32 %v7270_v22, %v6658_v16  ;;  %7708 = vmatmul.bf16.gmra.mxu2 %v14201_v42  ;;  %v7532_v42 = vrot.slane %v14610_v26, 5  ;;  %v10896_v16 = vrot.slane %v7377_v45, 9  ;;  %v8388_v22 = vshrl.u32 %v8133_v31, 16 }
 0x417   : > { %8023 = vmatmul.bf16.gmra.mxu3 %v11367_v36  ;;  %8705 = vmatmul.bf16.gmra.mxu0 %v8593_v62  ;;  %v7535_v36 = vrot.slane %v14659_v24, 5  ;;  %v15571_v62 = vld [vmem:[#allocation21_spill] sm:$0xff]  ;;  %v7156_v54 = vunpack.c.l.b16 %v7049_v4  ;;  %v7063_v56 = vrot.slane %v7061_v25, 4  ;;  %v8391_v45 = vshll.u32 %v8133_v31, 16 }
 0x418   : > { %v7534_v26 = vrot.slane %v7532_v42, 4  ;;  %v6659_v60 = vadd.f32 %v15572_v3, %v15571_v62  ;;  %v8397_v24 = vshll.u32 %v14535_v58, 16  ;;  %v7077_v3 = vor.u32 %v7076_v12, %v14716_v11 }
 0x419   : > { %v5949_v7 = vpop.f32.mrf.mxu2  ;;  %v7176_v4 = vpack.c.b16 %v7157_v51, %v7156_v54  ;;  %v8948_v28 = vrot.slane %v14723_v1, 5  ;;  %v8569_v25 = vunpack.c.l.b16 %v8352_v8  ;;  %v7080_v31 = vshll.u32 %v14729_v0, 16 }
 0x41a   : > { %v5950_v14 = vadd.f32 %v5949_v7, %v14318_v6  ;;  %v6327_v52 = vpop.f32.mrf.mxu3  ;;  %v7533_v6 = vsel %vm12183_vm5, %v10896_v16, %v7532_v42  ;;  %v7536_v7 = vsel %vm12183_vm5, %v7534_v26, %v7535_v36  ;;  %v8401_v42 = vshrl.u32 %v14535_v58, 16  ;;  %v11393_v26 = vld [vmem:[#allocation3 + $0x200] sm:$0xff]  ;;  %v14742_v36 = vld [vmem:[#allocation2 + $0xa4] sm:$0x1] }
 0x41b   : > { %v7583_v62 = vunpack.c.l.b16 %v7536_v7  ;;  %v7582_v16 = vunpack.c.l.b16 %v7533_v6  ;;  %v8386_v58 = vsel %vm11880_vm2, %v14713_v47, %v14708_v18  ;;  %v14748_v12 = vrot.slane %v8388_v22, 4  ;;  %9100 = vmatpush.bf16.msra.mxu1 %v11393_v26  ;;  %v15575_v47 = vld [vmem:[#allocation28_spill] sm:$0xff]  ;;  %v15576_v22 = vld [vmem:[#allocation26_spill] sm:$0xff] }
 0x41c   : > { %v14721_v5 = vadd.f32 %v6327_v52, %v5950_v14  ;;  %v7066_v52 = vrot.slane %v7064_v23, 5  ;;  %v8570_v23 = vunpack.c.l.b16 %v8362_v32  ;;  %v7078_v32 = vrot.slane %v7077_v3, 4  ;;  %v6725_v26 = vld [vmem:[#allocation2 + $0xb4] sm:$0xf]  ;;  %v8799_v3 = vld [vmem:[#allocation2 + $0x9c] sm:$0xe] }
 0x41d   : > { %v7273_v27 = vpop.f32.mrf.mxu1  ;;  %v8403_v7 = vrot.slane %v8401_v42, 4  ;;  %v8951_v18 = vrot.slane %v14742_v36, 5  ;;  %v15624_v40 = vld [vmem:[#allocation32_spill] sm:$0xff] }
 0x41e   : > { %15573 = vst [vmem:[#allocation20_spill] sm:$0xff] %v14721_v5  ;;  %v14734_v14 = vadd.f32 %v7273_v27, %v6659_v60  ;;  %v8370_v5 = vor.u32 %v14706_v46, %v14704_v55  ;;  %v14750_v60 = vpack.c.b16 %v7583_v62, %v7582_v16  ;;  %v7067_v6 = vor.u32 %v7066_v52, %v7063_v56  ;;  %v14753_v27 = vld [vmem:[#allocation2 + $0xb8] sm:$0xf] }
 0x41f   : > { %v14755_v55 = vrot.slane %v8391_v45, 5  ;;  %v14757_v46 = vrot.slane %v8397_v24, 5  ;;  %v6660_v62 = vadd.f32 %v15576_v22, %v15575_v47  ;;  %v7094_v45 = vshll.u32 %v14753_v27, 16 }
 0x420   : > { %15574 = vst [vmem:[#allocation19_spill] sm:$0xff] %v14734_v14  ;;  %7312 = vmatmul.bf16.gmra.mxu1 %v7176_v4  ;;  %v8950_v4 = vrot.slane %v8948_v28, 4  ;;  %v8371_v56 = vrot.slane %v8370_v5, 4  ;;  %v8594_v14 = vpack.c.b16 %v8570_v23, %v8569_v25  ;;  %v7098_v24 = vshrl.u32 %v14753_v27, 16  ;;  %v7378_v25 = vld [vmem:[#allocation2 + $0xa8] sm:$0xe]  ;;  %v14776_v23 = vpop.f32.mrf.mxu0 }
 0x421   : > { %v5951_v51 = vpop.f32.mrf.mxu2  ;;  %v11071_v47 = vrot.slane %v8799_v3, 9 }
 0x422   : > { %v5952_v8 = vadd.f32 %v5951_v51, %v14342_v43  ;;  %v6329_v54 = vpop.f32.mrf.mxu3  ;;  %v11368_v43 = vld [vmem:[#allocation2 + $0x6c] sm:$0xff]  ;;  %v7082_v51 = vrot.slane %v7080_v31, 5  ;;  %v8952_v42 = vsel %vm12183_vm5, %v8950_v4, %v8951_v18  ;;  %v8376_v5 = vsel %vm11880_vm2, %v8371_v56, %v14671_v63 }
 0x423   : > { %v14774_v31 = vunpack.c.l.b16 %v8386_v58  ;;  %v8394_v4 = vor.u32 %v14755_v55, %v14748_v12  ;;  %v7085_v58 = vshrl.u32 %v6725_v26, 16  ;;  %v7088_v18 = vshll.u32 %v6725_v26, 16  ;;  %v15580_v12 = vld [vmem:[#allocation29_spill] sm:$0xff] }
 0x424   : > { %v14762_v16 = vadd.f32 %v6329_v54, %v5952_v8  ;;  %v7068_v8 = vrot.slane %v7067_v6, 4  ;;  %v7083_v54 = vsel %vm11880_vm2, %v7078_v32, %v7082_v51  ;;  %v8407_v6 = vshll.u32 %v14552_v34, 16  ;;  %v15579_v51 = vld [vmem:[#allocation30_spill] sm:$0xff] }
 0x425   : > { %v7275_v52 = vpop.f32.mrf.mxu1  ;;  %v7539_v32 = vrot.slane %v14685_v19, 5  ;;  %v6661_v55 = vadd.f32 %v15580_v12, %v15579_v51  ;;  %v7159_v56 = vunpack.c.l.b16 %v7083_v54  ;;  %v7090_v51 = vrot.slane %v7088_v18, 5  ;;  %v14812_v18 = vld [vmem:[#allocation2 + $0x90] sm:$0xf] }
 0x426   : > { %15577 = vst [vmem:[#allocation22_spill] sm:$0xff] %v14762_v16  ;;  %v14768_v50 = vadd.f32 %v7275_v52, %v6660_v62  ;;  %7713 = vmatmul.bf16.gmra.mxu2 %v14271_v10  ;;  %v8404_v10 = vor.u32 %v8403_v7, %v14757_v46  ;;  %v7073_v63 = vsel %vm11880_vm2, %v7068_v8, %v14716_v11  ;;  %v14787_v62 = vrot.slane %v7094_v45, 5  ;;  %v14800_v8 = vld [vmem:[#allocation2 + $0xbc] sm:$0x1] }
 0x427   : > { %8028 = vmatmul.bf16.gmra.mxu3 %v11368_v43  ;;  %8710 = vmatmul.bf16.gmra.mxu0 %v8594_v14  ;;  %v7100_v14 = vrot.slane %v7098_v24, 4  ;;  %v10897_v43 = vrot.slane %v7378_v25, 9  ;;  %v8949_v11 = vsel %vm12183_vm5, %v11071_v47, %v8948_v28  ;;  %v7541_v26 = vrot.slane %v7539_v32, 4 }
 0x428   : > { %15578 = vst [vmem:[#allocation18_spill] sm:$0xff] %v14768_v50  ;;  %v7542_v45 = vrot.slane %v14729_v0, 5  ;;  %v9004_v24 = vunpack.c.l.b16 %v8952_v42  ;;  %v7158_v19 = vunpack.c.l.b16 %v7073_v63  ;;  %v7087_v25 = vrot.slane %v7085_v58, 4  ;;  %v14809_v42 = vld [vmem:[#allocation2 + $0xac] sm:$0xf] }
 0x429   : > { %v5954_v22 = vpop.f32.mrf.mxu2  ;;  %v7540_v52 = vsel %vm12183_vm5, %v10897_v43, %v7539_v32  ;;  %v7101_v54 = vor.u32 %v7100_v14, %v14787_v62  ;;  %v9003_v47 = vunpack.c.l.b16 %v8949_v11  ;;  %v8571_v12 = vunpack.c.l.b16 %v8376_v5  ;;  %v14818_v11 = vld [vmem:[#allocation2 + $0xb0] sm:$0x1]  ;;  %v6728_v50 = vld [vmem:[#allocation2 + $0xc0] sm:$0xf] }
 0x42a   : > { %v5955_v7 = vadd.f32 %v5954_v22, %v14380_v21  ;;  %v6332_v34 = vpop.f32.mrf.mxu3  ;;  %v14803_v22 = vrot.slane %v8404_v10, 4  ;;  %v7543_v28 = vsel %vm12183_vm5, %v7541_v26, %v7542_v45  ;;  %v7177_v0 = vpack.c.b16 %v7159_v56, %v7158_v19  ;;  %v8800_v10 = vld [vmem:[#allocation2 + $0xa8] sm:$0xe]  ;;  %v14822_v56 = vpop.f32.mrf.mxu0 }
 0x42b   : > { %v7584_v32 = vunpack.c.l.b16 %v7540_v52  ;;  %v7585_v63 = vunpack.c.l.b16 %v7543_v28  ;;  %v7104_v58 = vshll.u32 %v14800_v8, 16  ;;  %v7091_v14 = vor.u32 %v7090_v51, %v7087_v25 }
 0x42c   : > { %v14798_v3 = vadd.f32 %v6332_v34, %v5955_v7  ;;  %v14814_v7 = vpack.c.b16 %v9004_v24, %v9003_v47  ;;  %v14816_v34 = vrot.slane %v8407_v6, 5  ;;  %v8595_v5 = vpack.c.b16 %v14774_v31, %v8571_v12  ;;  %v14834_v47 = vld [vmem:[#allocation2 + $0xc4] sm:$0xf] }
 0x42d   : > { %v7278_v21 = vpop.f32.mrf.mxu1  ;;  %v7102_v26 = vrot.slane %v7101_v54, 4  ;;  %v14825_v45 = vrot.slane %v8394_v4, 4  ;;  %v8955_v24 = vrot.slane %v14809_v42, 5  ;;  %v11072_v51 = vrot.slane %v8800_v10, 9  ;;  %v11369_v10 = vld [vmem:[#allocation2 + $0x78] sm:$0xff] }
 0x42e   : > { %15581 = vst [vmem:[#allocation21_spill] sm:$0xff] %v14798_v3  ;;  %v14807_v43 = vadd.f32 %v7278_v21, %v6661_v55  ;;  %v14820_v55 = vpack.c.b16 %v7585_v63, %v7584_v32  ;;  %v7106_v28 = vrot.slane %v7104_v58, 5  ;;  %v8958_v54 = vrot.slane %v14818_v11, 5  ;;  %v15585_v32 = vld [vmem:[#allocation31_spill] sm:$0xff]  ;;  %v15587_v58 = vld [vmem:[#allocation37_spill] sm:$0xff] }
 0x42f   : > { %15583 = vst [vmem:[#allocation28_spill] sm:$0xff] %v14814_v7  ;;  %v8957_v4 = vrot.slane %v8955_v24, 4  ;;  %v7092_v12 = vrot.slane %v7091_v14, 4  ;;  %v8956_v6 = vsel %vm12183_vm5, %v11072_v51, %v8955_v24  ;;  %v8425_v7 = vshrl.u32 %v14604_v30, 16  ;;  %v14849_v3 = vld [vmem:[#allocation2 + $0xb8] sm:$0xf] }
 0x430   : > { %15582 = vst [vmem:[#allocation23_spill] sm:$0xff] %v14807_v43  ;;  %7317 = vmatmul.bf16.gmra.mxu1 %v7177_v0  ;;  %v15584_v0 = vld [vmem:[#allocation34_spill] sm:$0xff]  ;;  %v6663_v43 = vadd.f32 %v15587_v58, %v14173_v9  ;;  %v7107_v31 = vsel %vm11880_vm2, %v7102_v26, %v7106_v28  ;;  %v7118_v9 = vshll.u32 %v14834_v47, 16  ;;  %v7122_v26 = vshrl.u32 %v14834_v47, 16 }
 0x431   : > { %v5956_v52 = vpop.f32.mrf.mxu2  ;;  %v8959_v14 = vsel %vm12183_vm5, %v8957_v4, %v8958_v54  ;;  %v7097_v24 = vsel %vm11880_vm2, %v7092_v12, %v14787_v62  ;;  %v7546_v51 = vrot.slane %v14753_v27, 5  ;;  %v9005_v28 = vunpack.c.l.b16 %v8956_v6  ;;  %v8801_v4 = vld [vmem:[#allocation2 + $0xb4] sm:$0xe] }
 0x432   : > { %v5957_v19 = vadd.f32 %v5956_v52, %v14405_v13  ;;  %v6334_v21 = vpop.f32.mrf.mxu3  ;;  %v6662_v13 = vadd.f32 %v15585_v32, %v15584_v0  ;;  %v7379_v52 = vld [vmem:[#allocation2 + $0xb4] sm:$0xe]  ;;  %v9006_v0 = vunpack.c.l.b16 %v8959_v14  ;;  %v7109_v54 = vshrl.u32 %v6728_v50, 16  ;;  %v14873_v14 = vpop.f32.mrf.mxu0 }
 0x433   : > { %v7112_v32 = vshll.u32 %v6728_v50, 16  ;;  %v7548_v58 = vrot.slane %v7546_v51, 4  ;;  %v11073_v50 = vrot.slane %v8801_v4, 9 }
 0x434   : > { %v14840_v63 = vadd.f32 %v6334_v21, %v5957_v19  ;;  %v10898_v21 = vrot.slane %v7379_v52, 9  ;;  %v14868_v52 = vpack.c.b16 %v9006_v0, %v9005_v28  ;;  %v14882_v0 = vld [vmem:[#allocation2 + $0xc8] sm:$0x1] }
 0x435   : > { %v7280_v25 = vpop.f32.mrf.mxu1  ;;  %v7114_v4 = vrot.slane %v7112_v32, 5  ;;  %v7128_v32 = vshll.u32 %v14882_v0, 16 }
 0x436   : > { %15586 = vst [vmem:[#allocation26_spill] sm:$0xff] %v14840_v63  ;;  %v14853_v19 = vadd.f32 %v7280_v25, %v6662_v13  ;;  %7718 = vmatmul.bf16.gmra.mxu2 %v14327_v41  ;;  %v7161_v25 = vunpack.c.l.b16 %v7107_v31  ;;  %v14862_v41 = vld [vmem:[#allocation2 + $0xbc] sm:$0x1]  ;;  %v8962_v13 = vrot.slane %v14849_v3, 5  ;;  %v7547_v12 = vsel %vm12183_vm5, %v10898_v21, %v7546_v51 }
 0x437   : > { %8033 = vmatmul.bf16.gmra.mxu3 %v11369_v10  ;;  %8715 = vmatmul.bf16.gmra.mxu0 %v8595_v5  ;;  %v7549_v5 = vrot.slane %v14800_v8, 5  ;;  %v14871_v10 = vrot.slane %v7118_v9, 5  ;;  %v7124_v31 = vrot.slane %v7122_v26, 4  ;;  %v8965_v21 = vrot.slane %v14862_v41, 5 }
 0x438   : > { %15588 = vst [vmem:[#allocation30_spill] sm:$0xff] %v14853_v19  ;;  %v7160_v19 = vunpack.c.l.b16 %v7097_v24  ;;  %v8964_v16 = vrot.slane %v8962_v13, 4  ;;  %v7586_v8 = vunpack.c.l.b16 %v7547_v12  ;;  %v7111_v26 = vrot.slane %v7109_v54, 4 }
 0x439   : > { %v7679_v62 = vpop.f32.mrf.mxu2  ;;  %v7550_v63 = vsel %vm12183_vm5, %v7548_v58, %v7549_v5  ;;  %v8415_v24 = vshll.u32 %v14812_v18, 16  ;;  %v8400_v54 = vsel %vm11880_vm2, %v14825_v45, %v14757_v46 }
 0x43a   : > { %v7759_v27 = vadd.f32 %v7679_v62, %v14447_v2  ;;  %v7994_v6 = vpop.f32.mrf.mxu3  ;;  %v7587_v28 = vunpack.c.l.b16 %v7550_v63  ;;  %v8963_v2 = vsel %vm12183_vm5, %v11073_v50, %v8962_v13  ;;  %v8966_v62 = vsel %vm12183_vm5, %v8964_v16, %v8965_v21 }
 0x43b   : > { %v7178_v5 = vpack.c.b16 %v7161_v25, %v7160_v19  ;;  %v9007_v63 = vunpack.c.l.b16 %v8963_v2  ;;  %v15590_v13 = vshll.u32 %v14604_v30, 16  ;;  %v15591_v25 = vsel %vm11880_vm2, %v14803_v22, %v14816_v34  ;;  %v7380_v34 = vld [vmem:[#allocation2 + $0xc0] sm:$0xe] }
 0x43c   : > { %v14878_v51 = vadd.f32 %v7994_v6, %v7759_v27  ;;  %v7125_v27 = vor.u32 %v7124_v31, %v14871_v10  ;;  %v14890_v12 = vpack.c.b16 %v7587_v28, %v7586_v8  ;;  %v9008_v6 = vunpack.c.l.b16 %v8966_v62  ;;  %v15594_v62 = vld [vmem:[#allocation39_spill] sm:$0xff] }
 0x43d   : > { %v7283_v9 = vpop.f32.mrf.mxu1  ;;  %v14899_v16 = vrot.slane %v15590_v13, 5  ;;  %v8574_v31 = vunpack.c.l.b16 %v15591_v25  ;;  %v15592_v50 = vshrl.u32 %v14812_v18, 16  ;;  %v8417_v8 = vrot.slane %v8415_v24, 5  ;;  %v8802_v18 = vld [vmem:[#allocation2 + $0xc0] sm:$0xe]  ;;  %v14916_v25 = vpop.f32.mrf.mxu0 }
 0x43e   : > { %v14887_v58 = vadd.f32 %v7283_v9, %v6663_v43  ;;  %v8427_v43 = vrot.slane %v8425_v7, 4  ;;  %v14908_v28 = vpack.c.b16 %v9008_v6, %v9007_v63  ;;  %v7115_v30 = vor.u32 %v7114_v4, %v7111_v26  ;;  %v15593_v7 = vld [vmem:[#allocation38_spill] sm:$0xff]  ;;  %v14920_v26 = vld [vmem:[#allocation2 + $0xc8] sm:$0x1] }
 0x43f   : > { %v8414_v21 = vrot.slane %v15592_v50, 4  ;;  %v7126_v2 = vrot.slane %v7125_v27, 4  ;;  %v8573_v9 = vunpack.c.l.b16 %v8400_v54  ;;  %v11370_v63 = vld [vmem:[#allocation2 + $0x84] sm:$0xff]  ;;  %v11074_v50 = vrot.slane %v8802_v18, 9 }
 0x440   : > { %15589 = vst [vmem:[#allocation29_spill] sm:$0xff] %v14887_v58  ;;  %7322 = vmatmul.bf16.gmra.mxu1 %v7178_v5  ;;  %v6664_v5 = vadd.f32 %v15594_v62, %v15593_v7  ;;  %v7130_v58 = vrot.slane %v7128_v32, 5  ;;  %v8428_v22 = vor.u32 %v8427_v43, %v14899_v16  ;;  %v7116_v27 = vrot.slane %v7115_v30, 4  ;;  %v15596_v7 = vld [vmem:[#allocation42_spill] sm:$0xff] }
 0x441   : > { %v7681_v19 = vpop.f32.mrf.mxu2  ;;  %v8596_v6 = vpack.c.b16 %v8574_v31, %v8573_v9  ;;  %v8431_v32 = vshll.u32 %v14630_v53, 16  ;;  %v10899_v43 = vrot.slane %v7380_v34, 9  ;;  %v7553_v31 = vrot.slane %v14834_v47, 5  ;;  %v15595_v9 = vld [vmem:[#allocation41_spill] sm:$0xff] }
 0x442   : > { %v7760_v46 = vadd.f32 %v7681_v19, %v14482_v33  ;;  %v7996_v45 = vpop.f32.mrf.mxu3  ;;  %v8418_v33 = vor.u32 %v8417_v8, %v8414_v21  ;;  %v14918_v19 = vld [vmem:[#allocation2 + $0xc4] sm:$0xf]  ;;  %v7131_v54 = vsel %vm11880_vm2, %v7126_v2, %v7130_v58  ;;  %v7121_v8 = vsel %vm11880_vm2, %v7116_v27, %v14871_v10 }
 0x443   : > { %v8969_v21 = vrot.slane %v14918_v19, 5  ;;  %v7554_v53 = vsel %vm12183_vm5, %v10899_v43, %v7553_v31  ;;  %v7555_v30 = vrot.slane %v7553_v31, 4  ;;  %v6665_v62 = vadd.f32 %v15596_v7, %v15595_v9 }
 0x444   : > { %v14913_v13 = vadd.f32 %v7996_v45, %v7760_v46  ;;  %v8429_v46 = vrot.slane %v8428_v22, 4  ;;  %v8972_v45 = vrot.slane %v14920_v26, 5  ;;  %v7163_v22 = vunpack.c.l.b16 %v7131_v54 }
 0x445   : > { %v7285_v24 = vpop.f32.mrf.mxu1  ;;  %v8970_v47 = vsel %vm12183_vm5, %v11074_v50, %v8969_v21  ;;  %v8971_v2 = vrot.slane %v8969_v21, 4  ;;  %v8433_v34 = vrot.slane %v8431_v32, 5  ;;  %v8419_v21 = vrot.slane %v8418_v33, 4 }
 0x446   : > { %v14922_v4 = vadd.f32 %v7285_v24, %v6664_v5  ;;  %7723 = vmatmul.bf16.gmra.mxu2 %v14391_v44  ;;  %v7556_v44 = vrot.slane %v14882_v0, 5  ;;  %v7162_v0 = vunpack.c.l.b16 %v7121_v8  ;;  %v7588_v24 = vunpack.c.l.b16 %v7554_v53 }
 0x447   : > { %8038 = vmatmul.bf16.gmra.mxu3 %v11370_v63  ;;  %8720 = vmatmul.bf16.gmra.mxu0 %v8596_v6  ;;  %v8973_v63 = vsel %vm12183_vm5, %v8971_v2, %v8972_v45  ;;  %v9009_v43 = vunpack.c.l.b16 %v8970_v47  ;;  %v8445_v54 = vshll.u32 %v14723_v1, 16  ;;  %v8449_v32 = vshrl.u32 %v14723_v1, 16 }
 0x448   : > { %v7557_v18 = vsel %vm12183_vm5, %v7555_v30, %v7556_v44  ;;  %v9010_v31 = vunpack.c.l.b16 %v8973_v63  ;;  %v7179_v44 = vpack.c.b16 %v7163_v22, %v7162_v0  ;;  %v14958_v30 = vpop.f32.mrf.mxu0  ;;  %v8424_v33 = vsel %vm11880_vm2, %v8419_v21, %v14899_v16  ;;  %v15597_v22 = vld [vmem:[#allocation43_spill] sm:$0xff]  ;;  %v11371_v63 = vld [vmem:[#allocation2 + $0x90] sm:$0xff] }
 0x449   : > { %v7684_v58 = vpop.f32.mrf.mxu2  ;;  %v7589_v27 = vunpack.c.l.b16 %v7557_v18 }
 0x44a   : > { %v7761_v5 = vadd.f32 %v7684_v58, %v14522_v15  ;;  %v7999_v10 = vpop.f32.mrf.mxu3  ;;  %v8434_v15 = vsel %vm11880_vm2, %v8429_v46, %v8433_v34  ;;  %v8139_v58 = vld [vmem:[#allocation2 + $0x9c] sm:$0xf]  ;;  %v14956_v45 = vpack.c.b16 %v9010_v31, %v9009_v43 }
 0x44b   : > { %v14954_v53 = vpack.c.b16 %v7589_v27, %v7588_v24  ;;  %v8576_v47 = vunpack.c.l.b16 %v8434_v15  ;;  %v8436_v2 = vshrl.u32 %v8139_v58, 16  ;;  %v8439_v9 = vshll.u32 %v8139_v58, 16  ;;  %v15598_v34 = vld [vmem:[#allocation45_spill] sm:$0xff] }
 0x44c   : > { %v14946_v6 = vadd.f32 %v7999_v10, %v7761_v5  ;;  %v8451_v5 = vrot.slane %v8449_v32, 4  ;;  %v8575_v10 = vunpack.c.l.b16 %v8424_v33  ;;  %v6666_v0 = vadd.f32 %v15598_v34, %v15597_v22  ;;  %v15599_v33 = vld [vmem:[#allocation46_spill] sm:$0xff] }
 0x44d   : > { %v7288_v50 = vpop.f32.mrf.mxu1  ;;  %v8438_v43 = vrot.slane %v8436_v2, 4  ;;  %v8441_v16 = vrot.slane %v8439_v9, 5 }
 0x44e   : > { %v14952_v8 = vadd.f32 %v7288_v50, %v6665_v62  ;;  %v8447_v62 = vrot.slane %v8445_v54, 5  ;;  %v8597_v27 = vpack.c.b16 %v8576_v47, %v8575_v10  ;;  %v15600_v10 = vld [vmem:[#allocation9_spill] sm:$0xff] }
 0x44f   : > { %v8442_v54 = vor.u32 %v8441_v16, %v8438_v43 }
 0x450   : > { %7327 = vmatmul.bf16.gmra.mxu1 %v7179_v44  ;;  %v8452_v50 = vor.u32 %v8451_v5, %v8447_v62  ;;  %v14972_v21 = vpop.f32.mrf.mxu0  ;;  %v8469_v5 = vshll.u32 %v14809_v42, 16 }
 0x451   : > { %v7686_v46 = vpop.f32.mrf.mxu2  ;;  %v8443_v9 = vrot.slane %v8442_v54, 4  ;;  %v15602_v54 = vld [vmem:[#allocation50_spill] sm:$0xff] }
 0x452   : > { %v7762_v1 = vadd.f32 %v7686_v46, %v14547_v38  ;;  %v8001_v7 = vpop.f32.mrf.mxu3  ;;  %v8455_v38 = vshll.u32 %v14742_v36, 16  ;;  %v8453_v58 = vrot.slane %v8452_v50, 4  ;;  %v6667_v46 = vadd.f32 %v14333_v29, %v15599_v33 }
 0x453   : > { %v8448_v29 = vsel %vm11880_vm2, %v8443_v9, %v8447_v62  ;;  %v8471_v43 = vrot.slane %v8469_v5, 5 }
 0x454   : > { %v14966_v18 = vadd.f32 %v8001_v7, %v7762_v1  ;;  %v8457_v2 = vrot.slane %v8455_v38, 5  ;;  %v8142_v7 = vld [vmem:[#allocation2 + $0xa8] sm:$0xf]  ;;  %v8577_v38 = vunpack.c.l.b16 %v8448_v29  ;;  %v15604_v29 = vld [vmem:[#allocation52_spill] sm:$0xff] }
 0x455   : > { %v7290_v24 = vpop.f32.mrf.mxu1 }
 0x456   : > { %v14968_v31 = vadd.f32 %v7290_v24, %v6666_v0  ;;  %7728 = vmatmul.bf16.gmra.mxu2 %v14462_v35  ;;  %v8458_v36 = vsel %vm11880_vm2, %v8453_v58, %v8457_v2  ;;  %v8460_v0 = vshrl.u32 %v8142_v7, 16  ;;  %v8463_v24 = vshll.u32 %v8142_v7, 16  ;;  %v11372_v58 = vld [vmem:[#allocation2 + $0x9c] sm:$0xff] }
 0x457   : > { %8043 = vmatmul.bf16.gmra.mxu3 %v11371_v63  ;;  %8725 = vmatmul.bf16.gmra.mxu0 %v8597_v27  ;;  %v8578_v34 = vunpack.c.l.b16 %v8458_v36 }
 0x458   : > { %v14989_v50 = vpop.f32.mrf.mxu0  ;;  %v8462_v33 = vrot.slane %v8460_v0, 4 }
 0x459   : > { %v7689_v15 = vpop.f32.mrf.mxu2  ;;  %v8598_v62 = vpack.c.b16 %v8578_v34, %v8577_v38  ;;  %v8497_v38 = vshrl.u32 %v14849_v3, 16 }
 0x45a   : > { %v7763_v32 = vadd.f32 %v7689_v15, %v14580_v57  ;;  %v8004_v44 = vpop.f32.mrf.mxu3  ;;  %v8473_v57 = vshrl.u32 %v14809_v42, 16  ;;  %v15601_v15 = vld [vmem:[#allocation47_spill] sm:$0xff] }
 0x45b   : > { %v6668_v42 = vadd.f32 %v15602_v54, %v15601_v15  ;;  %v15605_v15 = vld [vmem:[#allocation33_spill] sm:$0xff] }
 0x45c   : > { %v14977_v47 = vadd.f32 %v8004_v44, %v7763_v32  ;;  %v8475_v16 = vrot.slane %v8473_v57, 4 }
 0x45d   : > { %v7293_v35 = vpop.f32.mrf.mxu1 }
 0x45e   : > { %v14979_v1 = vadd.f32 %v7293_v35, %v6667_v46  ;;  %v8465_v46 = vrot.slane %v8463_v24, 5  ;;  %v8479_v35 = vshll.u32 %v14818_v11, 16 }
 0x460   : > { %9101 = vmatmul.bf16.vlgmr.msra.gmra.mxu1 %v15600_v10  ;;  %v8466_v36 = vor.u32 %v8465_v46, %v8462_v33  ;;  %v15603_v10 = vld [vmem:[#allocation49_spill] sm:$0xff]  ;;  %v8481_v0 = vrot.slane %v8479_v35, 5  ;;  %v15004_v24 = vpop.f32.mrf.mxu0 }
 0x461   : > { %v7691_v22 = vpop.f32.mrf.mxu2 }
 0x462   : > { %v7764_v63 = vadd.f32 %v7691_v22, %v14623_v37  ;;  %v8006_v27 = vpop.f32.mrf.mxu3  ;;  %v8476_v37 = vor.u32 %v8475_v16, %v8471_v43  ;;  %v6669_v22 = vadd.f32 %v15604_v29, %v15603_v10  ;;  %v8145_v16 = vld [vmem:[#allocation2 + $0xb4] sm:$0xf]  ;;  %v11373_v10 = vld [vmem:[#allocation2 + $0xa8] sm:$0xff] }
 0x464   : > { %v14993_v32 = vadd.f32 %v8006_v27, %v7764_v63  ;;  %v8477_v57 = vrot.slane %v8476_v37, 4  ;;  %v8467_v63 = vrot.slane %v8466_v36, 4  ;;  %v8499_v37 = vrot.slane %v8497_v38, 4  ;;  %v15606_v36 = vld [vmem:[#allocation51_spill] sm:$0xff]  ;;  %v15609_v38 = vld [vmem:[#allocation58_spill] sm:$0xff] }
 0x465   : > { %v7295_v44 = vpop.f32.mrf.mxu1 }
 0x466   : > { %v14995_v2 = vadd.f32 %v7295_v44, %v6668_v42  ;;  %7733 = vmatmul.bf16.gmra.mxu2 %v14661_v59  ;;  %v8482_v11 = vsel %vm11880_vm2, %v8477_v57, %v8481_v0  ;;  %v8472_v54 = vsel %vm11880_vm2, %v8467_v63, %v8471_v43  ;;  %v8503_v63 = vshll.u32 %v14862_v41, 16 }
 0x467   : > { %8048 = vmatmul.bf16.gmra.mxu3 %v11372_v58  ;;  %8730 = vmatmul.bf16.gmra.mxu0 %v8598_v62  ;;  %v8580_v44 = vunpack.c.l.b16 %v8482_v11  ;;  %v8484_v58 = vshrl.u32 %v8145_v16, 16  ;;  %v8487_v62 = vshll.u32 %v8145_v16, 16 }
 0x469   : > { %v7694_v9 = vpop.f32.mrf.mxu2  ;;  %v8489_v43 = vrot.slane %v8487_v62, 5  ;;  %v8517_v62 = vshll.u32 %v14918_v19, 16 }
 0x46a   : > { %v7765_v7 = vadd.f32 %v7694_v9, %v14657_v17  ;;  %v8009_v5 = vpop.f32.mrf.mxu3  ;;  %v8493_v17 = vshll.u32 %v14849_v3, 16  ;;  %v8579_v9 = vunpack.c.l.b16 %v8472_v54  ;;  %v8505_v54 = vrot.slane %v8503_v63, 5 }
 0x46c   : > { %v15002_v34 = vadd.f32 %v8009_v5, %v7765_v7  ;;  %v8495_v46 = vrot.slane %v8493_v17, 5  ;;  %v15607_v7 = vld [vmem:[#allocation55_spill] sm:$0xff]  ;;  %v8599_v29 = vpack.c.b16 %v8580_v44, %v8579_v9  ;;  %v15608_v17 = vld [vmem:[#allocation54_spill] sm:$0xff] }
 0x46d   : > { %v7298_v59 = vpop.f32.mrf.mxu1  ;;  %v6670_v5 = vadd.f32 %v15607_v7, %v15606_v36 }
 0x46e   : > { %v15006_v27 = vadd.f32 %v7298_v59, %v6669_v22  ;;  %v8486_v22 = vrot.slane %v8484_v58, 4  ;;  %v8500_v59 = vor.u32 %v8499_v37, %v8495_v46  ;;  %v8148_v37 = vld [vmem:[#allocation2 + $0xc0] sm:$0xf] }
 0x46f   : > { %v8508_v7 = vshrl.u32 %v8148_v37, 16 }
 0x470   : > { %9106 = vmatmul.bf16.gmra.mxu1 %v15605_v15  ;;  %v8490_v11 = vor.u32 %v8489_v43, %v8486_v22  ;;  %v8501_v16 = vrot.slane %v8500_v59, 4  ;;  %v6671_v15 = vadd.f32 %v15609_v38, %v15608_v17  ;;  %v15611_v22 = vld [vmem:[#allocation56_spill] sm:$0xff]  ;;  %v15612_v43 = vld [vmem:[#allocation13_spill] sm:$0xff] }
 0x471   : > { %v7696_v42 = vpop.f32.mrf.mxu2  ;;  %v6672_v59 = vadd.f32 %v15612_v43, %v15611_v22  ;;  %v8510_v17 = vrot.slane %v8508_v7, 4  ;;  %v302_v7 = vld [vmem:[#allocation2 + $0xcc] sm:$0x1] }
 0x472   : > { %v7766_v33 = vadd.f32 %v7696_v42, %v14689_v48  ;;  %v8011_v35 = vpop.f32.mrf.mxu3  ;;  %v15023_v48 = vpop.f32.mrf.mxu0  ;;  %v8491_v44 = vrot.slane %v8490_v11, 4  ;;  %v11374_v11 = vld [vmem:[#allocation2 + $0xb4] sm:$0xff] }
 0x474   : > { %v15018_v57 = vadd.f32 %v8011_v35, %v7766_v33  ;;  %v8521_v33 = vshrl.u32 %v14918_v19, 16  ;;  %v15610_v35 = vld [vmem:[#allocation36_spill] sm:$0xff]  ;;  %v8496_v41 = vsel %vm11880_vm2, %v8491_v44, %v8495_v46 }
 0x475   : > { %v7300_v3 = vpop.f32.mrf.mxu1 }
 0x476   : > { %v15020_v0 = vadd.f32 %v7300_v3, %v6670_v5  ;;  %7738 = vmatmul.bf16.gmra.mxu2 %v14750_v60  ;;  %v8506_v60 = vsel %vm11880_vm2, %v8501_v16, %v8505_v54  ;;  %v8511_v5 = vshll.u32 %v8148_v37, 16  ;;  %v8519_v3 = vrot.slane %v8517_v62, 5  ;;  %v15614_v62 = vld [vmem:[#allocation16_spill] sm:$0xff] }
 0x477   : > { %8053 = vmatmul.bf16.gmra.mxu3 %v11373_v10  ;;  %8735 = vmatmul.bf16.gmra.mxu0 %v8599_v29  ;;  %v8582_v36 = vunpack.c.l.b16 %v8506_v60  ;;  %v8523_v10 = vrot.slane %v8521_v33, 4  ;;  %v8581_v29 = vunpack.c.l.b16 %v8496_v41  ;;  %v15613_v60 = vld [vmem:[#allocation11_spill] sm:$0xff] }
 0x478   : > { %v8513_v46 = vrot.slane %v8511_v5, 5  ;;  %v6673_v33 = vadd.f32 %v15614_v62, %v15613_v60 }
 0x479   : > { %v8600_v19 = vpack.c.b16 %v8582_v36, %v8581_v29  ;;  %v8524_v38 = vor.u32 %v8523_v10, %v8519_v3  ;;  %v303_v10 = vsel %vm12936_vm8, 0, %v302_v7 }
 0x47a   : > { %v15037_v9 = vpop.f32.mrf.mxu0  ;;  %v8514_v54 = vor.u32 %v8513_v46, %v8510_v17  ;;  %304 = vst [vmem:[#allocation2 + $0xcc] sm:$0x1] %v303_v10  ;;  %v11375_v46 = vld [vmem:[#allocation2 + $0xc0] sm:$0xff]  ;;  %v15620_v10 = vld [vmem:[#allocation12_spill] sm:$0xff] }
 0x47c   : > { %v8515_v36 = vrot.slane %v8514_v54, 4  ;;  %v358_v54 = vld [vmem:[#allocation2 + $0xd4] sm:$0x1] }
 0x47d   : > { %v7303_v42 = vpop.f32.mrf.mxu1  ;;  %v359_v60 = vsel %vm12947_vm10, 0, %v358_v54 }
 0x47e   : > { %v15028_v58 = vadd.f32 %v7303_v42, %v6671_v15  ;;  %v8527_v15 = vshll.u32 %v14920_v26, 16  ;;  %v8525_v42 = vrot.slane %v8524_v38, 4  ;;  %v15616_v26 = vld [vmem:[#allocation40_spill] sm:$0xff]  ;;  %v8520_v29 = vsel %vm11880_vm2, %v8515_v36, %v8519_v3  ;;  %360 = vst [vmem:[#allocation2 + $0xd4] sm:$0x1] %v359_v60 }
 0x47f   : > { %v8583_v43 = vunpack.c.l.b16 %v8520_v29 }
 0x480   : > { %9111 = vmatmul.bf16.gmra.mxu1 %v15610_v35  ;;  %v8529_v37 = vrot.slane %v8527_v15, 5 }
 0x481   : > { %v8151_v62 = vld [vmem:[#allocation2 + $0xcc] sm:$0xf] }
 0x482   : > { %v15045_v44 = vpop.f32.mrf.mxu0  ;;  %v8535_v36 = vshll.u32 %v8151_v62, 16 }
 0x485   : > { %v7305_v63 = vpop.f32.mrf.mxu1 }
 0x486   : > { %v15041_v16 = vadd.f32 %v7305_v63, %v6672_v59  ;;  %7743 = vmatmul.bf16.gmra.mxu2 %v14820_v55  ;;  %v8530_v55 = vsel %vm11880_vm2, %v8525_v42, %v8529_v37  ;;  %v15617_v59 = vld [vmem:[#allocation35_spill] sm:$0xff]  ;;  %v15065_v42 = vld [vmem:[#allocation2 + $0xd0] sm:$0xf] }
 0x487   : > { %8058 = vmatmul.bf16.gmra.mxu3 %v11374_v11  ;;  %8740 = vmatmul.bf16.gmra.mxu0 %v8600_v19  ;;  %v8584_v22 = vunpack.c.l.b16 %v8530_v55  ;;  %v15618_v63 = vld [vmem:[#allocation15_spill] sm:$0xff]  ;;  %v8545_v37 = vshrl.u32 %v15065_v42, 16 }
 0x488   : > { %v6674_v11 = vadd.f32 %v15618_v63, %v15617_v59 }
 0x489   : > { %v8601_v38 = vpack.c.b16 %v8584_v22, %v8583_v43  ;;  %v8547_v7 = vrot.slane %v8545_v37, 4 }
 0x48a   : > { %v15060_v19 = vpop.f32.mrf.mxu0 }
 0x48d   : > { %v7308_v35 = vpop.f32.mrf.mxu1 }
 0x48e   : > { %v15049_v41 = vadd.f32 %v7308_v35, %v6673_v33  ;;  %v8541_v33 = vshll.u32 %v15065_v42, 16  ;;  %v8532_v35 = vshrl.u32 %v8151_v62, 16 }
 0x490   : > { %9116 = vmatmul.bf16.gmra.mxu1 %v15616_v26  ;;  %v8543_v55 = vrot.slane %v8541_v33, 5  ;;  %v8534_v5 = vrot.slane %v8532_v35, 4  ;;  %v6675_v26 = vadd.f32 %v14675_v61, %v15620_v10  ;;  %v11376_v61 = vld [vmem:[#allocation2 + $0xcc] sm:$0xff]  ;;  %v15622_v33 = vld [vmem:[#allocation14_spill] sm:$0xff]  ;;  %v6677_v10 = vadd.f32 %v14776_v23, %v14654_v20  ;;  %v15626_v20 = vld [vmem:[#allocation53_spill] sm:$0xff] }
 0x491   : > { %v6676_v37 = vadd.f32 %v14727_v49, %v15622_v33  ;;  %v15623_v49 = vld [vmem:[#allocation48_spill] sm:$0xff]  ;;  %v15627_v23 = vld [vmem:[#allocation22_spill] sm:$0xff] }
 0x492   : > { %v8548_v22 = vor.u32 %v8547_v7, %v8543_v55 }
 0x494   : > { %v8549_v54 = vrot.slane %v8548_v22, 4  ;;  %v6678_v22 = vadd.f32 %v14822_v56, %v15624_v40  ;;  %v15628_v56 = vld [vmem:[#allocation21_spill] sm:$0xff] }
 0x495   : > { %v7310_v17 = vpop.f32.mrf.mxu1 }
 0x496   : > { %v15062_v15 = vadd.f32 %v7310_v17, %v6674_v11  ;;  %7748 = vmatmul.bf16.gmra.mxu2 %v14890_v12  ;;  %v8537_v12 = vrot.slane %v8535_v36, 5  ;;  %v15075_v11 = vpop.f32.mrf.mxu0  ;;  %v15077_v17 = vld [vmem:[#allocation2 + $0xd4] sm:$0x1] }
 0x497   : > { %8063 = vmatmul.bf16.gmra.mxu3 %v11375_v46  ;;  %8745 = vmatmul.bf16.gmra.mxu0 %v8601_v38  ;;  %v15621_v46 = vld [vmem:[#allocation44_spill] sm:$0xff]  ;;  %v8551_v3 = vshll.u32 %v15077_v17, 16 }
 0x498   : > { %v8538_v29 = vor.u32 %v8537_v12, %v8534_v5 }
 0x499   : > { %v8553_v60 = vrot.slane %v8551_v3, 5  ;;  %v6680_v3 = vadd.f32 %v14916_v25, %v15627_v23 }
 0x49a   : > { %v8539_v63 = vrot.slane %v8538_v29, 4 }
 0x49b   : > { %v8554_v35 = vsel %vm11880_vm2, %v8549_v54, %v8553_v60 }
 0x49c   : > { %v8544_v38 = vsel %vm11880_vm2, %v8539_v63, %v8543_v55  ;;  %v8586_v7 = vunpack.c.l.b16 %v8554_v35  ;;  %v15629_v35 = vld [vmem:[#allocation57_spill] sm:$0xff] }
 0x49d   : > { %v7313_v43 = vpop.f32.mrf.mxu1  ;;  %v8585_v62 = vunpack.c.l.b16 %v8544_v38 }
 0x49e   : > { %v15073_v59 = vadd.f32 %v7313_v43, %v6675_v26  ;;  %v15090_v12 = vpop.f32.mrf.mxu0 }
 0x49f   : > { %v8602_v55 = vpack.c.b16 %v8586_v7, %v8585_v62  ;;  %v6681_v62 = vadd.f32 %v14958_v30, %v15628_v56  ;;  %v8756_v30 = vadd.f32 %v14989_v50, %v14878_v51  ;;  %v8757_v51 = vadd.f32 %v15004_v24, %v14913_v13  ;;  %v11113_v24 = vld [vmem:[%s11848_s6 + $0x20] sm:$0x1] }
 0x4a0   : > { %9121 = vmatmul.bf16.gmra.mxu1 %v15621_v46 }
 0x4a5   : > { %v7315_v36 = vpop.f32.mrf.mxu1 }
 0x4a6   : > { %v15087_v5 = vadd.f32 %v7315_v36, %v6676_v37  ;;  %7753 = vmatmul.bf16.gmra.mxu2 %v14954_v53  ;;  %v15625_v53 = vld [vmem:[#allocation20_spill] sm:$0xff] }
 0x4a7   : > { %8068 = vmatmul.bf16.gmra.mxu3 %v11376_v61  ;;  %8750 = vmatmul.bf16.gmra.mxu0 %v8602_v55  ;;  %v6679_v46 = vadd.f32 %v14873_v14, %v15625_v53  ;;  %v15630_v14 = vld [vmem:[#allocation26_spill] sm:$0xff] }
 0x4a8   : > { %v6682_v36 = vadd.f32 %v14972_v21, %v15630_v14  ;;  %v15126_v53 = vld [vmem:[%s15430_s4] ss:$0 sm:$0xff]  ;;  %v15138_v14 = vpop.f32.mrf.mxu3 }
 0x4a9   : > { %v15631_v21 = vld [vmem:[#allocation10_spill] sm:$0xff] }
 0x4ad   : > { %v7318_v26 = vpop.f32.mrf.mxu1 }
 0x4ae   : > { %v15094_v29 = vadd.f32 %v7318_v26, %v6677_v10  ;;  %v11108_v10 = vld [vmem:[%s11848_s6 + $0xc] sm:$0xff]   ;;  %v11110_v26 = vld [vmem:[%s11848_s6 + $0x14] sm:$0x1] }
 0x4af   : > { %v9263_v40 = vunpack.c.h.bf16 %v11108_v10 }
 0x4b0   : > { %9126 = vmatmul.bf16.gmra.mxu1 %v15623_v49  ;;  %v9262_v49 = vunpack.c.l.bf16 %v11108_v10  ;;  %v15143_v10 = vpop.f32.mrf.mxu0 }
 0x4b5   : > { %v7320_v43 = vpop.f32.mrf.mxu1 }
 0x4b6   : > { %v15099_v63 = vadd.f32 %v7320_v43, %v6678_v22  ;;  %v9264_v22 = vunpack.c.l.bf16 %v11110_v26 }
 0x4b8   : > { %v9397_v23 = vrot.slane %v9264_v22, 1 }
 0x4bd   : > { %v7323_v38 = vpop.f32.mrf.mxu1 }
 0x4be   : > { %v15103_v54 = vadd.f32 %v7323_v38, %v6679_v46  ;;  %v9394_v46 = vrot.slane %v9262_v49, 1  ;;  %v9395_v38 = vrot.slane %v9263_v40, 1 }
 0x4c0   : > { %9131 = vmatmul.bf16.gmra.mxu1 %v15626_v20  ;;  %v15129_v20 = vpop.f32.mrf.mxu2  ;;  %v9396_v50 = vsel %vm9393_vm15, %v9394_v46, %v9395_v38 }
 0x4c5   : > { %v7325_v60 = vpop.f32.mrf.mxu1 }
 0x4c6   : > { %v15108_v61 = vadd.f32 %v7325_v60, %v6680_v3 }
 0x4cd   : > { %v7328_v33 = vpop.f32.mrf.mxu1 }
 0x4ce   : > { %v15112_v37 = vadd.f32 %v7328_v33, %v6681_v62  ;;  %v9398_v62 = vsel %vm9393_vm15, %v9395_v38, %v9397_v23  ;;  %v15632_v38 = vld [vmem:[#allocation27_spill] sm:$0xff] }
 0x4d0   : > { %9136 = vmatmul.bf16.gmra.mxu1 %v15629_v35 }
 0x4d5   : > { %v7330_v7 = vpop.f32.mrf.mxu1 }
 0x4d6   : > { %v15117_v55 = vadd.f32 %v7330_v7, %v6682_v36  ;;  %v11514_v7 = vld [vmem:[%s11848_s6 + $0x18] sm:$0xff]  }
 0x4d7   : > { %v11404_v40 = vunpack.c.l.bf16 %v11514_v7 }
 0x4d9   : > { %v9399_v23 = vrot.slane %v11404_v40, 1 }
 0x4dd   : > { %v9102_v25 = vpop.f32.mrf.mxu1 }
 0x4de   : > { %v9182_v43 = vadd.f32 %v9102_v25, %v8756_v30  ;;  %v15146_v25 = vpop.f32.mrf.mxu2  ;;  %v11405_v30 = vunpack.c.h.bf16 %v11514_v7 }
 0x4e0   : > { %9141 = vmatmul.bf16.gmra.mxu1 %v15631_v21  ;;  %v9313_v3 = vadd.f32 %v15126_v53, %v9182_v43  ;;  %v8758_v43 = vadd.f32 %v15023_v48, %v14946_v6  ;;  %v9267_v21 = vunpack.c.l.bf16 %v11113_v24  ;;  %v8759_v6 = vadd.f32 %v15037_v9, %v14966_v18  ;;  %v11114_v24 = vld [vmem:[%s11848_s6 + $0x24] sm:$0xff]  }
 0x4e2   : > { %v9506_v33 = vadd.f32 %v9396_v50, %v9313_v3  ;;  %v9400_v3 = vrot.slane %v11405_v30, 1  ;;  %v9402_v50 = vrot.slane %v9267_v21, 1  ;;  %v11116_v30 = vld [vmem:[%s11848_s6 + $0x2c] sm:$0x1] }
 0x4e4   : > { %v9538_v26 = vmax.f32 %v9506_v33, 0.0  ;;  %v9401_v48 = vsel %vm9393_vm15, %v9399_v23, %v9400_v3 }
 0x4e5   : > { %v9104_v60 = vpop.f32.mrf.mxu1 }
 0x4e6   : > { %v9183_v56 = vadd.f32 %v9104_v60, %v8757_v51  ;;  %v15154_v51 = vpop.f32.mrf.mxu3 }
 0x4e8   : > { %v9314_v35 = vadd.f32 %v15126_v53, %v9183_v56 }
 0x4ea   : > { %v9507_v36 = vadd.f32 %v9398_v62, %v9314_v35  ;;  %v15160_v62 = vpop.f32.mrf.mxu0  ;;  %v15162_v35 = vpop.f32.mrf.mxu2 }
 0x4ec   : > { %v9539_v13 = vmax.f32 %v9507_v36, 0.0  ;;  %v9403_v36 = vsel %vm9393_vm15, %v9400_v3, %v9402_v50  ;;  %v15633_v50 = vld [vmem:[#allocation17_spill] sm:$0xff] }
 0x4ed   : > { %v9107_v49 = vpop.f32.mrf.mxu1 }
 0x4ee   : > { %v11437_v22 = vpack.c.bf16 %v9539_v13, %v9538_v26  ;;  %v9184_v46 = vadd.f32 %v9107_v49, %v8758_v43  ;;  %v15168_v18 = vpop.f32.mrf.mxu3  ;;  %v9269_v43 = vunpack.c.h.bf16 %v11114_v24 }
 0x4f0   : > { %11438 = vst [vmem:[%s15150_s26] sm:$0xff] %v11437_v22   ;;  %9146 = vmatmul.bf16.gmra.mxu1 %v15632_v38  ;;  %v9315_v60 = vadd.f32 %v15126_v53, %v9184_v46  ;;  %v9268_v22 = vunpack.c.l.bf16 %v11114_v24  ;;  %v8760_v46 = vadd.f32 %v15045_v44, %v14977_v47  ;;  %v9270_v38 = vunpack.c.l.bf16 %v11116_v30 }
 0x4f2   : > { %v9508_v7 = vadd.f32 %v9401_v48, %v9315_v60  ;;  %v15172_v23 = vpop.f32.mrf.mxu0  ;;  %v15176_v60 = vpop.f32.mrf.mxu2  ;;  %v9405_v48 = vrot.slane %v9269_v43, 1 }
 0x4f4   : > { %v9540_v49 = vmax.f32 %v9508_v7, 0.0 }
 0x4f5   : > { %v9109_v56 = vpop.f32.mrf.mxu1 }
 0x4f6   : > { %v9185_v33 = vadd.f32 %v9109_v56, %v8759_v6  ;;  %v9404_v6 = vrot.slane %v9268_v22, 1  ;;  %v9407_v56 = vrot.slane %v9270_v38, 1 }
 0x4f8   : > { %v9316_v26 = vadd.f32 %v15126_v53, %v9185_v33  ;;  %v9406_v47 = vsel %vm9393_vm15, %v9404_v6, %v9405_v48 }
 0x4fa   : > { %v9509_v13 = vadd.f32 %v9403_v36, %v9316_v26  ;;  %v8761_v36 = vadd.f32 %v15060_v19, %v14993_v32  ;;  %v15182_v26 = vpop.f32.mrf.mxu3  ;;  %v15189_v22 = vpop.f32.mrf.mxu2  ;;  %v11119_v19 = vld [vmem:[%s11848_s6 + $0x38] sm:$0x1] }
 0x4fb   : > { %v9273_v6 = vunpack.c.l.bf16 %v11119_v19 }
 0x4fc   : > { %v9541_v40 = vmax.f32 %v9509_v13, 0.0  ;;  %v9408_v13 = vsel %vm9393_vm15, %v9405_v48, %v9407_v56  ;;  %v15634_v56 = vld [vmem:[#allocation28_spill] sm:$0xff] }
 0x4fd   : > { %v9112_v9 = vpop.f32.mrf.mxu1 }
 0x4fe   : > { %v11442_v21 = vpack.c.bf16 %v9541_v40, %v9540_v49  ;;  %v9186_v3 = vadd.f32 %v9112_v9, %v8760_v46  ;;  %v15186_v40 = vpop.f32.mrf.mxu0  ;;  %v11515_v9 = vld [vmem:[%s11848_s6 + $0x30] sm:$0xff]  }
 0x4ff   : > { %v11408_v46 = vunpack.c.l.bf16 %v11515_v9  ;;  %v11409_v38 = vunpack.c.h.bf16 %v11515_v9 }
 0x500   : > { %11522 = vst [vmem:[%s15150_s26 + $0x8] sm:$0xff] %v11442_v21   ;;  %9151 = vmatmul.bf16.gmra.mxu1 %v15633_v50  ;;  %v9317_v33 = vadd.f32 %v15126_v53, %v9186_v3  ;;  %v8762_v50 = vadd.f32 %v15075_v11, %v15002_v34 }
 0x502   : > { %v9510_v24 = vadd.f32 %v9406_v47, %v9317_v33  ;;  %v15196_v33 = vpop.f32.mrf.mxu3  ;;  %v9410_v47 = vrot.slane %v11409_v38, 1  ;;  %v15203_v34 = vpop.f32.mrf.mxu2 }
 0x504   : > { %v9542_v43 = vmax.f32 %v9510_v24, 0.0  ;;  %v8763_v24 = vadd.f32 %v15090_v12, %v15018_v57  ;;  %v11120_v57 = vld [vmem:[%s11848_s6 + $0x3c] sm:$0xff]  }
 0x505   : > { %v9114_v44 = vpop.f32.mrf.mxu1 }
 0x506   : > { %v9187_v7 = vadd.f32 %v9114_v44, %v8761_v36  ;;  %v9409_v36 = vrot.slane %v11408_v46, 1  ;;  %v9412_v44 = vrot.slane %v9273_v6, 1 }
 0x508   : > { %v9318_v49 = vadd.f32 %v15126_v53, %v9187_v7  ;;  %v15198_v7 = vpop.f32.mrf.mxu0  ;;  %v9411_v11 = vsel %vm9393_vm15, %v9409_v36, %v9410_v47  ;;  %v9274_v36 = vunpack.c.l.bf16 %v11120_v57 }
 0x50a   : > { %v9511_v30 = vadd.f32 %v9408_v13, %v9318_v49  ;;  %v15212_v12 = vpop.f32.mrf.mxu3 }
 0x50c   : > { %v9543_v32 = vmax.f32 %v9511_v30, 0.0  ;;  %v15635_v30 = vld [vmem:[#allocation19_spill] sm:$0xff] }
 0x50d   : > { %v9117_v21 = vpop.f32.mrf.mxu1  ;;  %v7767_v9 = vadd.f32 %v15129_v20, %v15635_v30 }
 0x50e   : > { %v11447_v3 = vpack.c.bf16 %v9543_v32, %v9542_v43  ;;  %v9188_v48 = vadd.f32 %v9117_v21, %v8762_v50  ;;  %v9413_v32 = vsel %vm9393_vm15, %v9410_v47, %v9412_v44 }
 0x50f   : > { %v8082_v46 = vadd.f32 %v15138_v14, %v7767_v9  ;;  %v15220_v14 = vpop.f32.mrf.mxu2 }
 0x510   : > { %11523 = vst [vmem:[%s15150_s26 + $0x10] sm:$0xff] %v11447_v3   ;;  %9156 = vmatmul.bf16.gmra.mxu1 %v15634_v56  ;;  %v9319_v13 = vadd.f32 %v15126_v53, %v9188_v48  ;;  %v15636_v3 = vld [vmem:[#allocation18_spill] sm:$0xff]  ;;  %v15217_v47 = vpop.f32.mrf.mxu0 }
 0x511   : > { %v7768_v50 = vadd.f32 %v15146_v25, %v15636_v3  ;;  %v11122_v56 = vld [vmem:[%s11848_s6 + $0x44] sm:$0x1]  ;;  %v9414_v25 = vrot.slane %v9274_v36, 1 }
 0x512   : > { %v9512_v19 = vadd.f32 %v9411_v11, %v9319_v13  ;;  %v8764_v13 = vadd.f32 %v15143_v10, %v8082_v46  ;;  %v9276_v11 = vunpack.c.l.bf16 %v11122_v56  ;;  %v15638_v36 = vld [vmem:[#allocation30_spill] sm:$0xff] }
 0x514   : > { %v9544_v6 = vmax.f32 %v9512_v19, 0.0 }
 0x515   : > { %v9119_v49 = vpop.f32.mrf.mxu1 }
 0x516   : > { %v9189_v43 = vadd.f32 %v9119_v49, %v8763_v24  ;;  %v9275_v24 = vunpack.c.h.bf16 %v11120_v57  ;;  %v8083_v49 = vadd.f32 %v15154_v51, %v7768_v50 }
 0x518   : > { %v9320_v21 = vadd.f32 %v15126_v53, %v9189_v43  ;;  %v9415_v9 = vrot.slane %v9275_v24, 1  ;;  %v9417_v43 = vrot.slane %v9276_v11, 1  ;;  %v8765_v19 = vadd.f32 %v15160_v62, %v8083_v49  ;;  %v15233_v3 = vpop.f32.mrf.mxu0 }
 0x519   : > { %v7770_v24 = vadd.f32 %v15176_v60, %v15638_v36 }
 0x51a   : > { %v9513_v38 = vadd.f32 %v9413_v32, %v9320_v21  ;;  %v15227_v21 = vpop.f32.mrf.mxu3  ;;  %v9416_v10 = vsel %vm9393_vm15, %v9414_v25, %v9415_v9 }
 0x51c   : > { %v9545_v48 = vmax.f32 %v9513_v38, 0.0  ;;  %v15637_v38 = vld [vmem:[#allocation23_spill] sm:$0xff] }
 0x51d   : > { %v9122_v20 = vpop.f32.mrf.mxu1  ;;  %v7769_v51 = vadd.f32 %v15162_v35, %v15637_v38 }
 0x51e   : > { %v11452_v44 = vpack.c.bf16 %v9545_v48, %v9544_v6  ;;  %v9190_v30 = vadd.f32 %v9122_v20, %v8764_v13  ;;  %v15236_v48 = vpop.f32.mrf.mxu2  ;;  %v11516_v20 = vld [vmem:[%s11848_s6 + $0x48] sm:$0xff]   ;;  %v11125_v13 = vld [vmem:[%s11848_s6 + $0x50] sm:$0x1] }
 0x51f   : > { %v8084_v62 = vadd.f32 %v15168_v18, %v7769_v51  ;;  %v11412_v49 = vunpack.c.l.bf16 %v11516_v20 }
 0x520   : > { %11524 = vst [vmem:[%s15150_s26 + $0x18] sm:$0xff] %v11452_v44   ;;  %9161 = vmatmul.bf16.gmra.mxu1 %v14868_v52  ;;  %v9321_v32 = vadd.f32 %v15126_v53, %v9190_v30  ;;  %v9418_v52 = vsel %vm9393_vm15, %v9415_v9, %v9417_v43  ;;  %v11413_v30 = vunpack.c.h.bf16 %v11516_v20 }
 0x521   : > { %v8766_v9 = vadd.f32 %v15172_v23, %v8084_v62  ;;  %v9419_v60 = vrot.slane %v11412_v49, 1 }
 0x522   : > { %v9514_v50 = vadd.f32 %v9416_v10, %v9321_v32  ;;  %v15244_v43 = vpop.f32.mrf.mxu3  ;;  %v9279_v32 = vunpack.c.l.bf16 %v11125_v13  ;;  %v9420_v10 = vrot.slane %v11413_v30, 1  ;;  %v11128_v30 = vld [vmem:[%s11848_s6 + $0x5c] sm:$0x1] }
 0x524   : > { %v9546_v44 = vmax.f32 %v9514_v50, 0.0  ;;  %v9422_v51 = vrot.slane %v9279_v32, 1  ;;  %v15639_v50 = vld [vmem:[#allocation29_spill] sm:$0xff] }
 0x525   : > { %v9124_v46 = vpop.f32.mrf.mxu1 }
 0x526   : > { %v9191_v57 = vadd.f32 %v9124_v46, %v8765_v19  ;;  %v8085_v19 = vadd.f32 %v15182_v26, %v7770_v24  ;;  %v15249_v46 = vpop.f32.mrf.mxu0  ;;  %v15251_v38 = vpop.f32.mrf.mxu2  ;;  %v9423_v62 = vsel %vm9393_vm15, %v9420_v10, %v9422_v51  ;;  %v11126_v24 = vld [vmem:[%s11848_s6 + $0x54] sm:$0xff]  }
 0x527   : > { %v9280_v49 = vunpack.c.l.bf16 %v11126_v24  ;;  %v9281_v32 = vunpack.c.h.bf16 %v11126_v24 }
 0x528   : > { %v9322_v6 = vadd.f32 %v15126_v53, %v9191_v57  ;;  %v8767_v23 = vadd.f32 %v15186_v40, %v8085_v19  ;;  %v7772_v40 = vadd.f32 %v15203_v34, %v14922_v4  ;;  %v8976_v19 = vrot.slane %v15065_v42, 5 }
 0x529   : > { %v9424_v34 = vrot.slane %v9280_v49, 1  ;;  %v11517_v49 = vld [vmem:[%s11848_s6 + $0x60] sm:$0xff]  }
 0x52a   : > { %v9515_v56 = vadd.f32 %v9418_v52, %v9322_v6  ;;  %v9421_v52 = vsel %vm9393_vm15, %v9419_v60, %v9420_v10  ;;  %v7771_v6 = vadd.f32 %v15189_v22, %v15639_v50  ;;  %v15260_v36 = vpop.f32.mrf.mxu3  ;;  %v8803_v60 = vld [vmem:[#allocation2 + $0xcc] sm:$0xe]  ;;  %v9282_v10 = vunpack.c.l.bf16 %v11128_v30 }
 0x52b   : > { %v8087_v51 = vadd.f32 %v15212_v12, %v7772_v40 }
 0x52c   : > { %v9547_v35 = vmax.f32 %v9515_v56, 0.0  ;;  %v9427_v42 = vrot.slane %v9282_v10, 1 }
 0x52d   : > { %v9127_v11 = vpop.f32.mrf.mxu1 }
 0x52e   : > { %v11457_v25 = vpack.c.bf16 %v9547_v35, %v9546_v44  ;;  %v9192_v18 = vadd.f32 %v9127_v11, %v8766_v9  ;;  %v8086_v44 = vadd.f32 %v15196_v33, %v7771_v6  ;;  %v15266_v13 = vpop.f32.mrf.mxu0 }
 0x530   : > { %11525 = vst [vmem:[%s15150_s26 + $0x20] sm:$0xff] %v11457_v25   ;;  %9166 = vmatmul.bf16.gmra.mxu1 %v14908_v28  ;;  %v9323_v57 = vadd.f32 %v15126_v53, %v9192_v18  ;;  %v15269_v25 = vpop.f32.mrf.mxu2  ;;  %v8768_v33 = vadd.f32 %v15198_v7, %v8086_v44  ;;  %v8769_v7 = vadd.f32 %v15217_v47, %v8087_v51 }
 0x532   : > { %v9516_v56 = vadd.f32 %v9421_v52, %v9323_v57  ;;  %v9425_v57 = vrot.slane %v9281_v32, 1  ;;  %v8978_v52 = vrot.slane %v8976_v19, 4  ;;  %v15277_v50 = vpop.f32.mrf.mxu3  ;;  %v11131_v32 = vld [vmem:[%s11848_s6 + $0x68] sm:$0x1] }
 0x534   : > { %v9548_v11 = vmax.f32 %v9516_v56, 0.0  ;;  %v9426_v12 = vsel %vm9393_vm15, %v9424_v34, %v9425_v57  ;;  %v9428_v47 = vsel %vm9393_vm15, %v9425_v57, %v9427_v42 }
 0x535   : > { %v9129_v26 = vpop.f32.mrf.mxu1 }
 0x536   : > { %v9193_v28 = vadd.f32 %v9129_v26, %v8767_v23  ;;  %v11075_v23 = vrot.slane %v8803_v60, 9  ;;  %v8979_v26 = vrot.slane %v15077_v17, 5  ;;  %v7773_v17 = vadd.f32 %v15220_v14, %v14952_v8  ;;  %v15288_v56 = vpop.f32.mrf.mxu0 }
 0x537   : > { %v7774_v8 = vadd.f32 %v15236_v48, %v14968_v31  ;;  %v11417_v60 = vunpack.c.h.bf16 %v11517_v49 }
 0x538   : > { %v9324_v20 = vadd.f32 %v15126_v53, %v9193_v28  ;;  %v15290_v24 = vpop.f32.mrf.mxu2 }
 0x53a   : > { %v9517_v35 = vadd.f32 %v9423_v62, %v9324_v20  ;;  %v8977_v62 = vsel %vm12183_vm5, %v11075_v23, %v8976_v19  ;;  %v8039_v19 = vpop.f32.mrf.mxu3  ;;  %v9430_v23 = vrot.slane %v11417_v60, 1 }
 0x53b   : > { %v9011_v40 = vunpack.c.l.b16 %v8977_v62 }
 0x53c   : > { %v9549_v22 = vmax.f32 %v9517_v35, 0.0 }
 0x53d   : > { %v9132_v9 = vpop.f32.mrf.mxu1 }
 0x53e   : > { %v11462_v18 = vpack.c.bf16 %v9549_v22, %v9548_v11  ;;  %v9194_v4 = vadd.f32 %v9132_v9, %v8768_v33  ;;  %v8088_v22 = vadd.f32 %v15227_v21, %v7773_v17  ;;  %v11416_v33 = vunpack.c.l.bf16 %v11517_v49  ;;  %v15301_v34 = vpop.f32.mrf.mxu0 }
 0x53f   : > { %v8089_v21 = vadd.f32 %v15244_v43, %v7774_v8  ;;  %v7775_v43 = vadd.f32 %v15251_v38, %v14979_v1  ;;  %v11134_v1 = vld [vmem:[%s11848_s6 + $0x74] sm:$0x1] }
 0x540   : > { %11526 = vst [vmem:[%s15150_s26 + $0x28] sm:$0xff] %v11462_v18   ;;  %9171 = vmatmul.bf16.gmra.mxu1 %v14956_v45  ;;  %v9325_v6 = vadd.f32 %v15126_v53, %v9194_v4  ;;  %v8980_v45 = vsel %vm12183_vm5, %v8978_v52, %v8979_v26  ;;  %v8770_v51 = vadd.f32 %v15233_v3, %v8088_v22  ;;  %v9285_v4 = vunpack.c.l.bf16 %v11131_v32  ;;  %v7726_v31 = vpop.f32.mrf.mxu2 }
 0x541   : > { %v9012_v11 = vunpack.c.l.b16 %v8980_v45  ;;  %v9429_v48 = vrot.slane %v11416_v33, 1  ;;  %v8771_v42 = vadd.f32 %v15249_v46, %v8089_v21  ;;  %v8090_v17 = vadd.f32 %v15260_v36, %v7775_v43  ;;  %v11132_v46 = vld [vmem:[%s11848_s6 + $0x6c] sm:$0xff]   ;;  %v11137_v43 = vld [vmem:[%s11848_s6 + $0x80] sm:$0x1] }
 0x542   : > { %v9518_v44 = vadd.f32 %v9426_v12, %v9325_v6  ;;  %v9432_v52 = vrot.slane %v9285_v4, 1  ;;  %v8041_v12 = vpop.f32.mrf.mxu3  ;;  %v9286_v22 = vunpack.c.l.bf16 %v11132_v46 }
 0x543   : > { %v9028_v9 = vpack.c.b16 %v9012_v11, %v9011_v40  ;;  %v9431_v6 = vsel %vm9393_vm15, %v9429_v48, %v9430_v23  ;;  %v8772_v8 = vadd.f32 %v15266_v13, %v8090_v17 }
 0x544   : > { %v9550_v14 = vmax.f32 %v9518_v44, 0.0  ;;  %v9434_v32 = vrot.slane %v9286_v22, 1 }
 0x545   : > { %v9134_v28 = vpop.f32.mrf.mxu1 }
 0x546   : > { %v9195_v20 = vadd.f32 %v9134_v28, %v8769_v7  ;;  %v9433_v28 = vsel %vm9393_vm15, %v9430_v23, %v9432_v52 }
 0x548   : > { %v9326_v35 = vadd.f32 %v15126_v53, %v9195_v20  ;;  %v8723_v20 = vpop.f32.mrf.mxu0  ;;  %v7729_v44 = vpop.f32.mrf.mxu2 }
 0x54a   : > { %v9519_v39 = vadd.f32 %v9428_v47, %v9326_v35  ;;  %v7776_v35 = vadd.f32 %v15269_v25, %v14995_v2 }
 0x54c   : > { %v9551_v30 = vmax.f32 %v9519_v39, 0.0  ;;  %v9287_v39 = vunpack.c.h.bf16 %v11132_v46  ;;  %v8091_v36 = vadd.f32 %v15277_v50, %v7776_v35  ;;  %v7777_v50 = vadd.f32 %v15290_v24, %v15006_v27 }
 0x54d   : > { %v9137_v18 = vpop.f32.mrf.mxu1 }
 0x54e   : > { %v11467_v10 = vpack.c.bf16 %v9551_v30, %v9550_v14  ;;  %v9196_v57 = vadd.f32 %v9137_v18, %v8770_v51  ;;  %v9288_v14 = vunpack.c.l.bf16 %v11134_v1  ;;  %v9435_v18 = vrot.slane %v9287_v39, 1 }
 0x54f   : > { %v8773_v60 = vadd.f32 %v15288_v56, %v8091_v36  ;;  %v8092_v23 = vadd.f32 %v8039_v19, %v7777_v50  ;;  %v7778_v56 = vadd.f32 %v7726_v31, %v15020_v0  ;;  %v7779_v39 = vadd.f32 %v7729_v44, %v15028_v58 }
 0x550   : > { %11527 = vst [vmem:[%s15150_s26 + $0x30] sm:$0xff] %v11467_v10   ;;  %9176 = vmatmul.bf16.gmra.mxu1 %v9028_v9  ;;  %v9327_v26 = vadd.f32 %v15126_v53, %v9196_v57  ;;  %v8044_v9 = vpop.f32.mrf.mxu3  ;;  %v9437_v33 = vrot.slane %v9288_v14, 1  ;;  %v8726_v2 = vpop.f32.mrf.mxu0  ;;  %v9436_v51 = vsel %vm9393_vm15, %v9434_v32, %v9435_v18 }
 0x551   : > { %v7731_v10 = vpop.f32.mrf.mxu2  ;;  %v8093_v46 = vadd.f32 %v8041_v12, %v7778_v56 }
 0x552   : > { %v9520_v62 = vadd.f32 %v9431_v6, %v9327_v26  ;;  %v9438_v21 = vsel %vm9393_vm15, %v9435_v18, %v9437_v33  ;;  %v11518_v26 = vld [vmem:[%s11848_s6 + $0x78] sm:$0xff]   ;;  %v11138_v18 = vld [vmem:[%s11848_s6 + $0x84] sm:$0xff]  }
 0x553   : > { %v8775_v31 = vadd.f32 %v8723_v20, %v8093_v46  ;;  %v7780_v20 = vadd.f32 %v7731_v10, %v15041_v16  ;;  %v9293_v58 = vunpack.c.h.bf16 %v11138_v18 }
 0x554   : > { %v9552_v40 = vmax.f32 %v9520_v62, 0.0  ;;  %v11421_v62 = vunpack.c.h.bf16 %v11518_v26 }
 0x555   : > { %v9139_v3 = vpop.f32.mrf.mxu1 }
 0x556   : > { %v9197_v7 = vadd.f32 %v9139_v3, %v8771_v42 }
 0x558   : > { %v9328_v45 = vadd.f32 %v15126_v53, %v9197_v7  ;;  %v8046_v42 = vpop.f32.mrf.mxu3  ;;  %v8728_v27 = vpop.f32.mrf.mxu0 }
 0x559   : > { %v7734_v17 = vpop.f32.mrf.mxu2 }
 0x55a   : > { %v9521_v47 = vadd.f32 %v9433_v28, %v9328_v45  ;;  %v11420_v28 = vunpack.c.l.bf16 %v11518_v26  ;;  %v8774_v45 = vadd.f32 %v15301_v34, %v8092_v23 }
 0x55c   : > { %v9553_v11 = vmax.f32 %v9521_v47, 0.0  ;;  %v9291_v47 = vunpack.c.l.bf16 %v11137_v43  ;;  %v9439_v35 = vrot.slane %v11420_v28, 1 }
 0x55d   : > { %v9142_v38 = vpop.f32.mrf.mxu1 }
 0x55e   : > { %v11472_v49 = vpack.c.bf16 %v9553_v11, %v9552_v40  ;;  %v9198_v30 = vadd.f32 %v9142_v38, %v8772_v8  ;;  %v9440_v40 = vrot.slane %v11421_v62, 1  ;;  %v9442_v11 = vrot.slane %v9291_v47, 1  ;;  %v11519_v47 = vld [vmem:[%s11848_s6 + $0x90] sm:$0xff]  }
 0x560   : > { %11528 = vst [vmem:[%s15150_s26 + $0x38] sm:$0xff] %v11472_v49   ;;  %v9329_v25 = vadd.f32 %v15126_v53, %v9198_v30  ;;  %v8049_v1 = vpop.f32.mrf.mxu3  ;;  %v9441_v38 = vsel %vm9393_vm15, %v9439_v35, %v9440_v40  ;;  %v9443_v49 = vsel %vm9393_vm15, %v9440_v40, %v9442_v11  ;;  %v8731_v12 = vpop.f32.mrf.mxu0  ;;  %v8094_v30 = vadd.f32 %v8044_v9, %v7779_v39  ;;  %v11143_v40 = vld [vmem:[%s11848_s6 + $0x98] sm:$0x1] }
 0x561   : > { %v7736_v36 = vpop.f32.mrf.mxu2 }
 0x562   : > { %v9522_v57 = vadd.f32 %v9436_v51, %v9329_v25  ;;  %v8776_v50 = vadd.f32 %v8726_v2, %v8094_v30  ;;  %v7781_v2 = vadd.f32 %v7734_v17, %v15049_v41  ;;  %v7782_v46 = vadd.f32 %v7736_v36, %v15062_v15 }
 0x563   : > { %v11424_v41 = vunpack.c.l.bf16 %v11519_v47  ;;  %v11425_v17 = vunpack.c.h.bf16 %v11519_v47 }
 0x564   : > { %v9554_v6 = vmax.f32 %v9522_v57, 0.0  ;;  %v8095_v57 = vadd.f32 %v8046_v42, %v7780_v20 }
 0x565   : > { %v9144_v13 = vpop.f32.mrf.mxu1 }
 0x566   : > { %v9199_v4 = vadd.f32 %v9144_v13, %v8773_v60  ;;  %v11140_v60 = vld [vmem:[%s11848_s6 + $0x8c] sm:$0x1]  ;;  %v9292_v13 = vunpack.c.l.bf16 %v11138_v18  ;;  %v8777_v10 = vadd.f32 %v8728_v27, %v8095_v57  ;;  %v11146_v57 = vld [vmem:[%s11848_s6 + $0xa4] sm:$0x1] }
 0x568   : > { %v9330_v48 = vadd.f32 %v15126_v53, %v9199_v4  ;;  %v8051_v4 = vpop.f32.mrf.mxu3  ;;  %v9444_v23 = vrot.slane %v9292_v13, 1  ;;  %v8733_v9 = vpop.f32.mrf.mxu0 }
 0x569   : > { %v7739_v26 = vpop.f32.mrf.mxu2  ;;  %v8097_v39 = vadd.f32 %v8051_v4, %v7782_v46 }
 0x56a   : > { %v9523_v52 = vadd.f32 %v9438_v21, %v9330_v48  ;;  %v9294_v21 = vunpack.c.l.bf16 %v11140_v60  ;;  %v7783_v18 = vadd.f32 %v7739_v26, %v15073_v59 }
 0x56b   : > { %v8779_v36 = vadd.f32 %v8733_v9, %v8097_v39 }
 0x56c   : > { %v9555_v3 = vmax.f32 %v9523_v52, 0.0  ;;  %v9445_v52 = vrot.slane %v9293_v58, 1  ;;  %v9447_v56 = vrot.slane %v9294_v21, 1 }
 0x56d   : > { %v9147_v7 = vpop.f32.mrf.mxu1 }
 0x56e   : > { %v11477_v24 = vpack.c.bf16 %v9555_v3, %v9554_v6  ;;  %v9200_v19 = vadd.f32 %v9147_v7, %v8774_v45  ;;  %v9446_v6 = vsel %vm9393_vm15, %v9444_v23, %v9445_v52  ;;  %v9448_v42 = vsel %vm9393_vm15, %v9445_v52, %v9447_v56 }
 0x56f   : > { %v9300_v56 = vunpack.c.l.bf16 %v11146_v57  ;;  %v11150_v57 = vld [vmem:[%s11848_s6 + $0xb4] sm:$0xff]  }
 0x570   : > { %11529 = vst [vmem:[%s15150_s26 + $0x40] sm:$0xff] %v11477_v24   ;;  %v9331_v0 = vadd.f32 %v15126_v53, %v9200_v19  ;;  %v8054_v62 = vpop.f32.mrf.mxu3  ;;  %v8096_v24 = vadd.f32 %v8049_v1, %v7781_v2  ;;  %v8736_v27 = vpop.f32.mrf.mxu0  ;;  %v9449_v1 = vrot.slane %v11424_v41, 1 }
 0x571   : > { %v7741_v11 = vpop.f32.mrf.mxu2  ;;  %v8098_v13 = vadd.f32 %v8054_v62, %v7783_v18 }
 0x572   : > { %v9524_v8 = vadd.f32 %v9441_v38, %v9331_v0  ;;  %v8778_v38 = vadd.f32 %v8731_v12, %v8096_v24 }
 0x573   : > { %v8780_v26 = vadd.f32 %v8736_v27, %v8098_v13 }
 0x574   : > { %v9556_v33 = vmax.f32 %v9524_v8, 0.0 }
 0x575   : > { %v9149_v22 = vpop.f32.mrf.mxu1 }
 0x576   : > { %v9201_v34 = vadd.f32 %v9149_v22, %v8775_v31  ;;  %v9297_v22 = vunpack.c.l.bf16 %v11143_v40 }
 0x578   : > { %v9332_v14 = vadd.f32 %v15126_v53, %v9201_v34  ;;  %v8056_v8 = vpop.f32.mrf.mxu3  ;;  %v8738_v20 = vpop.f32.mrf.mxu0 }
 0x57a   : > { %v9525_v32 = vadd.f32 %v9443_v49, %v9332_v14  ;;  %v9450_v49 = vrot.slane %v11425_v17, 1  ;;  %v9452_v14 = vrot.slane %v9297_v22, 1  ;;  %v11149_v22 = vld [vmem:[%s11848_s6 + $0xb0] sm:$0x1] }
 0x57c   : > { %v9557_v25 = vmax.f32 %v9525_v32, 0.0  ;;  %v9451_v30 = vsel %vm9393_vm15, %v9449_v1, %v9450_v49 }
 0x57d   : > { %v9152_v51 = vpop.f32.mrf.mxu1 }
 0x57e   : > { %v11482_v44 = vpack.c.bf16 %v9557_v25, %v9556_v33  ;;  %v9202_v48 = vadd.f32 %v9152_v51, %v8776_v50  ;;  %v7744_v33 = vpop.f32.mrf.mxu2  ;;  %v9453_v25 = vsel %vm9393_vm15, %v9450_v49, %v9452_v14  ;;  %v7784_v50 = vadd.f32 %v7741_v11, %v15087_v5 }
 0x57f   : > { %v7785_v24 = vadd.f32 %v7744_v33, %v15094_v29 }
 0x580   : > { %11530 = vst [vmem:[%s15150_s26 + $0x48] sm:$0xff] %v11482_v44   ;;  %v9333_v16 = vadd.f32 %v15126_v53, %v9202_v48  ;;  %v11144_v44 = vld [vmem:[%s11848_s6 + $0x9c] sm:$0xff]   ;;  %v8059_v48 = vpop.f32.mrf.mxu3 }
 0x581   : > { %v9298_v59 = vunpack.c.l.bf16 %v11144_v44  ;;  %v9299_v52 = vunpack.c.h.bf16 %v11144_v44 }
 0x582   : > { %v9526_v7 = vadd.f32 %v9446_v6, %v9333_v16  ;;  %v8099_v16 = vadd.f32 %v8056_v8, %v7784_v50  ;;  %v9303_v8 = vunpack.c.l.bf16 %v11149_v22 }
 0x583   : > { %v9454_v2 = vrot.slane %v9298_v59, 1 }
 0x584   : > { %v9558_v19 = vmax.f32 %v9526_v7, 0.0  ;;  %v8781_v7 = vadd.f32 %v8738_v20, %v8099_v16  ;;  %v9462_v18 = vrot.slane %v9303_v8, 1  ;;  %v9305_v16 = vunpack.c.h.bf16 %v11150_v57 }
 0x585   : > { %v9154_v3 = vpop.f32.mrf.mxu1 }
 0x586   : > { %v9203_v43 = vadd.f32 %v9154_v3, %v8777_v10  ;;  %v8741_v10 = vpop.f32.mrf.mxu0  ;;  %v7746_v3 = vpop.f32.mrf.mxu2 }
 0x587   : > { %v7786_v17 = vadd.f32 %v7746_v3, %v15099_v63 }
 0x588   : > { %v9334_v28 = vadd.f32 %v15126_v53, %v9203_v43  ;;  %v9455_v43 = vrot.slane %v9299_v52, 1  ;;  %v8061_v47 = vpop.f32.mrf.mxu3 }
 0x589   : > { %v8101_v14 = vadd.f32 %v8061_v47, %v7786_v17 }
 0x58a   : > { %v9527_v45 = vadd.f32 %v9448_v42, %v9334_v28  ;;  %v9457_v42 = vrot.slane %v9300_v56, 1  ;;  %v9456_v28 = vsel %vm9393_vm15, %v9454_v2, %v9455_v43  ;;  %v9304_v56 = vunpack.c.l.bf16 %v11150_v57 }
 0x58c   : > { %v9559_v35 = vmax.f32 %v9527_v45, 0.0  ;;  %v9458_v46 = vsel %vm9393_vm15, %v9455_v43, %v9457_v42 }
 0x58d   : > { %v9157_v0 = vpop.f32.mrf.mxu1 }
 0x58e   : > { %v11487_v31 = vpack.c.bf16 %v9559_v35, %v9558_v19  ;;  %v9204_v34 = vadd.f32 %v9157_v0, %v8778_v38  ;;  %v8100_v35 = vadd.f32 %v8059_v48, %v7785_v24  ;;  %v8743_v40 = vpop.f32.mrf.mxu0  ;;  %v11520_v0 = vld [vmem:[%s11848_s6 + $0xa8] sm:$0xff]   ;;  %v7749_v41 = vpop.f32.mrf.mxu2 }
 0x58f   : > { %v11428_v29 = vunpack.c.l.bf16 %v11520_v0 }
 0x590   : > { %11531 = vst [vmem:[%s15150_s26 + $0x50] sm:$0xff] %v11487_v31   ;;  %v9335_v15 = vadd.f32 %v15126_v53, %v9204_v34  ;;  %v11429_v34 = vunpack.c.h.bf16 %v11520_v0  ;;  %v8782_v49 = vadd.f32 %v8741_v10, %v8100_v35 }
 0x592   : > { %v9528_v60 = vadd.f32 %v9451_v30, %v9335_v15  ;;  %v9459_v30 = vrot.slane %v11428_v29, 1  ;;  %v11155_v29 = vld [vmem:[%s11848_s6 + $0xc8] sm:$0x1] }
 0x594   : > { %v9560_v4 = vmax.f32 %v9528_v60, 0.0 }
 0x595   : > { %v9159_v32 = vpop.f32.mrf.mxu1 }
 0x596   : > { %v9205_v12 = vadd.f32 %v9159_v32, %v8779_v36  ;;  %v8064_v36 = vpop.f32.mrf.mxu3  ;;  %v9460_v32 = vrot.slane %v11429_v34, 1  ;;  %v8746_v20 = vpop.f32.mrf.mxu0 }
 0x597   : > { %v7751_v33 = vpop.f32.mrf.mxu2 }
 0x598   : > { %v9336_v51 = vadd.f32 %v15126_v53, %v9205_v12  ;;  %v8783_v12 = vadd.f32 %v8743_v40, %v8101_v14 }
 0x59a   : > { %v9529_v58 = vadd.f32 %v9453_v25, %v9336_v51  ;;  %v9461_v25 = vsel %vm9393_vm15, %v9459_v30, %v9460_v32  ;;  %v7787_v51 = vadd.f32 %v7749_v41, %v15103_v54 }
 0x59c   : > { %v9561_v21 = vmax.f32 %v9529_v58, 0.0  ;;  %v9463_v58 = vsel %vm9393_vm15, %v9460_v32, %v9462_v18 }
 0x59d   : > { %v9162_v23 = vpop.f32.mrf.mxu1 }
 0x59e   : > { %v11492_v9 = vpack.c.bf16 %v9561_v21, %v9560_v4  ;;  %v9206_v6 = vadd.f32 %v9162_v23, %v8780_v26  ;;  %v8102_v4 = vadd.f32 %v8064_v36, %v7787_v51  ;;  %v8066_v48 = vpop.f32.mrf.mxu3  ;;  %v7788_v23 = vadd.f32 %v7751_v33, %v15108_v61 }
 0x59f   : > { %v7754_v3 = vpop.f32.mrf.mxu2 }
 0x5a0   : > { %11532 = vst [vmem:[%s15150_s26 + $0x58] sm:$0xff] %v11492_v9   ;;  %v9337_v5 = vadd.f32 %v15126_v53, %v9206_v6  ;;  %v11152_v9 = vld [vmem:[%s11848_s6 + $0xbc] sm:$0x1]  ;;  %v8784_v10 = vadd.f32 %v8746_v20, %v8102_v4  ;;  %v8748_v6 = vpop.f32.mrf.mxu0  ;;  %v8103_v43 = vadd.f32 %v8066_v48, %v7788_v23 }
 0x5a1   : > { %v9306_v2 = vunpack.c.l.bf16 %v11152_v9 }
 0x5a2   : > { %v9530_v27 = vadd.f32 %v9456_v28, %v9337_v5  ;;  %v9464_v5 = vrot.slane %v9304_v56, 1  ;;  %v8785_v24 = vadd.f32 %v8748_v6, %v8103_v43 }
 0x5a4   : > { %v9562_v31 = vmax.f32 %v9530_v27, 0.0 }
 0x5a5   : > { %v9164_v62 = vpop.f32.mrf.mxu1 }
 0x5a6   : > { %v9207_v45 = vadd.f32 %v9164_v62, %v8781_v7  ;;  %v9465_v7 = vrot.slane %v9305_v16, 1  ;;  %v8069_v28 = vpop.f32.mrf.mxu3  ;;  %v9467_v62 = vrot.slane %v9306_v2, 1 }
 0x5a7   : > { %v7756_v0 = vpop.f32.mrf.mxu2 }
 0x5a8   : > { %v9338_v19 = vadd.f32 %v15126_v53, %v9207_v45  ;;  %v9466_v45 = vsel %vm9393_vm15, %v9464_v5, %v9465_v7  ;;  %v9468_v35 = vsel %vm9393_vm15, %v9465_v7, %v9467_v62 }
 0x5aa   : > { %v9531_v11 = vadd.f32 %v9458_v46, %v9338_v19  ;;  %v7789_v46 = vadd.f32 %v7754_v3, %v15112_v37  ;;  %v8751_v19 = vpop.f32.mrf.mxu0 }
 0x5ac   : > { %v9563_v38 = vmax.f32 %v9531_v11, 0.0  ;;  %v8104_v41 = vadd.f32 %v8069_v28, %v7789_v46 }
 0x5ad   : > { %v9167_v39 = vpop.f32.mrf.mxu1 }
 0x5ae   : > { %v11497_v1 = vpack.c.bf16 %v9563_v38, %v9562_v31  ;;  %v9208_v15 = vadd.f32 %v9167_v39, %v8782_v49  ;;  %v11521_v31 = vld [vmem:[%s11848_s6 + $0xc0] sm:$0xff]   ;;  %v7790_v38 = vadd.f32 %v7756_v0, %v15117_v55  ;;  %v8071_v34 = vpop.f32.mrf.mxu3  ;;  %v8786_v8 = vadd.f32 %v8751_v19, %v8104_v41  ;;  %s11401_s6 = sshll.u32 %s11797_s22, 7  ;;  %s9635_s22 = scalar_lea.sflag [#allocation5], %s232_s23 }
 0x5af   : > { %v11432_v37 = vunpack.c.l.bf16 %v11521_v31  ;;  %v11433_v49 = vunpack.c.h.bf16 %v11521_v31  ;;  %s9646_s10 = scalar_lea.hbm %s15431_s5, %s11401_s6 }
 0x5b0   : > { %11533 = vst [vmem:[%s15150_s26 + $0x60] sm:$0xff] %v11497_v1   ;;  %v9339_v63 = vadd.f32 %v15126_v53, %v9208_v15  ;;  %v9309_v15 = vunpack.c.l.bf16 %v11155_v29  ;;  %v8105_v36 = vadd.f32 %v8071_v34, %v7790_v38  ;;  %s9649_s12 = sshll.u32 %s9646_s10, 4  ;;  %s9650_s12 = int_to_ptr.hbm [resolvable:$true] %s9649_s12 }
 0x5b1   : > { %v9469_v18 = vrot.slane %v11432_v37, 1  ;;  %v9470_v20 = vrot.slane %v11433_v49, 1  ;;  %s11686_s13 = sshra.s32 %s9650_s12, 4  ;;  %s11687_s13 = int_to_ptr.hbm [resolvable:$true] %s11686_s13 }
 0x5b2   : > { %v9532_v44 = vadd.f32 %v9461_v25, %v9339_v63  ;;  %v8753_v32 = vpop.f32.mrf.mxu0  ;;  %v9472_v63 = vrot.slane %v9309_v15, 1  ;;  %s11688_s14 = scalar_lea.hbm %s11687_s13, 128  ;;  %p11693_p3 = scmp.lt.s32.totalorder %s11687_s13, %s15431_s5 }
 0x5b3   : > { %v8787_v55 = vadd.f32 %v8753_v32, %v8105_v36  ;;  %v9471_v33 = vsel %vm9393_vm15, %v9469_v18, %v9470_v20  ;;  %p11689_p0 = scmp.ne.s32.totalorder %s11687_s13, %s11688_s14  ;;  %p11694_p4 = scmp.lt.s32.totalorder %s11692_s17, %s11688_s14 }
 0x5b4   : > { %v9564_v59 = vmax.f32 %v9532_v44, 0.0  ;;  %v9473_v51 = vsel %vm9393_vm15, %v9470_v20, %v9472_v63 }
 0x5b5   : > { %v9169_v60 = vpop.f32.mrf.mxu1  ;;  %p11690_p1 = pnand %p11689_p0, %p11814_p5  ;;  %p11695_p7 = por %p11694_p4, %p11693_p3 }
 0x5b6   : > { %v9209_v13 = vadd.f32 %v9169_v60, %v8783_v12 }
 0x5b7   : > { %p11691_p2 = pneg %p11690_p1 }
 0x5b8   : > { %v9340_v50 = vadd.f32 %v15126_v53, %v9209_v13 }
 0x5b9   : > { %p11696_p8 = pnand %p11695_p7, %p11691_p2 }
 0x5ba   : > { %v9533_v21 = vadd.f32 %v9463_v58, %v9340_v50  ;;  %v11641_v58 = vld [vmem:[%s15430_s4] ss:$0 sm:$0xff] }
 0x5bc   : > { %v9565_v52 = vmax.f32 %v9533_v21, 0.0 }
 0x5bd   : > { %v9172_v26 = vpop.f32.mrf.mxu1 }
 0x5be   : > { %v11502_v54 = vpack.c.bf16 %v9565_v52, %v9564_v59  ;;  %v9210_v42 = vadd.f32 %v9172_v26, %v8784_v10 }
 0x5c0   : > { %11534 = vst [vmem:[%s15150_s26 + $0x68] sm:$0xff] %v11502_v54   ;;  %v9341_v61 = vadd.f32 %v15126_v53, %v9210_v42 }
 0x5c2   : > { %v9534_v40 = vadd.f32 %v9466_v45, %v9341_v61 }
 0x5c4   : > { %v9566_v22 = vmax.f32 %v9534_v40, 0.0 }
 0x5c5   : > { %v9174_v47 = vpop.f32.mrf.mxu1 }
 0x5c6   : > { %v9211_v27 = vadd.f32 %v9174_v47, %v8785_v24 }
 0x5c8   : > { %v9342_v11 = vadd.f32 %v15126_v53, %v9211_v27 }
 0x5ca   : > { %v9535_v17 = vadd.f32 %v9468_v35, %v9342_v11 }
 0x5cc   : > { %v9567_v39 = vmax.f32 %v9535_v17, 0.0 }
 0x5cd   : > { %v9177_v1 = vpop.f32.mrf.mxu1 }
 0x5ce   : > { %v11507_v14 = vpack.c.bf16 %v9567_v39, %v9566_v22  ;;  %v9212_v30 = vadd.f32 %v9177_v1, %v8786_v8 }
 0x5d0   : > { %11535 = vst [vmem:[%s15150_s26 + $0x70] sm:$0xff] %v11507_v14   ;;  %v9343_v12 = vadd.f32 %v15126_v53, %v9212_v30 }
 0x5d2   : > { %v9536_v13 = vadd.f32 %v9471_v33, %v9343_v12 }
 0x5d4   : > { %v9568_v50 = vmax.f32 %v9536_v13, 0.0 }
 0x5d5   : > { %v9179_v25 = vpop.f32.mrf.mxu1 }
 0x5d6   : > { %v9213_v60 = vadd.f32 %v9179_v25, %v8787_v55 }
 0x5d8   : > { %v9344_v44 = vadd.f32 %v11641_v58, %v9213_v60 }
 0x5da   : > { %v9537_v53 = vadd.f32 %v9473_v51, %v9344_v44 }
 0x5dc   : > { %v9569_v4 = vmax.f32 %v9537_v53, 0.0 }
 0x5de   : > { %v11512_v21 = vpack.c.bf16 %v9569_v4, %v9568_v50 }
 0x5e0   : > { %11536 = vst [vmem:[%s15150_s26 + $0x78] sm:$0xff] %v11512_v21  }
 0x5e1   : > { %11699 = shalt.err (!%p11696_p8)
}
 0x5e2   : > { %s11744_s23 = smov 64   ;;  %s11745_s26 = smov 4  }
 0x5e3   : > { %11558 = dma.vmem_to_hbm [thread:$0]  (%p11814_p5), %s9648_s11, 2048, %s9650_s12, %s9635_s22, %s11744_s23, %s11744_s23, %s11745_s26  }
 0x5e4 PF: > { %p11570_p9 = scmp.ge.s32.totalorder %s11738_s21, 2  ;;  %s9664_s30 = sand.u32 1, %s11726_s18  }
 0x5e5   : > { %s9665_s7 = scalar_lea.sflag [#allocation5], %s9664_s30 }
 0x5e6   : > { %p11565_p10 = pnand %p11570_p9, %p11818_p6 }
 0x5e8   : > { %p11566_p11 = pneg %p11565_p10 }
 0x5ea   : > { %11721 = dma.done.wait (%p11566_p11), %s9665_s7, 2048  }
 0x5eb   : > { %11723 = vsyncadd (%p11566_p11), %s9665_s7, 4294965248  ;;  %p16_p12 = scmp.ge.s32.totalorder %s11801_s24, 4   ;;  %s15640_s18 = smov %s11730_s19 }
 0x5ec   : > { %s15641_s19 = smov %s11734_s20  ;;  %s15642_s20 = smov %s11812_s27 }
 0x5ed   : > { %s15643_s21 = smov %s11801_s24  ;;  %18 = sbr.rel (!%p16_p12) target bundleno = 4 (0x4), region = 101 }
 0x5f2   :  { %9671 = vsyncpa [#allocation4], 1 }
 0x5f3   :  { %9673 = vsyncpa [#allocation4 + $0x1], 1 }
 0x5f4   :  { %9674 = vsyncpa [#allocation5], 1 }
 0x5f5   :  { %9676 = vsyncpa [#allocation5 + $0x1], 1 }

</bundles_post_ra>
